<compile_context>
chip_gen: v7x
topology: tpu7x:2x2x1
jax: 0.10.0
libtpu: 0.0.40
codegen_flags: <defaults>
</compile_context>

<pallas_src>
import functools

import numpy as np

import jax
import jax.numpy as jnp
from jax.experimental import pallas as pl
from jax.experimental.pallas import tpu as pltpu


# ----------------------------------------------------------------------------
# Constant 0/1 structure matrices (pooling phase selection, conv2 tap shifts)
# ----------------------------------------------------------------------------
def _pool_select_np(h, w):
    """sel[p, m, n] = 1 iff flat index m == ((2i+a)*w + (2j+b)), n = i*(w//2)+j."""
    oh, ow = h // 2, w // 2
    sel = np.zeros((4, h * w, oh * ow), np.float32)
    for p in range(4):
        a, b = p // 2, p % 2
        for i in range(oh):
            for j in range(ow):
                sel[p, (2 * i + a) * w + (2 * j + b), i * ow + j] = 1.0
    return sel


def _shift_select_np(h, w, k):
    """sh[t, p, m] = 1 iff p == (i+dh)*w + (j+dw) with m = i*(w-k+1)+j, t = dh*k+dw."""
    oh, ow = h - k + 1, w - k + 1
    sh = np.zeros((k * k, h * w, oh * ow), np.float32)
    for t in range(k * k):
        dh, dw = t // k, t % k
        for i in range(oh):
            for j in range(ow):
                sh[t, (i + dh) * w + (j + dw), i * ow + j] = 1.0
    return sh


_SEL1 = _pool_select_np(24, 24)        # (4, 576, 144)  pool after conv1
_SHIFT2 = _shift_select_np(12, 12, 5)  # (25, 144, 64)  conv2 taps on pooled1
_SEL2 = _pool_select_np(8, 8)          # (4, 64, 16)    pool after conv2


# ----------------------------------------------------------------------------
# Fused Pallas kernel: the entire LeNet forward for one image per grid step
# ----------------------------------------------------------------------------
def _lenet_kernel(p1_ref, w1_ref, b1_ref, sel1_ref, shift2_ref, w2_ref, b2_ref,
                  sel2_ref, wfc1_ref, bfc1_ref, wfc2_ref, bfc2_ref,
                  wout_ref, bout_ref, tfinal_ref, t_ref):
    dot = functools.partial(jnp.dot, preferred_element_type=jnp.float32)

    # ---- conv1 (5x5, 1->6): one MXU matmul over the im2col patches -----------
    patches = p1_ref[0]                                    # (25, 576)
    c1 = dot(w1_ref[...], patches) + b1_ref[...]           # (6, 576)

    # ---- relu + 2x2/2 max-pool: max of 4 phase selections (lane-dense) -------
    pooled1 = dot(c1, sel1_ref[0])                         # (6, 144)
    for p in range(1, 4):
        pooled1 = jnp.maximum(pooled1, dot(c1, sel1_ref[p]))
    pooled1 = jnp.maximum(pooled1, 0.0)                    # relu (commutes with max)

    # ---- conv2 (5x5, 6->12): per-tap lane shift (matmul) + channel contraction
    c2 = jnp.zeros((12, 64), jnp.float32)
    for tap in range(25):
        shifted = dot(pooled1, shift2_ref[tap])            # (6, 64)
        c2 = c2 + dot(w2_ref[tap], shifted)                # (12, 64)
    c2 = c2 + b2_ref[...]

    # ---- relu + 2x2/2 max-pool ------------------------------------------------
    pooled2 = dot(c2, sel2_ref[0])                         # (12, 16)
    for p in range(1, 4):
        pooled2 = jnp.maximum(pooled2, dot(c2, sel2_ref[p]))
    pooled2 = jnp.maximum(pooled2, 0.0)

    # ---- fc1: contract (C, HW) directly against W^T rows -> no explicit flatten
    y1 = bfc1_ref[...]                                     # (1, 120)
    for c in range(12):
        y1 = y1 + dot(pooled2[c:c + 1, :], wfc1_ref[c * 16:(c + 1) * 16, :])
    h1 = jnp.maximum(y1, 0.0)

    # ---- fc2 (returned as `t`) and out(relu(t)) -------------------------------
    t_val = dot(h1, wfc2_ref[...]) + bfc2_ref[...]                      # (1, 60)
    t_fin = dot(jnp.maximum(t_val, 0.0), wout_ref[...]) + bout_ref[...]  # (1, 10)

    tfinal_ref[0] = t_fin
    t_ref[0] = t_val


# ----------------------------------------------------------------------------
# Wrapper: input im2col (tiny, raw input only) + one pallas_call
# ----------------------------------------------------------------------------
def _im2col_conv1(x_nchw):
    """x: (N, 1, 28, 28) -> (N, 25, 576); tap order (kh, kw), spatial row-major."""
    n = x_nchw.shape[0]
    cols = []
    for dh in range(5):
        for dw in range(5):
            cols.append(
                x_nchw[:, 0, dh:dh + 24, dw:dw + 24].reshape(n, 1, 576))
    return jnp.concatenate(cols, axis=1).astype(jnp.float32)


def _map2(i):
    return (0, 0)


def _map3(i):
    return (0, 0, 0)


def cnn_forward(params, x_nchw):
    n = x_nchw.shape[0]

    # One-time parameter layout prep (tiny).
    p1 = _im2col_conv1(x_nchw)                                           # (N,25,576)
    w1m = params["w1"].reshape(6, 25).astype(jnp.float32)                # (6,25)
    b1c = params["b1"].reshape(6, 1).astype(jnp.float32)
    w2m = params["w2"].transpose(2, 3, 0, 1).reshape(25, 12, 6).astype(jnp.float32)
    b2c = params["b2"].reshape(12, 1).astype(jnp.float32)
    wfc1t = params["wfc1"].T.astype(jnp.float32)                         # (192,120)
    bfc1r = params["bfc1"].reshape(1, 120).astype(jnp.float32)
    wfc2t = params["wfc2"].T.astype(jnp.float32)                         # (120,60)
    bfc2r = params["bfc2"].reshape(1, 60).astype(jnp.float32)
    woutt = params["wout"].T.astype(jnp.float32)                         # (60,10)
    boutr = params["bout"].reshape(1, 10).astype(jnp.float32)

    sel1 = jnp.asarray(_SEL1)
    shift2 = jnp.asarray(_SHIFT2)
    sel2 = jnp.asarray(_SEL2)

    t_final, t = pl.pallas_call(
        _lenet_kernel,
        out_shape=(jax.ShapeDtypeStruct((n, 1, 10), jnp.float32),
                   jax.ShapeDtypeStruct((n, 1, 60), jnp.float32)),
        grid=(n,),
        in_specs=[
            pl.BlockSpec((1, 25, 576), lambda i: (i, 0, 0)),   # per-image patches
            pl.BlockSpec((6, 25), _map2),                      # conv1 weights
            pl.BlockSpec((6, 1), _map2),                       # conv1 bias
            pl.BlockSpec((4, 576, 144), _map3),                # pool1 selection
            pl.BlockSpec((25, 144, 64), _map3),                # conv2 tap shifts
            pl.BlockSpec((25, 12, 6), _map3),                  # conv2 weights (tap-major)
            pl.BlockSpec((12, 1), _map2),                      # conv2 bias
            pl.BlockSpec((4, 64, 16), _map3),                  # pool2 selection
            pl.BlockSpec((192, 120), _map2),                   # fc1 W^T
            pl.BlockSpec((1, 120), _map2),                     # fc1 b
            pl.BlockSpec((120, 60), _map2),                    # fc2 W^T
            pl.BlockSpec((1, 60), _map2),                      # fc2 b
            pl.BlockSpec((60, 10), _map2),                     # out W^T
            pl.BlockSpec((1, 10), _map2),                      # out b
        ],
        out_specs=(pl.BlockSpec((1, 1, 10), lambda i: (i, 0, 0)),
                   pl.BlockSpec((1, 1, 60), lambda i: (i, 0, 0))),
        compiler_params=pltpu.CompilerParams(
            dimension_semantics=("parallel",)),
    )(p1, w1m, b1c, sel1, shift2, w2m, b2c, sel2,
      wfc1t, bfc1r, wfc2t, bfc2r, woutt, boutr)

    return t_final.reshape(n, 10), t.reshape(n, 60)


# ----------------------------------------------------------------------------
# Parameters (deterministic, PyTorch-default-style uniform(-1/sqrt(fan_in), ..))
# ----------------------------------------------------------------------------
def _uniform(key, shape, fan_in):
    bound = 1.0 / jnp.sqrt(float(fan_in))
    return jax.random.uniform(key, shape, jnp.float32, minval=-bound, maxval=bound)


def init_params(key):
    ks = jax.random.split(key, 10)
    p = {}
    p["w1"] = _uniform(ks[0], (6, 1, 5, 5), 1 * 5 * 5)
    p["b1"] = _uniform(ks[1], (6,), 1 * 5 * 5)
    p["w2"] = _uniform(ks[2], (12, 6, 5, 5), 6 * 5 * 5)
    p["b2"] = _uniform(ks[3], (12,), 6 * 5 * 5)
    p["wfc1"] = _uniform(ks[4], (120, 192), 192)   # PyTorch Linear: (out, in)
    p["bfc1"] = _uniform(ks[5], (120,), 192)
    p["wfc2"] = _uniform(ks[6], (60, 120), 120)
    p["bfc2"] = _uniform(ks[7], (60,), 120)
    p["wout"] = _uniform(ks[8], (10, 60), 60)
    p["bout"] = _uniform(ks[9], (10,), 60)
    return p


if __name__ == "__main__":
    key = jax.random.PRNGKey(0)
    pkey, xkey = jax.random.split(key)
    params = init_params(pkey)
    # NCHW input, as PyTorch: batch=2, 1 channel, 28x28 (required by fc1 = 12*4*4)
    x = jax.random.normal(xkey, (2, 1, 28, 28), dtype=jnp.float32)

    t_final, t = jax.jit(cnn_forward)(params, x)
    jax.block_until_ready((t_final, t))

    assert t_final.shape == (2, 10) and t.shape == (2, 60)
    assert t_final.dtype == jnp.float32 and t.dtype == jnp.float32
    assert bool(jnp.all(jnp.isfinite(t_final))) and bool(jnp.all(jnp.isfinite(t)))
    print("KERNEL_OK")
</pallas_src>

<mosaic_0001>
module attributes {stable_mosaic.version = 11 : i64} {
  func.func @_lenet_kernel(%arg0: i32, %arg1: memref<1x25x576xf32, #tpu.memory_space<vmem>>, %arg2: memref<6x25xf32, #tpu.memory_space<vmem>>, %arg3: memref<6x1xf32, #tpu.memory_space<vmem>>, %arg4: memref<4x576x144xf32, #tpu.memory_space<vmem>>, %arg5: memref<25x144x64xf32, #tpu.memory_space<vmem>>, %arg6: memref<25x12x6xf32, #tpu.memory_space<vmem>>, %arg7: memref<12x1xf32, #tpu.memory_space<vmem>>, %arg8: memref<4x64x16xf32, #tpu.memory_space<vmem>>, %arg9: memref<192x120xf32, #tpu.memory_space<vmem>>, %arg10: memref<1x120xf32, #tpu.memory_space<vmem>>, %arg11: memref<120x60xf32, #tpu.memory_space<vmem>>, %arg12: memref<1x60xf32, #tpu.memory_space<vmem>>, %arg13: memref<60x10xf32, #tpu.memory_space<vmem>>, %arg14: memref<1x10xf32, #tpu.memory_space<vmem>>, %arg15: memref<1x1x10xf32, #tpu.memory_space<vmem>>, %arg16: memref<1x1x60xf32, #tpu.memory_space<vmem>>) attributes {dimension_semantics = [#tpu.dimension_semantics<parallel>], iteration_bounds = array<i64: 2>, scalar_prefetch = 0 : i64, scratch_operands = 0 : i64, tpu.core_type = #tpu.core_type<tc>, window_params = [{transform_indices = @transform_0, window_bounds = array<i64: 1, 25, 576>}, {pipeline_mode = #tpu.pipeline_mode<synchronous>, transform_indices = @transform_1, window_bounds = array<i64: 6, 25>}, {pipeline_mode = #tpu.pipeline_mode<synchronous>, transform_indices = @transform_2, window_bounds = array<i64: 6, 1>}, {pipeline_mode = #tpu.pipeline_mode<synchronous>, transform_indices = @transform_3, window_bounds = array<i64: 4, 576, 144>}, {pipeline_mode = #tpu.pipeline_mode<synchronous>, transform_indices = @transform_4, window_bounds = array<i64: 25, 144, 64>}, {pipeline_mode = #tpu.pipeline_mode<synchronous>, transform_indices = @transform_5, window_bounds = array<i64: 25, 12, 6>}, {pipeline_mode = #tpu.pipeline_mode<synchronous>, transform_indices = @transform_6, window_bounds = array<i64: 12, 1>}, {pipeline_mode = #tpu.pipeline_mode<synchronous>, transform_indices = @transform_7, window_bounds = array<i64: 4, 64, 16>}, {pipeline_mode = #tpu.pipeline_mode<synchronous>, transform_indices = @transform_8, window_bounds = array<i64: 192, 120>}, {pipeline_mode = #tpu.pipeline_mode<synchronous>, transform_indices = @transform_9, window_bounds = array<i64: 1, 120>}, {pipeline_mode = #tpu.pipeline_mode<synchronous>, transform_indices = @transform_10, window_bounds = array<i64: 120, 60>}, {pipeline_mode = #tpu.pipeline_mode<synchronous>, transform_indices = @transform_11, window_bounds = array<i64: 1, 60>}, {pipeline_mode = #tpu.pipeline_mode<synchronous>, transform_indices = @transform_12, window_bounds = array<i64: 60, 10>}, {pipeline_mode = #tpu.pipeline_mode<synchronous>, transform_indices = @transform_13, window_bounds = array<i64: 1, 10>}, {transform_indices = @transform_14, window_bounds = array<i64: 1, 1, 10>}, {transform_indices = @transform_15, window_bounds = array<i64: 1, 1, 60>}]} {
    %c0 = arith.constant 0 : index
    %c0_0 = arith.constant 0 : index
    %c0_1 = arith.constant 0 : index
    %0 = vector.load %arg1[%c0, %c0_0, %c0_1] : memref<1x25x576xf32, #tpu.memory_space<vmem>>, vector<1x25x576xf32>
    %1 = vector.shape_cast %0 : vector<1x25x576xf32> to vector<25x576xf32>
    %c0_2 = arith.constant 0 : index
    %c0_3 = arith.constant 0 : index
    %2 = vector.load %arg2[%c0_2, %c0_3] : memref<6x25xf32, #tpu.memory_space<vmem>>, vector<6x25xf32>
    %cst = arith.constant dense<0.000000e+00> : vector<6x576xf32>
    %3 = tpu.matmul %2, %1, %cst {dimension_numbers = #tpu.dot_dimension_numbers<[1], [0], [0], [1], [0, 0, 1, 1], [], []>} : vector<6x25xf32>, vector<25x576xf32>, vector<6x576xf32> -> vector<6x576xf32>
    %c0_4 = arith.constant 0 : index
    %c0_5 = arith.constant 0 : index
    %4 = vector.load %arg3[%c0_4, %c0_5] : memref<6x1xf32, #tpu.memory_space<vmem>>, vector<6x1xf32>
    %5 = vector.broadcast %4 : vector<6x1xf32> to vector<6x576xf32>
    %6 = arith.addf %3, %5 : vector<6x576xf32>
    %c0_6 = arith.constant 0 : index
    %c0_7 = arith.constant 0 : index
    %c0_8 = arith.constant 0 : index
    %7 = vector.load %arg4[%c0_6, %c0_7, %c0_8] : memref<4x576x144xf32, #tpu.memory_space<vmem>>, vector<1x576x144xf32>
    %8 = vector.shape_cast %7 : vector<1x576x144xf32> to vector<576x144xf32>
    %cst_9 = arith.constant dense<0.000000e+00> : vector<6x144xf32>
    %9 = tpu.matmul %6, %8, %cst_9 {dimension_numbers = #tpu.dot_dimension_numbers<[1], [0], [0], [1], [0, 0, 1, 1], [], []>} : vector<6x576xf32>, vector<576x144xf32>, vector<6x144xf32> -> vector<6x144xf32>
    %c1 = arith.constant 1 : index
    %c0_10 = arith.constant 0 : index
    %c0_11 = arith.constant 0 : index
    %10 = vector.load %arg4[%c1, %c0_10, %c0_11] : memref<4x576x144xf32, #tpu.memory_space<vmem>>, vector<1x576x144xf32>
    %11 = vector.shape_cast %10 : vector<1x576x144xf32> to vector<576x144xf32>
    %cst_12 = arith.constant dense<0.000000e+00> : vector<6x144xf32>
    %12 = tpu.matmul %6, %11, %cst_12 {dimension_numbers = #tpu.dot_dimension_numbers<[1], [0], [0], [1], [0, 0, 1, 1], [], []>} : vector<6x576xf32>, vector<576x144xf32>, vector<6x144xf32> -> vector<6x144xf32>
    %13 = arith.maximumf %9, %12 : vector<6x144xf32>
    %c2 = arith.constant 2 : index
    %c0_13 = arith.constant 0 : index
    %c0_14 = arith.constant 0 : index
    %14 = vector.load %arg4[%c2, %c0_13, %c0_14] : memref<4x576x144xf32, #tpu.memory_space<vmem>>, vector<1x576x144xf32>
    %15 = vector.shape_cast %14 : vector<1x576x144xf32> to vector<576x144xf32>
    %cst_15 = arith.constant dense<0.000000e+00> : vector<6x144xf32>
    %16 = tpu.matmul %6, %15, %cst_15 {dimension_numbers = #tpu.dot_dimension_numbers<[1], [0], [0], [1], [0, 0, 1, 1], [], []>} : vector<6x576xf32>, vector<576x144xf32>, vector<6x144xf32> -> vector<6x144xf32>
    %17 = arith.maximumf %13, %16 : vector<6x144xf32>
    %c3 = arith.constant 3 : index
    %c0_16 = arith.constant 0 : index
    %c0_17 = arith.constant 0 : index
    %18 = vector.load %arg4[%c3, %c0_16, %c0_17] : memref<4x576x144xf32, #tpu.memory_space<vmem>>, vector<1x576x144xf32>
    %19 = vector.shape_cast %18 : vector<1x576x144xf32> to vector<576x144xf32>
    %cst_18 = arith.constant dense<0.000000e+00> : vector<6x144xf32>
    %20 = tpu.matmul %6, %19, %cst_18 {dimension_numbers = #tpu.dot_dimension_numbers<[1], [0], [0], [1], [0, 0, 1, 1], [], []>} : vector<6x576xf32>, vector<576x144xf32>, vector<6x144xf32> -> vector<6x144xf32>
    %21 = arith.maximumf %17, %20 : vector<6x144xf32>
    %cst_19 = arith.constant 0.000000e+00 : f32
    %22 = vector.broadcast %cst_19 : f32 to vector<6x144xf32>
    %23 = arith.maximumf %21, %22 : vector<6x144xf32>
    %cst_20 = arith.constant 0.000000e+00 : f32
    %24 = vector.broadcast %cst_20 : f32 to vector<12x64xf32>
    %c0_21 = arith.constant 0 : index
    %c0_22 = arith.constant 0 : index
    %c0_23 = arith.constant 0 : index
    %25 = vector.load %arg5[%c0_21, %c0_22, %c0_23] : memref<25x144x64xf32, #tpu.memory_space<vmem>>, vector<1x144x64xf32>
    %26 = vector.shape_cast %25 : vector<1x144x64xf32> to vector<144x64xf32>
    %cst_24 = arith.constant dense<0.000000e+00> : vector<6x64xf32>
    %27 = tpu.matmul %23, %26, %cst_24 {dimension_numbers = #tpu.dot_dimension_numbers<[1], [0], [0], [1], [0, 0, 1, 1], [], []>} : vector<6x144xf32>, vector<144x64xf32>, vector<6x64xf32> -> vector<6x64xf32>
    %c0_25 = arith.constant 0 : index
    %c0_26 = arith.constant 0 : index
    %c0_27 = arith.constant 0 : index
    %28 = vector.load %arg6[%c0_25, %c0_26, %c0_27] : memref<25x12x6xf32, #tpu.memory_space<vmem>>, vector<1x12x6xf32>
    %29 = vector.shape_cast %28 : vector<1x12x6xf32> to vector<12x6xf32>
    %cst_28 = arith.constant dense<0.000000e+00> : vector<12x64xf32>
    %30 = tpu.matmul %29, %27, %cst_28 {dimension_numbers = #tpu.dot_dimension_numbers<[1], [0], [0], [1], [0, 0, 1, 1], [], []>} : vector<12x6xf32>, vector<6x64xf32>, vector<12x64xf32> -> vector<12x64xf32>
    %31 = arith.addf %24, %30 : vector<12x64xf32>
    %c1_29 = arith.constant 1 : index
    %c0_30 = arith.constant 0 : index
    %c0_31 = arith.constant 0 : index
    %32 = vector.load %arg5[%c1_29, %c0_30, %c0_31] : memref<25x144x64xf32, #tpu.memory_space<vmem>>, vector<1x144x64xf32>
    %33 = vector.shape_cast %32 : vector<1x144x64xf32> to vector<144x64xf32>
    %cst_32 = arith.constant dense<0.000000e+00> : vector<6x64xf32>
    %34 = tpu.matmul %23, %33, %cst_32 {dimension_numbers = #tpu.dot_dimension_numbers<[1], [0], [0], [1], [0, 0, 1, 1], [], []>} : vector<6x144xf32>, vector<144x64xf32>, vector<6x64xf32> -> vector<6x64xf32>
    %c1_33 = arith.constant 1 : index
    %c0_34 = arith.constant 0 : index
    %c0_35 = arith.constant 0 : index
    %35 = vector.load %arg6[%c1_33, %c0_34, %c0_35] : memref<25x12x6xf32, #tpu.memory_space<vmem>>, vector<1x12x6xf32>
    %36 = vector.shape_cast %35 : vector<1x12x6xf32> to vector<12x6xf32>
    %cst_36 = arith.constant dense<0.000000e+00> : vector<12x64xf32>
    %37 = tpu.matmul %36, %34, %cst_36 {dimension_numbers = #tpu.dot_dimension_numbers<[1], [0], [0], [1], [0, 0, 1, 1], [], []>} : vector<12x6xf32>, vector<6x64xf32>, vector<12x64xf32> -> vector<12x64xf32>
    %38 = arith.addf %31, %37 : vector<12x64xf32>
    %c2_37 = arith.constant 2 : index
    %c0_38 = arith.constant 0 : index
    %c0_39 = arith.constant 0 : index
    %39 = vector.load %arg5[%c2_37, %c0_38, %c0_39] : memref<25x144x64xf32, #tpu.memory_space<vmem>>, vector<1x144x64xf32>
    %40 = vector.shape_cast %39 : vector<1x144x64xf32> to vector<144x64xf32>
    %cst_40 = arith.constant dense<0.000000e+00> : vector<6x64xf32>
    %41 = tpu.matmul %23, %40, %cst_40 {dimension_numbers = #tpu.dot_dimension_numbers<[1], [0], [0], [1], [0, 0, 1, 1], [], []>} : vector<6x144xf32>, vector<144x64xf32>, vector<6x64xf32> -> vector<6x64xf32>
    %c2_41 = arith.constant 2 : index
    %c0_42 = arith.constant 0 : index
    %c0_43 = arith.constant 0 : index
    %42 = vector.load %arg6[%c2_41, %c0_42, %c0_43] : memref<25x12x6xf32, #tpu.memory_space<vmem>>, vector<1x12x6xf32>
    %43 = vector.shape_cast %42 : vector<1x12x6xf32> to vector<12x6xf32>
    %cst_44 = arith.constant dense<0.000000e+00> : vector<12x64xf32>
    %44 = tpu.matmul %43, %41, %cst_44 {dimension_numbers = #tpu.dot_dimension_numbers<[1], [0], [0], [1], [0, 0, 1, 1], [], []>} : vector<12x6xf32>, vector<6x64xf32>, vector<12x64xf32> -> vector<12x64xf32>
    %45 = arith.addf %38, %44 : vector<12x64xf32>
    %c3_45 = arith.constant 3 : index
    %c0_46 = arith.constant 0 : index
    %c0_47 = arith.constant 0 : index
    %46 = vector.load %arg5[%c3_45, %c0_46, %c0_47] : memref<25x144x64xf32, #tpu.memory_space<vmem>>, vector<1x144x64xf32>
    %47 = vector.shape_cast %46 : vector<1x144x64xf32> to vector<144x64xf32>
    %cst_48 = arith.constant dense<0.000000e+00> : vector<6x64xf32>
    %48 = tpu.matmul %23, %47, %cst_48 {dimension_numbers = #tpu.dot_dimension_numbers<[1], [0], [0], [1], [0, 0, 1, 1], [], []>} : vector<6x144xf32>, vector<144x64xf32>, vector<6x64xf32> -> vector<6x64xf32>
    %c3_49 = arith.constant 3 : index
    %c0_50 = arith.constant 0 : index
    %c0_51 = arith.constant 0 : index
    %49 = vector.load %arg6[%c3_49, %c0_50, %c0_51] : memref<25x12x6xf32, #tpu.memory_space<vmem>>, vector<1x12x6xf32>
    %50 = vector.shape_cast %49 : vector<1x12x6xf32> to vector<12x6xf32>
    %cst_52 = arith.constant dense<0.000000e+00> : vector<12x64xf32>
    %51 = tpu.matmul %50, %48, %cst_52 {dimension_numbers = #tpu.dot_dimension_numbers<[1], [0], [0], [1], [0, 0, 1, 1], [], []>} : vector<12x6xf32>, vector<6x64xf32>, vector<12x64xf32> -> vector<12x64xf32>
    %52 = arith.addf %45, %51 : vector<12x64xf32>
    %c4 = arith.constant 4 : index
    %c0_53 = arith.constant 0 : index
    %c0_54 = arith.constant 0 : index
    %53 = vector.load %arg5[%c4, %c0_53, %c0_54] : memref<25x144x64xf32, #tpu.memory_space<vmem>>, vector<1x144x64xf32>
    %54 = vector.shape_cast %53 : vector<1x144x64xf32> to vector<144x64xf32>
    %cst_55 = arith.constant dense<0.000000e+00> : vector<6x64xf32>
    %55 = tpu.matmul %23, %54, %cst_55 {dimension_numbers = #tpu.dot_dimension_numbers<[1], [0], [0], [1], [0, 0, 1, 1], [], []>} : vector<6x144xf32>, vector<144x64xf32>, vector<6x64xf32> -> vector<6x64xf32>
    %c4_56 = arith.constant 4 : index
    %c0_57 = arith.constant 0 : index
    %c0_58 = arith.constant 0 : index
    %56 = vector.load %arg6[%c4_56, %c0_57, %c0_58] : memref<25x12x6xf32, #tpu.memory_space<vmem>>, vector<1x12x6xf32>
    %57 = vector.shape_cast %56 : vector<1x12x6xf32> to vector<12x6xf32>
    %cst_59 = arith.constant dense<0.000000e+00> : vector<12x64xf32>
    %58 = tpu.matmul %57, %55, %cst_59 {dimension_numbers = #tpu.dot_dimension_numbers<[1], [0], [0], [1], [0, 0, 1, 1], [], []>} : vector<12x6xf32>, vector<6x64xf32>, vector<12x64xf32> -> vector<12x64xf32>
    %59 = arith.addf %52, %58 : vector<12x64xf32>
    %c5 = arith.constant 5 : index
    %c0_60 = arith.constant 0 : index
    %c0_61 = arith.constant 0 : index
    %60 = vector.load %arg5[%c5, %c0_60, %c0_61] : memref<25x144x64xf32, #tpu.memory_space<vmem>>, vector<1x144x64xf32>
    %61 = vector.shape_cast %60 : vector<1x144x64xf32> to vector<144x64xf32>
    %cst_62 = arith.constant dense<0.000000e+00> : vector<6x64xf32>
    %62 = tpu.matmul %23, %61, %cst_62 {dimension_numbers = #tpu.dot_dimension_numbers<[1], [0], [0], [1], [0, 0, 1, 1], [], []>} : vector<6x144xf32>, vector<144x64xf32>, vector<6x64xf32> -> vector<6x64xf32>
    %c5_63 = arith.constant 5 : index
    %c0_64 = arith.constant 0 : index
    %c0_65 = arith.constant 0 : index
    %63 = vector.load %arg6[%c5_63, %c0_64, %c0_65] : memref<25x12x6xf32, #tpu.memory_space<vmem>>, vector<1x12x6xf32>
    %64 = vector.shape_cast %63 : vector<1x12x6xf32> to vector<12x6xf32>
    %cst_66 = arith.constant dense<0.000000e+00> : vector<12x64xf32>
    %65 = tpu.matmul %64, %62, %cst_66 {dimension_numbers = #tpu.dot_dimension_numbers<[1], [0], [0], [1], [0, 0, 1, 1], [], []>} : vector<12x6xf32>, vector<6x64xf32>, vector<12x64xf32> -> vector<12x64xf32>
    %66 = arith.addf %59, %65 : vector<12x64xf32>
    %c6 = arith.constant 6 : index
    %c0_67 = arith.constant 0 : index
    %c0_68 = arith.constant 0 : index
    %67 = vector.load %arg5[%c6, %c0_67, %c0_68] : memref<25x144x64xf32, #tpu.memory_space<vmem>>, vector<1x144x64xf32>
    %68 = vector.shape_cast %67 : vector<1x144x64xf32> to vector<144x64xf32>
    %cst_69 = arith.constant dense<0.000000e+00> : vector<6x64xf32>
    %69 = tpu.matmul %23, %68, %cst_69 {dimension_numbers = #tpu.dot_dimension_numbers<[1], [0], [0], [1], [0, 0, 1, 1], [], []>} : vector<6x144xf32>, vector<144x64xf32>, vector<6x64xf32> -> vector<6x64xf32>
    %c6_70 = arith.constant 6 : index
    %c0_71 = arith.constant 0 : index
    %c0_72 = arith.constant 0 : index
    %70 = vector.load %arg6[%c6_70, %c0_71, %c0_72] : memref<25x12x6xf32, #tpu.memory_space<vmem>>, vector<1x12x6xf32>
    %71 = vector.shape_cast %70 : vector<1x12x6xf32> to vector<12x6xf32>
    %cst_73 = arith.constant dense<0.000000e+00> : vector<12x64xf32>
    %72 = tpu.matmul %71, %69, %cst_73 {dimension_numbers = #tpu.dot_dimension_numbers<[1], [0], [0], [1], [0, 0, 1, 1], [], []>} : vector<12x6xf32>, vector<6x64xf32>, vector<12x64xf32> -> vector<12x64xf32>
    %73 = arith.addf %66, %72 : vector<12x64xf32>
    %c7 = arith.constant 7 : index
    %c0_74 = arith.constant 0 : index
    %c0_75 = arith.constant 0 : index
    %74 = vector.load %arg5[%c7, %c0_74, %c0_75] : memref<25x144x64xf32, #tpu.memory_space<vmem>>, vector<1x144x64xf32>
    %75 = vector.shape_cast %74 : vector<1x144x64xf32> to vector<144x64xf32>
    %cst_76 = arith.constant dense<0.000000e+00> : vector<6x64xf32>
    %76 = tpu.matmul %23, %75, %cst_76 {dimension_numbers = #tpu.dot_dimension_numbers<[1], [0], [0], [1], [0, 0, 1, 1], [], []>} : vector<6x144xf32>, vector<144x64xf32>, vector<6x64xf32> -> vector<6x64xf32>
    %c7_77 = arith.constant 7 : index
    %c0_78 = arith.constant 0 : index
    %c0_79 = arith.constant 0 : index
    %77 = vector.load %arg6[%c7_77, %c0_78, %c0_79] : memref<25x12x6xf32, #tpu.memory_space<vmem>>, vector<1x12x6xf32>
    %78 = vector.shape_cast %77 : vector<1x12x6xf32> to vector<12x6xf32>
    %cst_80 = arith.constant dense<0.000000e+00> : vector<12x64xf32>
    %79 = tpu.matmul %78, %76, %cst_80 {dimension_numbers = #tpu.dot_dimension_numbers<[1], [0], [0], [1], [0, 0, 1, 1], [], []>} : vector<12x6xf32>, vector<6x64xf32>, vector<12x64xf32> -> vector<12x64xf32>
    %80 = arith.addf %73, %79 : vector<12x64xf32>
    %c8 = arith.constant 8 : index
    %c0_81 = arith.constant 0 : index
    %c0_82 = arith.constant 0 : index
    %81 = vector.load %arg5[%c8, %c0_81, %c0_82] : memref<25x144x64xf32, #tpu.memory_space<vmem>>, vector<1x144x64xf32>
    %82 = vector.shape_cast %81 : vector<1x144x64xf32> to vector<144x64xf32>
    %cst_83 = arith.constant dense<0.000000e+00> : vector<6x64xf32>
    %83 = tpu.matmul %23, %82, %cst_83 {dimension_numbers = #tpu.dot_dimension_numbers<[1], [0], [0], [1], [0, 0, 1, 1], [], []>} : vector<6x144xf32>, vector<144x64xf32>, vector<6x64xf32> -> vector<6x64xf32>
    %c8_84 = arith.constant 8 : index
    %c0_85 = arith.constant 0 : index
    %c0_86 = arith.constant 0 : index
    %84 = vector.load %arg6[%c8_84, %c0_85, %c0_86] : memref<25x12x6xf32, #tpu.memory_space<vmem>>, vector<1x12x6xf32>
    %85 = vector.shape_cast %84 : vector<1x12x6xf32> to vector<12x6xf32>
    %cst_87 = arith.constant dense<0.000000e+00> : vector<12x64xf32>
    %86 = tpu.matmul %85, %83, %cst_87 {dimension_numbers = #tpu.dot_dimension_numbers<[1], [0], [0], [1], [0, 0, 1, 1], [], []>} : vector<12x6xf32>, vector<6x64xf32>, vector<12x64xf32> -> vector<12x64xf32>
    %87 = arith.addf %80, %86 : vector<12x64xf32>
    %c9 = arith.constant 9 : index
    %c0_88 = arith.constant 0 : index
    %c0_89 = arith.constant 0 : index
    %88 = vector.load %arg5[%c9, %c0_88, %c0_89] : memref<25x144x64xf32, #tpu.memory_space<vmem>>, vector<1x144x64xf32>
    %89 = vector.shape_cast %88 : vector<1x144x64xf32> to vector<144x64xf32>
    %cst_90 = arith.constant dense<0.000000e+00> : vector<6x64xf32>
    %90 = tpu.matmul %23, %89, %cst_90 {dimension_numbers = #tpu.dot_dimension_numbers<[1], [0], [0], [1], [0, 0, 1, 1], [], []>} : vector<6x144xf32>, vector<144x64xf32>, vector<6x64xf32> -> vector<6x64xf32>
    %c9_91 = arith.constant 9 : index
    %c0_92 = arith.constant 0 : index
    %c0_93 = arith.constant 0 : index
    %91 = vector.load %arg6[%c9_91, %c0_92, %c0_93] : memref<25x12x6xf32, #tpu.memory_space<vmem>>, vector<1x12x6xf32>
    %92 = vector.shape_cast %91 : vector<1x12x6xf32> to vector<12x6xf32>
    %cst_94 = arith.constant dense<0.000000e+00> : vector<12x64xf32>
    %93 = tpu.matmul %92, %90, %cst_94 {dimension_numbers = #tpu.dot_dimension_numbers<[1], [0], [0], [1], [0, 0, 1, 1], [], []>} : vector<12x6xf32>, vector<6x64xf32>, vector<12x64xf32> -> vector<12x64xf32>
    %94 = arith.addf %87, %93 : vector<12x64xf32>
    %c10 = arith.constant 10 : index
    %c0_95 = arith.constant 0 : index
    %c0_96 = arith.constant 0 : index
    %95 = vector.load %arg5[%c10, %c0_95, %c0_96] : memref<25x144x64xf32, #tpu.memory_space<vmem>>, vector<1x144x64xf32>
    %96 = vector.shape_cast %95 : vector<1x144x64xf32> to vector<144x64xf32>
    %cst_97 = arith.constant dense<0.000000e+00> : vector<6x64xf32>
    %97 = tpu.matmul %23, %96, %cst_97 {dimension_numbers = #tpu.dot_dimension_numbers<[1], [0], [0], [1], [0, 0, 1, 1], [], []>} : vector<6x144xf32>, vector<144x64xf32>, vector<6x64xf32> -> vector<6x64xf32>
    %c10_98 = arith.constant 10 : index
    %c0_99 = arith.constant 0 : index
    %c0_100 = arith.constant 0 : index
    %98 = vector.load %arg6[%c10_98, %c0_99, %c0_100] : memref<25x12x6xf32, #tpu.memory_space<vmem>>, vector<1x12x6xf32>
    %99 = vector.shape_cast %98 : vector<1x12x6xf32> to vector<12x6xf32>
    %cst_101 = arith.constant dense<0.000000e+00> : vector<12x64xf32>
    %100 = tpu.matmul %99, %97, %cst_101 {dimension_numbers = #tpu.dot_dimension_numbers<[1], [0], [0], [1], [0, 0, 1, 1], [], []>} : vector<12x6xf32>, vector<6x64xf32>, vector<12x64xf32> -> vector<12x64xf32>
    %101 = arith.addf %94, %100 : vector<12x64xf32>
    %c11 = arith.constant 11 : index
    %c0_102 = arith.constant 0 : index
    %c0_103 = arith.constant 0 : index
    %102 = vector.load %arg5[%c11, %c0_102, %c0_103] : memref<25x144x64xf32, #tpu.memory_space<vmem>>, vector<1x144x64xf32>
    %103 = vector.shape_cast %102 : vector<1x144x64xf32> to vector<144x64xf32>
    %cst_104 = arith.constant dense<0.000000e+00> : vector<6x64xf32>
    %104 = tpu.matmul %23, %103, %cst_104 {dimension_numbers = #tpu.dot_dimension_numbers<[1], [0], [0], [1], [0, 0, 1, 1], [], []>} : vector<6x144xf32>, vector<144x64xf32>, vector<6x64xf32> -> vector<6x64xf32>
    %c11_105 = arith.constant 11 : index
    %c0_106 = arith.constant 0 : index
    %c0_107 = arith.constant 0 : index
    %105 = vector.load %arg6[%c11_105, %c0_106, %c0_107] : memref<25x12x6xf32, #tpu.memory_space<vmem>>, vector<1x12x6xf32>
    %106 = vector.shape_cast %105 : vector<1x12x6xf32> to vector<12x6xf32>
    %cst_108 = arith.constant dense<0.000000e+00> : vector<12x64xf32>
    %107 = tpu.matmul %106, %104, %cst_108 {dimension_numbers = #tpu.dot_dimension_numbers<[1], [0], [0], [1], [0, 0, 1, 1], [], []>} : vector<12x6xf32>, vector<6x64xf32>, vector<12x64xf32> -> vector<12x64xf32>
    %108 = arith.addf %101, %107 : vector<12x64xf32>
    %c12 = arith.constant 12 : index
    %c0_109 = arith.constant 0 : index
    %c0_110 = arith.constant 0 : index
    %109 = vector.load %arg5[%c12, %c0_109, %c0_110] : memref<25x144x64xf32, #tpu.memory_space<vmem>>, vector<1x144x64xf32>
    %110 = vector.shape_cast %109 : vector<1x144x64xf32> to vector<144x64xf32>
    %cst_111 = arith.constant dense<0.000000e+00> : vector<6x64xf32>
    %111 = tpu.matmul %23, %110, %cst_111 {dimension_numbers = #tpu.dot_dimension_numbers<[1], [0], [0], [1], [0, 0, 1, 1], [], []>} : vector<6x144xf32>, vector<144x64xf32>, vector<6x64xf32> -> vector<6x64xf32>
    %c12_112 = arith.constant 12 : index
    %c0_113 = arith.constant 0 : index
    %c0_114 = arith.constant 0 : index
    %112 = vector.load %arg6[%c12_112, %c0_113, %c0_114] : memref<25x12x6xf32, #tpu.memory_space<vmem>>, vector<1x12x6xf32>
    %113 = vector.shape_cast %112 : vector<1x12x6xf32> to vector<12x6xf32>
    %cst_115 = arith.constant dense<0.000000e+00> : vector<12x64xf32>
    %114 = tpu.matmul %113, %111, %cst_115 {dimension_numbers = #tpu.dot_dimension_numbers<[1], [0], [0], [1], [0, 0, 1, 1], [], []>} : vector<12x6xf32>, vector<6x64xf32>, vector<12x64xf32> -> vector<12x64xf32>
    %115 = arith.addf %108, %114 : vector<12x64xf32>
    %c13 = arith.constant 13 : index
    %c0_116 = arith.constant 0 : index
    %c0_117 = arith.constant 0 : index
    %116 = vector.load %arg5[%c13, %c0_116, %c0_117] : memref<25x144x64xf32, #tpu.memory_space<vmem>>, vector<1x144x64xf32>
    %117 = vector.shape_cast %116 : vector<1x144x64xf32> to vector<144x64xf32>
    %cst_118 = arith.constant dense<0.000000e+00> : vector<6x64xf32>
    %118 = tpu.matmul %23, %117, %cst_118 {dimension_numbers = #tpu.dot_dimension_numbers<[1], [0], [0], [1], [0, 0, 1, 1], [], []>} : vector<6x144xf32>, vector<144x64xf32>, vector<6x64xf32> -> vector<6x64xf32>
    %c13_119 = arith.constant 13 : index
    %c0_120 = arith.constant 0 : index
    %c0_121 = arith.constant 0 : index
    %119 = vector.load %arg6[%c13_119, %c0_120, %c0_121] : memref<25x12x6xf32, #tpu.memory_space<vmem>>, vector<1x12x6xf32>
    %120 = vector.shape_cast %119 : vector<1x12x6xf32> to vector<12x6xf32>
    %cst_122 = arith.constant dense<0.000000e+00> : vector<12x64xf32>
    %121 = tpu.matmul %120, %118, %cst_122 {dimension_numbers = #tpu.dot_dimension_numbers<[1], [0], [0], [1], [0, 0, 1, 1], [], []>} : vector<12x6xf32>, vector<6x64xf32>, vector<12x64xf32> -> vector<12x64xf32>
    %122 = arith.addf %115, %121 : vector<12x64xf32>
    %c14 = arith.constant 14 : index
    %c0_123 = arith.constant 0 : index
    %c0_124 = arith.constant 0 : index
    %123 = vector.load %arg5[%c14, %c0_123, %c0_124] : memref<25x144x64xf32, #tpu.memory_space<vmem>>, vector<1x144x64xf32>
    %124 = vector.shape_cast %123 : vector<1x144x64xf32> to vector<144x64xf32>
    %cst_125 = arith.constant dense<0.000000e+00> : vector<6x64xf32>
    %125 = tpu.matmul %23, %124, %cst_125 {dimension_numbers = #tpu.dot_dimension_numbers<[1], [0], [0], [1], [0, 0, 1, 1], [], []>} : vector<6x144xf32>, vector<144x64xf32>, vector<6x64xf32> -> vector<6x64xf32>
    %c14_126 = arith.constant 14 : index
    %c0_127 = arith.constant 0 : index
    %c0_128 = arith.constant 0 : index
    %126 = vector.load %arg6[%c14_126, %c0_127, %c0_128] : memref<25x12x6xf32, #tpu.memory_space<vmem>>, vector<1x12x6xf32>
    %127 = vector.shape_cast %126 : vector<1x12x6xf32> to vector<12x6xf32>
    %cst_129 = arith.constant dense<0.000000e+00> : vector<12x64xf32>
    %128 = tpu.matmul %127, %125, %cst_129 {dimension_numbers = #tpu.dot_dimension_numbers<[1], [0], [0], [1], [0, 0, 1, 1], [], []>} : vector<12x6xf32>, vector<6x64xf32>, vector<12x64xf32> -> vector<12x64xf32>
    %129 = arith.addf %122, %128 : vector<12x64xf32>
    %c15 = arith.constant 15 : index
    %c0_130 = arith.constant 0 : index
    %c0_131 = arith.constant 0 : index
    %130 = vector.load %arg5[%c15, %c0_130, %c0_131] : memref<25x144x64xf32, #tpu.memory_space<vmem>>, vector<1x144x64xf32>
    %131 = vector.shape_cast %130 : vector<1x144x64xf32> to vector<144x64xf32>
    %cst_132 = arith.constant dense<0.000000e+00> : vector<6x64xf32>
    %132 = tpu.matmul %23, %131, %cst_132 {dimension_numbers = #tpu.dot_dimension_numbers<[1], [0], [0], [1], [0, 0, 1, 1], [], []>} : vector<6x144xf32>, vector<144x64xf32>, vector<6x64xf32> -> vector<6x64xf32>
    %c15_133 = arith.constant 15 : index
    %c0_134 = arith.constant 0 : index
    %c0_135 = arith.constant 0 : index
    %133 = vector.load %arg6[%c15_133, %c0_134, %c0_135] : memref<25x12x6xf32, #tpu.memory_space<vmem>>, vector<1x12x6xf32>
    %134 = vector.shape_cast %133 : vector<1x12x6xf32> to vector<12x6xf32>
    %cst_136 = arith.constant dense<0.000000e+00> : vector<12x64xf32>
    %135 = tpu.matmul %134, %132, %cst_136 {dimension_numbers = #tpu.dot_dimension_numbers<[1], [0], [0], [1], [0, 0, 1, 1], [], []>} : vector<12x6xf32>, vector<6x64xf32>, vector<12x64xf32> -> vector<12x64xf32>
    %136 = arith.addf %129, %135 : vector<12x64xf32>
    %c16 = arith.constant 16 : index
    %c0_137 = arith.constant 0 : index
    %c0_138 = arith.constant 0 : index
    %137 = vector.load %arg5[%c16, %c0_137, %c0_138] : memref<25x144x64xf32, #tpu.memory_space<vmem>>, vector<1x144x64xf32>
    %138 = vector.shape_cast %137 : vector<1x144x64xf32> to vector<144x64xf32>
    %cst_139 = arith.constant dense<0.000000e+00> : vector<6x64xf32>
    %139 = tpu.matmul %23, %138, %cst_139 {dimension_numbers = #tpu.dot_dimension_numbers<[1], [0], [0], [1], [0, 0, 1, 1], [], []>} : vector<6x144xf32>, vector<144x64xf32>, vector<6x64xf32> -> vector<6x64xf32>
    %c16_140 = arith.constant 16 : index
    %c0_141 = arith.constant 0 : index
    %c0_142 = arith.constant 0 : index
    %140 = vector.load %arg6[%c16_140, %c0_141, %c0_142] : memref<25x12x6xf32, #tpu.memory_space<vmem>>, vector<1x12x6xf32>
    %141 = vector.shape_cast %140 : vector<1x12x6xf32> to vector<12x6xf32>
    %cst_143 = arith.constant dense<0.000000e+00> : vector<12x64xf32>
    %142 = tpu.matmul %141, %139, %cst_143 {dimension_numbers = #tpu.dot_dimension_numbers<[1], [0], [0], [1], [0, 0, 1, 1], [], []>} : vector<12x6xf32>, vector<6x64xf32>, vector<12x64xf32> -> vector<12x64xf32>
    %143 = arith.addf %136, %142 : vector<12x64xf32>
    %c17 = arith.constant 17 : index
    %c0_144 = arith.constant 0 : index
    %c0_145 = arith.constant 0 : index
    %144 = vector.load %arg5[%c17, %c0_144, %c0_145] : memref<25x144x64xf32, #tpu.memory_space<vmem>>, vector<1x144x64xf32>
    %145 = vector.shape_cast %144 : vector<1x144x64xf32> to vector<144x64xf32>
    %cst_146 = arith.constant dense<0.000000e+00> : vector<6x64xf32>
    %146 = tpu.matmul %23, %145, %cst_146 {dimension_numbers = #tpu.dot_dimension_numbers<[1], [0], [0], [1], [0, 0, 1, 1], [], []>} : vector<6x144xf32>, vector<144x64xf32>, vector<6x64xf32> -> vector<6x64xf32>
    %c17_147 = arith.constant 17 : index
    %c0_148 = arith.constant 0 : index
    %c0_149 = arith.constant 0 : index
    %147 = vector.load %arg6[%c17_147, %c0_148, %c0_149] : memref<25x12x6xf32, #tpu.memory_space<vmem>>, vector<1x12x6xf32>
    %148 = vector.shape_cast %147 : vector<1x12x6xf32> to vector<12x6xf32>
    %cst_150 = arith.constant dense<0.000000e+00> : vector<12x64xf32>
    %149 = tpu.matmul %148, %146, %cst_150 {dimension_numbers = #tpu.dot_dimension_numbers<[1], [0], [0], [1], [0, 0, 1, 1], [], []>} : vector<12x6xf32>, vector<6x64xf32>, vector<12x64xf32> -> vector<12x64xf32>
    %150 = arith.addf %143, %149 : vector<12x64xf32>
    %c18 = arith.constant 18 : index
    %c0_151 = arith.constant 0 : index
    %c0_152 = arith.constant 0 : index
    %151 = vector.load %arg5[%c18, %c0_151, %c0_152] : memref<25x144x64xf32, #tpu.memory_space<vmem>>, vector<1x144x64xf32>
    %152 = vector.shape_cast %151 : vector<1x144x64xf32> to vector<144x64xf32>
    %cst_153 = arith.constant dense<0.000000e+00> : vector<6x64xf32>
    %153 = tpu.matmul %23, %152, %cst_153 {dimension_numbers = #tpu.dot_dimension_numbers<[1], [0], [0], [1], [0, 0, 1, 1], [], []>} : vector<6x144xf32>, vector<144x64xf32>, vector<6x64xf32> -> vector<6x64xf32>
    %c18_154 = arith.constant 18 : index
    %c0_155 = arith.constant 0 : index
    %c0_156 = arith.constant 0 : index
    %154 = vector.load %arg6[%c18_154, %c0_155, %c0_156] : memref<25x12x6xf32, #tpu.memory_space<vmem>>, vector<1x12x6xf32>
    %155 = vector.shape_cast %154 : vector<1x12x6xf32> to vector<12x6xf32>
    %cst_157 = arith.constant dense<0.000000e+00> : vector<12x64xf32>
    %156 = tpu.matmul %155, %153, %cst_157 {dimension_numbers = #tpu.dot_dimension_numbers<[1], [0], [0], [1], [0, 0, 1, 1], [], []>} : vector<12x6xf32>, vector<6x64xf32>, vector<12x64xf32> -> vector<12x64xf32>
    %157 = arith.addf %150, %156 : vector<12x64xf32>
    %c19 = arith.constant 19 : index
    %c0_158 = arith.constant 0 : index
    %c0_159 = arith.constant 0 : index
    %158 = vector.load %arg5[%c19, %c0_158, %c0_159] : memref<25x144x64xf32, #tpu.memory_space<vmem>>, vector<1x144x64xf32>
    %159 = vector.shape_cast %158 : vector<1x144x64xf32> to vector<144x64xf32>
    %cst_160 = arith.constant dense<0.000000e+00> : vector<6x64xf32>
    %160 = tpu.matmul %23, %159, %cst_160 {dimension_numbers = #tpu.dot_dimension_numbers<[1], [0], [0], [1], [0, 0, 1, 1], [], []>} : vector<6x144xf32>, vector<144x64xf32>, vector<6x64xf32> -> vector<6x64xf32>
    %c19_161 = arith.constant 19 : index
    %c0_162 = arith.constant 0 : index
    %c0_163 = arith.constant 0 : index
    %161 = vector.load %arg6[%c19_161, %c0_162, %c0_163] : memref<25x12x6xf32, #tpu.memory_space<vmem>>, vector<1x12x6xf32>
    %162 = vector.shape_cast %161 : vector<1x12x6xf32> to vector<12x6xf32>
    %cst_164 = arith.constant dense<0.000000e+00> : vector<12x64xf32>
    %163 = tpu.matmul %162, %160, %cst_164 {dimension_numbers = #tpu.dot_dimension_numbers<[1], [0], [0], [1], [0, 0, 1, 1], [], []>} : vector<12x6xf32>, vector<6x64xf32>, vector<12x64xf32> -> vector<12x64xf32>
    %164 = arith.addf %157, %163 : vector<12x64xf32>
    %c20 = arith.constant 20 : index
    %c0_165 = arith.constant 0 : index
    %c0_166 = arith.constant 0 : index
    %165 = vector.load %arg5[%c20, %c0_165, %c0_166] : memref<25x144x64xf32, #tpu.memory_space<vmem>>, vector<1x144x64xf32>
    %166 = vector.shape_cast %165 : vector<1x144x64xf32> to vector<144x64xf32>
    %cst_167 = arith.constant dense<0.000000e+00> : vector<6x64xf32>
    %167 = tpu.matmul %23, %166, %cst_167 {dimension_numbers = #tpu.dot_dimension_numbers<[1], [0], [0], [1], [0, 0, 1, 1], [], []>} : vector<6x144xf32>, vector<144x64xf32>, vector<6x64xf32> -> vector<6x64xf32>
    %c20_168 = arith.constant 20 : index
    %c0_169 = arith.constant 0 : index
    %c0_170 = arith.constant 0 : index
    %168 = vector.load %arg6[%c20_168, %c0_169, %c0_170] : memref<25x12x6xf32, #tpu.memory_space<vmem>>, vector<1x12x6xf32>
    %169 = vector.shape_cast %168 : vector<1x12x6xf32> to vector<12x6xf32>
    %cst_171 = arith.constant dense<0.000000e+00> : vector<12x64xf32>
    %170 = tpu.matmul %169, %167, %cst_171 {dimension_numbers = #tpu.dot_dimension_numbers<[1], [0], [0], [1], [0, 0, 1, 1], [], []>} : vector<12x6xf32>, vector<6x64xf32>, vector<12x64xf32> -> vector<12x64xf32>
    %171 = arith.addf %164, %170 : vector<12x64xf32>
    %c21 = arith.constant 21 : index
    %c0_172 = arith.constant 0 : index
    %c0_173 = arith.constant 0 : index
    %172 = vector.load %arg5[%c21, %c0_172, %c0_173] : memref<25x144x64xf32, #tpu.memory_space<vmem>>, vector<1x144x64xf32>
    %173 = vector.shape_cast %172 : vector<1x144x64xf32> to vector<144x64xf32>
    %cst_174 = arith.constant dense<0.000000e+00> : vector<6x64xf32>
    %174 = tpu.matmul %23, %173, %cst_174 {dimension_numbers = #tpu.dot_dimension_numbers<[1], [0], [0], [1], [0, 0, 1, 1], [], []>} : vector<6x144xf32>, vector<144x64xf32>, vector<6x64xf32> -> vector<6x64xf32>
    %c21_175 = arith.constant 21 : index
    %c0_176 = arith.constant 0 : index
    %c0_177 = arith.constant 0 : index
    %175 = vector.load %arg6[%c21_175, %c0_176, %c0_177] : memref<25x12x6xf32, #tpu.memory_space<vmem>>, vector<1x12x6xf32>
    %176 = vector.shape_cast %175 : vector<1x12x6xf32> to vector<12x6xf32>
    %cst_178 = arith.constant dense<0.000000e+00> : vector<12x64xf32>
    %177 = tpu.matmul %176, %174, %cst_178 {dimension_numbers = #tpu.dot_dimension_numbers<[1], [0], [0], [1], [0, 0, 1, 1], [], []>} : vector<12x6xf32>, vector<6x64xf32>, vector<12x64xf32> -> vector<12x64xf32>
    %178 = arith.addf %171, %177 : vector<12x64xf32>
    %c22 = arith.constant 22 : index
    %c0_179 = arith.constant 0 : index
    %c0_180 = arith.constant 0 : index
    %179 = vector.load %arg5[%c22, %c0_179, %c0_180] : memref<25x144x64xf32, #tpu.memory_space<vmem>>, vector<1x144x64xf32>
    %180 = vector.shape_cast %179 : vector<1x144x64xf32> to vector<144x64xf32>
    %cst_181 = arith.constant dense<0.000000e+00> : vector<6x64xf32>
    %181 = tpu.matmul %23, %180, %cst_181 {dimension_numbers = #tpu.dot_dimension_numbers<[1], [0], [0], [1], [0, 0, 1, 1], [], []>} : vector<6x144xf32>, vector<144x64xf32>, vector<6x64xf32> -> vector<6x64xf32>
    %c22_182 = arith.constant 22 : index
    %c0_183 = arith.constant 0 : index
    %c0_184 = arith.constant 0 : index
    %182 = vector.load %arg6[%c22_182, %c0_183, %c0_184] : memref<25x12x6xf32, #tpu.memory_space<vmem>>, vector<1x12x6xf32>
    %183 = vector.shape_cast %182 : vector<1x12x6xf32> to vector<12x6xf32>
    %cst_185 = arith.constant dense<0.000000e+00> : vector<12x64xf32>
    %184 = tpu.matmul %183, %181, %cst_185 {dimension_numbers = #tpu.dot_dimension_numbers<[1], [0], [0], [1], [0, 0, 1, 1], [], []>} : vector<12x6xf32>, vector<6x64xf32>, vector<12x64xf32> -> vector<12x64xf32>
    %185 = arith.addf %178, %184 : vector<12x64xf32>
    %c23 = arith.constant 23 : index
    %c0_186 = arith.constant 0 : index
    %c0_187 = arith.constant 0 : index
    %186 = vector.load %arg5[%c23, %c0_186, %c0_187] : memref<25x144x64xf32, #tpu.memory_space<vmem>>, vector<1x144x64xf32>
    %187 = vector.shape_cast %186 : vector<1x144x64xf32> to vector<144x64xf32>
    %cst_188 = arith.constant dense<0.000000e+00> : vector<6x64xf32>
    %188 = tpu.matmul %23, %187, %cst_188 {dimension_numbers = #tpu.dot_dimension_numbers<[1], [0], [0], [1], [0, 0, 1, 1], [], []>} : vector<6x144xf32>, vector<144x64xf32>, vector<6x64xf32> -> vector<6x64xf32>
    %c23_189 = arith.constant 23 : index
    %c0_190 = arith.constant 0 : index
    %c0_191 = arith.constant 0 : index
    %189 = vector.load %arg6[%c23_189, %c0_190, %c0_191] : memref<25x12x6xf32, #tpu.memory_space<vmem>>, vector<1x12x6xf32>
    %190 = vector.shape_cast %189 : vector<1x12x6xf32> to vector<12x6xf32>
    %cst_192 = arith.constant dense<0.000000e+00> : vector<12x64xf32>
    %191 = tpu.matmul %190, %188, %cst_192 {dimension_numbers = #tpu.dot_dimension_numbers<[1], [0], [0], [1], [0, 0, 1, 1], [], []>} : vector<12x6xf32>, vector<6x64xf32>, vector<12x64xf32> -> vector<12x64xf32>
    %192 = arith.addf %185, %191 : vector<12x64xf32>
    %c24 = arith.constant 24 : index
    %c0_193 = arith.constant 0 : index
    %c0_194 = arith.constant 0 : index
    %193 = vector.load %arg5[%c24, %c0_193, %c0_194] : memref<25x144x64xf32, #tpu.memory_space<vmem>>, vector<1x144x64xf32>
    %194 = vector.shape_cast %193 : vector<1x144x64xf32> to vector<144x64xf32>
    %cst_195 = arith.constant dense<0.000000e+00> : vector<6x64xf32>
    %195 = tpu.matmul %23, %194, %cst_195 {dimension_numbers = #tpu.dot_dimension_numbers<[1], [0], [0], [1], [0, 0, 1, 1], [], []>} : vector<6x144xf32>, vector<144x64xf32>, vector<6x64xf32> -> vector<6x64xf32>
    %c24_196 = arith.constant 24 : index
    %c0_197 = arith.constant 0 : index
    %c0_198 = arith.constant 0 : index
    %196 = vector.load %arg6[%c24_196, %c0_197, %c0_198] : memref<25x12x6xf32, #tpu.memory_space<vmem>>, vector<1x12x6xf32>
    %197 = vector.shape_cast %196 : vector<1x12x6xf32> to vector<12x6xf32>
    %cst_199 = arith.constant dense<0.000000e+00> : vector<12x64xf32>
    %198 = tpu.matmul %197, %195, %cst_199 {dimension_numbers = #tpu.dot_dimension_numbers<[1], [0], [0], [1], [0, 0, 1, 1], [], []>} : vector<12x6xf32>, vector<6x64xf32>, vector<12x64xf32> -> vector<12x64xf32>
    %199 = arith.addf %192, %198 : vector<12x64xf32>
    %c0_200 = arith.constant 0 : index
    %c0_201 = arith.constant 0 : index
    %200 = vector.load %arg7[%c0_200, %c0_201] : memref<12x1xf32, #tpu.memory_space<vmem>>, vector<12x1xf32>
    %201 = vector.broadcast %200 : vector<12x1xf32> to vector<12x64xf32>
    %202 = arith.addf %199, %201 : vector<12x64xf32>
    %c0_202 = arith.constant 0 : index
    %c0_203 = arith.constant 0 : index
    %c0_204 = arith.constant 0 : index
    %203 = vector.load %arg8[%c0_202, %c0_203, %c0_204] : memref<4x64x16xf32, #tpu.memory_space<vmem>>, vector<1x64x16xf32>
    %204 = vector.shape_cast %203 : vector<1x64x16xf32> to vector<64x16xf32>
    %cst_205 = arith.constant dense<0.000000e+00> : vector<12x16xf32>
    %205 = tpu.matmul %202, %204, %cst_205 {dimension_numbers = #tpu.dot_dimension_numbers<[1], [0], [0], [1], [0, 0, 1, 1], [], []>} : vector<12x64xf32>, vector<64x16xf32>, vector<12x16xf32> -> vector<12x16xf32>
    %c1_206 = arith.constant 1 : index
    %c0_207 = arith.constant 0 : index
    %c0_208 = arith.constant 0 : index
    %206 = vector.load %arg8[%c1_206, %c0_207, %c0_208] : memref<4x64x16xf32, #tpu.memory_space<vmem>>, vector<1x64x16xf32>
    %207 = vector.shape_cast %206 : vector<1x64x16xf32> to vector<64x16xf32>
    %cst_209 = arith.constant dense<0.000000e+00> : vector<12x16xf32>
    %208 = tpu.matmul %202, %207, %cst_209 {dimension_numbers = #tpu.dot_dimension_numbers<[1], [0], [0], [1], [0, 0, 1, 1], [], []>} : vector<12x64xf32>, vector<64x16xf32>, vector<12x16xf32> -> vector<12x16xf32>
    %209 = arith.maximumf %205, %208 : vector<12x16xf32>
    %c2_210 = arith.constant 2 : index
    %c0_211 = arith.constant 0 : index
    %c0_212 = arith.constant 0 : index
    %210 = vector.load %arg8[%c2_210, %c0_211, %c0_212] : memref<4x64x16xf32, #tpu.memory_space<vmem>>, vector<1x64x16xf32>
    %211 = vector.shape_cast %210 : vector<1x64x16xf32> to vector<64x16xf32>
    %cst_213 = arith.constant dense<0.000000e+00> : vector<12x16xf32>
    %212 = tpu.matmul %202, %211, %cst_213 {dimension_numbers = #tpu.dot_dimension_numbers<[1], [0], [0], [1], [0, 0, 1, 1], [], []>} : vector<12x64xf32>, vector<64x16xf32>, vector<12x16xf32> -> vector<12x16xf32>
    %213 = arith.maximumf %209, %212 : vector<12x16xf32>
    %c3_214 = arith.constant 3 : index
    %c0_215 = arith.constant 0 : index
    %c0_216 = arith.constant 0 : index
    %214 = vector.load %arg8[%c3_214, %c0_215, %c0_216] : memref<4x64x16xf32, #tpu.memory_space<vmem>>, vector<1x64x16xf32>
    %215 = vector.shape_cast %214 : vector<1x64x16xf32> to vector<64x16xf32>
    %cst_217 = arith.constant dense<0.000000e+00> : vector<12x16xf32>
    %216 = tpu.matmul %202, %215, %cst_217 {dimension_numbers = #tpu.dot_dimension_numbers<[1], [0], [0], [1], [0, 0, 1, 1], [], []>} : vector<12x64xf32>, vector<64x16xf32>, vector<12x16xf32> -> vector<12x16xf32>
    %217 = arith.maximumf %213, %216 : vector<12x16xf32>
    %cst_218 = arith.constant 0.000000e+00 : f32
    %218 = vector.broadcast %cst_218 : f32 to vector<12x16xf32>
    %219 = arith.maximumf %217, %218 : vector<12x16xf32>
    %c0_219 = arith.constant 0 : index
    %c0_220 = arith.constant 0 : index
    %220 = vector.load %arg10[%c0_219, %c0_220] : memref<1x120xf32, #tpu.memory_space<vmem>>, vector<1x120xf32>
    %221 = vector.extract_strided_slice %219 {offsets = [0, 0], sizes = [1, 16], strides = [1, 1]} : vector<12x16xf32> to vector<1x16xf32>
    %c0_221 = arith.constant 0 : index
    %c0_222 = arith.constant 0 : index
    %222 = vector.load %arg9[%c0_221, %c0_222] : memref<192x120xf32, #tpu.memory_space<vmem>>, vector<16x120xf32>
    %cst_223 = arith.constant dense<0.000000e+00> : vector<1x120xf32>
    %223 = tpu.matmul %221, %222, %cst_223 {dimension_numbers = #tpu.dot_dimension_numbers<[1], [0], [0], [1], [0, 0, 1, 1], [], []>} : vector<1x16xf32>, vector<16x120xf32>, vector<1x120xf32> -> vector<1x120xf32>
    %224 = arith.addf %220, %223 : vector<1x120xf32>
    %225 = vector.extract_strided_slice %219 {offsets = [1, 0], sizes = [1, 16], strides = [1, 1]} : vector<12x16xf32> to vector<1x16xf32>
    %c16_224 = arith.constant 16 : index
    %c0_225 = arith.constant 0 : index
    %226 = vector.load %arg9[%c16_224, %c0_225] : memref<192x120xf32, #tpu.memory_space<vmem>>, vector<16x120xf32>
    %cst_226 = arith.constant dense<0.000000e+00> : vector<1x120xf32>
    %227 = tpu.matmul %225, %226, %cst_226 {dimension_numbers = #tpu.dot_dimension_numbers<[1], [0], [0], [1], [0, 0, 1, 1], [], []>} : vector<1x16xf32>, vector<16x120xf32>, vector<1x120xf32> -> vector<1x120xf32>
    %228 = arith.addf %224, %227 : vector<1x120xf32>
    %229 = vector.extract_strided_slice %219 {offsets = [2, 0], sizes = [1, 16], strides = [1, 1]} : vector<12x16xf32> to vector<1x16xf32>
    %c32 = arith.constant 32 : index
    %c0_227 = arith.constant 0 : index
    %230 = vector.load %arg9[%c32, %c0_227] : memref<192x120xf32, #tpu.memory_space<vmem>>, vector<16x120xf32>
    %cst_228 = arith.constant dense<0.000000e+00> : vector<1x120xf32>
    %231 = tpu.matmul %229, %230, %cst_228 {dimension_numbers = #tpu.dot_dimension_numbers<[1], [0], [0], [1], [0, 0, 1, 1], [], []>} : vector<1x16xf32>, vector<16x120xf32>, vector<1x120xf32> -> vector<1x120xf32>
    %232 = arith.addf %228, %231 : vector<1x120xf32>
    %233 = vector.extract_strided_slice %219 {offsets = [3, 0], sizes = [1, 16], strides = [1, 1]} : vector<12x16xf32> to vector<1x16xf32>
    %c48 = arith.constant 48 : index
    %c0_229 = arith.constant 0 : index
    %234 = vector.load %arg9[%c48, %c0_229] : memref<192x120xf32, #tpu.memory_space<vmem>>, vector<16x120xf32>
    %cst_230 = arith.constant dense<0.000000e+00> : vector<1x120xf32>
    %235 = tpu.matmul %233, %234, %cst_230 {dimension_numbers = #tpu.dot_dimension_numbers<[1], [0], [0], [1], [0, 0, 1, 1], [], []>} : vector<1x16xf32>, vector<16x120xf32>, vector<1x120xf32> -> vector<1x120xf32>
    %236 = arith.addf %232, %235 : vector<1x120xf32>
    %237 = vector.extract_strided_slice %219 {offsets = [4, 0], sizes = [1, 16], strides = [1, 1]} : vector<12x16xf32> to vector<1x16xf32>
    %c64 = arith.constant 64 : index
    %c0_231 = arith.constant 0 : index
    %238 = vector.load %arg9[%c64, %c0_231] : memref<192x120xf32, #tpu.memory_space<vmem>>, vector<16x120xf32>
    %cst_232 = arith.constant dense<0.000000e+00> : vector<1x120xf32>
    %239 = tpu.matmul %237, %238, %cst_232 {dimension_numbers = #tpu.dot_dimension_numbers<[1], [0], [0], [1], [0, 0, 1, 1], [], []>} : vector<1x16xf32>, vector<16x120xf32>, vector<1x120xf32> -> vector<1x120xf32>
    %240 = arith.addf %236, %239 : vector<1x120xf32>
    %241 = vector.extract_strided_slice %219 {offsets = [5, 0], sizes = [1, 16], strides = [1, 1]} : vector<12x16xf32> to vector<1x16xf32>
    %c80 = arith.constant 80 : index
    %c0_233 = arith.constant 0 : index
    %242 = vector.load %arg9[%c80, %c0_233] : memref<192x120xf32, #tpu.memory_space<vmem>>, vector<16x120xf32>
    %cst_234 = arith.constant dense<0.000000e+00> : vector<1x120xf32>
    %243 = tpu.matmul %241, %242, %cst_234 {dimension_numbers = #tpu.dot_dimension_numbers<[1], [0], [0], [1], [0, 0, 1, 1], [], []>} : vector<1x16xf32>, vector<16x120xf32>, vector<1x120xf32> -> vector<1x120xf32>
    %244 = arith.addf %240, %243 : vector<1x120xf32>
    %245 = vector.extract_strided_slice %219 {offsets = [6, 0], sizes = [1, 16], strides = [1, 1]} : vector<12x16xf32> to vector<1x16xf32>
    %c96 = arith.constant 96 : index
    %c0_235 = arith.constant 0 : index
    %246 = vector.load %arg9[%c96, %c0_235] : memref<192x120xf32, #tpu.memory_space<vmem>>, vector<16x120xf32>
    %cst_236 = arith.constant dense<0.000000e+00> : vector<1x120xf32>
    %247 = tpu.matmul %245, %246, %cst_236 {dimension_numbers = #tpu.dot_dimension_numbers<[1], [0], [0], [1], [0, 0, 1, 1], [], []>} : vector<1x16xf32>, vector<16x120xf32>, vector<1x120xf32> -> vector<1x120xf32>
    %248 = arith.addf %244, %247 : vector<1x120xf32>
    %249 = vector.extract_strided_slice %219 {offsets = [7, 0], sizes = [1, 16], strides = [1, 1]} : vector<12x16xf32> to vector<1x16xf32>
    %c112 = arith.constant 112 : index
    %c0_237 = arith.constant 0 : index
    %250 = vector.load %arg9[%c112, %c0_237] : memref<192x120xf32, #tpu.memory_space<vmem>>, vector<16x120xf32>
    %cst_238 = arith.constant dense<0.000000e+00> : vector<1x120xf32>
    %251 = tpu.matmul %249, %250, %cst_238 {dimension_numbers = #tpu.dot_dimension_numbers<[1], [0], [0], [1], [0, 0, 1, 1], [], []>} : vector<1x16xf32>, vector<16x120xf32>, vector<1x120xf32> -> vector<1x120xf32>
    %252 = arith.addf %248, %251 : vector<1x120xf32>
    %253 = vector.extract_strided_slice %219 {offsets = [8, 0], sizes = [1, 16], strides = [1, 1]} : vector<12x16xf32> to vector<1x16xf32>
    %c128 = arith.constant 128 : index
    %c0_239 = arith.constant 0 : index
    %254 = vector.load %arg9[%c128, %c0_239] : memref<192x120xf32, #tpu.memory_space<vmem>>, vector<16x120xf32>
    %cst_240 = arith.constant dense<0.000000e+00> : vector<1x120xf32>
    %255 = tpu.matmul %253, %254, %cst_240 {dimension_numbers = #tpu.dot_dimension_numbers<[1], [0], [0], [1], [0, 0, 1, 1], [], []>} : vector<1x16xf32>, vector<16x120xf32>, vector<1x120xf32> -> vector<1x120xf32>
    %256 = arith.addf %252, %255 : vector<1x120xf32>
    %257 = vector.extract_strided_slice %219 {offsets = [9, 0], sizes = [1, 16], strides = [1, 1]} : vector<12x16xf32> to vector<1x16xf32>
    %c144 = arith.constant 144 : index
    %c0_241 = arith.constant 0 : index
    %258 = vector.load %arg9[%c144, %c0_241] : memref<192x120xf32, #tpu.memory_space<vmem>>, vector<16x120xf32>
    %cst_242 = arith.constant dense<0.000000e+00> : vector<1x120xf32>
    %259 = tpu.matmul %257, %258, %cst_242 {dimension_numbers = #tpu.dot_dimension_numbers<[1], [0], [0], [1], [0, 0, 1, 1], [], []>} : vector<1x16xf32>, vector<16x120xf32>, vector<1x120xf32> -> vector<1x120xf32>
    %260 = arith.addf %256, %259 : vector<1x120xf32>
    %261 = vector.extract_strided_slice %219 {offsets = [10, 0], sizes = [1, 16], strides = [1, 1]} : vector<12x16xf32> to vector<1x16xf32>
    %c160 = arith.constant 160 : index
    %c0_243 = arith.constant 0 : index
    %262 = vector.load %arg9[%c160, %c0_243] : memref<192x120xf32, #tpu.memory_space<vmem>>, vector<16x120xf32>
    %cst_244 = arith.constant dense<0.000000e+00> : vector<1x120xf32>
    %263 = tpu.matmul %261, %262, %cst_244 {dimension_numbers = #tpu.dot_dimension_numbers<[1], [0], [0], [1], [0, 0, 1, 1], [], []>} : vector<1x16xf32>, vector<16x120xf32>, vector<1x120xf32> -> vector<1x120xf32>
    %264 = arith.addf %260, %263 : vector<1x120xf32>
    %265 = vector.extract_strided_slice %219 {offsets = [11, 0], sizes = [1, 16], strides = [1, 1]} : vector<12x16xf32> to vector<1x16xf32>
    %c176 = arith.constant 176 : index
    %c0_245 = arith.constant 0 : index
    %266 = vector.load %arg9[%c176, %c0_245] : memref<192x120xf32, #tpu.memory_space<vmem>>, vector<16x120xf32>
    %cst_246 = arith.constant dense<0.000000e+00> : vector<1x120xf32>
    %267 = tpu.matmul %265, %266, %cst_246 {dimension_numbers = #tpu.dot_dimension_numbers<[1], [0], [0], [1], [0, 0, 1, 1], [], []>} : vector<1x16xf32>, vector<16x120xf32>, vector<1x120xf32> -> vector<1x120xf32>
    %268 = arith.addf %264, %267 : vector<1x120xf32>
    %cst_247 = arith.constant 0.000000e+00 : f32
    %269 = vector.broadcast %cst_247 : f32 to vector<1x120xf32>
    %270 = arith.maximumf %268, %269 : vector<1x120xf32>
    %c0_248 = arith.constant 0 : index
    %c0_249 = arith.constant 0 : index
    %271 = vector.load %arg11[%c0_248, %c0_249] : memref<120x60xf32, #tpu.memory_space<vmem>>, vector<120x60xf32>
    %cst_250 = arith.constant dense<0.000000e+00> : vector<1x60xf32>
    %272 = tpu.matmul %270, %271, %cst_250 {dimension_numbers = #tpu.dot_dimension_numbers<[1], [0], [0], [1], [0, 0, 1, 1], [], []>} : vector<1x120xf32>, vector<120x60xf32>, vector<1x60xf32> -> vector<1x60xf32>
    %c0_251 = arith.constant 0 : index
    %c0_252 = arith.constant 0 : index
    %273 = vector.load %arg12[%c0_251, %c0_252] : memref<1x60xf32, #tpu.memory_space<vmem>>, vector<1x60xf32>
    %274 = arith.addf %272, %273 : vector<1x60xf32>
    %cst_253 = arith.constant 0.000000e+00 : f32
    %275 = vector.broadcast %cst_253 : f32 to vector<1x60xf32>
    %276 = arith.maximumf %274, %275 : vector<1x60xf32>
    %c0_254 = arith.constant 0 : index
    %c0_255 = arith.constant 0 : index
    %277 = vector.load %arg13[%c0_254, %c0_255] : memref<60x10xf32, #tpu.memory_space<vmem>>, vector<60x10xf32>
    %cst_256 = arith.constant dense<0.000000e+00> : vector<1x10xf32>
    %278 = tpu.matmul %276, %277, %cst_256 {dimension_numbers = #tpu.dot_dimension_numbers<[1], [0], [0], [1], [0, 0, 1, 1], [], []>} : vector<1x60xf32>, vector<60x10xf32>, vector<1x10xf32> -> vector<1x10xf32>
    %c0_257 = arith.constant 0 : index
    %c0_258 = arith.constant 0 : index
    %279 = vector.load %arg14[%c0_257, %c0_258] : memref<1x10xf32, #tpu.memory_space<vmem>>, vector<1x10xf32>
    %280 = arith.addf %278, %279 : vector<1x10xf32>
    %c0_259 = arith.constant 0 : index
    %c0_260 = arith.constant 0 : index
    %c0_261 = arith.constant 0 : index
    %281 = vector.load %arg15[%c0_259, %c0_260, %c0_261] : memref<1x1x10xf32, #tpu.memory_space<vmem>>, vector<1x1x10xf32>
    %282 = vector.shape_cast %281 : vector<1x1x10xf32> to vector<1x10xf32>
    %283 = vector.shape_cast %280 : vector<1x10xf32> to vector<1x1x10xf32>
    tpu.vector_store %arg15[%c0_259, %c0_260, %c0_261], %283 {strides = array<i32>} : memref<1x1x10xf32, #tpu.memory_space<vmem>>, vector<1x1x10xf32>,
    %c0_262 = arith.constant 0 : index
    %c0_263 = arith.constant 0 : index
    %c0_264 = arith.constant 0 : index
    %284 = vector.load %arg16[%c0_262, %c0_263, %c0_264] : memref<1x1x60xf32, #tpu.memory_space<vmem>>, vector<1x1x60xf32>
    %285 = vector.shape_cast %284 : vector<1x1x60xf32> to vector<1x60xf32>
    %286 = vector.shape_cast %274 : vector<1x60xf32> to vector<1x1x60xf32>
    tpu.vector_store %arg16[%c0_262, %c0_263, %c0_264], %286 {strides = array<i32>} : memref<1x1x60xf32, #tpu.memory_space<vmem>>, vector<1x1x60xf32>,
    return
  }
  func.func @transform_0(%arg0: i32) -> (i32, i32, i32) {
    %c0_i32 = arith.constant 0 : i32
    %c0_i32_0 = arith.constant 0 : i32
    %c0_i32_1 = arith.constant 0 : i32
    return %arg0, %c0_i32, %c0_i32_0 : i32, i32, i32
  }
  func.func @transform_1(%arg0: i32) -> (i32, i32) {
    %c0_i32 = arith.constant 0 : i32
    %c0_i32_0 = arith.constant 0 : i32
    %c0_i32_1 = arith.constant 0 : i32
    return %c0_i32, %c0_i32_0 : i32, i32
  }
  func.func @transform_2(%arg0: i32) -> (i32, i32) {
    %c0_i32 = arith.constant 0 : i32
    %c0_i32_0 = arith.constant 0 : i32
    %c0_i32_1 = arith.constant 0 : i32
    return %c0_i32, %c0_i32_0 : i32, i32
  }
  func.func @transform_3(%arg0: i32) -> (i32, i32, i32) {
    %c0_i32 = arith.constant 0 : i32
    %c0_i32_0 = arith.constant 0 : i32
    %c0_i32_1 = arith.constant 0 : i32
    %c0_i32_2 = arith.constant 0 : i32
    return %c0_i32, %c0_i32_0, %c0_i32_1 : i32, i32, i32
  }
  func.func @transform_4(%arg0: i32) -> (i32, i32, i32) {
    %c0_i32 = arith.constant 0 : i32
    %c0_i32_0 = arith.constant 0 : i32
    %c0_i32_1 = arith.constant 0 : i32
    %c0_i32_2 = arith.constant 0 : i32
    return %c0_i32, %c0_i32_0, %c0_i32_1 : i32, i32, i32
  }
  func.func @transform_5(%arg0: i32) -> (i32, i32, i32) {
    %c0_i32 = arith.constant 0 : i32
    %c0_i32_0 = arith.constant 0 : i32
    %c0_i32_1 = arith.constant 0 : i32
    %c0_i32_2 = arith.constant 0 : i32
    return %c0_i32, %c0_i32_0, %c0_i32_1 : i32, i32, i32
  }
  func.func @transform_6(%arg0: i32) -> (i32, i32) {
    %c0_i32 = arith.constant 0 : i32
    %c0_i32_0 = arith.constant 0 : i32
    %c0_i32_1 = arith.constant 0 : i32
    return %c0_i32, %c0_i32_0 : i32, i32
  }
  func.func @transform_7(%arg0: i32) -> (i32, i32, i32) {
    %c0_i32 = arith.constant 0 : i32
    %c0_i32_0 = arith.constant 0 : i32
    %c0_i32_1 = arith.constant 0 : i32
    %c0_i32_2 = arith.constant 0 : i32
    return %c0_i32, %c0_i32_0, %c0_i32_1 : i32, i32, i32
  }
  func.func @transform_8(%arg0: i32) -> (i32, i32) {
    %c0_i32 = arith.constant 0 : i32
    %c0_i32_0 = arith.constant 0 : i32
    %c0_i32_1 = arith.constant 0 : i32
    return %c0_i32, %c0_i32_0 : i32, i32
  }
  func.func @transform_9(%arg0: i32) -> (i32, i32) {
    %c0_i32 = arith.constant 0 : i32
    %c0_i32_0 = arith.constant 0 : i32
    %c0_i32_1 = arith.constant 0 : i32
    return %c0_i32, %c0_i32_0 : i32, i32
  }
  func.func @transform_10(%arg0: i32) -> (i32, i32) {
    %c0_i32 = arith.constant 0 : i32
    %c0_i32_0 = arith.constant 0 : i32
    %c0_i32_1 = arith.constant 0 : i32
    return %c0_i32, %c0_i32_0 : i32, i32
  }
  func.func @transform_11(%arg0: i32) -> (i32, i32) {
    %c0_i32 = arith.constant 0 : i32
    %c0_i32_0 = arith.constant 0 : i32
    %c0_i32_1 = arith.constant 0 : i32
    return %c0_i32, %c0_i32_0 : i32, i32
  }
  func.func @transform_12(%arg0: i32) -> (i32, i32) {
    %c0_i32 = arith.constant 0 : i32
    %c0_i32_0 = arith.constant 0 : i32
    %c0_i32_1 = arith.constant 0 : i32
    return %c0_i32, %c0_i32_0 : i32, i32
  }
  func.func @transform_13(%arg0: i32) -> (i32, i32) {
    %c0_i32 = arith.constant 0 : i32
    %c0_i32_0 = arith.constant 0 : i32
    %c0_i32_1 = arith.constant 0 : i32
    return %c0_i32, %c0_i32_0 : i32, i32
  }
  func.func @transform_14(%arg0: i32) -> (i32, i32, i32) {
    %c0_i32 = arith.constant 0 : i32
    %c0_i32_0 = arith.constant 0 : i32
    %c0_i32_1 = arith.constant 0 : i32
    return %arg0, %c0_i32, %c0_i32_0 : i32, i32, i32
  }
  func.func @transform_15(%arg0: i32) -> (i32, i32, i32) {
    %c0_i32 = arith.constant 0 : i32
    %c0_i32_0 = arith.constant 0 : i32
    %c0_i32_1 = arith.constant 0 : i32
    return %arg0, %c0_i32, %c0_i32_0 : i32, i32, i32
  }
}

</mosaic_0001>

<bundles_post_ra>
// kernel: squeeze.32
= control target key start
LH: loop header
LB: loop body
LE: loop exit
PB: predicated region body
PF: predicated region fallthrough
CT: control target
= control target key end

     0   :  { %vm32_vm0 = vcmask 130048   ;;  %s41_s6 = smov 3  ;;  %s44_s7 = smov 3  ;;  %vm18_vm1 = vcmask 1043458   ;;  %vm28_vm2 = vcmask 64512   ;;  %vm4_vm3 = vcmask 195584   ;;  %s462_s0 = inlined_call_operand.vmem [shape: f32[2,24,24], index: 0, kind: input, shape index: {}]   ;;  %s463_s1 = inlined_call_operand.vmem [shape: f32[2,1,576], index: 1, kind: output, shape index: {}]  }
   0x1   :  { %v268_v0 = vld [vmem:[%s462_s0 + $0xa] ss:$24 sm:%s41_s6]   ;;  %s57_s12 = smov 3  ;;  %s13_s15 = smov 3  ;;  %vm61_vm4 = vcmask 1048384   ;;  %vm36_vm5 = vcmask 1048512  }
   0x2   :  { %v269_v1 = vld [vmem:[%s462_s0 + $0xa] ss:$24 sm:%s44_s7]   ;;  %v270_v3 = vld [vmem:[%s462_s0 + $0xf] ss:$24 sm:%s57_s12]   ;;  %s313_s16 = smov 112   ;;  %s314_s17 = smov 104  }
   0x3   :  { %v47_v2 = vsel %vm32_vm0, %v269_v1, %v268_v0  ;;  %59 = vrot.lane.b32.xlu1 %v270_v3, %s314_s17  ;;  %v264_v4 = vld [vmem:[%s462_s0 + $0x15] ss:$-16 sm:%s13_s15]   ;;  %s16_s20 = smov 12  ;;  %s21_s21 = smov 3  ;;  %vm53_vm6 = vcmask 1048448   ;;  %vm74_vm7 = vcmask 982784  }
   0x4   :  { %48 = vrot.lane.b32.xlu0 %v47_v2, %s313_s16  ;;  %v265_v5 = vld [vmem:[%s462_s0 - $0x3] ss:$16 sm:%s16_s20]   ;;  %s24_s26 = smov 12  ;;  %s65_s29 = smov 3  ;;  %vm83_vm8 = vcmask 917184   ;;  %vm91_vm9 = vcmask 851584  }
   0x5   :  { %v266_v6 = vld [vmem:[%s462_s0 + $0x5] ss:$24 sm:%s21_s21]   ;;  %v19_v7 = vsel %vm18_vm1, %v265_v5, %v264_v4  ;;  %s68_s30 = smov 12  ;;  %v271_v10 = vld [vmem:[%s462_s0 + $0x4] ss:$24 sm:%s65_s29]   ;;  %s79_s6 = smov 3 }
   0x6   :  { %v267_v8 = vld [vmem:[%s462_s0 - $0x1b] ss:$24 sm:%s24_s26]   ;;  %v272_v11 = vld [vmem:[%s462_s0 - $0x1c] ss:$24 sm:%s68_s30]   ;;  %s87_s7 = smov 3  ;;  %s315_s8 = smov 120  }
   0x7   :  { %v27_v9 = vsel %vm18_vm1, %v267_v8, %v266_v6  ;;  %v71_v13 = vsel %vm18_vm1, %v272_v11, %v271_v10  ;;  %s316_s9 = smov 96   ;;  %s95_s10 = smov 3  ;;  %v273_v14 = vld [vmem:[%s462_s0 + $0x9] ss:$24 sm:%s79_s6]   ;;  %v274_v15 = vld [vmem:[%s462_s0 + $0xe] ss:$24 sm:%s87_s7]  }
   0x8   :  { %v29_v12 = vsel %vm28_vm2, %v27_v9, %v19_v7  ;;  %72 = vrot.lane.b32.xlu1 %v71_v13, %s316_s9  ;;  %s98_s15 = smov 12  ;;  %v275_v16 = vld [vmem:[%s462_s0 + $0x3] ss:$24 sm:%s95_s10]   ;;  %s109_s20 = smov 3  ;;  %vm104_vm10 = vcmask 785984   ;;  %vm113_vm11 = vcmask 720384  }
   0x9   :  { %30 = vrot.lane.b32.xlu0 %v29_v12, %s315_s8  ;;  %v276_v17 = vld [vmem:[%s462_s0 - $0x1d] ss:$24 sm:%s98_s15]   ;;  %s317_s21 = smov 88   ;;  %s318_s22 = smov 80   ;;  %vm121_vm12 = vcmask 654784   ;;  %vm134_vm13 = vcmask 589184  }
   0xa   :  { %s125_s23 = smov 3  ;;  %s128_s24 = smov 12  ;;  %v101_v18 = vsel %vm18_vm1, %v276_v17, %v275_v16  ;;  %v277_v19 = vld [vmem:[%s462_s0 + $0x8] ss:$24 sm:%s109_s20]   ;;  %vm148_vm14 = vcmask 523584   ;;  %vm157_vm15 = vcmask 457984  }
   0xb   :  { %s117_s27 = smov 3  ;;  %v279_v20 = vld [vmem:[%s462_s0 + $0x2] ss:$24 sm:%s125_s23]   ;;  %s139_s3 = smov 3 }
   0xc   :  { %89 = vrot.lane.b32.xlu1 %v274_v15, %s318_s22  ;;  %v280_v21 = vld [vmem:[%s462_s0 - $0x1e] ss:$24 sm:%s128_s24]   ;;  %s142_s4 = smov 12  ;;  %s319_s5 = smov 72  }
   0xd   :  { %81 = vrot.lane.b32.xlu0 %v273_v14, %s317_s21  ;;  %s320_s6 = smov 64   ;;  %s153_s7 = smov 3  ;;  %v278_v22 = vld [vmem:[%s462_s0 + $0xd] ss:$24 sm:%s117_s27]   ;;  %v131_v23 = vsel %vm18_vm1, %v280_v21, %v279_v20 }
   0xe   :  { %s161_s10 = smov 3  ;;  %s164_s11 = smov 12  ;;  %v281_v24 = vld [vmem:[%s462_s0 + $0x17] ss:$-16 sm:%s139_s3]   ;;  %v282_v25 = vld [vmem:[%s462_s0 - $0x1] ss:$16 sm:%s142_s4]  }
   0xf   :  { %v283_v26 = vld [vmem:[%s462_s0 + $0xc] ss:$24 sm:%s153_s7]   ;;  %s175_s18 = smov 3  ;;  %s178_s19 = smov 12  ;;  %v284_v27 = vld [vmem:[%s462_s0 + $0x1] ss:$24 sm:%s161_s10]   ;;  %v145_v29 = vsel %vm18_vm1, %v282_v25, %v281_v24 }
  0x10   :  { %111 = vrot.lane.b32.xlu1 %v277_v19, %s320_s6  ;;  %s321_s20 = smov 56   ;;  %s322_s21 = smov 48   ;;  %v285_v28 = vld [vmem:[%s462_s0 - $0x1f] ss:$24 sm:%s164_s11]  }
  0x11   :  { %102 = vrot.lane.b32.xlu0 %v101_v18, %s319_s5  ;;  %s2_s26 = smov 3  ;;  %s7_s27 = smov 3  ;;  %v286_v32 = vld [vmem:[%s462_s0 + $0x16] ss:$-16 sm:%s175_s18]   ;;  %v167_v34 = vsel %vm18_vm1, %v285_v28, %v284_v27 }
  0x12   :  { %v3_v30 = vld [vmem:[%s462_s0] ss:$16 sm:%s2_s26]   ;;  %v263_v31 = vld [vmem:[%s462_s0 + $0x18] ss:$16 sm:%s7_s27]   ;;  %s323_s7 = smov 40   ;;  %s324_s8 = smov 32  }
  0x13   :  { %v287_v33 = vld [vmem:[%s462_s0 - $0x2] ss:$16 sm:%s178_s19]   ;;  %5 = vst.msk [vmem:[#allocation0] ss:$24 sm:$0x3] %vm4_vm3, %v3_v30   ;;  %s189_s9 = smov 3 }
  0x14   :  { %132 = vrot.lane.b32.xlu1 %v131_v23, %s322_s21  ;;  %11 = vst.msk [vmem:[#allocation0 + $0x28] ss:$24 sm:$0x3] %vm4_vm3, %v263_v31   ;;  %v181_v35 = vsel %vm18_vm1, %v287_v33, %v286_v32  ;;  %s325_s10 = smov 24   ;;  %s326_s11 = smov 16   ;;  %vm184_vm1 = vcmask 326784  }
  0x15   :  { %119 = vrot.lane.b32.xlu0 %v278_v22, %s321_s20  ;;  %v288_v36 = vld [vmem:[%s462_s0 + $0xb] ss:$24 sm:%s189_s9]   ;;  %s327_s0 = smov 8  }
  0x18   :  { %155 = vrot.lane.b32.xlu1 %v283_v26, %s324_s8 }
  0x19   :  { %146 = vrot.lane.b32.xlu0 %v145_v29, %s323_s7 }
  0x1c   :  { %182 = vrot.lane.b32.xlu1 %v181_v35, %s326_s11 }
  0x1d   :  { %168 = vrot.lane.b32.xlu0 %v167_v34, %s325_s10 }
  0x21   :  { %191 = vrot.lane.b32.xlu0 %v288_v36, %s327_s0 }
  0x75   :  { %v60_v38 = vpop.permute.xlu1 %59  }
  0x76   :  { %v49_v37 = vpop.permute.xlu0 %48  }
  0x77   :  { %52 = vst.msk [vmem:[#allocation0 + $0x10] ss:$40 sm:$0x3] %vm28_vm2, %v49_v37   ;;  %vm193_vm2 = vcmask 261184  }
  0x78   :  { %63 = vst.msk [vmem:[#allocation0 + $0x10] ss:$40 sm:$0x3] %vm61_vm4, %v60_v38  }
  0x7a   :  { %v73_v40 = vpop.permute.xlu1 %72  }
  0x7b   :  { %v31_v39 = vpop.permute.xlu0 %30  }
  0x7c   :  { %34 = vst.msk [vmem:[#allocation0 + $0x20] ss:$-24 sm:$0x3] %vm32_vm0, %v31_v39   ;;  %35 = vst.msk [vmem:[#allocation0] ss:$24 sm:$0xc] %vm32_vm0, %v31_v39  }
  0x7d   :  { %37 = vst.msk [vmem:[#allocation0] ss:$40 sm:$0x3] %vm36_vm5, %v31_v39   ;;  %39 = vst.msk [vmem:[#allocation0 - $0x38] ss:$40 sm:$0xc] %vm36_vm5, %v31_v39  }
  0x7e   :  { %75 = vst.msk [vmem:[#allocation0] ss:$40 sm:$0x3] %vm74_vm7, %v73_v40   ;;  %77 = vst.msk [vmem:[#allocation0 - $0x38] ss:$40 sm:$0xc] %vm74_vm7, %v73_v40   ;;  %v90_v42 = vpop.permute.xlu1 %89  }
  0x7f   :  { %55 = vst.msk [vmem:[#allocation0 + $0x8] ss:$40 sm:$0x3] %vm53_vm6, %v49_v37   ;;  %v82_v41 = vpop.permute.xlu0 %81   ;;  %vm170_vm0 = vcmask 392384  }
  0x80   :  { %85 = vst.msk [vmem:[#allocation0 + $0x8] ss:$40 sm:$0x3] %vm83_vm8, %v82_v41  }
  0x81   :  { %93 = vst.msk [vmem:[#allocation0 + $0x10] ss:$40 sm:$0x3] %vm91_vm9, %v90_v42  }
  0x82   :  { %v112_v44 = vpop.permute.xlu1 %111  }
  0x83   :  { %v103_v43 = vpop.permute.xlu0 %102   ;;  %115 = vst.msk [vmem:[#allocation0 + $0x8] ss:$40 sm:$0x3] %vm113_vm11, %v112_v44  }
  0x84   :  { %105 = vst.msk [vmem:[#allocation0] ss:$40 sm:$0x3] %vm104_vm10, %v103_v43   ;;  %107 = vst.msk [vmem:[#allocation0 - $0x38] ss:$40 sm:$0xc] %vm104_vm10, %v103_v43  }
  0x86   :  { %v133_v46 = vpop.permute.xlu1 %132  }
  0x87   :  { %v120_v45 = vpop.permute.xlu0 %119   ;;  %135 = vst.msk [vmem:[#allocation0] ss:$40 sm:$0x3] %vm134_vm13, %v133_v46   ;;  %137 = vst.msk [vmem:[#allocation0 - $0x38] ss:$40 sm:$0xc] %vm134_vm13, %v133_v46  }
  0x88   :  { %123 = vst.msk [vmem:[#allocation0 + $0x10] ss:$40 sm:$0x3] %vm121_vm12, %v120_v45  }
  0x8a   :  { %v156_v48 = vpop.permute.xlu1 %155  }
  0x8b   :  { %v147_v47 = vpop.permute.xlu0 %146   ;;  %159 = vst.msk [vmem:[#allocation0 + $0x10] ss:$40 sm:$0x3] %vm157_vm15, %v156_v48  }
  0x8c   :  { %150 = vst.msk [vmem:[#allocation0 + $0x20] ss:$-24 sm:$0x3] %vm148_vm14, %v147_v47   ;;  %151 = vst.msk [vmem:[#allocation0] ss:$24 sm:$0xc] %vm148_vm14, %v147_v47  }
  0x8e   :  { %v183_v50 = vpop.permute.xlu1 %182  }
  0x8f   :  { %v169_v49 = vpop.permute.xlu0 %168   ;;  %186 = vst.msk [vmem:[#allocation0 + $0x20] ss:$-24 sm:$0x3] %vm184_vm1, %v183_v50   ;;  %187 = vst.msk [vmem:[#allocation0] ss:$24 sm:$0xc] %vm184_vm1, %v183_v50  }
  0x90   :  { %171 = vst.msk [vmem:[#allocation0] ss:$40 sm:$0x3] %vm170_vm0, %v169_v49   ;;  %173 = vst.msk [vmem:[#allocation0 - $0x38] ss:$40 sm:$0xc] %vm170_vm0, %v169_v49  }
  0x93   :  { %v192_v51 = vpop.permute.xlu0 %191  }
  0x94   :  { %195 = vst.msk [vmem:[#allocation0 + $0x10] ss:$40 sm:$0x3] %vm193_vm2, %v192_v51  }
  0x96   :  { %v203_v56 = vld [vmem:[#allocation0 + $0x8] sm:$0x1]  ;;  %v220_v57 = vld [vmem:[#allocation0 + $0x20] sm:$0x1]  ;;  %v232_v58 = vld [vmem:[#allocation0 + $0x30] sm:$0x1] }
  0x97   :  { %v199_v52 = vld [vmem:[#allocation0] sm:$0x1]  ;;  %v214_v53 = vld [vmem:[#allocation0 + $0x18] sm:$0x1]  ;;  %v226_v54 = vld [vmem:[#allocation0 + $0x28] sm:$0x1] }
  0x98   :  { %201 = vst [vmem:[%s463_s1] sm:$0x1] %v199_v52  ;;  %291 = vst [vmem:[%s463_s1 + $0x3] sm:$0x1] %v214_v53  ;;  %v244_v55 = vld [vmem:[#allocation0 + $0x40] sm:$0x1] }
  0x99   :  { %293 = vst [vmem:[%s463_s1 + $0x5] sm:$0x1] %v226_v54  ;;  %296 = vst [vmem:[%s463_s1 + $0x8] sm:$0x1] %v244_v55  ;;  %v250_v59 = vld [vmem:[#allocation0 + $0x48] sm:$0x1] }
  0x9a   :  { %289 = vst [vmem:[%s463_s1 + $0x1] sm:$0x1] %v203_v56  ;;  %292 = vst [vmem:[%s463_s1 + $0x4] sm:$0x1] %v220_v57 }
  0x9b   :  { %294 = vst [vmem:[%s463_s1 + $0x6] sm:$0x1] %v232_v58  ;;  %297 = vst [vmem:[%s463_s1 + $0x9] sm:$0x1] %v250_v59  ;;  %v208_v60 = vld [vmem:[#allocation0 + $0x10] sm:$0x1] }
  0x9c   :  { %v238_v61 = vld [vmem:[#allocation0 + $0x38] sm:$0x1]  ;;  %290 = vst [vmem:[%s463_s1 + $0x2] sm:$0x1] %v208_v60 }
  0x9d   :  { %295 = vst [vmem:[%s463_s1 + $0x7] sm:$0x1] %v238_v61 }

// kernel: cnn_forward.1
= control target key start
LH: loop header
LB: loop body
LE: loop exit
PB: predicated region body
PF: predicated region fallthrough
CT: control target
= control target key end

     0   :  { %s14148_s0 = inlined_call_operand.vmem [shape: f32[2,25,576], index: 0, kind: input, shape index: {}]   ;;  %s14149_s1 = inlined_call_operand.vmem [shape: f32[6,25], index: 1, kind: input, shape index: {}]   ;;  %s14150_s2 = inlined_call_operand.vmem [shape: f32[6,1], index: 2, kind: input, shape index: {}]   ;;  %s14151_s3 = inlined_call_operand.vmem [shape: f32[4,576,144], index: 3, kind: input, shape index: {}]   ;;  %s14152_s4 = inlined_call_operand.hbm [shape: f32[25,144,64], index: 4, kind: input, shape index: {}]   ;;  %s14153_s5 = inlined_call_operand.vmem [shape: f32[25,12,6], index: 5, kind: input, shape index: {}]   ;;  %s14154_s6 = inlined_call_operand.vmem [shape: f32[12,1], index: 6, kind: input, shape index: {}]   ;;  %s14155_s7 = inlined_call_operand.vmem [shape: f32[4,64,16], index: 7, kind: input, shape index: {}]   ;;  %s14156_s8 = inlined_call_operand.vmem [shape: f32[192,120], index: 8, kind: input, shape index: {}]   ;;  %s14157_s9 = inlined_call_operand.vmem [shape: f32[1,120], index: 9, kind: input, shape index: {}]   ;;  %s14158_s10 = inlined_call_operand.vmem [shape: f32[120,60], index: 10, kind: input, shape index: {}]   ;;  %s14159_s11 = inlined_call_operand.vmem [shape: f32[1,60], index: 11, kind: input, shape index: {}]   ;;  %s14160_s12 = inlined_call_operand.vmem [shape: f32[60,10], index: 12, kind: input, shape index: {}]   ;;  %s14161_s13 = inlined_call_operand.vmem [shape: f32[1,10], index: 13, kind: input, shape index: {}]   ;;  %s14162_s14 = inlined_call_operand.hbm [shape: f32[2,1,10], index: 14, kind: output, shape index: {0}]   ;;  %s14163_s15 = inlined_call_operand.hbm [shape: f32[2,1,60], index: 15, kind: output, shape index: {1}]  }
   0x1   :  { %14173 = sst [smem:[#allocation16_spill]] %s14148_s0 }
   0x2   :  { %21 = vsyncpa [#allocation3], 0 }
   0x3   :  { %22 = vsyncpa [#allocation4], 0 }
   0x4   :  { %24 = vsyncpa [#allocation4 + $0x1], 0 }
   0x5   :  { %25 = vsyncpa [#allocation7], 0 }
   0x6   :  { %27 = vsyncpa [#allocation7 + $0x1], 0  ;;  %s11214_s18 = smov 0   ;;  %s11216_s19 = smov 0  }
   0x7   :  { %s11218_s20 = smov 0   ;;  %s11220_s21 = smov 0  }
   0x8 LB: > { %14174 = sst [smem:[#allocation11_spill]] %s11110_s18  ;;  %s11235_s22 = sadd.s32 4294967295, %s11122_s21   ;;  %s11122_s21 = sphi %s11220_s21, %s14194_s21   ;;  %s11118_s20 = sphi %s11218_s20, %s14196_s20   ;;  %s11114_s19 = sphi %s11216_s19, %s14198_s19   ;;  %s11110_s18 = sphi %s11214_s18, %s14197_s18  }
   0x9   : > { %14175 = sst [smem:[#allocation12_spill]] %s11118_s20  ;;  %s8253_s23 = sadd.s32 4294967294, %s11122_s21  }
   0xa   : > { %s11239_s24 = sadd.s32 1, %s11122_s21   ;;  %s339_s25 = sadd.s32 1, %s11118_s20 }
   0xb   : > { %14176 = sst [smem:[#allocation13_spill]] %s11239_s24  ;;  %s336_s26 = ssub.s32 %s11122_s21, %s11239_s24 }
   0xc   : > { %p349_p0 = scmp.ne.s32.totalorder %s11118_s20, %s11114_s19  ;;  %p337_p1 = scmp.eq.s32.totalorder %s336_s26, 0 }
   0xd   : > { %p350_p2 = scmp.eq.s32.totalorder %s11235_s22, 1  ;;  %p355_p3 = scmp.ne.s32.totalorder %s11114_s19, %s11110_s18 }
   0xe   : > { %p356_p4 = scmp.eq.s32.totalorder %s8253_s23, 1  ;;  %p8254_p7 = scmp.ge.s32.totalorder %s11122_s21, 1 }
   0xf   : > { %s11250_s27 = scalar_select %p337_p1, %s11118_s20, %s339_s25  }
  0x10   : > { %p11252_p5 = por %p350_p2, %p349_p0  ;;  %p11256_p6 = por %p356_p4, %p355_p3 }
  0x11   : > { %14177 = sst [smem:[#allocation14_spill]] %s11250_s27  ;;  %p389_p8 = scmp.lt.s32.totalorder %s11122_s21, 3 }
  0x12   : > { %s14178_s28 = scalar_select %p11252_p5, 1, 0 }
  0x13   : > { %s14179_s29 = scalar_select %p11256_p6, 1, 0 }
  0x14   : > { %p14169_p9 = scmp.eq.s32.totalorder %s11235_s22, 0  ;;  %p11263_p10 = pnand %p8254_p7, %p389_p8 }
  0x15   : > { %14180 = sst [smem:[#allocation15_spill]] %s14179_s29  ;;  %s11124_s16 = smov [#allocation2]  }
  0x16   : > { %s14181_s30 = scalar_select %p11263_p10, 1, 0 }
  0x17   : > { %s410_s17 = sshll.u32 %s11124_s16, 4  ;;  %p10940_p11 = pneg %p11263_p10  ;;  %s411_s17 = int_to_ptr.vmem [resolvable:$true] %s410_s17 }
  0x18   : > { %s10996_s27 = scalar_lea.hbm %s14152_s4, 57600 }
  0x19   : > { %p11271_p12 = pnand %p14169_p9, %p10940_p11  ;;  %p10997_p13 = scmp.ne.s32.totalorder %s14152_s4, %s10996_s27 }
  0x1a   : > { %p11003_p3 = scmp.lt.u32.totalorder %s10996_s27, %s14152_s4 }
  0x1b   : > { %p10998_p0 = pneg %p11271_p12 }
  0x1d   : > { %p10999_p1 = pnand %p10998_p0, %p10997_p13 }
  0x1f   : > { %p11000_p2 = pneg %p10999_p1 }
  0x21   : > { %p11005_p4 = pnand %p11003_p3, %p11000_p2 }
  0x23   : > { %11008 = shalt.err (!%p11005_p4)
}
  0x24   : > { %s11009_s18 = scalar_lea.vmem %s411_s17, 57600  ;;  %p11017_p9 = scmp.lt.s32.totalorder %s411_s17, %s411_s17 }
  0x25   : > { %p11010_p7 = scmp.ne.s32.totalorder %s411_s17, %s11009_s18  ;;  %p11018_p6 = scmp.lt.s32.totalorder %s11009_s18, %s11009_s18 }
  0x27   : > { %p11012_p8 = pnand %p11010_p7, %p10998_p0  ;;  %p11019_p5 = por %p11018_p6, %p11017_p9 }
  0x29   : > { %p11013_p11 = pneg %p11012_p8 }
  0x2b   : > { %p11020_p10 = pnand %p11019_p5, %p11013_p11 }
  0x2d   : > { %11023 = shalt.err (!%p11020_p10)
}
  0x2e   : > { %s11125_s20 = smov 128   ;;  %s11126_s24 = smov 8  }
  0x2f   : > { %10943 = dma.hbm_to_vmem [thread:$0]  (!%p11271_p12), %s14152_s4, 57600, %s411_s17, [#allocation3], %s11125_s20, %s11125_s20, %s11126_s24  }
  0x30   : > { %p14183_p13 = scmp.ne.s32.totalorder %s14181_s30, 0 }
  0x31   : > { %p14184_p1 = scmp.eq.s32.totalorder (!%p14183_p13), %s11235_s22, 0 }
  0x32   : > { %461 = sbr.rel (%p14183_p13) target bundleno = 4781 (0x12ad), region = 76 }
  0x39   : > { %11097 = dma.done.wait (%p14184_p1), [#allocation3], 57600   ;;  %p14185_p0 = pmov %p14184_p1 }
  0x3a   : > { %p512_p5 = scmp.lt.s32.totalorder %s11235_s22, 1  ;;  %v11127_v0 = vmov 0.0|0.0   ;;  %v11128_v1 = vmov 0.0   ;;  %vm11129_vm0 = vmmov 0   ;;  %vm548_vm1 = vcmask 1040384   ;;  %s14186_s0 = sld [smem:[#allocation16_spill]] }
  0x3b   : > { %11099 = vsyncadd (%p14185_p0), [#allocation3], 4294909696  ;;  %9452 = vmatprep.subr.bf16.mxu0 %v11127_v0  ;;  %628 = vmatprep.mubr.f32.mxu1 %v11128_v1  ;;  %v11130_v2 = vmov 0   ;;  %vm11131_vm2 = vmmov 1   ;;  %v537_v29 = vld [vmem:[%s14149_s1] sm:$0x3f] }
  0x3c   : > { %s513_s18 = scalar_select %p512_p5, %s11235_s22, 1  ;;  %9092 = vmatprep.mubr.msk.f32.mxu0 %vm11129_vm0, %v11128_v1  ;;  %10994 = vset.pattern.permute.xlu0 %v11130_v2  ;;  %vm11309_vm3 = vmpackc.low %vm548_vm1, %vm11131_vm2  ;;  %v538_v30 = vld [vmem:[%s14150_s2] sm:$0x3f]  ;;  %vm544_vm4 = vcmask 203776   ;;  %v8270_v33 = vld [vmem:[%s14151_s3 + $0x488] sm:$0xff]  ;;  %vm920_vm5 = vcmask 523264  }
  0x3d   : > { %10995 = vset.pattern.permute.xlu1 %v11130_v2  ;;  %v8272_v34 = vld [vmem:[%s14151_s3 + $0x498] sm:$0xff]  ;;  %541 = vperm.xlu0 %10994, %v538_v30   ;;  %v6669_v37 = vld [vmem:[%s14154_s6] sm:$0xff]  ;;  %v777_v39 = vld [vmem:[%s14151_s3 + $0x8] sm:$0xff]  ;;  %vm2237_vm6 = vcmask 130048   ;;  %vm2405_vm7 = vcmask 48128   ;;  %vm2412_vm8 = vcmask 1045504  }
  0x3e   : > { %s10931_s27 = smul.u32 160, %s513_s18  ;;  %v8269_v38 = vld [vmem:[%s14151_s3 + $0x480] sm:$0xff]  ;;  %v779_v40 = vld [vmem:[%s14151_s3 + $0x18] sm:$0xff]  ;;  %v9603_v41 = vpack.c.bf16 %v8272_v34, %v8270_v33  ;;  %v8271_v42 = vld [vmem:[%s14151_s3 + $0x490] sm:$0xff]  ;;  %vm7962_vm9 = vcmask 982016   ;;  %vm8050_vm10 = vcmask 1043456  }
  0x3f   : > { %v9605_v43 = vpack.c.bf16 %v8271_v42, %v8269_v38  ;;  %v8274_v44 = vld [vmem:[%s14151_s3 + $0x4a8] sm:$0xff]  ;;  %v8276_v45 = vld [vmem:[%s14151_s3 + $0x4b8] sm:$0xff]  ;;  %v8273_v48 = vld [vmem:[%s14151_s3 + $0x4a0] sm:$0xff]  ;;  %v9459_v50 = vpack.c.bf16 %v779_v40, %v777_v39  ;;  %s14064_s23 = sand.u32 1, %s11114_s19   ;;  %vm8126_vm12 = vcmask 483328   ;;  %vm8046_vm13 = vcmask 490496  }
  0x40   : > { %s11306_s17 = scalar_lea.vmem %s14186_s0, %s10931_s27  ;;  %v9607_v47 = vpack.c.bf16 %v8276_v45, %v8274_v44  ;;  %v8275_v49 = vld [vmem:[%s14151_s3 + $0x4b0] sm:$0xff]  ;;  %v776_v51 = vld [vmem:[%s14151_s3] sm:$0xff]  ;;  %v8278_v53 = vld [vmem:[%s14151_s3 + $0x4c8] sm:$0xff]  ;;  %s511_s24 = scalar_lea.vmem [#allocation6], %s14064_s23 }
  0x41   : > { %v518_v4 = vld [vmem:[%s11306_s17 + $0x8] sm:$0xff]  ;;  %v523_v5 = vld [vmem:[%s11306_s17 + $0x30] sm:$0xff]  ;;  %v517_v6 = vld [vmem:[%s11306_s17] sm:$0xff]  ;;  %6673 = vperm.xlu0 %10994, %v6669_v37   ;;  %v9609_v57 = vpack.c.bf16 %v8275_v49, %v8273_v48  ;;  %s14172_s0 = sshll.u32 %s11235_s22, 4  ;;  %s8133_s27 = scalar_lea.sflag [#allocation7], %s14064_s23 }
  0x42   : > { %v9432_v7 = vpack.c.bf16 %v523_v5, %v518_v4  ;;  %v522_v8 = vld [vmem:[%s11306_s17 + $0x28] sm:$0xff]  ;;  %v521_v9 = vld [vmem:[%s11306_s17 + $0x20] sm:$0xff]  ;;  %v528_v13 = vld [vmem:[%s11306_s17 + $0x58] sm:$0xff]  ;;  %s14076_s18 = scalar_lea.hbm %s14163_s15, %s14172_s0  ;;  %p14189_p9 = scmp.ne.s32.totalorder %s14178_s28, 0 }
  0x43   : > { %v526_v10 = vld [vmem:[%s11306_s17 + $0x48] sm:$0xff]  ;;  %v9434_v11 = vpack.c.bf16 %v522_v8, %v517_v6  ;;  %v533_v14 = vld [vmem:[%s11306_s17 + $0x80] sm:$0x1]  ;;  %v527_v15 = vld [vmem:[%s11306_s17 + $0x50] sm:$0xff]  ;;  %s11132_s30 = smov [#allocation6]  }
  0x44   : > { %v9453_v12 = vpack.c.bf16 %v526_v10, %v521_v9  ;;  %9433 = vmatprep.subr.bf16.mxu1 %v9432_v7  ;;  %v9436_v16 = vpack.c.bf16 %v533_v14, %v528_v13  ;;  %v532_v17 = vld [vmem:[%s11306_s17 + $0x78] sm:$0x1]  ;;  %v531_v18 = vld [vmem:[%s11306_s17 + $0x70] sm:$0xff]  ;;  %v525_v23 = vld [vmem:[%s11306_s17 + $0x40] sm:$0xff]  ;;  %s11028_s16 = sshll.u32 %s11132_s30, 4  ;;  %s11029_s16 = int_to_ptr.vmem [resolvable:$false] %s11028_s16 }
  0x45   : > { %v536_v19 = vld [vmem:[%s11306_s17 + $0x98] sm:$0x1]  ;;  %9435 = vmatpush1.bf16.msra.mxu1 %v9434_v11  ;;  %v9439_v20 = vpack.c.bf16 %v532_v17, %v527_v15  ;;  %v519_v25 = vld [vmem:[%s11306_s17 + $0x10] sm:$0xff]  ;;  %v530_v27 = vld [vmem:[%s11306_s17 + $0x68] sm:$0xff]  ;;  %s11030_s20 = scalar_lea.vmem %s11029_s16, 32 }
  0x46   : > { %9454 = vmatpush3.bf16.msra.mxu0 %v9453_v12  ;;  %v9456_v21 = vpack.c.bf16 %v536_v19, %v531_v18  ;;  %v520_v22 = vld [vmem:[%s11306_s17 + $0x18] sm:$0xff]  ;;  %9438 = vmatprep.subr.msk.bf16.mxu1 %vm11309_vm3, %v9436_v16  ;;  %v535_v28 = vld [vmem:[%s11306_s17 + $0x90] sm:$0x1]  ;;  %v529_v32 = vld [vmem:[%s11306_s17 + $0x60] sm:$0xff] }
  0x47   : > { %9455 = vmatprep.subr.bf16.mxu0 %v11127_v0  ;;  %v9442_v24 = vpack.c.bf16 %v525_v23, %v520_v22  ;;  %v524_v26 = vld [vmem:[%s11306_s17 + $0x38] sm:$0xff]  ;;  %v9446_v35 = vpack.c.bf16 %v535_v28, %v530_v27  ;;  %v534_v36 = vld [vmem:[%s11306_s17 + $0x88] sm:$0x1]  ;;  %v778_v52 = vld [vmem:[%s14151_s3 + $0x10] sm:$0xff]  ;;  %s8158_s17 = sshll.u32 %s511_s24, 4  ;;  %s8159_s17 = int_to_ptr.vmem [resolvable:$true] %s8158_s17 }
  0x48   : > { %v9444_v31 = vpack.c.bf16 %v524_v26, %v519_v25  ;;  %v9449_v46 = vpack.c.bf16 %v534_v36, %v529_v32  ;;  %v781_v54 = vld [vmem:[%s14151_s3 + $0x28] sm:$0xff]  ;;  %v783_v55 = vld [vmem:[%s14151_s3 + $0x38] sm:$0xff]  ;;  %v9461_v58 = vpack.c.bf16 %v778_v52, %v776_v51  ;;  %v780_v59 = vld [vmem:[%s14151_s3 + $0x20] sm:$0xff]  ;;  %s11024_s29 = scalar_lea.vmem %s8159_s17, 16  ;;  %p11031_p2 = scmp.lt.s32.totalorder %s8159_s17, %s11029_s16 }
  0x49   : > { %9441 = vmatpush1.bf16.msk.msra.mxu1 %vm11309_vm3, %v9439_v20  ;;  %v8280_v56 = vld [vmem:[%s14151_s3 + $0x4d8] sm:$0xff]  ;;  %v8277_v61 = vld [vmem:[%s14151_s3 + $0x4c0] sm:$0xff]  ;;  %v8279_v62 = vld [vmem:[%s14151_s3 + $0x4d0] sm:$0xff]  ;;  %v9463_v63 = vpack.c.bf16 %v783_v55, %v781_v54  ;;  %p11025_p6 = scmp.ne.s32.totalorder %s8159_s17, %s11024_s29  ;;  %p11032_p3 = scmp.lt.s32.totalorder %s11030_s20, %s11024_s29 }
  0x4a   : > { %9458 = vmatpush3.bf16.msk.msra.mxu0 %vm11309_vm3, %v9456_v21  ;;  %9443 = vmatprep.subr.bf16.mxu1 %v9442_v24  ;;  %v9611_v60 = vpack.c.bf16 %v8280_v56, %v8278_v53  ;;  %v782_v2 = vld [vmem:[%s14151_s3 + $0x30] sm:$0xff]  ;;  %v8282_v3 = vld [vmem:[%s14151_s3 + $0x4e8] sm:$0xff]  ;;  %v8284_v4 = vld [vmem:[%s14151_s3 + $0x4f8] sm:$0xff]  ;;  %v9613_v7 = vpack.c.bf16 %v8279_v62, %v8277_v61 }
  0x4b   : > { %9604 = vmatprep.subr.bf16.mxu0 %v9603_v41  ;;  %v785_v5 = vld [vmem:[%s14151_s3 + $0x48] sm:$0xff]  ;;  %v787_v6 = vld [vmem:[%s14151_s3 + $0x58] sm:$0xff]  ;;  %v9465_v8 = vpack.c.bf16 %v782_v2, %v780_v59  ;;  %v784_v9 = vld [vmem:[%s14151_s3 + $0x40] sm:$0xff]  ;;  %v9615_v10 = vpack.c.bf16 %v8284_v4, %v8282_v3  ;;  %p11026_p10 = pnand %p11025_p6, %p14189_p9  ;;  %p11033_p4 = por %p11032_p3, %p11031_p2 }
  0x4c   : > { %8262 = vmatmul.mubr.msk.f32.vlgmr.msra.gmra.mrb[0].mxu1 %vm544_vm4, %v537_v29  ;;  %v8281_v11 = vld [vmem:[%s14151_s3 + $0x4e0] sm:$0xff]  ;;  %v8283_v12 = vld [vmem:[%s14151_s3 + $0x4f0] sm:$0xff]  ;;  %v9467_v13 = vpack.c.bf16 %v787_v6, %v785_v5  ;;  %v8286_v15 = vld [vmem:[%s14151_s3 + $0x508] sm:$0xff] }
  0x4d   : > { %9093 = vmatmul.mubr.msk.f32.vlgmr.msra.gmra.mrb[0].mxu0 %vm544_vm4, %v537_v29  ;;  %9445 = vmatpush1.bf16.msra.mxu1 %v9444_v31  ;;  %v786_v14 = vld [vmem:[%s14151_s3 + $0x50] sm:$0xff]  ;;  %v8288_v16 = vld [vmem:[%s14151_s3 + $0x518] sm:$0xff]  ;;  %v789_v17 = vld [vmem:[%s14151_s3 + $0x68] sm:$0xff]  ;;  %v9617_v19 = vpack.c.bf16 %v8283_v12, %v8281_v11  ;;  %p11027_p12 = pneg %p11026_p10 }
  0x4e   : > { %699 = vmatprep.mubr.f32.mxu1 %v11128_v1  ;;  %9448 = vmatprep.subr.msk.bf16.mxu1 %vm11309_vm3, %v9446_v35  ;;  %v791_v18 = vld [vmem:[%s14151_s3 + $0x78] sm:$0xff]  ;;  %v9469_v20 = vpack.c.bf16 %v786_v14, %v784_v9  ;;  %v788_v21 = vld [vmem:[%s14151_s3 + $0x60] sm:$0xff]  ;;  %v9619_v22 = vpack.c.bf16 %v8288_v16, %v8286_v15  ;;  %v8287_v24 = vld [vmem:[%s14151_s3 + $0x510] sm:$0xff] }
  0x4f   : > { %9606 = vmatpush1.bf16.msra.mxu0 %v9605_v43  ;;  %v8285_v23 = vld [vmem:[%s14151_s3 + $0x500] sm:$0xff]  ;;  %v9471_v25 = vpack.c.bf16 %v791_v18, %v789_v17  ;;  %v790_v26 = vld [vmem:[%s14151_s3 + $0x70] sm:$0xff]  ;;  %v8290_v27 = vld [vmem:[%s14151_s3 + $0x528] sm:$0xff]  ;;  %p11034_p7 = pnand %p11033_p4, %p11027_p12 }
  0x50   : > { %9608 = vmatprep.subr.bf16.mxu0 %v9607_v47  ;;  %v8292_v28 = vld [vmem:[%s14151_s3 + $0x538] sm:$0xff]  ;;  %v9621_v31 = vpack.c.bf16 %v8287_v24, %v8285_v23  ;;  %v9473_v32 = vpack.c.bf16 %v790_v26, %v788_v21  ;;  %v792_v33 = vld [vmem:[%s14151_s3 + $0x80] sm:$0xff]  ;;  %v8291_v36 = vld [vmem:[%s14151_s3 + $0x530] sm:$0xff] }
  0x51   : > { %9451 = vmatpush1.bf16.msk.msra.mxu1 %vm11309_vm3, %v9449_v46  ;;  %v795_v30 = vld [vmem:[%s14151_s3 + $0x98] sm:$0xff]  ;;  %v9623_v34 = vpack.c.bf16 %v8292_v28, %v8290_v27  ;;  %v8289_v35 = vld [vmem:[%s14151_s3 + $0x520] sm:$0xff]  ;;  %v794_v38 = vld [vmem:[%s14151_s3 + $0x90] sm:$0xff] }
  0x52   : > { %9460 = vmatprep.subr.bf16.mxu1 %v9459_v50  ;;  %v8294_v39 = vld [vmem:[%s14151_s3 + $0x548] sm:$0xff]  ;;  %v8296_v40 = vld [vmem:[%s14151_s3 + $0x558] sm:$0xff]  ;;  %v9625_v43 = vpack.c.bf16 %v8291_v36, %v8289_v35  ;;  %v9477_v44 = vpack.c.bf16 %v794_v38, %v792_v33  ;;  %v796_v45 = vld [vmem:[%s14151_s3 + $0xa0] sm:$0xff] }
  0x53   : > { %9610 = vmatpush1.bf16.msra.mxu0 %v9609_v57  ;;  %v797_v41 = vld [vmem:[%s14151_s3 + $0xa8] sm:$0xff]  ;;  %v799_v42 = vld [vmem:[%s14151_s3 + $0xb8] sm:$0xff]  ;;  %v9627_v46 = vpack.c.bf16 %v8296_v40, %v8294_v39  ;;  %v8293_v47 = vld [vmem:[%s14151_s3 + $0x540] sm:$0xff] }
  0x54   : > { %8265 = vmatmul.mubr.msk.f32.vlgmr.msra.gmra.mrb[2].mxu1 %vm544_vm4, %v537_v29  ;;  %9612 = vmatprep.subr.bf16.mxu0 %v9611_v60  ;;  %v793_v29 = vld [vmem:[%s14151_s3 + $0x88] sm:$0xff]  ;;  %v8295_v48 = vld [vmem:[%s14151_s3 + $0x550] sm:$0xff]  ;;  %v9479_v49 = vpack.c.bf16 %v799_v42, %v797_v41  ;;  %v8300_v52 = vld [vmem:[%s14151_s3 + $0x578] sm:$0xff] }
  0x55   : > { %9462 = vmatpush1.bf16.msra.mxu1 %v9461_v58  ;;  %v9475_v37 = vpack.c.bf16 %v795_v30, %v793_v29  ;;  %v798_v50 = vld [vmem:[%s14151_s3 + $0xb0] sm:$0xff]  ;;  %v8298_v51 = vld [vmem:[%s14151_s3 + $0x568] sm:$0xff]  ;;  %v803_v54 = vld [vmem:[%s14151_s3 + $0xd8] sm:$0xff]  ;;  %v9629_v55 = vpack.c.bf16 %v8295_v48, %v8293_v47 }
  0x56   : > { %9464 = vmatprep.subr.bf16.mxu1 %v9463_v63  ;;  %v801_v53 = vld [vmem:[%s14151_s3 + $0xc8] sm:$0xff]  ;;  %v9481_v56 = vpack.c.bf16 %v798_v50, %v796_v45  ;;  %v800_v57 = vld [vmem:[%s14151_s3 + $0xc0] sm:$0xff]  ;;  %v9631_v58 = vpack.c.bf16 %v8300_v52, %v8298_v51  ;;  %v8299_v60 = vld [vmem:[%s14151_s3 + $0x570] sm:$0xff] }
  0x57   : > { %9614 = vmatpush1.bf16.msra.mxu0 %v9613_v7  ;;  %v8297_v59 = vld [vmem:[%s14151_s3 + $0x560] sm:$0xff]  ;;  %v9483_v61 = vpack.c.bf16 %v803_v54, %v801_v53  ;;  %v802_v62 = vld [vmem:[%s14151_s3 + $0xd0] sm:$0xff]  ;;  %v8302_v63 = vld [vmem:[%s14151_s3 + $0x588] sm:$0xff] }
  0x58   : > { %9616 = vmatprep.subr.bf16.mxu0 %v9615_v10  ;;  %v8304_v2 = vld [vmem:[%s14151_s3 + $0x598] sm:$0xff]  ;;  %v805_v3 = vld [vmem:[%s14151_s3 + $0xe8] sm:$0xff]  ;;  %v9633_v5 = vpack.c.bf16 %v8299_v60, %v8297_v59  ;;  %v9485_v6 = vpack.c.bf16 %v802_v62, %v800_v57  ;;  %v804_v7 = vld [vmem:[%s14151_s3 + $0xe0] sm:$0xff] }
  0x59   : > { %9466 = vmatpush1.bf16.msra.mxu1 %v9465_v8  ;;  %v807_v4 = vld [vmem:[%s14151_s3 + $0xf8] sm:$0xff]  ;;  %v9635_v8 = vpack.c.bf16 %v8304_v2, %v8302_v63  ;;  %v8301_v9 = vld [vmem:[%s14151_s3 + $0x580] sm:$0xff]  ;;  %v8303_v10 = vld [vmem:[%s14151_s3 + $0x590] sm:$0xff] }
  0x5a   : > { %9468 = vmatprep.subr.bf16.mxu1 %v9467_v13  ;;  %v9487_v11 = vpack.c.bf16 %v807_v4, %v805_v3  ;;  %v806_v12 = vld [vmem:[%s14151_s3 + $0xf0] sm:$0xff]  ;;  %v8306_v13 = vld [vmem:[%s14151_s3 + $0x5a8] sm:$0xff]  ;;  %v8308_v14 = vld [vmem:[%s14151_s3 + $0x5b8] sm:$0xff]  ;;  %v9637_v17 = vpack.c.bf16 %v8303_v10, %v8301_v9 }
  0x5b   : > { %9618 = vmatpush1.bf16.msra.mxu0 %v9617_v19  ;;  %v809_v15 = vld [vmem:[%s14151_s3 + $0x108] sm:$0xff]  ;;  %v811_v16 = vld [vmem:[%s14151_s3 + $0x118] sm:$0xff]  ;;  %v9489_v18 = vpack.c.bf16 %v806_v12, %v804_v7  ;;  %v808_v19 = vld [vmem:[%s14151_s3 + $0x100] sm:$0xff] }
  0x5c   : > { %9620 = vmatprep.subr.bf16.mxu0 %v9619_v22  ;;  %v8305_v21 = vld [vmem:[%s14151_s3 + $0x5a0] sm:$0xff]  ;;  %v8307_v22 = vld [vmem:[%s14151_s3 + $0x5b0] sm:$0xff]  ;;  %v9491_v23 = vpack.c.bf16 %v811_v16, %v809_v15  ;;  %v8312_v26 = vld [vmem:[%s14151_s3 + $0x5d8] sm:$0xff] }
  0x5d   : > { %9470 = vmatpush1.bf16.msra.mxu1 %v9469_v20  ;;  %v9639_v20 = vpack.c.bf16 %v8308_v14, %v8306_v13  ;;  %v810_v24 = vld [vmem:[%s14151_s3 + $0x110] sm:$0xff]  ;;  %v813_v27 = vld [vmem:[%s14151_s3 + $0x128] sm:$0xff]  ;;  %v815_v28 = vld [vmem:[%s14151_s3 + $0x138] sm:$0xff]  ;;  %v9641_v29 = vpack.c.bf16 %v8307_v22, %v8305_v21 }
  0x5e   : > { %9472 = vmatprep.subr.bf16.mxu1 %v9471_v25  ;;  %v8310_v25 = vld [vmem:[%s14151_s3 + $0x5c8] sm:$0xff]  ;;  %v9493_v30 = vpack.c.bf16 %v810_v24, %v808_v19  ;;  %v8309_v33 = vld [vmem:[%s14151_s3 + $0x5c0] sm:$0xff]  ;;  %v9495_v35 = vpack.c.bf16 %v815_v28, %v813_v27  ;;  %v814_v36 = vld [vmem:[%s14151_s3 + $0x130] sm:$0xff] }
  0x5f   : > { %9622 = vmatpush1.bf16.msra.mxu0 %v9621_v31  ;;  %v812_v31 = vld [vmem:[%s14151_s3 + $0x120] sm:$0xff]  ;;  %v8316_v38 = vld [vmem:[%s14151_s3 + $0x5f8] sm:$0xff]  ;;  %v817_v39 = vld [vmem:[%s14151_s3 + $0x148] sm:$0xff] }
  0x60   : > { %9624 = vmatprep.subr.bf16.mxu0 %v9623_v34  ;;  %v8311_v34 = vld [vmem:[%s14151_s3 + $0x5d0] sm:$0xff]  ;;  %v819_v40 = vld [vmem:[%s14151_s3 + $0x158] sm:$0xff]  ;;  %v9497_v42 = vpack.c.bf16 %v814_v36, %v812_v31  ;;  %v8313_v45 = vld [vmem:[%s14151_s3 + $0x5e0] sm:$0xff] }
  0x61   : > { %9474 = vmatpush1.bf16.msra.mxu1 %v9473_v32  ;;  %v9643_v32 = vpack.c.bf16 %v8312_v26, %v8310_v25  ;;  %v9645_v41 = vpack.c.bf16 %v8311_v34, %v8309_v33  ;;  %v9499_v47 = vpack.c.bf16 %v819_v40, %v817_v39  ;;  %v818_v48 = vld [vmem:[%s14151_s3 + $0x150] sm:$0xff]  ;;  %v8320_v50 = vld [vmem:[%s14151_s3 + $0x618] sm:$0xff]  ;;  %v821_v51 = vld [vmem:[%s14151_s3 + $0x168] sm:$0xff] }
  0x62   : > { %9476 = vmatprep.subr.bf16.mxu1 %v9475_v37  ;;  %v8314_v37 = vld [vmem:[%s14151_s3 + $0x5e8] sm:$0xff]  ;;  %v823_v52 = vld [vmem:[%s14151_s3 + $0x178] sm:$0xff]  ;;  %v8317_v57 = vld [vmem:[%s14151_s3 + $0x600] sm:$0xff] }
  0x63   : > { %9626 = vmatpush1.bf16.msra.mxu0 %v9625_v43  ;;  %v816_v43 = vld [vmem:[%s14151_s3 + $0x140] sm:$0xff]  ;;  %v9503_v59 = vpack.c.bf16 %v823_v52, %v821_v51  ;;  %v822_v60 = vld [vmem:[%s14151_s3 + $0x170] sm:$0xff]  ;;  %v8324_v62 = vld [vmem:[%s14151_s3 + $0x638] sm:$0xff] }
  0x64   : > { %9628 = vmatprep.subr.bf16.mxu0 %v9627_v46  ;;  %v8315_v46 = vld [vmem:[%s14151_s3 + $0x5f0] sm:$0xff]  ;;  %v9501_v54 = vpack.c.bf16 %v818_v48, %v816_v43  ;;  %v825_v63 = vld [vmem:[%s14151_s3 + $0x188] sm:$0xff]  ;;  %v827_v2 = vld [vmem:[%s14151_s3 + $0x198] sm:$0xff] }
  0x65   : > { %9478 = vmatpush1.bf16.msra.mxu1 %v9477_v44  ;;  %v9647_v44 = vpack.c.bf16 %v8316_v38, %v8314_v37  ;;  %v9649_v53 = vpack.c.bf16 %v8315_v46, %v8313_v45  ;;  %v8321_v7 = vld [vmem:[%s14151_s3 + $0x620] sm:$0xff]  ;;  %v9507_v9 = vpack.c.bf16 %v827_v2, %v825_v63  ;;  %v826_v10 = vld [vmem:[%s14151_s3 + $0x190] sm:$0xff]  ;;  %v8328_v12 = vld [vmem:[%s14151_s3 + $0x658] sm:$0xff] }
  0x66   : > { %9480 = vmatprep.subr.bf16.mxu1 %v9479_v49  ;;  %v8318_v49 = vld [vmem:[%s14151_s3 + $0x608] sm:$0xff]  ;;  %v831_v14 = vld [vmem:[%s14151_s3 + $0x1b8] sm:$0xff]  ;;  %v8327_v19 = vld [vmem:[%s14151_s3 + $0x650] sm:$0xff] }
  0x67   : > { %9630 = vmatpush1.bf16.msra.mxu0 %v9629_v55  ;;  %v820_v55 = vld [vmem:[%s14151_s3 + $0x160] sm:$0xff]  ;;  %v829_v13 = vld [vmem:[%s14151_s3 + $0x1a8] sm:$0xff]  ;;  %v830_v22 = vld [vmem:[%s14151_s3 + $0x1b0] sm:$0xff] }
  0x68   : > { %9632 = vmatprep.subr.bf16.mxu0 %v9631_v58  ;;  %v8319_v58 = vld [vmem:[%s14151_s3 + $0x610] sm:$0xff]  ;;  %v9505_v4 = vpack.c.bf16 %v822_v60, %v820_v55  ;;  %v828_v21 = vld [vmem:[%s14151_s3 + $0x1a0] sm:$0xff]  ;;  %v835_v24 = vld [vmem:[%s14151_s3 + $0x1d8] sm:$0xff] }
  0x69   : > { %9482 = vmatpush1.bf16.msra.mxu1 %v9481_v56  ;;  %v9651_v56 = vpack.c.bf16 %v8320_v50, %v8318_v49  ;;  %v9653_v3 = vpack.c.bf16 %v8319_v58, %v8317_v57  ;;  %v9513_v26 = vpack.c.bf16 %v830_v22, %v828_v21  ;;  %v832_v28 = vld [vmem:[%s14151_s3 + $0x1c0] sm:$0xff]  ;;  %v837_v31 = vld [vmem:[%s14151_s3 + $0x1e8] sm:$0xff]  ;;  %v838_v37 = vld [vmem:[%s14151_s3 + $0x1f0] sm:$0xff] }
  0x6a   : > { %9484 = vmatprep.subr.bf16.mxu1 %v9483_v61  ;;  %v8322_v61 = vld [vmem:[%s14151_s3 + $0x628] sm:$0xff]  ;;  %v836_v36 = vld [vmem:[%s14151_s3 + $0x1e0] sm:$0xff]  ;;  %v842_v50 = vld [vmem:[%s14151_s3 + $0x210] sm:$0xff] }
  0x6b   : > { %9634 = vmatpush1.bf16.msra.mxu0 %v9633_v5  ;;  %v824_v5 = vld [vmem:[%s14151_s3 + $0x180] sm:$0xff]  ;;  %v8330_v33 = vld [vmem:[%s14151_s3 + $0x668] sm:$0xff]  ;;  %v9521_v39 = vpack.c.bf16 %v838_v37, %v836_v36  ;;  %v847_v57 = vld [vmem:[%s14151_s3 + $0x238] sm:$0xff] }
  0x6c   : > { %9636 = vmatprep.subr.bf16.mxu0 %v9635_v8  ;;  %v8323_v8 = vld [vmem:[%s14151_s3 + $0x630] sm:$0xff]  ;;  %v9509_v16 = vpack.c.bf16 %v826_v10, %v824_v5  ;;  %v8329_v40 = vld [vmem:[%s14151_s3 + $0x660] sm:$0xff]  ;;  %v841_v43 = vld [vmem:[%s14151_s3 + $0x208] sm:$0xff] }
  0x6d   : > { %9486 = vmatpush1.bf16.msra.mxu1 %v9485_v6  ;;  %v9655_v6 = vpack.c.bf16 %v8324_v62, %v8322_v61  ;;  %v9657_v15 = vpack.c.bf16 %v8323_v8, %v8321_v7  ;;  %v8334_v45 = vld [vmem:[%s14151_s3 + $0x688] sm:$0xff]  ;;  %v840_v49 = vld [vmem:[%s14151_s3 + $0x200] sm:$0xff]  ;;  %v8343_v21 = vld [vmem:[%s14151_s3 + $0x6d0] sm:$0xff] }
  0x6e   : > { %9488 = vmatprep.subr.bf16.mxu1 %v9487_v11  ;;  %v8326_v11 = vld [vmem:[%s14151_s3 + $0x648] sm:$0xff]  ;;  %v8333_v52 = vld [vmem:[%s14151_s3 + $0x680] sm:$0xff]  ;;  %v9525_v63 = vpack.c.bf16 %v842_v50, %v840_v49  ;;  %v8347_v36 = vld [vmem:[%s14151_s3 + $0x6f0] sm:$0xff] }
  0x6f   : > { %9638 = vmatpush1.bf16.msra.mxu0 %v9637_v17  ;;  %v9659_v17 = vpack.c.bf16 %v8328_v12, %v8326_v11  ;;  %v8338_v58 = vld [vmem:[%s14151_s3 + $0x6a8] sm:$0xff]  ;;  %v8337_v8 = vld [vmem:[%s14151_s3 + $0x6a0] sm:$0xff]  ;;  %v851_v11 = vld [vmem:[%s14151_s3 + $0x258] sm:$0xff] }
  0x70   : > { %9640 = vmatprep.subr.bf16.mxu0 %v9639_v20  ;;  %v9511_v20 = vpack.c.bf16 %v831_v14, %v829_v13  ;;  %v849_v10 = vld [vmem:[%s14151_s3 + $0x248] sm:$0xff]  ;;  %v8344_v13 = vld [vmem:[%s14151_s3 + $0x6d8] sm:$0xff]  ;;  %vm10842_vm11 = vmpackc.low %vm8050_vm10, %vm11131_vm2 }
  0x71   : > { %9490 = vmatpush1.bf16.msra.mxu1 %v9489_v18  ;;  %v8325_v18 = vld [vmem:[%s14151_s3 + $0x640] sm:$0xff]  ;;  %v8342_v12 = vld [vmem:[%s14151_s3 + $0x6c8] sm:$0xff]  ;;  %v863_v50 = vld [vmem:[%s14151_s3 + $0x2b8] sm:$0xff] }
  0x72   : > { %9492 = vmatprep.subr.bf16.mxu1 %v9491_v23  ;;  %v833_v23 = vld [vmem:[%s14151_s3 + $0x1c8] sm:$0xff]  ;;  %v9661_v25 = vpack.c.bf16 %v8327_v19, %v8325_v18  ;;  %v9531_v18 = vpack.c.bf16 %v851_v11, %v849_v10  ;;  %v9675_v19 = vpack.c.bf16 %v8344_v13, %v8342_v12  ;;  %v866_v10 = vld [vmem:[%s14151_s3 + $0x2d0] sm:$0xff]  ;;  %v8357_v13 = vld [vmem:[%s14151_s3 + $0x740] sm:$0xff] }
  0x73   : > { %9642 = vmatpush1.bf16.msra.mxu0 %v9641_v29  ;;  %v9515_v27 = vpack.c.bf16 %v835_v24, %v833_v23  ;;  %v834_v29 = vld [vmem:[%s14151_s3 + $0x1d0] sm:$0xff]  ;;  %v853_v22 = vld [vmem:[%s14151_s3 + $0x268] sm:$0xff]  ;;  %v855_v24 = vld [vmem:[%s14151_s3 + $0x278] sm:$0xff] }
  0x74   : > { %9644 = vmatprep.subr.bf16.mxu0 %v9643_v32  ;;  %v839_v32 = vld [vmem:[%s14151_s3 + $0x1f8] sm:$0xff]  ;;  %v857_v37 = vld [vmem:[%s14151_s3 + $0x288] sm:$0xff] }
  0x75   : > { %9494 = vmatpush1.bf16.msra.mxu1 %v9493_v30  ;;  %v9517_v30 = vpack.c.bf16 %v834_v29, %v832_v28  ;;  %v9519_v34 = vpack.c.bf16 %v839_v32, %v837_v31  ;;  %v852_v31 = vld [vmem:[%s14151_s3 + $0x260] sm:$0xff]  ;;  %v854_v32 = vld [vmem:[%s14151_s3 + $0x270] sm:$0xff]  ;;  %v861_v49 = vld [vmem:[%s14151_s3 + $0x2a8] sm:$0xff] }
  0x76   : > { %9496 = vmatprep.subr.bf16.mxu1 %v9495_v35  ;;  %v8332_v35 = vld [vmem:[%s14151_s3 + $0x678] sm:$0xff] }
  0x77   : > { %9646 = vmatpush1.bf16.msra.mxu0 %v9645_v41  ;;  %v9663_v38 = vpack.c.bf16 %v8332_v35, %v8330_v33  ;;  %v8331_v41 = vld [vmem:[%s14151_s3 + $0x670] sm:$0xff]  ;;  %v9535_v33 = vpack.c.bf16 %v855_v24, %v853_v22  ;;  %v8345_v35 = vld [vmem:[%s14151_s3 + $0x6e0] sm:$0xff] }
  0x78   : > { %9648 = vmatprep.subr.bf16.mxu0 %v9647_v44  ;;  %v843_v44 = vld [vmem:[%s14151_s3 + $0x218] sm:$0xff]  ;;  %v870_v22 = vld [vmem:[%s14151_s3 + $0x2f0] sm:$0xff] }
  0x79   : > { %9498 = vmatpush1.bf16.msra.mxu1 %v9497_v42  ;;  %v9665_v42 = vpack.c.bf16 %v8331_v41, %v8329_v40  ;;  %v9523_v46 = vpack.c.bf16 %v843_v44, %v841_v43  ;;  %v8352_v40 = vld [vmem:[%s14151_s3 + $0x718] sm:$0xff]  ;;  %v9537_v41 = vpack.c.bf16 %v854_v32, %v852_v31  ;;  %v856_v43 = vld [vmem:[%s14151_s3 + $0x280] sm:$0xff]  ;;  %v858_v44 = vld [vmem:[%s14151_s3 + $0x290] sm:$0xff] }
  0x7a   : > { %9500 = vmatprep.subr.bf16.mxu1 %v9499_v47  ;;  %v8336_v47 = vld [vmem:[%s14151_s3 + $0x698] sm:$0xff]  ;;  %v8366_v31 = vld [vmem:[%s14151_s3 + $0x788] sm:$0xff] }
  0x7b   : > { %9650 = vmatpush1.bf16.msra.mxu0 %v9649_v53  ;;  %v9667_v48 = vpack.c.bf16 %v8336_v47, %v8334_v45  ;;  %v8335_v53 = vld [vmem:[%s14151_s3 + $0x690] sm:$0xff]  ;;  %v8349_v47 = vld [vmem:[%s14151_s3 + $0x700] sm:$0xff]  ;;  %v8368_v32 = vld [vmem:[%s14151_s3 + $0x798] sm:$0xff] }
  0x7c   : > { %9652 = vmatprep.subr.bf16.mxu0 %v9651_v56  ;;  %v9669_v2 = vpack.c.bf16 %v8335_v53, %v8333_v52  ;;  %v8354_v52 = vld [vmem:[%s14151_s3 + $0x728] sm:$0xff]  ;;  %v8356_v53 = vld [vmem:[%s14151_s3 + $0x738] sm:$0xff] }
  0x7d   : > { %9502 = vmatpush1.bf16.msra.mxu1 %v9501_v54  ;;  %v845_v54 = vld [vmem:[%s14151_s3 + $0x228] sm:$0xff] }
  0x7e   : > { %9504 = vmatprep.subr.bf16.mxu1 %v9503_v59  ;;  %v8340_v59 = vld [vmem:[%s14151_s3 + $0x6b8] sm:$0xff] }
  0x7f   : > { %9654 = vmatpush1.bf16.msra.mxu0 %v9653_v3  ;;  %v844_v3 = vld [vmem:[%s14151_s3 + $0x220] sm:$0xff]  ;;  %v9671_v7 = vpack.c.bf16 %v8340_v59, %v8338_v58  ;;  %v862_v58 = vld [vmem:[%s14151_s3 + $0x2b0] sm:$0xff]  ;;  %v9543_v59 = vpack.c.bf16 %v863_v50, %v861_v49 }
  0x80   : > { %9656 = vmatprep.subr.bf16.mxu0 %v9655_v6  ;;  %v9527_v6 = vpack.c.bf16 %v847_v57, %v845_v54  ;;  %v9541_v54 = vpack.c.bf16 %v858_v44, %v856_v43  ;;  %v860_v57 = vld [vmem:[%s14151_s3 + $0x2a0] sm:$0xff]  ;;  %v8370_v43 = vld [vmem:[%s14151_s3 + $0x7a8] sm:$0xff]  ;;  %v8372_v44 = vld [vmem:[%s14151_s3 + $0x7b8] sm:$0xff] }
  0x81   : > { %9506 = vmatpush1.bf16.msra.mxu1 %v9505_v4  ;;  %v846_v4 = vld [vmem:[%s14151_s3 + $0x230] sm:$0xff]  ;;  %v9703_v50 = vpack.c.bf16 %v8372_v44, %v8370_v43  ;;  %v8385_v43 = vld [vmem:[%s14151_s3 + $0x820] sm:$0xff] }
  0x82   : > { %9508 = vmatprep.subr.bf16.mxu1 %v9507_v9  ;;  %v8339_v9 = vld [vmem:[%s14151_s3 + $0x6b0] sm:$0xff]  ;;  %v9529_v14 = vpack.c.bf16 %v846_v4, %v844_v3  ;;  %v867_v3 = vld [vmem:[%s14151_s3 + $0x2d8] sm:$0xff]  ;;  %v8358_v4 = vld [vmem:[%s14151_s3 + $0x748] sm:$0xff] }
  0x83   : > { %9658 = vmatpush1.bf16.msra.mxu0 %v9657_v15  ;;  %v9673_v15 = vpack.c.bf16 %v8339_v9, %v8337_v8  ;;  %v864_v9 = vld [vmem:[%s14151_s3 + $0x2c0] sm:$0xff]  ;;  %v8387_v44 = vld [vmem:[%s14151_s3 + $0x830] sm:$0xff] }
  0x84   : > { %9660 = vmatprep.subr.bf16.mxu0 %v9659_v17  ;;  %v850_v17 = vld [vmem:[%s14151_s3 + $0x250] sm:$0xff] }
  0x85   : > { %9510 = vmatpush1.bf16.msra.mxu1 %v9509_v16  ;;  %v848_v16 = vld [vmem:[%s14151_s3 + $0x240] sm:$0xff] }
  0x86   : > { %9512 = vmatprep.subr.bf16.mxu1 %v9511_v20  ;;  %v8341_v20 = vld [vmem:[%s14151_s3 + $0x6c0] sm:$0xff]  ;;  %v9533_v29 = vpack.c.bf16 %v850_v17, %v848_v16  ;;  %v871_v16 = vld [vmem:[%s14151_s3 + $0x2f8] sm:$0xff]  ;;  %v8362_v17 = vld [vmem:[%s14151_s3 + $0x768] sm:$0xff] }
  0x87   : > { %9662 = vmatpush1.bf16.msra.mxu0 %v9661_v25  ;;  %v8346_v25 = vld [vmem:[%s14151_s3 + $0x6e8] sm:$0xff] }
  0x88   : > { %9664 = vmatprep.subr.bf16.mxu0 %v9663_v38  ;;  %v859_v38 = vld [vmem:[%s14151_s3 + $0x298] sm:$0xff] }
  0x89   : > { %9514 = vmatpush1.bf16.msra.mxu1 %v9513_v26  ;;  %v8348_v26 = vld [vmem:[%s14151_s3 + $0x6f8] sm:$0xff]  ;;  %v9539_v45 = vpack.c.bf16 %v859_v38, %v857_v37  ;;  %v9699_v38 = vpack.c.bf16 %v8368_v32, %v8366_v31  ;;  %v8381_v31 = vld [vmem:[%s14151_s3 + $0x800] sm:$0xff]  ;;  %v8383_v32 = vld [vmem:[%s14151_s3 + $0x810] sm:$0xff] }
  0x8a   : > { %9516 = vmatprep.subr.bf16.mxu1 %v9515_v27 }
  0x8b   : > { %9666 = vmatpush1.bf16.msra.mxu0 %v9665_v42  ;;  %v9681_v42 = vpack.c.bf16 %v8347_v36, %v8345_v35  ;;  %v872_v35 = vld [vmem:[%s14151_s3 + $0x300] sm:$0xff]  ;;  %v874_v36 = vld [vmem:[%s14151_s3 + $0x310] sm:$0xff] }
  0x8c   : > { %9668 = vmatprep.subr.bf16.mxu0 %v9667_v48  ;;  %v8351_v48 = vld [vmem:[%s14151_s3 + $0x710] sm:$0xff] }
  0x8d   : > { %9518 = vmatpush1.bf16.msra.mxu1 %v9517_v30  ;;  %v9677_v30 = vpack.c.bf16 %v8343_v21, %v8341_v20  ;;  %v868_v21 = vld [vmem:[%s14151_s3 + $0x2e0] sm:$0xff] }
  0x8e   : > { %9520 = vmatprep.subr.bf16.mxu1 %v9519_v34  ;;  %v9679_v34 = vpack.c.bf16 %v8348_v26, %v8346_v25  ;;  %v8361_v26 = vld [vmem:[%s14151_s3 + $0x760] sm:$0xff] }
  0x91   : > { %9522 = vmatpush1.bf16.msra.mxu1 %v9521_v39  ;;  %v8350_v39 = vld [vmem:[%s14151_s3 + $0x708] sm:$0xff] }
  0x92   : > { %9524 = vmatprep.subr.bf16.mxu1 %v9523_v46  ;;  %v9683_v46 = vpack.c.bf16 %v8352_v40, %v8350_v39  ;;  %v8365_v39 = vld [vmem:[%s14151_s3 + $0x780] sm:$0xff]  ;;  %v8367_v40 = vld [vmem:[%s14151_s3 + $0x790] sm:$0xff] }
  0xbc   : > { %v11759_v51 = vpop.permute.xlu0 %541 }
 0x11f   : > { %v630_v55 = vpop.f32.mrb[0].mxu1 }
 0x120   : > { %v11770_v56 = vpop.f32.mrb[0].mxu0  ;;  %v632_v60 = vpop.f32.mrb[1].mxu1  ;;  %v11791_v5 = vadd.f32 %v630_v55, %v11759_v51  ;;  %v9685_v55 = vpack.c.bf16 %v8351_v48, %v8349_v47  ;;  %v876_v47 = vld [vmem:[%s14151_s3 + $0x320] sm:$0xff]  ;;  %v878_v48 = vld [vmem:[%s14151_s3 + $0x330] sm:$0xff] }
 0x121   : > { %v9094_v61 = vpop.f32.mrb[1].mxu0  ;;  %v11782_v62 = vadd.f32 %v632_v60, %v11759_v51  ;;  %v9687_v60 = vpack.c.bf16 %v8356_v53, %v8354_v52  ;;  %v8369_v52 = vld [vmem:[%s14151_s3 + $0x7a0] sm:$0xff]  ;;  %v8371_v53 = vld [vmem:[%s14151_s3 + $0x7b0] sm:$0xff] }
 0x122   : > { %v8353_v61 = vld [vmem:[%s14151_s3 + $0x720] sm:$0xff] }
 0x123   : > { %988 = vmatprep.mubr.f32.mxu1 %v11782_v62  ;;  %1346 = vmatprep.mubr.f32.mxu0 %v11782_v62 }
 0x124   : > { %989 = vmatmul.mubr.f32.vlgmr.msra.gmra.mrb[4].mxu1 %v11791_v5  ;;  %1347 = vmatmul.mubr.f32.vlgmr.msra.gmra.mrb[2].mxu0 %v11791_v5 }
 0x125   : > { %9526 = vmatpush1.bf16.msra.mxu1 %v9525_v63  ;;  %9670 = vmatpush1.bf16.msra.mxu0 %v9669_v2  ;;  %v8355_v63 = vld [vmem:[%s14151_s3 + $0x730] sm:$0xff]  ;;  %v865_v2 = vld [vmem:[%s14151_s3 + $0x2c8] sm:$0xff] }
 0x126   : > { %9528 = vmatprep.subr.bf16.mxu1 %v9527_v6  ;;  %9672 = vmatprep.subr.bf16.mxu0 %v9671_v7  ;;  %v8360_v6 = vld [vmem:[%s14151_s3 + $0x758] sm:$0xff]  ;;  %v9545_v7 = vpack.c.bf16 %v862_v58, %v860_v57  ;;  %v9689_v8 = vpack.c.bf16 %v8355_v63, %v8353_v61  ;;  %v9547_v11 = vpack.c.bf16 %v867_v3, %v865_v2  ;;  %v8374_v57 = vld [vmem:[%s14151_s3 + $0x7c8] sm:$0xff]  ;;  %v880_v61 = vld [vmem:[%s14151_s3 + $0x340] sm:$0xff] }
 0x127   : > { %v11830_v23 = vpop.f32.mrb[2].mxu1  ;;  %v9691_v12 = vpack.c.bf16 %v8360_v6, %v8358_v4  ;;  %v8376_v58 = vld [vmem:[%s14151_s3 + $0x7d8] sm:$0xff]  ;;  %v882_v63 = vld [vmem:[%s14151_s3 + $0x350] sm:$0xff]  ;;  %v8373_v4 = vld [vmem:[%s14151_s3 + $0x7c0] sm:$0xff] }
 0x128   : > { %v703_v27 = vpop.f32.mrb[3].mxu1  ;;  %v9707_v3 = vpack.c.bf16 %v8376_v58, %v8374_v57  ;;  %v8375_v6 = vld [vmem:[%s14151_s3 + $0x7d0] sm:$0xff]  ;;  %v8389_v57 = vld [vmem:[%s14151_s3 + $0x840] sm:$0xff] }
 0x129   : > { %v11842_v28 = vadd.f32 %v703_v27, %v11759_v51  ;;  %9530 = vmatpush1.bf16.msra.mxu1 %v9529_v14  ;;  %9674 = vmatpush1.bf16.msra.mxu0 %v9673_v15  ;;  %v8359_v14 = vld [vmem:[%s14151_s3 + $0x750] sm:$0xff]  ;;  %v869_v15 = vld [vmem:[%s14151_s3 + $0x2e8] sm:$0xff] }
 0x12a   : > { %9532 = vmatprep.subr.bf16.mxu1 %v9531_v18  ;;  %9676 = vmatprep.subr.bf16.mxu0 %v9675_v19  ;;  %v8364_v18 = vld [vmem:[%s14151_s3 + $0x778] sm:$0xff]  ;;  %v9549_v19 = vpack.c.bf16 %v866_v10, %v864_v9  ;;  %v9693_v20 = vpack.c.bf16 %v8359_v14, %v8357_v13  ;;  %v9551_v24 = vpack.c.bf16 %v871_v16, %v869_v15  ;;  %v8363_v27 = vld [vmem:[%s14151_s3 + $0x770] sm:$0xff]  ;;  %v8378_v9 = vld [vmem:[%s14151_s3 + $0x7e8] sm:$0xff] }
 0x12b   : > { %1059 = vmatprep.mubr.f32.mxu1 %v11842_v28  ;;  %1417 = vmatprep.mubr.f32.mxu0 %v11842_v28  ;;  %v9695_v25 = vpack.c.bf16 %v8364_v18, %v8362_v17  ;;  %v8380_v10 = vld [vmem:[%s14151_s3 + $0x7f8] sm:$0xff]  ;;  %v884_v13 = vld [vmem:[%s14151_s3 + $0x360] sm:$0xff]  ;;  %v886_v14 = vld [vmem:[%s14151_s3 + $0x370] sm:$0xff] }
 0x12c   : > { %v9711_v16 = vpack.c.bf16 %v8380_v10, %v8378_v9  ;;  %v8377_v17 = vld [vmem:[%s14151_s3 + $0x7e0] sm:$0xff]  ;;  %v8379_v18 = vld [vmem:[%s14151_s3 + $0x7f0] sm:$0xff] }
 0x12d   : > { %9534 = vmatpush1.bf16.msra.mxu1 %v9533_v29  ;;  %9678 = vmatpush1.bf16.msra.mxu0 %v9677_v30  ;;  %v873_v29 = vld [vmem:[%s14151_s3 + $0x308] sm:$0xff]  ;;  %v875_v30 = vld [vmem:[%s14151_s3 + $0x318] sm:$0xff]  ;;  %v8391_v58 = vld [vmem:[%s14151_s3 + $0x850] sm:$0xff] }
 0x12e   : > { %9536 = vmatprep.subr.bf16.mxu1 %v9535_v33  ;;  %9680 = vmatprep.subr.bf16.mxu0 %v9679_v34  ;;  %v9553_v33 = vpack.c.bf16 %v870_v22, %v868_v21  ;;  %v9697_v34 = vpack.c.bf16 %v8363_v27, %v8361_v26  ;;  %v9555_v37 = vpack.c.bf16 %v875_v30, %v873_v29  ;;  %v8382_v21 = vld [vmem:[%s14151_s3 + $0x808] sm:$0xff]  ;;  %v8384_v22 = vld [vmem:[%s14151_s3 + $0x818] sm:$0xff]  ;;  %v888_v26 = vld [vmem:[%s14151_s3 + $0x380] sm:$0xff] }
 0x12f   : > { %v890_v27 = vld [vmem:[%s14151_s3 + $0x390] sm:$0xff]  ;;  %v9715_v30 = vpack.c.bf16 %v8384_v22, %v8382_v21  ;;  %v8393_v9 = vld [vmem:[%s14151_s3 + $0x860] sm:$0xff] }
 0x130   : > { %v8395_v10 = vld [vmem:[%s14151_s3 + $0x870] sm:$0xff]  ;;  %v8397_v21 = vld [vmem:[%s14151_s3 + $0x880] sm:$0xff] }
 0x131   : > { %9538 = vmatpush1.bf16.msra.mxu1 %v9537_v41  ;;  %9682 = vmatpush1.bf16.msra.mxu0 %v9681_v42  ;;  %v877_v41 = vld [vmem:[%s14151_s3 + $0x328] sm:$0xff]  ;;  %v879_v42 = vld [vmem:[%s14151_s3 + $0x338] sm:$0xff]  ;;  %v8399_v22 = vld [vmem:[%s14151_s3 + $0x890] sm:$0xff] }
 0x132   : > { %9540 = vmatprep.subr.bf16.mxu1 %v9539_v45  ;;  %9684 = vmatprep.subr.bf16.mxu0 %v9683_v46  ;;  %v9557_v45 = vpack.c.bf16 %v874_v36, %v872_v35  ;;  %v9701_v46 = vpack.c.bf16 %v8367_v40, %v8365_v39  ;;  %v9559_v49 = vpack.c.bf16 %v879_v42, %v877_v41  ;;  %v8386_v35 = vld [vmem:[%s14151_s3 + $0x828] sm:$0xff]  ;;  %v8388_v36 = vld [vmem:[%s14151_s3 + $0x838] sm:$0xff]  ;;  %v892_v39 = vld [vmem:[%s14151_s3 + $0x3a0] sm:$0xff] }
 0x133   : > { %v894_v40 = vld [vmem:[%s14151_s3 + $0x3b0] sm:$0xff]  ;;  %v9719_v42 = vpack.c.bf16 %v8388_v36, %v8386_v35  ;;  %v8401_v36 = vld [vmem:[%s14151_s3 + $0x8a0] sm:$0xff] }
 0x135   : > { %9542 = vmatpush1.bf16.msra.mxu1 %v9541_v54  ;;  %9686 = vmatpush1.bf16.msra.mxu0 %v9685_v55  ;;  %v881_v54 = vld [vmem:[%s14151_s3 + $0x348] sm:$0xff]  ;;  %v883_v55 = vld [vmem:[%s14151_s3 + $0x358] sm:$0xff] }
 0x136   : > { %9544 = vmatprep.subr.bf16.mxu1 %v9543_v59  ;;  %9688 = vmatprep.subr.bf16.mxu0 %v9687_v60  ;;  %v9561_v59 = vpack.c.bf16 %v878_v48, %v876_v47  ;;  %v9705_v60 = vpack.c.bf16 %v8371_v53, %v8369_v52  ;;  %v9563_v2 = vpack.c.bf16 %v883_v55, %v881_v54  ;;  %v8390_v47 = vld [vmem:[%s14151_s3 + $0x848] sm:$0xff]  ;;  %v8392_v48 = vld [vmem:[%s14151_s3 + $0x858] sm:$0xff]  ;;  %v896_v52 = vld [vmem:[%s14151_s3 + $0x3c0] sm:$0xff] }
 0x137   : > { %v898_v53 = vld [vmem:[%s14151_s3 + $0x3d0] sm:$0xff]  ;;  %v9723_v55 = vpack.c.bf16 %v8392_v48, %v8390_v47  ;;  %v8405_v47 = vld [vmem:[%s14151_s3 + $0x8c0] sm:$0xff] }
 0x138   : > { %v8407_v48 = vld [vmem:[%s14151_s3 + $0x8d0] sm:$0xff] }
 0x139   : > { %9546 = vmatpush1.bf16.msra.mxu1 %v9545_v7  ;;  %9690 = vmatpush1.bf16.msra.mxu0 %v9689_v8  ;;  %v885_v7 = vld [vmem:[%s14151_s3 + $0x368] sm:$0xff]  ;;  %v887_v8 = vld [vmem:[%s14151_s3 + $0x378] sm:$0xff] }
 0x13a   : > { %9548 = vmatprep.subr.bf16.mxu1 %v9547_v11  ;;  %9692 = vmatprep.subr.bf16.mxu0 %v9691_v12  ;;  %v9565_v11 = vpack.c.bf16 %v882_v63, %v880_v61  ;;  %v9709_v12 = vpack.c.bf16 %v8375_v6, %v8373_v4  ;;  %v9567_v15 = vpack.c.bf16 %v887_v8, %v885_v7  ;;  %v8394_v61 = vld [vmem:[%s14151_s3 + $0x868] sm:$0xff]  ;;  %v8396_v63 = vld [vmem:[%s14151_s3 + $0x878] sm:$0xff]  ;;  %v900_v4 = vld [vmem:[%s14151_s3 + $0x3e0] sm:$0xff] }
 0x13b   : > { %v902_v6 = vld [vmem:[%s14151_s3 + $0x3f0] sm:$0xff]  ;;  %v9727_v8 = vpack.c.bf16 %v8396_v63, %v8394_v61  ;;  %v8409_v61 = vld [vmem:[%s14151_s3 + $0x8e0] sm:$0xff] }
 0x13c   : > { %v8411_v63 = vld [vmem:[%s14151_s3 + $0x8f0] sm:$0xff] }
 0x13d   : > { %9550 = vmatpush1.bf16.msra.mxu1 %v9549_v19  ;;  %9694 = vmatpush1.bf16.msra.mxu0 %v9693_v20  ;;  %v889_v19 = vld [vmem:[%s14151_s3 + $0x388] sm:$0xff]  ;;  %v891_v20 = vld [vmem:[%s14151_s3 + $0x398] sm:$0xff] }
 0x13e   : > { %9552 = vmatprep.subr.bf16.mxu1 %v9551_v24  ;;  %9696 = vmatprep.subr.bf16.mxu0 %v9695_v25  ;;  %v9569_v24 = vpack.c.bf16 %v886_v14, %v884_v13  ;;  %v9713_v25 = vpack.c.bf16 %v8379_v18, %v8377_v17  ;;  %v9571_v29 = vpack.c.bf16 %v891_v20, %v889_v19  ;;  %v8398_v13 = vld [vmem:[%s14151_s3 + $0x888] sm:$0xff]  ;;  %v8400_v14 = vld [vmem:[%s14151_s3 + $0x898] sm:$0xff]  ;;  %v904_v17 = vld [vmem:[%s14151_s3 + $0x400] sm:$0xff] }
 0x13f   : > { %v906_v18 = vld [vmem:[%s14151_s3 + $0x410] sm:$0xff]  ;;  %v9731_v20 = vpack.c.bf16 %v8400_v14, %v8398_v13  ;;  %v8559_v13 = vld [vmem:[%s14151_s3 + $0xd80] sm:$0xff] }
 0x140   : > { %v8561_v14 = vld [vmem:[%s14151_s3 + $0xd90] sm:$0xff] }
 0x141   : > { %9554 = vmatpush1.bf16.msra.mxu1 %v9553_v33  ;;  %9698 = vmatpush1.bf16.msra.mxu0 %v9697_v34  ;;  %v893_v33 = vld [vmem:[%s14151_s3 + $0x3a8] sm:$0xff]  ;;  %v895_v34 = vld [vmem:[%s14151_s3 + $0x3b8] sm:$0xff] }
 0x142   : > { %9556 = vmatprep.subr.bf16.mxu1 %v9555_v37  ;;  %9700 = vmatprep.subr.bf16.mxu0 %v9699_v38  ;;  %v9573_v37 = vpack.c.bf16 %v890_v27, %v888_v26  ;;  %v9717_v38 = vpack.c.bf16 %v8383_v32, %v8381_v31  ;;  %v9575_v41 = vpack.c.bf16 %v895_v34, %v893_v33  ;;  %v8402_v26 = vld [vmem:[%s14151_s3 + $0x8a8] sm:$0xff]  ;;  %v8404_v27 = vld [vmem:[%s14151_s3 + $0x8b8] sm:$0xff]  ;;  %v908_v31 = vld [vmem:[%s14151_s3 + $0x420] sm:$0xff] }
 0x143   : > { %v910_v32 = vld [vmem:[%s14151_s3 + $0x430] sm:$0xff]  ;;  %v12190_v33 = vadd.f32 %v11830_v23, %v11759_v51  ;;  %v9735_v35 = vpack.c.bf16 %v8404_v27, %v8402_v26  ;;  %v915_v23 = vld [vmem:[%s14151_s3 + $0x458] sm:$0xff] }
 0x145   : > { %9558 = vmatpush1.bf16.msra.mxu1 %v9557_v45  ;;  %9702 = vmatpush1.bf16.msra.mxu0 %v9701_v46  ;;  %v897_v45 = vld [vmem:[%s14151_s3 + $0x3c8] sm:$0xff]  ;;  %v899_v46 = vld [vmem:[%s14151_s3 + $0x3d8] sm:$0xff] }
 0x146   : > { %9560 = vmatprep.subr.bf16.mxu1 %v9559_v49  ;;  %9704 = vmatprep.subr.bf16.mxu0 %v9703_v50  ;;  %v9577_v49 = vpack.c.bf16 %v894_v40, %v892_v39  ;;  %v9721_v50 = vpack.c.bf16 %v8387_v44, %v8385_v43  ;;  %v9579_v54 = vpack.c.bf16 %v899_v46, %v897_v45  ;;  %v8406_v39 = vld [vmem:[%s14151_s3 + $0x8c8] sm:$0xff]  ;;  %v8408_v40 = vld [vmem:[%s14151_s3 + $0x8d8] sm:$0xff]  ;;  %v912_v43 = vld [vmem:[%s14151_s3 + $0x440] sm:$0xff] }
 0x147   : > { %v914_v44 = vld [vmem:[%s14151_s3 + $0x450] sm:$0xff]  ;;  %v9739_v46 = vpack.c.bf16 %v8408_v40, %v8406_v39  ;;  %v8427_v39 = vld [vmem:[%s14151_s3 + $0x968] sm:$0xff]  ;;  %v8429_v40 = vld [vmem:[%s14151_s3 + $0x978] sm:$0xff] }
 0x149   : > { %9562 = vmatpush1.bf16.msra.mxu1 %v9561_v59  ;;  %9706 = vmatpush1.bf16.msra.mxu0 %v9705_v60  ;;  %v901_v59 = vld [vmem:[%s14151_s3 + $0x3e8] sm:$0xff]  ;;  %v903_v60 = vld [vmem:[%s14151_s3 + $0x3f8] sm:$0xff] }
 0x14a   : > { %9564 = vmatprep.subr.bf16.mxu1 %v9563_v2  ;;  %9708 = vmatprep.subr.bf16.mxu0 %v9707_v3  ;;  %v9581_v2 = vpack.c.bf16 %v898_v53, %v896_v52  ;;  %v9725_v3 = vpack.c.bf16 %v8391_v58, %v8389_v57  ;;  %v9583_v7 = vpack.c.bf16 %v903_v60, %v901_v59  ;;  %v8410_v52 = vld [vmem:[%s14151_s3 + $0x8e8] sm:$0xff]  ;;  %v8412_v53 = vld [vmem:[%s14151_s3 + $0x8f8] sm:$0xff]  ;;  %v916_v57 = vld [vmem:[%s14151_s3 + $0x460] sm:$0xff] }
 0x14b   : > { %v918_v58 = vld [vmem:[%s14151_s3 + $0x470] sm:$0xff]  ;;  %v9743_v60 = vpack.c.bf16 %v8412_v53, %v8410_v52  ;;  %v8431_v52 = vld [vmem:[%s14151_s3 + $0x988] sm:$0xff]  ;;  %v8433_v53 = vld [vmem:[%s14151_s3 + $0x998] sm:$0xff] }
 0x14d   : > { %9566 = vmatpush1.bf16.msra.mxu1 %v9565_v11  ;;  %9710 = vmatpush1.bf16.msra.mxu0 %v9709_v12  ;;  %v905_v11 = vld [vmem:[%s14151_s3 + $0x408] sm:$0xff]  ;;  %v907_v12 = vld [vmem:[%s14151_s3 + $0x418] sm:$0xff] }
 0x14e   : > { %9568 = vmatprep.subr.bf16.mxu1 %v9567_v15  ;;  %9712 = vmatprep.subr.bf16.mxu0 %v9711_v16  ;;  %v9585_v15 = vpack.c.bf16 %v902_v6, %v900_v4  ;;  %v9729_v16 = vpack.c.bf16 %v8395_v10, %v8393_v9  ;;  %v9587_v19 = vpack.c.bf16 %v907_v12, %v905_v11  ;;  %v8560_v4 = vld [vmem:[%s14151_s3 + $0xd88] sm:$0xff]  ;;  %v8562_v6 = vld [vmem:[%s14151_s3 + $0xd98] sm:$0xff]  ;;  %v8414_v11 = vld [vmem:[%s14151_s3 + $0x900] sm:$0xff] }
 0x14f   : > { %v9891_v10 = vpack.c.bf16 %v8562_v6, %v8560_v4  ;;  %v8416_v12 = vld [vmem:[%s14151_s3 + $0x910] sm:$0xff]  ;;  %v8435_v4 = vld [vmem:[%s14151_s3 + $0x9a8] sm:$0xff]  ;;  %v8437_v6 = vld [vmem:[%s14151_s3 + $0x9b8] sm:$0xff] }
 0x151   : > { %9570 = vmatpush1.bf16.msra.mxu1 %v9569_v24  ;;  %9714 = vmatpush1.bf16.msra.mxu0 %v9713_v25  ;;  %v909_v24 = vld [vmem:[%s14151_s3 + $0x428] sm:$0xff]  ;;  %v911_v25 = vld [vmem:[%s14151_s3 + $0x438] sm:$0xff] }
 0x152   : > { %9572 = vmatprep.subr.bf16.mxu1 %v9571_v29  ;;  %9716 = vmatprep.subr.bf16.mxu0 %v9715_v30  ;;  %v9589_v29 = vpack.c.bf16 %v906_v18, %v904_v17  ;;  %v9733_v30 = vpack.c.bf16 %v8399_v22, %v8397_v21  ;;  %v9591_v34 = vpack.c.bf16 %v911_v25, %v909_v24  ;;  %v8564_v17 = vld [vmem:[%s14151_s3 + $0xda8] sm:$0xff]  ;;  %v8566_v18 = vld [vmem:[%s14151_s3 + $0xdb8] sm:$0xff]  ;;  %v8418_v22 = vld [vmem:[%s14151_s3 + $0x920] sm:$0xff] }
 0x153   : > { %v9893_v21 = vpack.c.bf16 %v8561_v14, %v8559_v13  ;;  %v8420_v24 = vld [vmem:[%s14151_s3 + $0x930] sm:$0xff]  ;;  %v8563_v25 = vld [vmem:[%s14151_s3 + $0xda0] sm:$0xff]  ;;  %v9895_v27 = vpack.c.bf16 %v8566_v18, %v8564_v17  ;;  %v8439_v17 = vld [vmem:[%s14151_s3 + $0x9c8] sm:$0xff] }
 0x154   : > { %v8436_v13 = vld [vmem:[%s14151_s3 + $0x9b0] sm:$0xff]  ;;  %v8579_v14 = vld [vmem:[%s14151_s3 + $0xe20] sm:$0xff]  ;;  %v8441_v18 = vld [vmem:[%s14151_s3 + $0x9d8] sm:$0xff] }
 0x155   : > { %9574 = vmatpush1.bf16.msra.mxu1 %v9573_v37  ;;  %9718 = vmatpush1.bf16.msra.mxu0 %v9717_v38  ;;  %v8403_v37 = vld [vmem:[%s14151_s3 + $0x8b0] sm:$0xff]  ;;  %v913_v38 = vld [vmem:[%s14151_s3 + $0x448] sm:$0xff] }
 0x156   : > { %9576 = vmatprep.subr.bf16.mxu1 %v9575_v41  ;;  %9720 = vmatprep.subr.bf16.mxu0 %v9719_v42  ;;  %v9593_v41 = vpack.c.bf16 %v910_v32, %v908_v31  ;;  %v9737_v42 = vpack.c.bf16 %v8403_v37, %v8401_v36  ;;  %v9595_v45 = vpack.c.bf16 %v915_v23, %v913_v38  ;;  %v8570_v31 = vld [vmem:[%s14151_s3 + $0xdd8] sm:$0xff]  ;;  %v8422_v36 = vld [vmem:[%s14151_s3 + $0x940] sm:$0xff]  ;;  %v8424_v37 = vld [vmem:[%s14151_s3 + $0x950] sm:$0xff] }
 0x157   : > { %v9753_v32 = vpack.c.bf16 %v8420_v24, %v8418_v22  ;;  %v8567_v38 = vld [vmem:[%s14151_s3 + $0xdc0] sm:$0xff] }
 0x159   : > { %9578 = vmatpush1.bf16.msra.mxu1 %v9577_v49  ;;  %9722 = vmatpush1.bf16.msra.mxu0 %v9721_v50  ;;  %v917_v49 = vld [vmem:[%s14151_s3 + $0x468] sm:$0xff]  ;;  %v919_v50 = vld [vmem:[%s14151_s3 + $0x478] sm:$0xff] }
 0x15a   : > { %9580 = vmatprep.subr.bf16.mxu1 %v9579_v54  ;;  %9724 = vmatprep.subr.bf16.mxu0 %v9723_v55  ;;  %v9597_v54 = vpack.c.bf16 %v914_v44, %v912_v43  ;;  %v9741_v55 = vpack.c.bf16 %v8407_v48, %v8405_v47  ;;  %v9599_v59 = vpack.c.bf16 %v919_v50, %v917_v49  ;;  %v8428_v47 = vld [vmem:[%s14151_s3 + $0x970] sm:$0xff]  ;;  %v8571_v48 = vld [vmem:[%s14151_s3 + $0xde0] sm:$0xff] }
 0x15b   : > { %v9757_v43 = vpack.c.bf16 %v8424_v37, %v8422_v36  ;;  %v8573_v50 = vld [vmem:[%s14151_s3 + $0xdf0] sm:$0xff] }
 0x15d   : > { %9582 = vmatpush1.bf16.msra.mxu1 %v9581_v2  ;;  %9726 = vmatpush1.bf16.msra.mxu0 %v9725_v3  ;;  %v8415_v2 = vld [vmem:[%s14151_s3 + $0x908] sm:$0xff]  ;;  %v8417_v3 = vld [vmem:[%s14151_s3 + $0x918] sm:$0xff] }
 0x15e   : > { %9584 = vmatprep.subr.bf16.mxu1 %v9583_v7  ;;  %9728 = vmatprep.subr.bf16.mxu0 %v9727_v8  ;;  %v9601_v7 = vpack.c.bf16 %v918_v58, %v916_v57  ;;  %v9745_v8 = vpack.c.bf16 %v8411_v63, %v8409_v61  ;;  %v9747_v9 = vpack.c.bf16 %v8417_v3, %v8415_v2  ;;  %v8432_v61 = vld [vmem:[%s14151_s3 + $0x990] sm:$0xff]  ;;  %v8575_v63 = vld [vmem:[%s14151_s3 + $0xe00] sm:$0xff] }
 0x15f   : > { %v9905_v58 = vpack.c.bf16 %v8573_v50, %v8571_v48  ;;  %v8577_v3 = vld [vmem:[%s14151_s3 + $0xe10] sm:$0xff]  ;;  %v8446_v48 = vld [vmem:[%s14151_s3 + $0xa00] sm:$0xff] }
 0x160   : > { %v8591_v50 = vld [vmem:[%s14151_s3 + $0xe80] sm:$0xff] }
 0x161   : > { %9586 = vmatpush1.bf16.msra.mxu1 %v9585_v15  ;;  %9730 = vmatpush1.bf16.msra.mxu0 %v9729_v16  ;;  %v8419_v15 = vld [vmem:[%s14151_s3 + $0x928] sm:$0xff]  ;;  %v8421_v16 = vld [vmem:[%s14151_s3 + $0x938] sm:$0xff] }
 0x162   : > { %9588 = vmatprep.subr.bf16.mxu1 %v9587_v19  ;;  %9732 = vmatprep.subr.bf16.mxu0 %v9731_v20  ;;  %v9749_v19 = vpack.c.bf16 %v8416_v12, %v8414_v11  ;;  %v12288_v20 = vadd.f32 %v11770_v56, %v11759_v51  ;;  %v9751_v26 = vpack.c.bf16 %v8421_v16, %v8419_v15  ;;  %v8565_v51 = vld [vmem:[%s14151_s3 + $0xdb0] sm:$0xff]  ;;  %v8423_v56 = vld [vmem:[%s14151_s3 + $0x948] sm:$0xff]  ;;  %v8434_v12 = vld [vmem:[%s14151_s3 + $0x9a0] sm:$0xff] }
 0x163   : > { %v9767_v11 = vpack.c.bf16 %v8437_v6, %v8435_v4  ;;  %v8581_v16 = vld [vmem:[%s14151_s3 + $0xe30] sm:$0xff]  ;;  %v9769_v22 = vpack.c.bf16 %v8436_v13, %v8434_v12 }
 0x164   : > { %1060 = vmatmul.mubr.f32.vlgmr.msra.gmra.mrb[4].mxu1 %v12190_v33  ;;  %1418 = vmatmul.mubr.f32.vlgmr.msra.gmra.mrb[2].mxu0 %v12190_v33  ;;  %v9913_v24 = vpack.c.bf16 %v8581_v16, %v8579_v14  ;;  %v8597_v6 = vld [vmem:[%s14151_s3 + $0xeb0] sm:$0xff]  ;;  %v8454_v14 = vld [vmem:[%s14151_s3 + $0xa40] sm:$0xff] }
 0x165   : > { %9590 = vmatpush1.bf16.msra.mxu1 %v9589_v29  ;;  %9734 = vmatpush1.bf16.msra.mxu0 %v9733_v30  ;;  %v8425_v29 = vld [vmem:[%s14151_s3 + $0x958] sm:$0xff]  ;;  %v8568_v30 = vld [vmem:[%s14151_s3 + $0xdc8] sm:$0xff]  ;;  %v8599_v16 = vld [vmem:[%s14151_s3 + $0xec0] sm:$0xff] }
 0x166   : > { %9592 = vmatprep.subr.bf16.mxu1 %v9591_v34  ;;  %9736 = vmatprep.subr.bf16.mxu0 %v9735_v35  ;;  %v9897_v34 = vpack.c.bf16 %v8565_v51, %v8563_v25  ;;  %v9755_v35 = vpack.c.bf16 %v8425_v29, %v8423_v56  ;;  %v9899_v23 = vpack.c.bf16 %v8570_v31, %v8568_v30  ;;  %v8583_v51 = vld [vmem:[%s14151_s3 + $0xe40] sm:$0xff]  ;;  %v8585_v29 = vld [vmem:[%s14151_s3 + $0xe50] sm:$0xff]  ;;  %v8443_v30 = vld [vmem:[%s14151_s3 + $0x9e8] sm:$0xff] }
 0x167   : > { %1130 = vmatprep.mubr.f32.mxu1 %v11128_v1  ;;  %1488 = vmatprep.mubr.f32.mxu0 %v11128_v1  ;;  %v9771_v25 = vpack.c.bf16 %v8441_v18, %v8439_v17  ;;  %v8445_v31 = vld [vmem:[%s14151_s3 + $0x9f8] sm:$0xff]  ;;  %v9917_v36 = vpack.c.bf16 %v8585_v29, %v8583_v51  ;;  %v8601_v18 = vld [vmem:[%s14151_s3 + $0xed0] sm:$0xff]  ;;  %v8458_v51 = vld [vmem:[%s14151_s3 + $0xa60] sm:$0xff] }
 0x168   : > { %v9775_v37 = vpack.c.bf16 %v8445_v31, %v8443_v30  ;;  %v8603_v29 = vld [vmem:[%s14151_s3 + $0xee0] sm:$0xff]  ;;  %v8605_v31 = vld [vmem:[%s14151_s3 + $0xef0] sm:$0xff] }
 0x169   : > { %9594 = vmatpush1.bf16.msra.mxu1 %v9593_v41  ;;  %9738 = vmatpush1.bf16.msra.mxu0 %v9737_v42  ;;  %v8572_v41 = vld [vmem:[%s14151_s3 + $0xde8] sm:$0xff]  ;;  %v8574_v42 = vld [vmem:[%s14151_s3 + $0xdf8] sm:$0xff] }
 0x16a   : > { %9596 = vmatprep.subr.bf16.mxu1 %v9595_v45  ;;  %9740 = vmatprep.subr.bf16.mxu0 %v9739_v46  ;;  %v9759_v45 = vpack.c.bf16 %v8429_v40, %v8427_v39  ;;  %v8426_v46 = vld [vmem:[%s14151_s3 + $0x960] sm:$0xff]  ;;  %v9903_v49 = vpack.c.bf16 %v8574_v42, %v8572_v41  ;;  %v8589_v40 = vld [vmem:[%s14151_s3 + $0xe70] sm:$0xff]  ;;  %v8447_v41 = vld [vmem:[%s14151_s3 + $0xa08] sm:$0xff] }
 0x16b   : > { %v9761_v57 = vpack.c.bf16 %v8428_v47, %v8426_v46  ;;  %v8449_v42 = vld [vmem:[%s14151_s3 + $0xa18] sm:$0xff] }
 0x16c   : > { %v9779_v47 = vpack.c.bf16 %v8449_v42, %v8447_v41  ;;  %v8609_v42 = vld [vmem:[%s14151_s3 + $0xf10] sm:$0xff] }
 0x16d   : > { %9598 = vmatpush1.bf16.msra.mxu1 %v9597_v54  ;;  %9742 = vmatpush1.bf16.msra.mxu0 %v9741_v55  ;;  %v8576_v54 = vld [vmem:[%s14151_s3 + $0xe08] sm:$0xff]  ;;  %v8578_v55 = vld [vmem:[%s14151_s3 + $0xe18] sm:$0xff] }
 0x16e   : > { %9600 = vmatprep.subr.bf16.mxu1 %v9599_v59  ;;  %9744 = vmatprep.subr.bf16.mxu0 %v9743_v60  ;;  %v9763_v59 = vpack.c.bf16 %v8433_v53, %v8431_v52  ;;  %v8430_v60 = vld [vmem:[%s14151_s3 + $0x980] sm:$0xff]  ;;  %v9907_v2 = vpack.c.bf16 %v8578_v55, %v8576_v54  ;;  %v8593_v53 = vld [vmem:[%s14151_s3 + $0xe90] sm:$0xff]  ;;  %v8451_v54 = vld [vmem:[%s14151_s3 + $0xa28] sm:$0xff] }
 0x16f   : > { %v8453_v55 = vld [vmem:[%s14151_s3 + $0xa38] sm:$0xff] }
 0x171   : > { %9602 = vmatpush1.bf16.msra.mxu1 %v9601_v7  ;;  %9746 = vmatpush1.bf16.msra.mxu0 %v9745_v8  ;;  %v8580_v7 = vld [vmem:[%s14151_s3 + $0xe28] sm:$0xff]  ;;  %v8582_v8 = vld [vmem:[%s14151_s3 + $0xe38] sm:$0xff] }
 0x172   : > { %9748 = vmatprep.subr.bf16.mxu1 %v9747_v9  ;;  %9892 = vmatprep.subr.bf16.mxu0 %v9891_v10  ;;  %v9765_v9 = vpack.c.bf16 %v8432_v61, %v8430_v60  ;;  %v9909_v10 = vpack.c.bf16 %v8577_v3, %v8575_v63  ;;  %v9911_v15 = vpack.c.bf16 %v8582_v8, %v8580_v7  ;;  %v8450_v63 = vld [vmem:[%s14151_s3 + $0xa20] sm:$0xff]  ;;  %v8455_v7 = vld [vmem:[%s14151_s3 + $0xa48] sm:$0xff]  ;;  %v8457_v8 = vld [vmem:[%s14151_s3 + $0xa58] sm:$0xff] }
 0x173   : > { %v9925_v60 = vpack.c.bf16 %v8593_v53, %v8591_v50  ;;  %v9783_v61 = vpack.c.bf16 %v8453_v55, %v8451_v54  ;;  %v8595_v3 = vld [vmem:[%s14151_s3 + $0xea0] sm:$0xff]  ;;  %v9787_v13 = vpack.c.bf16 %v8457_v8, %v8455_v7  ;;  %v8613_v55 = vld [vmem:[%s14151_s3 + $0xf30] sm:$0xff] }
 0x174   : > { %8268 = vmatmul.mubr.msk.f32.vlgmr.msra.gmra.mrb[4].mxu1 %vm920_vm5, %v12288_v20  ;;  %8413 = vmatmul.mubr.msk.f32.vlgmr.msra.gmra.mrb[2].mxu0 %vm920_vm5, %v12288_v20  ;;  %v9929_v12 = vpack.c.bf16 %v8597_v6, %v8595_v3  ;;  %v8466_v50 = vld [vmem:[%s14151_s3 + $0xaa0] sm:$0xff]  ;;  %v8617_v8 = vld [vmem:[%s14151_s3 + $0xf50] sm:$0xff] }
 0x175   : > { %9750 = vmatpush1.bf16.msra.mxu1 %v9749_v19  ;;  %1706 = vmatprep.mubr.f32.mxu1 %v11782_v62  ;;  %v8584_v19 = vld [vmem:[%s14151_s3 + $0xe48] sm:$0xff]  ;;  %v8611_v53 = vld [vmem:[%s14151_s3 + $0xf20] sm:$0xff] }
 0x176   : > { %9894 = vmatpush1.bf16.msra.mxu0 %v9893_v21  ;;  %2066 = vmatprep.mubr.f32.mxu0 %v11782_v62  ;;  %v8569_v62 = vld [vmem:[%s14151_s3 + $0xdd0] sm:$0xff]  ;;  %v8586_v21 = vld [vmem:[%s14151_s3 + $0xe58] sm:$0xff]  ;;  %v8470_v3 = vld [vmem:[%s14151_s3 + $0xac0] sm:$0xff] }
 0x177   : > { %9752 = vmatprep.subr.bf16.mxu1 %v9751_v26  ;;  %9896 = vmatprep.subr.bf16.mxu0 %v9895_v27  ;;  %v9901_v44 = vpack.c.bf16 %v8569_v62, %v8567_v38  ;;  %v8438_v26 = vld [vmem:[%s14151_s3 + $0x9c0] sm:$0xff]  ;;  %v8440_v27 = vld [vmem:[%s14151_s3 + $0x9d0] sm:$0xff]  ;;  %v9915_v56 = vpack.c.bf16 %v8586_v21, %v8584_v19  ;;  %v8459_v19 = vld [vmem:[%s14151_s3 + $0xa68] sm:$0xff] }
 0x178   : > { %v8442_v38 = vld [vmem:[%s14151_s3 + $0x9e0] sm:$0xff]  ;;  %v8461_v21 = vld [vmem:[%s14151_s3 + $0xa78] sm:$0xff] }
 0x179   : > { %9754 = vmatpush1.bf16.msra.mxu1 %v9753_v32  ;;  %v8588_v32 = vld [vmem:[%s14151_s3 + $0xe68] sm:$0xff]  ;;  %v8587_v62 = vld [vmem:[%s14151_s3 + $0xe60] sm:$0xff] }
 0x17a   : > { %9898 = vmatpush1.bf16.msra.mxu0 %v9897_v34  ;;  %9756 = vmatprep.subr.bf16.mxu1 %v9755_v35  ;;  %v8590_v34 = vld [vmem:[%s14151_s3 + $0xe78] sm:$0xff]  ;;  %v9773_v35 = vpack.c.bf16 %v8440_v27, %v8438_v26  ;;  %v9921_v46 = vpack.c.bf16 %v8589_v40, %v8587_v62  ;;  %v9933_v26 = vpack.c.bf16 %v8601_v18, %v8599_v16  ;;  %v8462_v62 = vld [vmem:[%s14151_s3 + $0xa80] sm:$0xff] }
 0x17b   : > { %9900 = vmatprep.subr.bf16.mxu0 %v9899_v23  ;;  %v8444_v23 = vld [vmem:[%s14151_s3 + $0x9f0] sm:$0xff]  ;;  %v9919_v39 = vpack.c.bf16 %v8590_v34, %v8588_v32  ;;  %v9791_v27 = vpack.c.bf16 %v8461_v21, %v8459_v19  ;;  %v8463_v32 = vld [vmem:[%s14151_s3 + $0xa88] sm:$0xff]  ;;  %v8465_v34 = vld [vmem:[%s14151_s3 + $0xa98] sm:$0xff] }
 0x17c   : > { %v8607_v40 = vld [vmem:[%s14151_s3 + $0xf00] sm:$0xff]  ;;  %v8621_v21 = vld [vmem:[%s14151_s3 + $0xf70] sm:$0xff] }
 0x17d   : > { %9758 = vmatpush1.bf16.msra.mxu1 %v9757_v43  ;;  %v8592_v43 = vld [vmem:[%s14151_s3 + $0xe88] sm:$0xff]  ;;  %v8615_v6 = vld [vmem:[%s14151_s3 + $0xf40] sm:$0xff] }
 0x17e   : > { %9902 = vmatpush1.bf16.msra.mxu0 %v9901_v44  ;;  %9760 = vmatprep.subr.bf16.mxu1 %v9759_v45  ;;  %v8594_v44 = vld [vmem:[%s14151_s3 + $0xe98] sm:$0xff]  ;;  %v9777_v45 = vpack.c.bf16 %v8444_v23, %v8442_v38  ;;  %v9937_v38 = vpack.c.bf16 %v8605_v31, %v8603_v29  ;;  %v9795_v23 = vpack.c.bf16 %v8465_v34, %v8463_v32  ;;  %v8474_v16 = vld [vmem:[%s14151_s3 + $0xae0] sm:$0xff]  ;;  %v8625_v34 = vld [vmem:[%s14151_s3 + $0xf90] sm:$0xff] }
 0x17f   : > { %9904 = vmatprep.subr.bf16.mxu0 %v9903_v49  ;;  %v8448_v49 = vld [vmem:[%s14151_s3 + $0xa10] sm:$0xff]  ;;  %v9923_v52 = vpack.c.bf16 %v8594_v44, %v8592_v43  ;;  %v8467_v43 = vld [vmem:[%s14151_s3 + $0xaa8] sm:$0xff]  ;;  %v8469_v44 = vld [vmem:[%s14151_s3 + $0xab8] sm:$0xff] }
 0x180   : > { %v8619_v18 = vld [vmem:[%s14151_s3 + $0xf60] sm:$0xff] }
 0x181   : > { %9762 = vmatpush1.bf16.msra.mxu1 %v9761_v57  ;;  %v8596_v57 = vld [vmem:[%s14151_s3 + $0xea8] sm:$0xff]  ;;  %v8478_v29 = vld [vmem:[%s14151_s3 + $0xb00] sm:$0xff] }
 0x182   : > { %9906 = vmatpush1.bf16.msra.mxu0 %v9905_v58  ;;  %9764 = vmatprep.subr.bf16.mxu1 %v9763_v59  ;;  %v8598_v58 = vld [vmem:[%s14151_s3 + $0xeb8] sm:$0xff]  ;;  %v9781_v59 = vpack.c.bf16 %v8448_v49, %v8446_v48  ;;  %v9941_v48 = vpack.c.bf16 %v8609_v42, %v8607_v40  ;;  %v9799_v49 = vpack.c.bf16 %v8469_v44, %v8467_v43  ;;  %v8623_v32 = vld [vmem:[%s14151_s3 + $0xf80] sm:$0xff]  ;;  %v8484_v40 = vld [vmem:[%s14151_s3 + $0xb30] sm:$0xff] }
 0x183   : > { %9908 = vmatprep.subr.bf16.mxu0 %v9907_v2  ;;  %v8452_v2 = vld [vmem:[%s14151_s3 + $0xa30] sm:$0xff]  ;;  %v9927_v4 = vpack.c.bf16 %v8598_v58, %v8596_v57  ;;  %v8471_v57 = vld [vmem:[%s14151_s3 + $0xac8] sm:$0xff]  ;;  %v8473_v58 = vld [vmem:[%s14151_s3 + $0xad8] sm:$0xff] }
 0x184   : > { %v8629_v43 = vld [vmem:[%s14151_s3 + $0xfb0] sm:$0xff]  ;;  %v8487_v44 = vld [vmem:[%s14151_s3 + $0xb48] sm:$0xff] }
 0x185   : > { %9766 = vmatpush1.bf16.msra.mxu1 %v9765_v9  ;;  %v8600_v9 = vld [vmem:[%s14151_s3 + $0xec8] sm:$0xff] }
 0x186   : > { %9910 = vmatpush1.bf16.msra.mxu0 %v9909_v10  ;;  %9768 = vmatprep.subr.bf16.mxu1 %v9767_v11  ;;  %v8602_v10 = vld [vmem:[%s14151_s3 + $0xed8] sm:$0xff]  ;;  %v9785_v11 = vpack.c.bf16 %v8452_v2, %v8450_v63  ;;  %v9945_v63 = vpack.c.bf16 %v8613_v55, %v8611_v53  ;;  %v9803_v2 = vpack.c.bf16 %v8473_v58, %v8471_v57  ;;  %v8486_v53 = vld [vmem:[%s14151_s3 + $0xb40] sm:$0xff]  ;;  %v8633_v57 = vld [vmem:[%s14151_s3 + $0xfd0] sm:$0xff] }
 0x187   : > { %9912 = vmatprep.subr.bf16.mxu0 %v9911_v15  ;;  %v8456_v15 = vld [vmem:[%s14151_s3 + $0xa50] sm:$0xff]  ;;  %v9931_v17 = vpack.c.bf16 %v8602_v10, %v8600_v9  ;;  %v8475_v9 = vld [vmem:[%s14151_s3 + $0xae8] sm:$0xff]  ;;  %v8477_v10 = vld [vmem:[%s14151_s3 + $0xaf8] sm:$0xff] }
 0x188   : > { %v8631_v55 = vld [vmem:[%s14151_s3 + $0xfc0] sm:$0xff]  ;;  %v8491_v58 = vld [vmem:[%s14151_s3 + $0xb68] sm:$0xff] }
 0x189   : > { %9770 = vmatpush1.bf16.msra.mxu1 %v9769_v22  ;;  %v8604_v22 = vld [vmem:[%s14151_s3 + $0xee8] sm:$0xff] }
 0x18a   : > { %9914 = vmatpush1.bf16.msra.mxu0 %v9913_v24  ;;  %9772 = vmatprep.subr.bf16.mxu1 %v9771_v25  ;;  %v8606_v24 = vld [vmem:[%s14151_s3 + $0xef8] sm:$0xff]  ;;  %v9789_v25 = vpack.c.bf16 %v8456_v15, %v8454_v14  ;;  %v9949_v14 = vpack.c.bf16 %v8617_v8, %v8615_v6  ;;  %v9807_v15 = vpack.c.bf16 %v8477_v10, %v8475_v9  ;;  %v8635_v6 = vld [vmem:[%s14151_s3 + $0xfe0] sm:$0xff]  ;;  %v8637_v8 = vld [vmem:[%s14151_s3 + $0xff0] sm:$0xff] }
 0x18b   : > { %9916 = vmatprep.subr.bf16.mxu0 %v9915_v56  ;;  %v8460_v56 = vld [vmem:[%s14151_s3 + $0xa70] sm:$0xff]  ;;  %v9935_v30 = vpack.c.bf16 %v8606_v24, %v8604_v22  ;;  %v8479_v22 = vld [vmem:[%s14151_s3 + $0xb08] sm:$0xff]  ;;  %v8481_v24 = vld [vmem:[%s14151_s3 + $0xb18] sm:$0xff] }
 0x18c   : > { %v8495_v9 = vld [vmem:[%s14151_s3 + $0xb88] sm:$0xff]  ;;  %v8497_v10 = vld [vmem:[%s14151_s3 + $0xb98] sm:$0xff] }
 0x18d   : > { %9774 = vmatpush1.bf16.msra.mxu1 %v9773_v35  ;;  %v8608_v35 = vld [vmem:[%s14151_s3 + $0xf08] sm:$0xff] }
 0x18e   : > { %9918 = vmatpush1.bf16.msra.mxu0 %v9917_v36  ;;  %9776 = vmatprep.subr.bf16.mxu1 %v9775_v37  ;;  %v8610_v36 = vld [vmem:[%s14151_s3 + $0xf18] sm:$0xff]  ;;  %v9793_v37 = vpack.c.bf16 %v8460_v56, %v8458_v51  ;;  %v9953_v51 = vpack.c.bf16 %v8621_v21, %v8619_v18  ;;  %v9811_v56 = vpack.c.bf16 %v8481_v24, %v8479_v22  ;;  %v8639_v18 = vld [vmem:[%s14151_s3 + $0x1000] sm:$0xff]  ;;  %v8641_v21 = vld [vmem:[%s14151_s3 + $0x1010] sm:$0xff] }
 0x18f   : > { %9920 = vmatprep.subr.bf16.mxu0 %v9919_v39  ;;  %v8464_v39 = vld [vmem:[%s14151_s3 + $0xa90] sm:$0xff]  ;;  %v9939_v41 = vpack.c.bf16 %v8610_v36, %v8608_v35  ;;  %v8483_v35 = vld [vmem:[%s14151_s3 + $0xb28] sm:$0xff]  ;;  %v8485_v36 = vld [vmem:[%s14151_s3 + $0xb38] sm:$0xff] }
 0x190   : > { %v9815_v42 = vpack.c.bf16 %v8485_v36, %v8483_v35  ;;  %v8499_v22 = vld [vmem:[%s14151_s3 + $0xba8] sm:$0xff]  ;;  %v8501_v24 = vld [vmem:[%s14151_s3 + $0xbb8] sm:$0xff] }
 0x191   : > { %9778 = vmatpush1.bf16.msra.mxu1 %v9777_v45  ;;  %v8612_v45 = vld [vmem:[%s14151_s3 + $0xf28] sm:$0xff]  ;;  %v8505_v36 = vld [vmem:[%s14151_s3 + $0xbd8] sm:$0xff] }
 0x192   : > { %9922 = vmatpush1.bf16.msra.mxu0 %v9921_v46  ;;  %9780 = vmatprep.subr.bf16.mxu1 %v9779_v47  ;;  %v8614_v46 = vld [vmem:[%s14151_s3 + $0xf38] sm:$0xff]  ;;  %v9797_v47 = vpack.c.bf16 %v8464_v39, %v8462_v62  ;;  %v9957_v62 = vpack.c.bf16 %v8625_v34, %v8623_v32  ;;  %v8482_v39 = vld [vmem:[%s14151_s3 + $0xb20] sm:$0xff]  ;;  %v8645_v34 = vld [vmem:[%s14151_s3 + $0x1030] sm:$0xff] }
 0x193   : > { %9924 = vmatprep.subr.bf16.mxu0 %v9923_v52  ;;  %v8468_v52 = vld [vmem:[%s14151_s3 + $0xab0] sm:$0xff]  ;;  %v9943_v54 = vpack.c.bf16 %v8614_v46, %v8612_v45  ;;  %v8489_v45 = vld [vmem:[%s14151_s3 + $0xb58] sm:$0xff]  ;;  %v8503_v35 = vld [vmem:[%s14151_s3 + $0xbc8] sm:$0xff] }
 0x195   : > { %9782 = vmatpush1.bf16.msra.mxu1 %v9781_v59  ;;  %v8616_v59 = vld [vmem:[%s14151_s3 + $0xf48] sm:$0xff] }
 0x196   : > { %9926 = vmatpush1.bf16.msra.mxu0 %v9925_v60  ;;  %9784 = vmatprep.subr.bf16.mxu1 %v9783_v61  ;;  %v8618_v60 = vld [vmem:[%s14151_s3 + $0xf58] sm:$0xff]  ;;  %v9801_v61 = vpack.c.bf16 %v8468_v52, %v8466_v50  ;;  %v9819_v52 = vpack.c.bf16 %v8489_v45, %v8487_v44  ;;  %v8649_v44 = vld [vmem:[%s14151_s3 + $0x1050] sm:$0xff]  ;;  %v8507_v45 = vld [vmem:[%s14151_s3 + $0xbe8] sm:$0xff] }
 0x197   : > { %9928 = vmatprep.subr.bf16.mxu0 %v9927_v4  ;;  %v8472_v4 = vld [vmem:[%s14151_s3 + $0xad0] sm:$0xff]  ;;  %v9947_v7 = vpack.c.bf16 %v8618_v60, %v8616_v59  ;;  %v8493_v59 = vld [vmem:[%s14151_s3 + $0xb78] sm:$0xff]  ;;  %v8636_v60 = vld [vmem:[%s14151_s3 + $0xfe8] sm:$0xff] }
 0x199   : > { %9786 = vmatpush1.bf16.msra.mxu1 %v9785_v11  ;;  %v8620_v11 = vld [vmem:[%s14151_s3 + $0xf68] sm:$0xff] }
 0x19a   : > { %9930 = vmatpush1.bf16.msra.mxu0 %v9929_v12  ;;  %9788 = vmatprep.subr.bf16.mxu1 %v9787_v13  ;;  %v8622_v12 = vld [vmem:[%s14151_s3 + $0xf78] sm:$0xff]  ;;  %v9805_v13 = vpack.c.bf16 %v8472_v4, %v8470_v3  ;;  %v8490_v3 = vld [vmem:[%s14151_s3 + $0xb60] sm:$0xff]  ;;  %v8492_v4 = vld [vmem:[%s14151_s3 + $0xb70] sm:$0xff] }
 0x19b   : > { %9932 = vmatprep.subr.bf16.mxu0 %v9931_v17  ;;  %v8476_v17 = vld [vmem:[%s14151_s3 + $0xaf0] sm:$0xff]  ;;  %v9951_v19 = vpack.c.bf16 %v8622_v12, %v8620_v11  ;;  %v8640_v11 = vld [vmem:[%s14151_s3 + $0x1008] sm:$0xff]  ;;  %v8642_v12 = vld [vmem:[%s14151_s3 + $0x1018] sm:$0xff] }
 0x19d   : > { %9790 = vmatpush1.bf16.msra.mxu1 %v9789_v25  ;;  %v8624_v25 = vld [vmem:[%s14151_s3 + $0xf88] sm:$0xff] }
 0x19e   : > { %9934 = vmatpush1.bf16.msra.mxu0 %v9933_v26  ;;  %9792 = vmatprep.subr.bf16.mxu1 %v9791_v27  ;;  %v8626_v26 = vld [vmem:[%s14151_s3 + $0xf98] sm:$0xff]  ;;  %v9809_v27 = vpack.c.bf16 %v8476_v17, %v8474_v16  ;;  %v8494_v16 = vld [vmem:[%s14151_s3 + $0xb80] sm:$0xff]  ;;  %v8496_v17 = vld [vmem:[%s14151_s3 + $0xb90] sm:$0xff] }
 0x19f   : > { %9936 = vmatprep.subr.bf16.mxu0 %v9935_v30  ;;  %v8480_v30 = vld [vmem:[%s14151_s3 + $0xb10] sm:$0xff]  ;;  %v9955_v31 = vpack.c.bf16 %v8626_v26, %v8624_v25  ;;  %v8644_v25 = vld [vmem:[%s14151_s3 + $0x1028] sm:$0xff]  ;;  %v8646_v26 = vld [vmem:[%s14151_s3 + $0x1038] sm:$0xff] }
 0x1a0   : > { %v9975_v32 = vpack.c.bf16 %v8646_v26, %v8644_v25  ;;  %v8664_v25 = vld [vmem:[%s14151_s3 + $0x10c8] sm:$0xff]  ;;  %v8666_v26 = vld [vmem:[%s14151_s3 + $0x10d8] sm:$0xff] }
 0x1a1   : > { %9794 = vmatpush1.bf16.msra.mxu1 %v9793_v37  ;;  %v9813_v37 = vpack.c.bf16 %v8480_v30, %v8478_v29  ;;  %v8498_v29 = vld [vmem:[%s14151_s3 + $0xba0] sm:$0xff]  ;;  %v8500_v30 = vld [vmem:[%s14151_s3 + $0xbb0] sm:$0xff] }
 0x1a2   : > { %9938 = vmatpush1.bf16.msra.mxu0 %v9937_v38  ;;  %9796 = vmatprep.subr.bf16.mxu1 %v9795_v23  ;;  %v8628_v38 = vld [vmem:[%s14151_s3 + $0xfa8] sm:$0xff]  ;;  %v8630_v23 = vld [vmem:[%s14151_s3 + $0xfb8] sm:$0xff] }
 0x1a3   : > { %9940 = vmatprep.subr.bf16.mxu0 %v9939_v41  ;;  %v8627_v41 = vld [vmem:[%s14151_s3 + $0xfa0] sm:$0xff]  ;;  %v9959_v46 = vpack.c.bf16 %v8630_v23, %v8628_v38  ;;  %v8650_v38 = vld [vmem:[%s14151_s3 + $0x1058] sm:$0xff]  ;;  %v9833_v23 = vpack.c.bf16 %v8500_v30, %v8498_v29  ;;  %v8520_v30 = vld [vmem:[%s14151_s3 + $0xc50] sm:$0xff] }
 0x1a4   : > { %v9961_v50 = vpack.c.bf16 %v8629_v43, %v8627_v41  ;;  %v8504_v41 = vld [vmem:[%s14151_s3 + $0xbd0] sm:$0xff]  ;;  %v8518_v29 = vld [vmem:[%s14151_s3 + $0xc40] sm:$0xff] }
 0x1a5   : > { %9798 = vmatpush1.bf16.msra.mxu1 %v9797_v47  ;;  %v8632_v47 = vld [vmem:[%s14151_s3 + $0xfc8] sm:$0xff] }
 0x1a6   : > { %9942 = vmatpush1.bf16.msra.mxu0 %v9941_v48  ;;  %9800 = vmatprep.subr.bf16.mxu1 %v9799_v49  ;;  %v8634_v48 = vld [vmem:[%s14151_s3 + $0xfd8] sm:$0xff]  ;;  %v9817_v49 = vpack.c.bf16 %v8484_v40, %v8482_v39  ;;  %v9835_v39 = vpack.c.bf16 %v8505_v36, %v8503_v35  ;;  %v8502_v40 = vld [vmem:[%s14151_s3 + $0xbc0] sm:$0xff]  ;;  %v8523_v35 = vld [vmem:[%s14151_s3 + $0xc68] sm:$0xff] }
 0x1a7   : > { %9944 = vmatprep.subr.bf16.mxu0 %v9943_v54  ;;  %v8488_v54 = vld [vmem:[%s14151_s3 + $0xb50] sm:$0xff]  ;;  %v8525_v36 = vld [vmem:[%s14151_s3 + $0xc78] sm:$0xff] }
 0x1a9   : > { %9802 = vmatpush1.bf16.msra.mxu1 %v9801_v61  ;;  %v9821_v61 = vpack.c.bf16 %v8488_v54, %v8486_v53  ;;  %v8506_v53 = vld [vmem:[%s14151_s3 + $0xbe0] sm:$0xff]  ;;  %v8508_v54 = vld [vmem:[%s14151_s3 + $0xbf0] sm:$0xff] }
 0x1aa   : > { %9946 = vmatpush1.bf16.msra.mxu0 %v9945_v63  ;;  %9804 = vmatprep.subr.bf16.mxu1 %v9803_v2  ;;  %v9965_v63 = vpack.c.bf16 %v8633_v57, %v8631_v55  ;;  %v9823_v2 = vpack.c.bf16 %v8493_v59, %v8491_v58  ;;  %v8651_v55 = vld [vmem:[%s14151_s3 + $0x1060] sm:$0xff]  ;;  %v8653_v57 = vld [vmem:[%s14151_s3 + $0x1070] sm:$0xff]  ;;  %v8511_v58 = vld [vmem:[%s14151_s3 + $0xc08] sm:$0xff] }
 0x1ab   : > { %9948 = vmatprep.subr.bf16.mxu0 %v9947_v7  ;;  %v8513_v59 = vld [vmem:[%s14151_s3 + $0xc18] sm:$0xff] }
 0x1ad   : > { %9806 = vmatpush1.bf16.msra.mxu1 %v9805_v13  ;;  %v9825_v13 = vpack.c.bf16 %v8492_v4, %v8490_v3  ;;  %v8510_v3 = vld [vmem:[%s14151_s3 + $0xc00] sm:$0xff]  ;;  %v8512_v4 = vld [vmem:[%s14151_s3 + $0xc10] sm:$0xff] }
 0x1ae   : > { %9950 = vmatpush1.bf16.msra.mxu0 %v9949_v14  ;;  %9808 = vmatprep.subr.bf16.mxu1 %v9807_v15  ;;  %v9969_v14 = vpack.c.bf16 %v8637_v8, %v8635_v6  ;;  %v9827_v15 = vpack.c.bf16 %v8497_v10, %v8495_v9  ;;  %v8655_v6 = vld [vmem:[%s14151_s3 + $0x1080] sm:$0xff]  ;;  %v8657_v8 = vld [vmem:[%s14151_s3 + $0x1090] sm:$0xff]  ;;  %v8515_v9 = vld [vmem:[%s14151_s3 + $0xc28] sm:$0xff] }
 0x1af   : > { %9952 = vmatprep.subr.bf16.mxu0 %v9951_v19  ;;  %v9971_v19 = vpack.c.bf16 %v8642_v12, %v8640_v11  ;;  %v8517_v10 = vld [vmem:[%s14151_s3 + $0xc38] sm:$0xff]  ;;  %v8660_v11 = vld [vmem:[%s14151_s3 + $0x10a8] sm:$0xff] }
 0x1b0   : > { %v8662_v12 = vld [vmem:[%s14151_s3 + $0x10b8] sm:$0xff] }
 0x1b1   : > { %9810 = vmatpush1.bf16.msra.mxu1 %v9809_v27  ;;  %v9829_v27 = vpack.c.bf16 %v8496_v17, %v8494_v16  ;;  %v8514_v16 = vld [vmem:[%s14151_s3 + $0xc20] sm:$0xff]  ;;  %v8516_v17 = vld [vmem:[%s14151_s3 + $0xc30] sm:$0xff] }
 0x1b2   : > { %9954 = vmatpush1.bf16.msra.mxu0 %v9953_v51  ;;  %9812 = vmatprep.subr.bf16.mxu1 %v9811_v56  ;;  %v9973_v51 = vpack.c.bf16 %v8641_v21, %v8639_v18  ;;  %v9831_v56 = vpack.c.bf16 %v8501_v24, %v8499_v22  ;;  %v8659_v18 = vld [vmem:[%s14151_s3 + $0x10a0] sm:$0xff]  ;;  %v8661_v21 = vld [vmem:[%s14151_s3 + $0x10b0] sm:$0xff]  ;;  %v8519_v22 = vld [vmem:[%s14151_s3 + $0xc48] sm:$0xff] }
 0x1b3   : > { %9956 = vmatprep.subr.bf16.mxu0 %v9955_v31  ;;  %v8643_v31 = vld [vmem:[%s14151_s3 + $0x1020] sm:$0xff]  ;;  %v8521_v24 = vld [vmem:[%s14151_s3 + $0xc58] sm:$0xff] }
 0x1b4   : > { %1707 = vmatmul.mubr.f32.vlgmr.msra.gmra.mrb[6].mxu1 %v11791_v5 }
 0x1b5   : > { %2067 = vmatmul.mubr.f32.vlgmr.msra.gmra.mrb[4].mxu0 %v11791_v5  ;;  %9814 = vmatpush1.bf16.msra.mxu1 %v9813_v37  ;;  %v9963_v5 = vpack.c.bf16 %v8634_v48, %v8632_v47  ;;  %v8648_v37 = vld [vmem:[%s14151_s3 + $0x1048] sm:$0xff]  ;;  %v8654_v48 = vld [vmem:[%s14151_s3 + $0x1078] sm:$0xff] }
 0x1b6   : > { %1777 = vmatprep.mubr.f32.mxu1 %v11842_v28  ;;  %9958 = vmatpush1.bf16.msra.mxu0 %v9957_v62  ;;  %v9977_v62 = vpack.c.bf16 %v8645_v34, %v8643_v31  ;;  %v9979_v43 = vpack.c.bf16 %v8650_v38, %v8648_v37  ;;  %v8652_v47 = vld [vmem:[%s14151_s3 + $0x1068] sm:$0xff]  ;;  %v8663_v31 = vld [vmem:[%s14151_s3 + $0x10c0] sm:$0xff]  ;;  %v8665_v34 = vld [vmem:[%s14151_s3 + $0x10d0] sm:$0xff] }
 0x1b7   : > { %2137 = vmatprep.mubr.f32.mxu0 %v11842_v28  ;;  %9816 = vmatprep.subr.bf16.mxu1 %v9815_v42  ;;  %v8638_v28 = vld [vmem:[%s14151_s3 + $0xff8] sm:$0xff]  ;;  %v8647_v42 = vld [vmem:[%s14151_s3 + $0x1040] sm:$0xff]  ;;  %v8668_v37 = vld [vmem:[%s14151_s3 + $0x10e8] sm:$0xff] }
 0x1b8   : > { %9960 = vmatprep.subr.bf16.mxu0 %v9959_v46  ;;  %v9967_v7 = vpack.c.bf16 %v8638_v28, %v8636_v60  ;;  %v8509_v46 = vld [vmem:[%s14151_s3 + $0xbf8] sm:$0xff]  ;;  %v8656_v60 = vld [vmem:[%s14151_s3 + $0x1088] sm:$0xff] }
 0x1b9   : > { %9818 = vmatpush1.bf16.msra.mxu1 %v9817_v49  ;;  %v9837_v49 = vpack.c.bf16 %v8504_v41, %v8502_v40  ;;  %v8658_v28 = vld [vmem:[%s14151_s3 + $0x1098] sm:$0xff]  ;;  %v8522_v40 = vld [vmem:[%s14151_s3 + $0xc60] sm:$0xff]  ;;  %v8524_v41 = vld [vmem:[%s14151_s3 + $0xc70] sm:$0xff] }
 0x1ba   : > { %9962 = vmatpush1.bf16.msra.mxu0 %v9961_v50  ;;  %9820 = vmatprep.subr.bf16.mxu1 %v9819_v52  ;;  %v9981_v50 = vpack.c.bf16 %v8649_v44, %v8647_v42  ;;  %v9839_v52 = vpack.c.bf16 %v8509_v46, %v8507_v45  ;;  %v8670_v38 = vld [vmem:[%s14151_s3 + $0x10f8] sm:$0xff]  ;;  %v8667_v42 = vld [vmem:[%s14151_s3 + $0x10e0] sm:$0xff]  ;;  %v8669_v44 = vld [vmem:[%s14151_s3 + $0x10f0] sm:$0xff] }
 0x1bb   : > { %9964 = vmatprep.subr.bf16.mxu0 %v9963_v5  ;;  %v9983_v5 = vpack.c.bf16 %v8654_v48, %v8652_v47  ;;  %v8527_v45 = vld [vmem:[%s14151_s3 + $0xc88] sm:$0xff]  ;;  %v8529_v46 = vld [vmem:[%s14151_s3 + $0xc98] sm:$0xff] }
 0x1bc   : > { %v8672_v47 = vld [vmem:[%s14151_s3 + $0x1108] sm:$0xff]  ;;  %v8674_v48 = vld [vmem:[%s14151_s3 + $0x1118] sm:$0xff] }
 0x1bd   : > { %9822 = vmatpush1.bf16.msra.mxu1 %v9821_v61  ;;  %v9841_v61 = vpack.c.bf16 %v8508_v54, %v8506_v53  ;;  %v8526_v53 = vld [vmem:[%s14151_s3 + $0xc80] sm:$0xff]  ;;  %v8528_v54 = vld [vmem:[%s14151_s3 + $0xc90] sm:$0xff] }
 0x1be   : > { %9966 = vmatpush1.bf16.msra.mxu0 %v9965_v63  ;;  %9824 = vmatprep.subr.bf16.mxu1 %v9823_v2  ;;  %v9985_v63 = vpack.c.bf16 %v8653_v57, %v8651_v55  ;;  %v9843_v2 = vpack.c.bf16 %v8513_v59, %v8511_v58  ;;  %v8671_v55 = vld [vmem:[%s14151_s3 + $0x1100] sm:$0xff]  ;;  %v8673_v57 = vld [vmem:[%s14151_s3 + $0x1110] sm:$0xff]  ;;  %v8531_v58 = vld [vmem:[%s14151_s3 + $0xca8] sm:$0xff] }
 0x1bf   : > { %9968 = vmatprep.subr.bf16.mxu0 %v9967_v7  ;;  %v9987_v7 = vpack.c.bf16 %v8658_v28, %v8656_v60  ;;  %v8533_v59 = vld [vmem:[%s14151_s3 + $0xcb8] sm:$0xff]  ;;  %v8676_v60 = vld [vmem:[%s14151_s3 + $0x1128] sm:$0xff] }
 0x1c0   : > { %v8678_v28 = vld [vmem:[%s14151_s3 + $0x1138] sm:$0xff] }
 0x1c1   : > { %9826 = vmatpush1.bf16.msra.mxu1 %v9825_v13  ;;  %v9845_v13 = vpack.c.bf16 %v8512_v4, %v8510_v3  ;;  %v8530_v3 = vld [vmem:[%s14151_s3 + $0xca0] sm:$0xff]  ;;  %v8532_v4 = vld [vmem:[%s14151_s3 + $0xcb0] sm:$0xff] }
 0x1c2   : > { %9970 = vmatpush1.bf16.msra.mxu0 %v9969_v14  ;;  %9828 = vmatprep.subr.bf16.mxu1 %v9827_v15  ;;  %v9989_v14 = vpack.c.bf16 %v8657_v8, %v8655_v6  ;;  %v9847_v15 = vpack.c.bf16 %v8517_v10, %v8515_v9  ;;  %v8675_v6 = vld [vmem:[%s14151_s3 + $0x1120] sm:$0xff]  ;;  %v8677_v8 = vld [vmem:[%s14151_s3 + $0x1130] sm:$0xff]  ;;  %v8535_v9 = vld [vmem:[%s14151_s3 + $0xcc8] sm:$0xff] }
 0x1c3   : > { %9972 = vmatprep.subr.bf16.mxu0 %v9971_v19  ;;  %v9991_v19 = vpack.c.bf16 %v8662_v12, %v8660_v11  ;;  %v8537_v10 = vld [vmem:[%s14151_s3 + $0xcd8] sm:$0xff]  ;;  %v8680_v11 = vld [vmem:[%s14151_s3 + $0x1148] sm:$0xff] }
 0x1c4   : > { %v8682_v12 = vld [vmem:[%s14151_s3 + $0x1158] sm:$0xff] }
 0x1c5   : > { %9830 = vmatpush1.bf16.msra.mxu1 %v9829_v27  ;;  %v9849_v27 = vpack.c.bf16 %v8516_v17, %v8514_v16  ;;  %v8534_v16 = vld [vmem:[%s14151_s3 + $0xcc0] sm:$0xff]  ;;  %v8536_v17 = vld [vmem:[%s14151_s3 + $0xcd0] sm:$0xff] }
 0x1c6   : > { %9974 = vmatpush1.bf16.msra.mxu0 %v9973_v51  ;;  %9832 = vmatprep.subr.bf16.mxu1 %v9831_v56  ;;  %v9993_v51 = vpack.c.bf16 %v8661_v21, %v8659_v18  ;;  %v9851_v56 = vpack.c.bf16 %v8521_v24, %v8519_v22  ;;  %v8679_v18 = vld [vmem:[%s14151_s3 + $0x1140] sm:$0xff]  ;;  %v8681_v21 = vld [vmem:[%s14151_s3 + $0x1150] sm:$0xff]  ;;  %v8539_v22 = vld [vmem:[%s14151_s3 + $0xce8] sm:$0xff] }
 0x1c7   : > { %9976 = vmatprep.subr.bf16.mxu0 %v9975_v32  ;;  %v9995_v32 = vpack.c.bf16 %v8666_v26, %v8664_v25  ;;  %v8541_v24 = vld [vmem:[%s14151_s3 + $0xcf8] sm:$0xff]  ;;  %v8684_v25 = vld [vmem:[%s14151_s3 + $0x1168] sm:$0xff] }
 0x1c8   : > { %v8686_v26 = vld [vmem:[%s14151_s3 + $0x1178] sm:$0xff] }
 0x1c9   : > { %9834 = vmatpush1.bf16.msra.mxu1 %v9833_v23  ;;  %v9853_v23 = vpack.c.bf16 %v8520_v30, %v8518_v29  ;;  %v8538_v29 = vld [vmem:[%s14151_s3 + $0xce0] sm:$0xff]  ;;  %v8540_v30 = vld [vmem:[%s14151_s3 + $0xcf0] sm:$0xff] }
 0x1ca   : > { %9978 = vmatpush1.bf16.msra.mxu0 %v9977_v62  ;;  %9836 = vmatprep.subr.bf16.mxu1 %v9835_v39  ;;  %v9997_v62 = vpack.c.bf16 %v8665_v34, %v8663_v31  ;;  %v9855_v39 = vpack.c.bf16 %v8525_v36, %v8523_v35  ;;  %v8683_v31 = vld [vmem:[%s14151_s3 + $0x1160] sm:$0xff]  ;;  %v8685_v34 = vld [vmem:[%s14151_s3 + $0x1170] sm:$0xff]  ;;  %v8543_v35 = vld [vmem:[%s14151_s3 + $0xd08] sm:$0xff] }
 0x1cb   : > { %9980 = vmatprep.subr.bf16.mxu0 %v9979_v43  ;;  %v9999_v43 = vpack.c.bf16 %v8670_v38, %v8668_v37  ;;  %v8545_v36 = vld [vmem:[%s14151_s3 + $0xd18] sm:$0xff]  ;;  %v8688_v37 = vld [vmem:[%s14151_s3 + $0x1188] sm:$0xff] }
 0x1cc   : > { %v8690_v38 = vld [vmem:[%s14151_s3 + $0x1198] sm:$0xff] }
 0x1cd   : > { %9838 = vmatpush1.bf16.msra.mxu1 %v9837_v49  ;;  %v9857_v49 = vpack.c.bf16 %v8524_v41, %v8522_v40  ;;  %v8542_v40 = vld [vmem:[%s14151_s3 + $0xd00] sm:$0xff]  ;;  %v8544_v41 = vld [vmem:[%s14151_s3 + $0xd10] sm:$0xff] }
 0x1ce   : > { %9982 = vmatpush1.bf16.msra.mxu0 %v9981_v50  ;;  %9840 = vmatprep.subr.bf16.mxu1 %v9839_v52  ;;  %v10001_v50 = vpack.c.bf16 %v8669_v44, %v8667_v42  ;;  %v9859_v52 = vpack.c.bf16 %v8529_v46, %v8527_v45  ;;  %v8687_v42 = vld [vmem:[%s14151_s3 + $0x1180] sm:$0xff]  ;;  %v8689_v44 = vld [vmem:[%s14151_s3 + $0x1190] sm:$0xff]  ;;  %v8547_v45 = vld [vmem:[%s14151_s3 + $0xd28] sm:$0xff] }
 0x1cf   : > { %9984 = vmatprep.subr.bf16.mxu0 %v9983_v5  ;;  %v10003_v5 = vpack.c.bf16 %v8674_v48, %v8672_v47  ;;  %v8549_v46 = vld [vmem:[%s14151_s3 + $0xd38] sm:$0xff]  ;;  %v8692_v47 = vld [vmem:[%s14151_s3 + $0x11a8] sm:$0xff] }
 0x1d0   : > { %v8694_v48 = vld [vmem:[%s14151_s3 + $0x11b8] sm:$0xff] }
 0x1d1   : > { %9842 = vmatpush1.bf16.msra.mxu1 %v9841_v61  ;;  %v9861_v61 = vpack.c.bf16 %v8528_v54, %v8526_v53  ;;  %v8546_v53 = vld [vmem:[%s14151_s3 + $0xd20] sm:$0xff]  ;;  %v8548_v54 = vld [vmem:[%s14151_s3 + $0xd30] sm:$0xff] }
 0x1d2   : > { %9986 = vmatpush1.bf16.msra.mxu0 %v9985_v63  ;;  %9844 = vmatprep.subr.bf16.mxu1 %v9843_v2  ;;  %v10005_v63 = vpack.c.bf16 %v8673_v57, %v8671_v55  ;;  %v9863_v2 = vpack.c.bf16 %v8533_v59, %v8531_v58  ;;  %v8691_v55 = vld [vmem:[%s14151_s3 + $0x11a0] sm:$0xff]  ;;  %v8693_v57 = vld [vmem:[%s14151_s3 + $0x11b0] sm:$0xff]  ;;  %v8551_v58 = vld [vmem:[%s14151_s3 + $0xd48] sm:$0xff] }
 0x1d3   : > { %9988 = vmatprep.subr.bf16.mxu0 %v9987_v7  ;;  %v10007_v7 = vpack.c.bf16 %v8678_v28, %v8676_v60  ;;  %v8553_v59 = vld [vmem:[%s14151_s3 + $0xd58] sm:$0xff]  ;;  %v8696_v60 = vld [vmem:[%s14151_s3 + $0x11c8] sm:$0xff] }
 0x1d4   : > { %v8698_v28 = vld [vmem:[%s14151_s3 + $0x11d8] sm:$0xff] }
 0x1d5   : > { %9846 = vmatpush1.bf16.msra.mxu1 %v9845_v13  ;;  %v9865_v13 = vpack.c.bf16 %v8532_v4, %v8530_v3  ;;  %v8550_v3 = vld [vmem:[%s14151_s3 + $0xd40] sm:$0xff]  ;;  %v8552_v4 = vld [vmem:[%s14151_s3 + $0xd50] sm:$0xff] }
 0x1d6   : > { %9990 = vmatpush1.bf16.msra.mxu0 %v9989_v14  ;;  %9848 = vmatprep.subr.bf16.mxu1 %v9847_v15  ;;  %v10009_v14 = vpack.c.bf16 %v8677_v8, %v8675_v6  ;;  %v9867_v15 = vpack.c.bf16 %v8537_v10, %v8535_v9  ;;  %v8695_v6 = vld [vmem:[%s14151_s3 + $0x11c0] sm:$0xff]  ;;  %v8555_v8 = vld [vmem:[%s14151_s3 + $0xd68] sm:$0xff]  ;;  %v8557_v9 = vld [vmem:[%s14151_s3 + $0xd78] sm:$0xff] }
 0x1d7   : > { %9992 = vmatprep.subr.bf16.mxu0 %v9991_v19  ;;  %v10011_v19 = vpack.c.bf16 %v8682_v12, %v8680_v11  ;;  %v8700_v10 = vld [vmem:[%s14151_s3 + $0x11e8] sm:$0xff]  ;;  %v8702_v11 = vld [vmem:[%s14151_s3 + $0x11f8] sm:$0xff]  ;;  %v9885_v12 = vpack.c.bf16 %v8552_v4, %v8550_v3 }
 0x1d9   : > { %9850 = vmatpush1.bf16.msra.mxu1 %v9849_v27  ;;  %v9869_v27 = vpack.c.bf16 %v8536_v17, %v8534_v16  ;;  %v8556_v16 = vld [vmem:[%s14151_s3 + $0xd70] sm:$0xff]  ;;  %v10031_v17 = vpack.c.bf16 %v8702_v11, %v8700_v10 }
 0x1da   : > { %9994 = vmatpush1.bf16.msra.mxu0 %v9993_v51  ;;  %9852 = vmatprep.subr.bf16.mxu1 %v9851_v56  ;;  %v10013_v51 = vpack.c.bf16 %v8681_v21, %v8679_v18  ;;  %v9871_v56 = vpack.c.bf16 %v8541_v24, %v8539_v22  ;;  %v8699_v18 = vld [vmem:[%s14151_s3 + $0x11e0] sm:$0xff]  ;;  %v2233_v11 = vld [vmem:[#allocation2 + $0x70] sm:$0xff] }
 0x1db   : > { %9996 = vmatprep.subr.bf16.mxu0 %v9995_v32  ;;  %v10015_v32 = vpack.c.bf16 %v8686_v26, %v8684_v25  ;;  %v2219_v24 = vld [vmem:[#allocation2] sm:$0xff]  ;;  %v2220_v25 = vld [vmem:[#allocation2 + $0x8] sm:$0xff]  ;;  %v2314_v26 = vld [vmem:[#allocation2 + $0x90] sm:$0xff] }
 0x1dd   : > { %9854 = vmatpush1.bf16.msra.mxu1 %v9853_v23  ;;  %v9873_v23 = vpack.c.bf16 %v8540_v30, %v8538_v29  ;;  %v2221_v29 = vld [vmem:[#allocation2 + $0x10] sm:$0xff]  ;;  %v2222_v30 = vld [vmem:[#allocation2 + $0x18] sm:$0xff] }
 0x1de   : > { %9998 = vmatpush1.bf16.msra.mxu0 %v9997_v62  ;;  %9856 = vmatprep.subr.bf16.mxu1 %v9855_v39  ;;  %v10017_v62 = vpack.c.bf16 %v8685_v34, %v8683_v31  ;;  %v9875_v39 = vpack.c.bf16 %v8545_v36, %v8543_v35  ;;  %v2316_v31 = vld [vmem:[#allocation2 + $0xa0] sm:$0xff]  ;;  %v10039_v34 = vpack.c.bf16 %v2222_v30, %v2221_v29  ;;  %v2577_v29 = vld [vmem:[#allocation2 + $0x128] sm:$0xff] }
 0x1df   : > { %10000 = vmatprep.subr.bf16.mxu0 %v9999_v43  ;;  %v10019_v43 = vpack.c.bf16 %v8690_v38, %v8688_v37  ;;  %v2223_v36 = vld [vmem:[#allocation2 + $0x20] sm:$0xff]  ;;  %v2224_v37 = vld [vmem:[#allocation2 + $0x28] sm:$0xff]  ;;  %v2318_v38 = vld [vmem:[#allocation2 + $0xb0] sm:$0xff] }
 0x1e1   : > { %9858 = vmatpush1.bf16.msra.mxu1 %v9857_v49  ;;  %v9877_v49 = vpack.c.bf16 %v8544_v41, %v8542_v40  ;;  %v2225_v40 = vld [vmem:[#allocation2 + $0x30] sm:$0xff]  ;;  %v2320_v41 = vld [vmem:[#allocation2 + $0xc0] sm:$0xff] }
 0x1e2   : > { %10002 = vmatpush1.bf16.msra.mxu0 %v10001_v50  ;;  %9860 = vmatprep.subr.bf16.mxu1 %v9859_v52  ;;  %v10021_v50 = vpack.c.bf16 %v8689_v44, %v8687_v42  ;;  %v9879_v52 = vpack.c.bf16 %v8549_v46, %v8547_v45  ;;  %v2321_v42 = vld [vmem:[#allocation2 + $0xc8] sm:$0xff]  ;;  %v2227_v45 = vld [vmem:[#allocation2 + $0x40] sm:$0xff] }
 0x1e3   : > { %10004 = vmatprep.subr.bf16.mxu0 %v10003_v5  ;;  %v10023_v5 = vpack.c.bf16 %v8694_v48, %v8692_v47  ;;  %v10072_v44 = vpack.c.bf16 %v2321_v42, %v2320_v41  ;;  %v2228_v46 = vld [vmem:[#allocation2 + $0x48] sm:$0xff]  ;;  %v2322_v47 = vld [vmem:[#allocation2 + $0xd0] sm:$0xff]  ;;  %v2323_v48 = vld [vmem:[#allocation2 + $0xd8] sm:$0xff] }
 0x1e4   : > { %v2584_v41 = vld [vmem:[#allocation2 + $0x160] sm:$0xff]  ;;  %v2585_v42 = vld [vmem:[#allocation2 + $0x168] sm:$0xff] }
 0x1e5   : > { %9862 = vmatpush1.bf16.msra.mxu1 %v9861_v61  ;;  %v9881_v61 = vpack.c.bf16 %v8548_v54, %v8546_v53  ;;  %v2230_v53 = vld [vmem:[#allocation2 + $0x58] sm:$0xff]  ;;  %v2324_v54 = vld [vmem:[#allocation2 + $0xe0] sm:$0xff] }
 0x1e6   : > { %10006 = vmatpush1.bf16.msra.mxu0 %v10005_v63  ;;  %9864 = vmatprep.subr.bf16.mxu1 %v9863_v2  ;;  %v10025_v63 = vpack.c.bf16 %v8693_v57, %v8691_v55  ;;  %v9883_v2 = vpack.c.bf16 %v8553_v59, %v8551_v58  ;;  %v2325_v55 = vld [vmem:[#allocation2 + $0xe8] sm:$0xff]  ;;  %v2231_v58 = vld [vmem:[#allocation2 + $0x60] sm:$0xff] }
 0x1e7   : > { %10008 = vmatprep.subr.bf16.mxu0 %v10007_v7  ;;  %v8697_v7 = vld [vmem:[%s14151_s3 + $0x11d0] sm:$0xff]  ;;  %v10078_v57 = vpack.c.bf16 %v2325_v55, %v2324_v54  ;;  %v2232_v59 = vld [vmem:[#allocation2 + $0x68] sm:$0xff]  ;;  %v2592_v54 = vld [vmem:[#allocation2 + $0x1a0] sm:$0xff] }
 0x1e8   : > { %v2593_v55 = vld [vmem:[#allocation2 + $0x1a8] sm:$0xff] }
 0x1e9   : > { %9866 = vmatpush1.bf16.msra.mxu1 %v9865_v13  ;;  %v10029_v13 = vpack.c.bf16 %v8697_v7, %v8695_v6 }
 0x1ea   : > { %10010 = vmatpush1.bf16.msra.mxu0 %v10009_v14  ;;  %9868 = vmatprep.subr.bf16.mxu1 %v9867_v15  ;;  %v9887_v14 = vpack.c.bf16 %v8557_v9, %v8555_v8  ;;  %v8554_v15 = vld [vmem:[%s14151_s3 + $0xd60] sm:$0xff]  ;;  %v2329_v9 = vld [vmem:[#allocation2 + $0x108] sm:$0xff] }
 0x1eb   : > { %10012 = vmatprep.subr.bf16.mxu0 %v10011_v19  ;;  %v8701_v19 = vld [vmem:[%s14151_s3 + $0x11f0] sm:$0xff]  ;;  %v9889_v21 = vpack.c.bf16 %v8556_v16, %v8554_v15  ;;  %v2328_v8 = vld [vmem:[#allocation2 + $0x100] sm:$0xff]  ;;  %v2331_v15 = vld [vmem:[#allocation2 + $0x118] sm:$0xff] }
 0x1ec   : > { %v10033_v22 = vpack.c.bf16 %v8701_v19, %v8699_v18  ;;  %v10084_v10 = vpack.c.bf16 %v2329_v9, %v2328_v8  ;;  %v2236_v18 = vld [vmem:[#allocation2 + $0x88] sm:$0xff] }
 0x1ed   : > { %9870 = vmatpush1.bf16.msra.mxu1 %v9869_v27  ;;  %v2315_v27 = vld [vmem:[#allocation2 + $0x98] sm:$0xff]  ;;  %v2941_v8 = vld [vmem:[#allocation2 + $0x288] sm:$0xff] }
 0x1ee   : > { %10014 = vmatpush1.bf16.msra.mxu0 %v10013_v51  ;;  %9872 = vmatprep.subr.bf16.mxu1 %v9871_v56  ;;  %v10036_v51 = vpack.c.bf16 %v2220_v25, %v2219_v24  ;;  %v10063_v56 = vpack.c.bf16 %v2315_v27, %v2314_v26 }
 0x1ef   : > { %10016 = vmatprep.subr.bf16.mxu0 %v10015_v32  ;;  %v2317_v32 = vld [vmem:[#allocation2 + $0xa8] sm:$0xff] }
 0x1f0   : > { %v10066_v35 = vpack.c.bf16 %v2317_v32, %v2316_v31 }
 0x1f1   : > { %9874 = vmatpush1.bf16.msra.mxu1 %v9873_v23  ;;  %v2319_v23 = vld [vmem:[#allocation2 + $0xb8] sm:$0xff] }
 0x1f2   : > { %10018 = vmatpush1.bf16.msra.mxu0 %v10017_v62  ;;  %9876 = vmatprep.subr.bf16.mxu1 %v9875_v39  ;;  %v10042_v62 = vpack.c.bf16 %v2224_v37, %v2223_v36  ;;  %v10069_v39 = vpack.c.bf16 %v2319_v23, %v2318_v38  ;;  %v2579_v36 = vld [vmem:[#allocation2 + $0x138] sm:$0xff]  ;;  %v2580_v38 = vld [vmem:[#allocation2 + $0x140] sm:$0xff]  ;;  %v2581_v23 = vld [vmem:[#allocation2 + $0x148] sm:$0xff] }
 0x1f3   : > { %10020 = vmatprep.subr.bf16.mxu0 %v10019_v43 }
 0x1f4   : > { %1778 = vmatmul.mubr.f32.vlgmr.msra.gmra.mrb[6].mxu1 %v12190_v33 }
 0x1f5   : > { %2138 = vmatmul.mubr.f32.vlgmr.msra.gmra.mrb[4].mxu0 %v12190_v33  ;;  %9878 = vmatpush1.bf16.msra.mxu1 %v9877_v49  ;;  %v10027_v33 = vpack.c.bf16 %v8698_v28, %v8696_v60  ;;  %v10048_v49 = vpack.c.bf16 %v2228_v46, %v2227_v45  ;;  %v2326_v60 = vld [vmem:[#allocation2 + $0xf0] sm:$0xff]  ;;  %v2327_v28 = vld [vmem:[#allocation2 + $0xf8] sm:$0xff] }
 0x1f6   : > { %10022 = vmatpush1.bf16.msra.mxu0 %v10021_v50  ;;  %9880 = vmatprep.subr.bf16.mxu1 %v9879_v52  ;;  %v10075_v50 = vpack.c.bf16 %v2323_v48, %v2322_v47  ;;  %v2229_v52 = vld [vmem:[#allocation2 + $0x50] sm:$0xff]  ;;  %v2587_v45 = vld [vmem:[#allocation2 + $0x178] sm:$0xff]  ;;  %v2588_v47 = vld [vmem:[#allocation2 + $0x180] sm:$0xff] }
 0x1f7   : > { %10024 = vmatprep.subr.bf16.mxu0 %v10023_v5  ;;  %1848 = vmatprep.mubr.f32.mxu1 %v11128_v1  ;;  %v10051_v5 = vpack.c.bf16 %v2230_v53, %v2229_v52  ;;  %v2589_v48 = vld [vmem:[#allocation2 + $0x188] sm:$0xff]  ;;  %v2591_v52 = vld [vmem:[#allocation2 + $0x198] sm:$0xff] }
 0x1f8   : > { %2208 = vmatprep.mubr.f32.mxu0 %v11128_v1 }
 0x1f9   : > { %9882 = vmatpush1.bf16.msra.mxu1 %v9881_v61  ;;  %v10054_v61 = vpack.c.bf16 %v2232_v59, %v2231_v58  ;;  %v2933_v58 = vld [vmem:[#allocation2 + $0x248] sm:$0xff] }
 0x1fa   : > { %10026 = vmatpush1.bf16.msra.mxu0 %v10025_v63  ;;  %9884 = vmatprep.subr.bf16.mxu1 %v9883_v2  ;;  %v10081_v63 = vpack.c.bf16 %v2327_v28, %v2326_v60  ;;  %v2934_v60 = vld [vmem:[#allocation2 + $0x250] sm:$0xff]  ;;  %v2935_v28 = vld [vmem:[#allocation2 + $0x258] sm:$0xff] }
 0x1fb   : > { %10028 = vmatprep.subr.bf16.mxu0 %v10027_v33 }
 0x1fd   : > { %9886 = vmatpush1.bf16.msra.mxu1 %v9885_v12  ;;  %v2234_v12 = vld [vmem:[#allocation2 + $0x78] sm:$0xff] }
 0x1fe   : > { %10030 = vmatpush1.bf16.msra.mxu0 %v10029_v13  ;;  %9888 = vmatprep.subr.bf16.mxu1 %v9887_v14  ;;  %v10057_v13 = vpack.c.bf16 %v2234_v12, %v2233_v11  ;;  %v2330_v14 = vld [vmem:[#allocation2 + $0x110] sm:$0xff]  ;;  %v2943_v11 = vld [vmem:[#allocation2 + $0x298] sm:$0xff] }
 0x1ff   : > { %10032 = vmatprep.subr.bf16.mxu0 %v10031_v17  ;;  %v10087_v16 = vpack.c.bf16 %v2331_v15, %v2330_v14  ;;  %v2235_v17 = vld [vmem:[#allocation2 + $0x80] sm:$0xff]  ;;  %v2945_v14 = vld [vmem:[#allocation2 + $0x2a8] sm:$0xff] }
 0x200   : > { %v10060_v19 = vpack.c.bf16 %v2236_v18, %v2235_v17  ;;  %v2947_v17 = vld [vmem:[#allocation2 + $0x2b8] sm:$0xff] }
 0x201   : > { %9890 = vmatpush1.bf16.msra.mxu1 %v9889_v21 }
 0x202   : > { %10034 = vmatpush1.bf16.msra.mxu0 %v10033_v22  ;;  %10035 = vmatprep.subr.bf16.mxu1 %v11127_v0 }
 0x203   : > { %10062 = vmatprep.subr.bf16.mxu0 %v11127_v0 }
 0x204   : > { %8558 = vmatmul.mubr.msk.f32.vlgmr.msra.gmra.mrb[6].mxu1 %vm920_vm5, %v12288_v20 }
 0x205   : > { %8703 = vmatmul.mubr.msk.f32.vlgmr.msra.gmra.mrb[4].mxu0 %vm920_vm5, %v12288_v20  ;;  %10037 = vmatpush1.bf16.msra.mxu1 %v10036_v51  ;;  %v2226_v20 = vld [vmem:[#allocation2 + $0x38] sm:$0xff] }
 0x206   : > { %10064 = vmatpush1.bf16.msra.mxu0 %v10063_v56  ;;  %10038 = vmatprep.subr.bf16.mxu1 %v11127_v0  ;;  %v10045_v43 = vpack.c.bf16 %v2226_v20, %v2225_v40  ;;  %v2576_v56 = vld [vmem:[#allocation2 + $0x120] sm:$0xff]  ;;  %v2583_v40 = vld [vmem:[#allocation2 + $0x158] sm:$0xff] }
 0x207   : > { %10065 = vmatprep.subr.bf16.mxu0 %v11127_v0  ;;  %v10090_v32 = vpack.c.bf16 %v2577_v29, %v2576_v56  ;;  %v3292_v29 = vld [vmem:[#allocation2 + $0x380] sm:$0xff] }
 0x209   : > { %10040 = vmatpush1.bf16.msra.mxu1 %v10039_v34 }
 0x20a   : > { %10067 = vmatpush1.bf16.msra.mxu0 %v10066_v35  ;;  %10041 = vmatprep.subr.bf16.mxu1 %v11127_v0  ;;  %v2578_v35 = vld [vmem:[#allocation2 + $0x130] sm:$0xff] }
 0x20b   : > { %10068 = vmatprep.subr.bf16.mxu0 %v11127_v0  ;;  %v10093_v37 = vpack.c.bf16 %v2579_v36, %v2578_v35  ;;  %v3294_v35 = vld [vmem:[#allocation2 + $0x390] sm:$0xff]  ;;  %v3295_v36 = vld [vmem:[#allocation2 + $0x398] sm:$0xff] }
 0x20d   : > { %10043 = vmatpush1.bf16.msra.mxu1 %v10042_v62  ;;  %v10096_v62 = vpack.c.bf16 %v2581_v23, %v2580_v38  ;;  %v3296_v38 = vld [vmem:[#allocation2 + $0x3a0] sm:$0xff]  ;;  %v3297_v23 = vld [vmem:[#allocation2 + $0x3a8] sm:$0xff] }
 0x20e   : > { %10070 = vmatpush1.bf16.msra.mxu0 %v10069_v39  ;;  %10044 = vmatprep.subr.bf16.mxu1 %v11127_v0  ;;  %v2582_v39 = vld [vmem:[#allocation2 + $0x150] sm:$0xff] }
 0x20f   : > { %10071 = vmatprep.subr.bf16.mxu0 %v11127_v0  ;;  %v10099_v20 = vpack.c.bf16 %v2583_v40, %v2582_v39  ;;  %v8706_v39 = vld [vmem:[%s14153_s5 + $0x10] sm:$0xff] }
 0x210   : > { %v3298_v40 = vld [vmem:[#allocation2 + $0x3b0] sm:$0xff] }
 0x211   : > { %10046 = vmatpush1.bf16.msra.mxu1 %v10045_v43  ;;  %v10102_v43 = vpack.c.bf16 %v2585_v42, %v2584_v41  ;;  %v3300_v42 = vld [vmem:[#allocation2 + $0x3c0] sm:$0xff] }
 0x212   : > { %10073 = vmatpush1.bf16.msra.mxu0 %v10072_v44  ;;  %10047 = vmatprep.subr.bf16.mxu1 %v11127_v0  ;;  %v2586_v44 = vld [vmem:[#allocation2 + $0x170] sm:$0xff] }
 0x213   : > { %10074 = vmatprep.subr.bf16.mxu0 %v11127_v0  ;;  %v10105_v46 = vpack.c.bf16 %v2587_v45, %v2586_v44  ;;  %v3302_v45 = vld [vmem:[#allocation2 + $0x3d0] sm:$0xff] }
 0x215   : > { %10049 = vmatpush1.bf16.msra.mxu1 %v10048_v49  ;;  %v10108_v49 = vpack.c.bf16 %v2589_v48, %v2588_v47  ;;  %v3304_v48 = vld [vmem:[#allocation2 + $0x3e0] sm:$0xff] }
 0x216   : > { %10076 = vmatpush1.bf16.msra.mxu0 %v10075_v50  ;;  %10050 = vmatprep.subr.bf16.mxu1 %v11127_v0  ;;  %v2590_v50 = vld [vmem:[#allocation2 + $0x190] sm:$0xff] }
 0x217   : > { %10077 = vmatprep.subr.bf16.mxu0 %v11127_v0  ;;  %v10111_v53 = vpack.c.bf16 %v2591_v52, %v2590_v50  ;;  %v3644_v52 = vld [vmem:[#allocation2 + $0x480] sm:$0xff] }
 0x219   : > { %10052 = vmatpush1.bf16.msra.mxu1 %v10051_v5  ;;  %v10114_v5 = vpack.c.bf16 %v2593_v55, %v2592_v54  ;;  %v3646_v55 = vld [vmem:[#allocation2 + $0x490] sm:$0xff] }
 0x21a   : > { %10079 = vmatpush1.bf16.msra.mxu0 %v10078_v57  ;;  %10053 = vmatprep.subr.bf16.mxu1 %v11127_v0  ;;  %v2932_v57 = vld [vmem:[#allocation2 + $0x240] sm:$0xff] }
 0x21b   : > { %10080 = vmatprep.subr.bf16.mxu0 %v11127_v0  ;;  %v10144_v59 = vpack.c.bf16 %v2933_v58, %v2932_v57  ;;  %v3648_v58 = vld [vmem:[#allocation2 + $0x4a0] sm:$0xff] }
 0x21d   : > { %10055 = vmatpush1.bf16.msra.mxu1 %v10054_v61  ;;  %v10147_v61 = vpack.c.bf16 %v2935_v28, %v2934_v60  ;;  %v3650_v28 = vld [vmem:[#allocation2 + $0x4b0] sm:$0xff] }
 0x21e   : > { %10082 = vmatpush1.bf16.msra.mxu0 %v10081_v63  ;;  %10056 = vmatprep.subr.bf16.mxu1 %v11127_v0  ;;  %v2936_v63 = vld [vmem:[#allocation2 + $0x260] sm:$0xff] }
 0x21f   : > { %10083 = vmatprep.subr.bf16.mxu0 %v11127_v0 }
 0x221   : > { %10058 = vmatpush1.bf16.msra.mxu1 %v10057_v13  ;;  %v2944_v13 = vld [vmem:[#allocation2 + $0x2a0] sm:$0xff] }
 0x222   : > { %10085 = vmatpush1.bf16.msra.mxu0 %v10084_v10  ;;  %10059 = vmatprep.subr.bf16.mxu1 %v11127_v0  ;;  %v2942_v10 = vld [vmem:[#allocation2 + $0x290] sm:$0xff]  ;;  %v10162_v15 = vpack.c.bf16 %v2945_v14, %v2944_v13  ;;  %v3660_v14 = vld [vmem:[#allocation2 + $0x500] sm:$0xff] }
 0x223   : > { %10086 = vmatprep.subr.bf16.mxu0 %v11127_v0  ;;  %v10159_v12 = vpack.c.bf16 %v2943_v11, %v2942_v10  ;;  %v3658_v11 = vld [vmem:[#allocation2 + $0x4f0] sm:$0xff] }
 0x225   : > { %10061 = vmatpush1.bf16.msra.mxu1 %v10060_v19  ;;  %v2948_v19 = vld [vmem:[#allocation2 + $0x2c0] sm:$0xff] }
 0x226   : > { %10088 = vmatpush1.bf16.msra.mxu0 %v10087_v16  ;;  %v2946_v16 = vld [vmem:[#allocation2 + $0x2b0] sm:$0xff] }
 0x227   : > { %10089 = vmatprep.subr.bf16.mxu0 %v11127_v0  ;;  %v10165_v18 = vpack.c.bf16 %v2947_v17, %v2946_v16  ;;  %v4000_v17 = vld [vmem:[#allocation2 + $0x5a0] sm:$0xff] }
 0x247   : > { %v1132_v2 = vpop.f32.mrb[4].mxu1  ;;  %v1490_v3 = vpop.f32.mrb[2].mxu0 }
 0x248   : > { %v1495_v4 = vmax.f32 %v1132_v2, %v1490_v3  ;;  %v1134_v6 = vpop.f32.mrb[5].mxu1  ;;  %v1492_v33 = vpop.f32.mrb[3].mxu0  ;;  %v2937_v2 = vld [vmem:[#allocation2 + $0x268] sm:$0xff] }
 0x249   : > { %v1496_v7 = vmax.f32 %v1134_v6, %v1492_v33  ;;  %v10150_v3 = vpack.c.bf16 %v2937_v2, %v2936_v63  ;;  %v2939_v6 = vld [vmem:[#allocation2 + $0x278] sm:$0xff]  ;;  %v3652_v2 = vld [vmem:[#allocation2 + $0x4c0] sm:$0xff] }
 0x2d7   : > { %v1850_v21 = vpop.f32.mrb[6].mxu1 }
 0x2d8   : > { %v1855_v22 = vmax.f32 %v1495_v4, %v1850_v21  ;;  %v2210_v24 = vpop.f32.mrb[4].mxu0  ;;  %v1852_v25 = vpop.f32.mrb[7].mxu1  ;;  %v2938_v4 = vld [vmem:[#allocation2 + $0x270] sm:$0xff]  ;;  %v2949_v21 = vld [vmem:[#allocation2 + $0x2c8] sm:$0xff] }
 0x2d9   : > { %v1856_v26 = vmax.f32 %v1496_v7, %v1852_v25  ;;  %v2212_v27 = vpop.f32.mrb[5].mxu0  ;;  %v10153_v33 = vpack.c.bf16 %v2939_v6, %v2938_v4  ;;  %v2940_v7 = vld [vmem:[#allocation2 + $0x280] sm:$0xff]  ;;  %v3289_v25 = vld [vmem:[#allocation2 + $0x368] sm:$0xff]  ;;  %v3654_v6 = vld [vmem:[#allocation2 + $0x4d0] sm:$0xff] }
 0x2da   : > { %v2215_v51 = vmax.f32 %v1855_v22, %v2210_v24  ;;  %v10156_v9 = vpack.c.bf16 %v2941_v8, %v2940_v7  ;;  %v10168_v22 = vpack.c.bf16 %v2949_v21, %v2948_v19  ;;  %v3288_v24 = vld [vmem:[#allocation2 + $0x360] sm:$0xff]  ;;  %v4002_v21 = vld [vmem:[#allocation2 + $0x5b0] sm:$0xff] }
 0x2db   : > { %v2216_v30 = vmax.f32 %v1856_v26, %v2212_v27  ;;  %v10198_v26 = vpack.c.bf16 %v3289_v25, %v3288_v24  ;;  %v3290_v27 = vld [vmem:[#allocation2 + $0x370] sm:$0xff]  ;;  %v3656_v8 = vld [vmem:[#allocation2 + $0x4e0] sm:$0xff] }
 0x2dc   : > { %v13157_v34 = vmax.f32 %v2215_v51, 0.0  ;;  %v3291_v51 = vld [vmem:[#allocation2 + $0x378] sm:$0xff]  ;;  %v4004_v25 = vld [vmem:[#allocation2 + $0x5c0] sm:$0xff] }
 0x2dd   : > { %v13155_v31 = vmax.f32 %v2216_v30, 0.0  ;;  %v10201_v56 = vpack.c.bf16 %v3291_v51, %v3290_v27  ;;  %v3293_v30 = vld [vmem:[#allocation2 + $0x388] sm:$0xff]  ;;  %v4006_v51 = vld [vmem:[#allocation2 + $0x5d0] sm:$0xff] }
 0x2df   : > { %8704 = vmatprep.mubr.msk.f32.mxu1 %vm2237_vm6, %v13155_v31  ;;  %8705 = vmatprep.mubr.msk.f32.mxu0 %vm2237_vm6, %v13155_v31 }
 0x2e0   : > { %2306 = vmatmul.mubr.f32.vlgmr.msra.gmra.mrb[8].mxu1 %v13157_v34  ;;  %2397 = vmatmul.mubr.f32.vlgmr.msra.gmra.mrb[6].mxu0 %v13157_v34 }
 0x2e1   : > { %10091 = vmatpush1.bf16.msra.mxu0 %v10090_v32  ;;  %8714 = vmatprep.mubr.msk.f32.mxu0 %vm2237_vm6, %v13155_v31  ;;  %v10204_v32 = vpack.c.bf16 %v3293_v30, %v3292_v29  ;;  %v4008_v30 = vld [vmem:[#allocation2 + $0x5e0] sm:$0xff] }
 0x2e2   : > { %10092 = vmatprep.subr.bf16.mxu0 %v11127_v0  ;;  %9097 = vmatprep.mubr.msk.f32.mxu1 %vm2405_vm7, %v8706_v39 }
 0x2e5   : > { %10094 = vmatpush1.bf16.msra.mxu0 %v10093_v37  ;;  %v10207_v37 = vpack.c.bf16 %v3295_v36, %v3294_v35  ;;  %v4010_v36 = vld [vmem:[#allocation2 + $0x5f0] sm:$0xff] }
 0x2e6   : > { %10095 = vmatprep.subr.bf16.mxu0 %v11127_v0 }
 0x2e9   : > { %10097 = vmatpush1.bf16.msra.mxu0 %v10096_v62  ;;  %v10210_v62 = vpack.c.bf16 %v3297_v23, %v3296_v38  ;;  %v4012_v23 = vld [vmem:[#allocation2 + $0x600] sm:$0xff] }
 0x2ea   : > { %10098 = vmatprep.subr.bf16.mxu0 %v11127_v0 }
 0x2ed   : > { %10100 = vmatpush1.bf16.msra.mxu0 %v10099_v20  ;;  %v3299_v20 = vld [vmem:[#allocation2 + $0x3b8] sm:$0xff] }
 0x2ee   : > { %10101 = vmatprep.subr.bf16.mxu0 %v11127_v0  ;;  %v10213_v41 = vpack.c.bf16 %v3299_v20, %v3298_v40  ;;  %v4014_v40 = vld [vmem:[#allocation2 + $0x610] sm:$0xff]  ;;  %v4015_v20 = vld [vmem:[#allocation2 + $0x618] sm:$0xff] }
 0x2f1   : > { %10103 = vmatpush1.bf16.msra.mxu0 %v10102_v43  ;;  %v3301_v43 = vld [vmem:[#allocation2 + $0x3c8] sm:$0xff] }
 0x2f2   : > { %10104 = vmatprep.subr.bf16.mxu0 %v11127_v0  ;;  %v10216_v44 = vpack.c.bf16 %v3301_v43, %v3300_v42  ;;  %v4016_v42 = vld [vmem:[#allocation2 + $0x620] sm:$0xff]  ;;  %v4017_v43 = vld [vmem:[#allocation2 + $0x628] sm:$0xff] }
 0x2f5   : > { %10106 = vmatpush1.bf16.msra.mxu0 %v10105_v46  ;;  %v3303_v46 = vld [vmem:[#allocation2 + $0x3d8] sm:$0xff] }
 0x2f6   : > { %10107 = vmatprep.subr.bf16.mxu0 %v11127_v0  ;;  %v10219_v47 = vpack.c.bf16 %v3303_v46, %v3302_v45  ;;  %v4178_v45 = vld [vmem:[#allocation2 + $0x630] sm:$0xff]  ;;  %v4179_v46 = vld [vmem:[#allocation2 + $0x638] sm:$0xff] }
 0x2f9   : > { %10109 = vmatpush1.bf16.msra.mxu0 %v10108_v49  ;;  %v3305_v49 = vld [vmem:[#allocation2 + $0x3e8] sm:$0xff] }
 0x2fa   : > { %10110 = vmatprep.subr.bf16.mxu0 %v11127_v0  ;;  %v10222_v50 = vpack.c.bf16 %v3305_v49, %v3304_v48  ;;  %v4180_v48 = vld [vmem:[#allocation2 + $0x640] sm:$0xff]  ;;  %v4181_v49 = vld [vmem:[#allocation2 + $0x648] sm:$0xff] }
 0x2fd   : > { %10112 = vmatpush1.bf16.msra.mxu0 %v10111_v53  ;;  %v3645_v53 = vld [vmem:[#allocation2 + $0x488] sm:$0xff] }
 0x2fe   : > { %10113 = vmatprep.subr.bf16.mxu0 %v11127_v0  ;;  %v10252_v54 = vpack.c.bf16 %v3645_v53, %v3644_v52  ;;  %v4182_v52 = vld [vmem:[#allocation2 + $0x650] sm:$0xff]  ;;  %v4183_v53 = vld [vmem:[#allocation2 + $0x658] sm:$0xff] }
 0x301   : > { %10115 = vmatpush1.bf16.msra.mxu0 %v10114_v5  ;;  %v3647_v5 = vld [vmem:[#allocation2 + $0x498] sm:$0xff] }
 0x302   : > { %10143 = vmatprep.subr.bf16.mxu0 %v11127_v0  ;;  %v10255_v57 = vpack.c.bf16 %v3647_v5, %v3646_v55  ;;  %v4184_v55 = vld [vmem:[#allocation2 + $0x660] sm:$0xff]  ;;  %v4185_v5 = vld [vmem:[#allocation2 + $0x668] sm:$0xff] }
 0x304   : > { %2659 = vmatmul.mubr.f32.vlgmr.msra.gmra.mrb[8].mxu0 %v13157_v34 }
 0x305   : > { %10145 = vmatpush1.bf16.msra.mxu0 %v10144_v59  ;;  %8726 = vmatprep.mubr.msk.f32.mxu0 %vm2237_vm6, %v13155_v31  ;;  %v3649_v59 = vld [vmem:[#allocation2 + $0x4a8] sm:$0xff] }
 0x306   : > { %10146 = vmatprep.subr.bf16.mxu0 %v11127_v0  ;;  %v10258_v60 = vpack.c.bf16 %v3649_v59, %v3648_v58  ;;  %v4186_v58 = vld [vmem:[#allocation2 + $0x670] sm:$0xff]  ;;  %v4187_v59 = vld [vmem:[#allocation2 + $0x678] sm:$0xff] }
 0x309   : > { %10148 = vmatpush1.bf16.msra.mxu0 %v10147_v61  ;;  %v3651_v61 = vld [vmem:[#allocation2 + $0x4b8] sm:$0xff] }
 0x30a   : > { %10149 = vmatprep.subr.bf16.mxu0 %v11127_v0  ;;  %v10261_v63 = vpack.c.bf16 %v3651_v61, %v3650_v28  ;;  %v4188_v28 = vld [vmem:[#allocation2 + $0x680] sm:$0xff]  ;;  %v4189_v61 = vld [vmem:[#allocation2 + $0x688] sm:$0xff] }
 0x30d   : > { %10151 = vmatpush1.bf16.msra.mxu0 %v10150_v3  ;;  %v3653_v3 = vld [vmem:[#allocation2 + $0x4c8] sm:$0xff] }
 0x30e   : > { %10152 = vmatprep.subr.bf16.mxu0 %v11127_v0  ;;  %v10264_v4 = vpack.c.bf16 %v3653_v3, %v3652_v2  ;;  %v4190_v2 = vld [vmem:[#allocation2 + $0x690] sm:$0xff]  ;;  %v4191_v3 = vld [vmem:[#allocation2 + $0x698] sm:$0xff] }
 0x311   : > { %10154 = vmatpush1.bf16.msra.mxu0 %v10153_v33  ;;  %v3655_v33 = vld [vmem:[#allocation2 + $0x4d8] sm:$0xff] }
 0x312   : > { %10155 = vmatprep.subr.bf16.mxu0 %v11127_v0  ;;  %v10267_v7 = vpack.c.bf16 %v3655_v33, %v3654_v6  ;;  %v4192_v6 = vld [vmem:[#allocation2 + $0x6a0] sm:$0xff]  ;;  %v4193_v33 = vld [vmem:[#allocation2 + $0x6a8] sm:$0xff] }
 0x315   : > { %10157 = vmatpush1.bf16.msra.mxu0 %v10156_v9  ;;  %v3657_v9 = vld [vmem:[#allocation2 + $0x4e8] sm:$0xff] }
 0x316   : > { %10158 = vmatprep.subr.bf16.mxu0 %v11127_v0  ;;  %v10270_v10 = vpack.c.bf16 %v3657_v9, %v3656_v8  ;;  %v4194_v8 = vld [vmem:[#allocation2 + $0x6b0] sm:$0xff]  ;;  %v4195_v9 = vld [vmem:[#allocation2 + $0x6b8] sm:$0xff] }
 0x319   : > { %10160 = vmatpush1.bf16.msra.mxu0 %v10159_v12  ;;  %v3659_v12 = vld [vmem:[#allocation2 + $0x4f8] sm:$0xff] }
 0x31a   : > { %10161 = vmatprep.subr.bf16.mxu0 %v11127_v0  ;;  %v10273_v13 = vpack.c.bf16 %v3659_v12, %v3658_v11  ;;  %v4534_v11 = vld [vmem:[#allocation2 + $0x750] sm:$0xff]  ;;  %v4535_v12 = vld [vmem:[#allocation2 + $0x758] sm:$0xff] }
 0x31d   : > { %10163 = vmatpush1.bf16.msra.mxu0 %v10162_v15  ;;  %v3661_v15 = vld [vmem:[#allocation2 + $0x508] sm:$0xff] }
 0x31e   : > { %10164 = vmatprep.subr.bf16.mxu0 %v11127_v0  ;;  %v10276_v16 = vpack.c.bf16 %v3661_v15, %v3660_v14  ;;  %v8707_v15 = vld [vmem:[%s14153_s5 + $0x18] sm:$0xf] }
 0x321   : > { %10166 = vmatpush1.bf16.msra.mxu0 %v10165_v18  ;;  %v4001_v18 = vld [vmem:[#allocation2 + $0x5a8] sm:$0xff] }
 0x322   : > { %10167 = vmatprep.subr.bf16.mxu0 %v11127_v0  ;;  %v10306_v19 = vpack.c.bf16 %v4001_v18, %v4000_v17  ;;  %v10387_v18 = vpack.c.bf16 %v4535_v12, %v4534_v11  ;;  %v2762_v12 = vld [vmem:[#allocation2 + $0x1f0] sm:$0xff] }
 0x325   : > { %10169 = vmatpush1.bf16.msra.mxu0 %v10168_v22  ;;  %v4003_v22 = vld [vmem:[#allocation2 + $0x5b8] sm:$0xff] }
 0x326   : > { %10197 = vmatprep.subr.bf16.mxu0 %v11127_v0  ;;  %v10309_v24 = vpack.c.bf16 %v4003_v22, %v4002_v21  ;;  %v4536_v21 = vld [vmem:[#allocation2 + $0x760] sm:$0xff]  ;;  %v4537_v22 = vld [vmem:[#allocation2 + $0x768] sm:$0xff] }
 0x328   : > { %3015 = vmatmul.mubr.f32.vlgmr.msra.gmra.mrb[10].mxu0 %v13157_v34 }
 0x329   : > { %10199 = vmatpush1.bf16.msra.mxu0 %v10198_v26  ;;  %8738 = vmatprep.mubr.msk.f32.mxu0 %vm2237_vm6, %v13155_v31  ;;  %v4005_v26 = vld [vmem:[#allocation2 + $0x5c8] sm:$0xff] }
 0x32a   : > { %10200 = vmatprep.subr.bf16.mxu0 %v11127_v0  ;;  %v10312_v27 = vpack.c.bf16 %v4005_v26, %v4004_v25  ;;  %v4538_v25 = vld [vmem:[#allocation2 + $0x770] sm:$0xff]  ;;  %v4539_v26 = vld [vmem:[#allocation2 + $0x778] sm:$0xff] }
 0x32d   : > { %10202 = vmatpush1.bf16.msra.mxu0 %v10201_v56  ;;  %v4007_v56 = vld [vmem:[#allocation2 + $0x5d8] sm:$0xff] }
 0x32e   : > { %10203 = vmatprep.subr.bf16.mxu0 %v11127_v0  ;;  %v10315_v29 = vpack.c.bf16 %v4007_v56, %v4006_v51  ;;  %v8715_v51 = vld [vmem:[%s14153_s5 + $0x20] sm:$0xff]  ;;  %v10393_v56 = vpack.c.bf16 %v4539_v26, %v4538_v25  ;;  %v2766_v26 = vld [vmem:[#allocation2 + $0x210] sm:$0xff] }
 0x331   : > { %10205 = vmatpush1.bf16.msra.mxu0 %v10204_v32  ;;  %v4009_v32 = vld [vmem:[#allocation2 + $0x5e8] sm:$0xff] }
 0x332   : > { %10206 = vmatprep.subr.bf16.mxu0 %v11127_v0  ;;  %v10318_v35 = vpack.c.bf16 %v4009_v32, %v4008_v30  ;;  %v4541_v30 = vld [vmem:[#allocation2 + $0x788] sm:$0xff] }
 0x335   : > { %10208 = vmatpush1.bf16.msra.mxu0 %v10207_v37  ;;  %v4011_v37 = vld [vmem:[#allocation2 + $0x5f8] sm:$0xff] }
 0x336   : > { %10209 = vmatprep.subr.bf16.mxu0 %v11127_v0  ;;  %v10321_v38 = vpack.c.bf16 %v4011_v37, %v4010_v36  ;;  %v4543_v36 = vld [vmem:[#allocation2 + $0x798] sm:$0xff] }
 0x339   : > { %10211 = vmatpush1.bf16.msra.mxu0 %v10210_v62  ;;  %v4013_v62 = vld [vmem:[#allocation2 + $0x608] sm:$0xff] }
 0x33a   : > { %10212 = vmatprep.subr.bf16.mxu0 %v11127_v0  ;;  %v10324_v39 = vpack.c.bf16 %v4013_v62, %v4012_v23  ;;  %v4545_v23 = vld [vmem:[#allocation2 + $0x7a8] sm:$0xff] }
 0x33d   : > { %10214 = vmatpush1.bf16.msra.mxu0 %v10213_v41  ;;  %v10327_v41 = vpack.c.bf16 %v4015_v20, %v4014_v40  ;;  %v4547_v40 = vld [vmem:[#allocation2 + $0x7b8] sm:$0xff] }
 0x33e   : > { %10215 = vmatprep.subr.bf16.mxu0 %v11127_v0 }
 0x341   : > { %10217 = vmatpush1.bf16.msra.mxu0 %v10216_v44  ;;  %v10330_v44 = vpack.c.bf16 %v4017_v43, %v4016_v42  ;;  %v4549_v42 = vld [vmem:[#allocation2 + $0x7c8] sm:$0xff] }
 0x342   : > { %10218 = vmatprep.subr.bf16.mxu0 %v11127_v0 }
 0x345   : > { %10220 = vmatpush1.bf16.msra.mxu0 %v10219_v47  ;;  %v10333_v47 = vpack.c.bf16 %v4179_v46, %v4178_v45  ;;  %v4551_v45 = vld [vmem:[#allocation2 + $0x7d8] sm:$0xff]  ;;  %v2754_v46 = vld [vmem:[#allocation2 + $0x1b0] sm:$0xff] }
 0x346   : > { %10221 = vmatprep.subr.bf16.mxu0 %v11127_v0 }
 0x349   : > { %10223 = vmatpush1.bf16.msra.mxu0 %v10222_v50  ;;  %v10336_v50 = vpack.c.bf16 %v4181_v49, %v4180_v48  ;;  %v4890_v49 = vld [vmem:[#allocation2 + $0x870] sm:$0xff] }
 0x34a   : > { %10251 = vmatprep.subr.bf16.mxu0 %v11127_v0 }
 0x34c   : > { %3371 = vmatmul.mubr.f32.vlgmr.msra.gmra.mrb[12].mxu0 %v13157_v34 }
 0x34d   : > { %10253 = vmatpush1.bf16.msra.mxu0 %v10252_v54  ;;  %8750 = vmatprep.mubr.msk.f32.mxu0 %vm2237_vm6, %v13155_v31  ;;  %v10339_v54 = vpack.c.bf16 %v4183_v53, %v4182_v52  ;;  %v8716_v53 = vld [vmem:[%s14153_s5 + $0x28] sm:$0xf] }
 0x34e   : > { %10254 = vmatprep.subr.bf16.mxu0 %v11127_v0 }
 0x351   : > { %10256 = vmatpush1.bf16.msra.mxu0 %v10255_v57  ;;  %v10342_v57 = vpack.c.bf16 %v4185_v5, %v4184_v55  ;;  %v2756_v5 = vld [vmem:[#allocation2 + $0x1c0] sm:$0xff] }
 0x352   : > { %10257 = vmatprep.subr.bf16.mxu0 %v11127_v0 }
 0x355   : > { %10259 = vmatpush1.bf16.msra.mxu0 %v10258_v60  ;;  %v10345_v60 = vpack.c.bf16 %v4187_v59, %v4186_v58  ;;  %v4892_v59 = vld [vmem:[#allocation2 + $0x880] sm:$0xff] }
 0x356   : > { %10260 = vmatprep.subr.bf16.mxu0 %v11127_v0 }
 0x359   : > { %10262 = vmatpush1.bf16.msra.mxu0 %v10261_v63  ;;  %v10348_v63 = vpack.c.bf16 %v4189_v61, %v4188_v28  ;;  %v2758_v61 = vld [vmem:[#allocation2 + $0x1d0] sm:$0xff] }
 0x35a   : > { %10263 = vmatprep.subr.bf16.mxu0 %v11127_v0 }
 0x35d   : > { %10265 = vmatpush1.bf16.msra.mxu0 %v10264_v4  ;;  %v10351_v4 = vpack.c.bf16 %v4191_v3, %v4190_v2  ;;  %v4894_v3 = vld [vmem:[#allocation2 + $0x890] sm:$0xff] }
 0x35e   : > { %10266 = vmatprep.subr.bf16.mxu0 %v11127_v0 }
 0x361   : > { %10268 = vmatpush1.bf16.msra.mxu0 %v10267_v7  ;;  %v10354_v7 = vpack.c.bf16 %v4193_v33, %v4192_v6  ;;  %v2760_v33 = vld [vmem:[#allocation2 + $0x1e0] sm:$0xff] }
 0x362   : > { %10269 = vmatprep.subr.bf16.mxu0 %v11127_v0 }
 0x365   : > { %10271 = vmatpush1.bf16.msra.mxu0 %v10270_v10  ;;  %v10357_v10 = vpack.c.bf16 %v4195_v9, %v4194_v8  ;;  %v4896_v9 = vld [vmem:[#allocation2 + $0x8a0] sm:$0xff] }
 0x366   : > { %10272 = vmatprep.subr.bf16.mxu0 %v11127_v0 }
 0x369   : > { %10274 = vmatpush1.bf16.msra.mxu0 %v10273_v13 }
 0x36a   : > { %10275 = vmatprep.subr.bf16.mxu0 %v11127_v0 }
 0x36d   : > { %10277 = vmatpush1.bf16.msra.mxu0 %v10276_v16 }
 0x36e   : > { %10305 = vmatprep.subr.bf16.mxu0 %v11127_v0 }
 0x370   : > { %3727 = vmatmul.mubr.f32.vlgmr.msra.gmra.mrb[14].mxu0 %v13157_v34 }
 0x371   : > { %10307 = vmatpush1.bf16.msra.mxu0 %v10306_v19  ;;  %8762 = vmatprep.mubr.msk.f32.mxu0 %vm2237_vm6, %v13155_v31  ;;  %v2311_v19 = vld [vmem:[%s14153_s5] sm:$0xff] }
 0x372   : > { %10308 = vmatprep.subr.bf16.mxu0 %v11127_v0 }
 0x375   : > { %10310 = vmatpush1.bf16.msra.mxu0 %v10309_v24  ;;  %v10390_v24 = vpack.c.bf16 %v4537_v22, %v4536_v21  ;;  %v4900_v22 = vld [vmem:[#allocation2 + $0x8c0] sm:$0xff] }
 0x376   : > { %10311 = vmatprep.subr.bf16.mxu0 %v11127_v0 }
 0x379   : > { %10313 = vmatpush1.bf16.msra.mxu0 %v10312_v27  ;;  %v2312_v27 = vld [vmem:[%s14153_s5 + $0x8] sm:$0xf] }
 0x37a   : > { %10314 = vmatprep.subr.bf16.mxu0 %v11127_v0 }
 0x37d   : > { %10316 = vmatpush1.bf16.msra.mxu0 %v10315_v29  ;;  %v4540_v29 = vld [vmem:[#allocation2 + $0x780] sm:$0xff] }
 0x37e   : > { %10317 = vmatprep.subr.bf16.mxu0 %v11127_v0  ;;  %v10396_v32 = vpack.c.bf16 %v4541_v30, %v4540_v29  ;;  %v4903_v29 = vld [vmem:[#allocation2 + $0x8d8] sm:$0xff] }
 0x381   : > { %10319 = vmatpush1.bf16.msra.mxu0 %v10318_v35  ;;  %v4542_v35 = vld [vmem:[#allocation2 + $0x790] sm:$0xff] }
 0x382   : > { %10320 = vmatprep.subr.bf16.mxu0 %v11127_v0  ;;  %v10399_v37 = vpack.c.bf16 %v4543_v36, %v4542_v35  ;;  %v2769_v35 = vld [vmem:[#allocation2 + $0x228] sm:$0xff] }
 0x385   : > { %10322 = vmatpush1.bf16.msra.mxu0 %v10321_v38  ;;  %v4544_v38 = vld [vmem:[#allocation2 + $0x7a0] sm:$0xff] }
 0x386   : > { %10323 = vmatprep.subr.bf16.mxu0 %v11127_v0  ;;  %v10402_v62 = vpack.c.bf16 %v4545_v23, %v4544_v38  ;;  %v4905_v38 = vld [vmem:[#allocation2 + $0x8e8] sm:$0xff] }
 0x389   : > { %10325 = vmatpush1.bf16.msra.mxu0 %v10324_v39  ;;  %v4546_v39 = vld [vmem:[#allocation2 + $0x7b0] sm:$0xff] }
 0x38a   : > { %10326 = vmatprep.subr.bf16.mxu0 %v11127_v0  ;;  %v10405_v20 = vpack.c.bf16 %v4547_v40, %v4546_v39  ;;  %v2771_v39 = vld [vmem:[#allocation2 + $0x238] sm:$0xff] }
 0x38d   : > { %10328 = vmatpush1.bf16.msra.mxu0 %v10327_v41  ;;  %v4548_v41 = vld [vmem:[#allocation2 + $0x7c0] sm:$0xff] }
 0x38e   : > { %10329 = vmatprep.subr.bf16.mxu0 %v11127_v0  ;;  %v10408_v43 = vpack.c.bf16 %v4549_v42, %v4548_v41  ;;  %v4907_v41 = vld [vmem:[#allocation2 + $0x8f8] sm:$0xff] }
 0x391   : > { %10331 = vmatpush1.bf16.msra.mxu0 %v10330_v44  ;;  %v4550_v44 = vld [vmem:[#allocation2 + $0x7d0] sm:$0xff] }
 0x392   : > { %10332 = vmatprep.subr.bf16.mxu0 %v11127_v0  ;;  %v10411_v48 = vpack.c.bf16 %v4551_v45, %v4550_v44  ;;  %v5246_v44 = vld [vmem:[#allocation2 + $0x990] sm:$0xff]  ;;  %v5247_v45 = vld [vmem:[#allocation2 + $0x998] sm:$0xff] }
 0x394   : > { %4083 = vmatmul.mubr.f32.vlgmr.msra.gmra.mrb[16].mxu0 %v13157_v34 }
 0x395   : > { %10334 = vmatpush1.bf16.msra.mxu0 %v10333_v47  ;;  %8768 = vmatprep.mubr.msk.f32.mxu0 %vm2237_vm6, %v13155_v31  ;;  %v2755_v47 = vld [vmem:[#allocation2 + $0x1b8] sm:$0xff] }
 0x396   : > { %10335 = vmatprep.subr.bf16.mxu0 %v11127_v0 }
 0x399   : > { %10337 = vmatpush1.bf16.msra.mxu0 %v10336_v50  ;;  %v4891_v50 = vld [vmem:[#allocation2 + $0x878] sm:$0xff] }
 0x39a   : > { %10338 = vmatprep.subr.bf16.mxu0 %v11127_v0  ;;  %v10441_v58 = vpack.c.bf16 %v4891_v50, %v4890_v49  ;;  %v5248_v49 = vld [vmem:[#allocation2 + $0x9a0] sm:$0xff]  ;;  %v5249_v50 = vld [vmem:[#allocation2 + $0x9a8] sm:$0xff] }
 0x39d   : > { %10340 = vmatpush1.bf16.msra.mxu0 %v10339_v54  ;;  %v10117_v54 = vpack.c.bf16 %v2755_v47, %v2754_v46 }
 0x39e   : > { %10341 = vmatprep.subr.bf16.mxu0 %v11127_v0 }
 0x3a1   : > { %10343 = vmatpush1.bf16.msra.mxu0 %v10342_v57  ;;  %v2757_v57 = vld [vmem:[#allocation2 + $0x1c8] sm:$0xff] }
 0x3a2   : > { %10344 = vmatprep.subr.bf16.mxu0 %v11127_v0  ;;  %v10120_v28 = vpack.c.bf16 %v2757_v57, %v2756_v5  ;;  %v5252_v5 = vld [vmem:[#allocation2 + $0x9c0] sm:$0xff]  ;;  %v5253_v57 = vld [vmem:[#allocation2 + $0x9c8] sm:$0xff] }
 0x3a5   : > { %10346 = vmatpush1.bf16.msra.mxu0 %v10345_v60  ;;  %v4893_v60 = vld [vmem:[#allocation2 + $0x888] sm:$0xff] }
 0x3a6   : > { %10347 = vmatprep.subr.bf16.mxu0 %v11127_v0  ;;  %v10444_v2 = vpack.c.bf16 %v4893_v60, %v4892_v59  ;;  %v5254_v59 = vld [vmem:[#allocation2 + $0x9d0] sm:$0xff]  ;;  %v5255_v60 = vld [vmem:[#allocation2 + $0x9d8] sm:$0xff] }
 0x3a9   : > { %10349 = vmatpush1.bf16.msra.mxu0 %v10348_v63  ;;  %v2759_v63 = vld [vmem:[#allocation2 + $0x1d8] sm:$0xff] }
 0x3aa   : > { %10350 = vmatprep.subr.bf16.mxu0 %v11127_v0  ;;  %v10123_v6 = vpack.c.bf16 %v2759_v63, %v2758_v61  ;;  %v5256_v61 = vld [vmem:[#allocation2 + $0x9e0] sm:$0xff]  ;;  %v5257_v63 = vld [vmem:[#allocation2 + $0x9e8] sm:$0xff] }
 0x3ad   : > { %10352 = vmatpush1.bf16.msra.mxu0 %v10351_v4  ;;  %v4895_v4 = vld [vmem:[#allocation2 + $0x898] sm:$0xff] }
 0x3ae   : > { %10353 = vmatprep.subr.bf16.mxu0 %v11127_v0  ;;  %v10447_v8 = vpack.c.bf16 %v4895_v4, %v4894_v3  ;;  %v5258_v3 = vld [vmem:[#allocation2 + $0x9f0] sm:$0xff]  ;;  %v5259_v4 = vld [vmem:[#allocation2 + $0x9f8] sm:$0xff] }
 0x3b1   : > { %10355 = vmatpush1.bf16.msra.mxu0 %v10354_v7  ;;  %v2761_v7 = vld [vmem:[#allocation2 + $0x1e8] sm:$0xff] }
 0x3b2   : > { %10356 = vmatprep.subr.bf16.mxu0 %v11127_v0  ;;  %v10126_v11 = vpack.c.bf16 %v2761_v7, %v2760_v33  ;;  %v5260_v33 = vld [vmem:[#allocation2 + $0xa00] sm:$0xff]  ;;  %v5261_v7 = vld [vmem:[#allocation2 + $0xa08] sm:$0xff] }
 0x3b3   : > { %v2307_v13 = vpop.f32.mrb[8].mxu1  ;;  %v2398_v14 = vpop.f32.mrb[6].mxu0 }
 0x3b4   : > { %v2309_v16 = vpop.f32.mrb[9].mxu1  ;;  %v2400_v17 = vpop.f32.mrb[7].mxu0  ;;  %9095 = vmatprep.subr.msk.mxu1 %vm2412_vm8, %v2398_v14 }
 0x3b5   : > { %10358 = vmatpush1.bf16.msra.mxu0 %v10357_v10  ;;  %9096 = vmatpush3.msk.msra.mxu1 %vm2412_vm8, %v2398_v14  ;;  %v4897_v10 = vld [vmem:[#allocation2 + $0x8a8] sm:$0xff]  ;;  %v4899_v16 = vld [vmem:[#allocation2 + $0x8b8] sm:$0xff] }
 0x3b6   : > { %9100 = vmatprep.subr.msk.mxu1 %vm2412_vm8, %v2307_v13  ;;  %9098 = vmatmul.mubr.msk.f32.vlgmr.msra.gmra.mrb[10].mxu1 %vm2405_vm7, %v8707_v15  ;;  %v10450_v14 = vpack.c.bf16 %v4897_v10, %v4896_v9  ;;  %v4898_v15 = vld [vmem:[#allocation2 + $0x8b0] sm:$0xff]  ;;  %v5263_v10 = vld [vmem:[#allocation2 + $0xa18] sm:$0xff] }
 0x3b7   : > { %9101 = vmatpush3.msk.msra.mxu1 %vm2412_vm8, %v2307_v13  ;;  %10386 = vmatprep.subr.bf16.mxu0 %v11127_v0  ;;  %v2763_v13 = vld [vmem:[#allocation2 + $0x1f8] sm:$0xff]  ;;  %v10453_v21 = vpack.c.bf16 %v4899_v16, %v4898_v15  ;;  %v5262_v9 = vld [vmem:[#allocation2 + $0xa10] sm:$0xff] }
 0x3b8   : > { %4261 = vmatmul.mubr.f32.vlgmr.msra.gmra.mrb[18].mxu0 %v13157_v34  ;;  %9102 = vmatprep.mubr.msk.f32.mxu1 %vm2405_vm7, %v2311_v19  ;;  %v10129_v17 = vpack.c.bf16 %v2763_v13, %v2762_v12  ;;  %v2765_v19 = vld [vmem:[#allocation2 + $0x208] sm:$0xff]  ;;  %v5602_v12 = vld [vmem:[#allocation2 + $0xab0] sm:$0xff]  ;;  %v5603_v13 = vld [vmem:[#allocation2 + $0xab8] sm:$0xff] }
 0x3b9   : > { %10388 = vmatpush1.bf16.msra.mxu0 %v10387_v18  ;;  %8780 = vmatprep.mubr.msk.f32.mxu0 %vm2237_vm6, %v13155_v31  ;;  %v2764_v18 = vld [vmem:[#allocation2 + $0x200] sm:$0xff]  ;;  %v10549_v16 = vpack.c.bf16 %v5603_v13, %v5602_v12  ;;  %v6137_v13 = vld [vmem:[#allocation2 + $0xc68] sm:$0xff] }
 0x3ba   : > { %10389 = vmatprep.subr.bf16.mxu0 %v11127_v0  ;;  %v10132_v25 = vpack.c.bf16 %v2765_v19, %v2764_v18  ;;  %v5605_v18 = vld [vmem:[#allocation2 + $0xac8] sm:$0xff]  ;;  %v6136_v12 = vld [vmem:[#allocation2 + $0xc60] sm:$0xff] }
 0x3bd   : > { %10391 = vmatpush1.bf16.msra.mxu0 %v10390_v24  ;;  %v4901_v24 = vld [vmem:[#allocation2 + $0x8c8] sm:$0xff] }
 0x3be   : > { %10392 = vmatprep.subr.bf16.mxu0 %v11127_v0  ;;  %9103 = vmatmul.mubr.msk.f32.vlgmr.msra.gmra.mrb[10].mxu1 %vm2405_vm7, %v2312_v27  ;;  %v2767_v27 = vld [vmem:[#allocation2 + $0x218] sm:$0xff] }
 0x3bf   : > { %9107 = vmatprep.mubr.msk.f32.mxu1 %vm2405_vm7, %v8715_v51  ;;  %v10456_v51 = vpack.c.bf16 %v4901_v24, %v4900_v22  ;;  %v10135_v30 = vpack.c.bf16 %v2767_v27, %v2766_v26  ;;  %v5607_v22 = vld [vmem:[#allocation2 + $0xad8] sm:$0xff]  ;;  %v5609_v26 = vld [vmem:[#allocation2 + $0xae8] sm:$0xff] }
 0x3c1   : > { %10394 = vmatpush1.bf16.msra.mxu0 %v10393_v56  ;;  %v4902_v56 = vld [vmem:[#allocation2 + $0x8d0] sm:$0xff] }
 0x3c2   : > { %10395 = vmatprep.subr.bf16.mxu0 %v11127_v0  ;;  %v10459_v36 = vpack.c.bf16 %v4903_v29, %v4902_v56  ;;  %v5611_v56 = vld [vmem:[#allocation2 + $0xaf8] sm:$0xff] }
 0x3c5   : > { %10397 = vmatpush1.bf16.msra.mxu0 %v10396_v32  ;;  %v2768_v32 = vld [vmem:[#allocation2 + $0x220] sm:$0xff] }
 0x3c6   : > { %10398 = vmatprep.subr.bf16.mxu0 %v11127_v0  ;;  %v10138_v23 = vpack.c.bf16 %v2769_v35, %v2768_v32  ;;  %v5613_v32 = vld [vmem:[#allocation2 + $0xb08] sm:$0xff] }
 0x3c9   : > { %10400 = vmatpush1.bf16.msra.mxu0 %v10399_v37  ;;  %v4904_v37 = vld [vmem:[#allocation2 + $0x8e0] sm:$0xff] }
 0x3ca   : > { %10401 = vmatprep.subr.bf16.mxu0 %v11127_v0  ;;  %v10462_v40 = vpack.c.bf16 %v4905_v38, %v4904_v37  ;;  %v5615_v37 = vld [vmem:[#allocation2 + $0xb18] sm:$0xff] }
 0x3cd   : > { %10403 = vmatpush1.bf16.msra.mxu0 %v10402_v62  ;;  %v2770_v62 = vld [vmem:[#allocation2 + $0x230] sm:$0xff] }
 0x3ce   : > { %10404 = vmatprep.subr.bf16.mxu0 %v11127_v0  ;;  %v10141_v42 = vpack.c.bf16 %v2771_v39, %v2770_v62  ;;  %v5617_v62 = vld [vmem:[#allocation2 + $0xb28] sm:$0xff] }
 0x3d1   : > { %10406 = vmatpush1.bf16.msra.mxu0 %v10405_v20  ;;  %v4906_v20 = vld [vmem:[#allocation2 + $0x8f0] sm:$0xff] }
 0x3d2   : > { %10407 = vmatprep.subr.bf16.mxu0 %v11127_v0 }
 0x3d5   : > { %10409 = vmatpush1.bf16.msra.mxu0 %v10408_v43  ;;  %v10465_v43 = vpack.c.bf16 %v4907_v41, %v4906_v20  ;;  %v5619_v20 = vld [vmem:[#allocation2 + $0xb38] sm:$0xff] }
 0x3d6   : > { %10410 = vmatprep.subr.bf16.mxu0 %v11127_v0 }
 0x3d7   : > { %v2660_v52 = vpop.f32.mrb[8].mxu0 }
 0x3d8   : > { %v2662_v55 = vpop.f32.mrb[9].mxu0  ;;  %9105 = vmatprep.subr.msk.mxu1 %vm2412_vm8, %v2660_v52 }
 0x3d9   : > { %9106 = vmatpush3.msk.msra.mxu1 %vm2412_vm8, %v2660_v52  ;;  %10412 = vmatpush1.bf16.msra.mxu0 %v10411_v48  ;;  %v10495_v48 = vpack.c.bf16 %v5247_v45, %v5246_v44  ;;  %v10498_v52 = vpack.c.bf16 %v5249_v50, %v5248_v49  ;;  %v5783_v49 = vld [vmem:[#allocation2 + $0xb58] sm:$0xff] }
 0x3da   : > { %9108 = vmatmul.mubr.msk.f32.vlgmr.msra.gmra.mrb[10].mxu1 %vm2405_vm7, %v8716_v53  ;;  %10116 = vmatprep.subr.bf16.mxu1 %v11127_v0  ;;  %v5250_v53 = vld [vmem:[#allocation2 + $0x9b0] sm:$0xff] }
 0x3db   : > { %10118 = vmatpush1.bf16.msra.mxu1 %v10117_v54  ;;  %8720 = vmatprep.mubr.msk.f32.mxu1 %vm2237_vm6, %v13155_v31  ;;  %v5251_v54 = vld [vmem:[#allocation2 + $0x9b8] sm:$0xff] }
 0x3dc   : > { %4617 = vmatmul.mubr.f32.vlgmr.msra.gmra.mrb[20].mxu0 %v13157_v34  ;;  %10440 = vmatprep.subr.bf16.mxu0 %v11127_v0  ;;  %v10501_v55 = vpack.c.bf16 %v5251_v54, %v5250_v53  ;;  %v5785_v53 = vld [vmem:[#allocation2 + $0xb68] sm:$0xff] }
 0x3dd   : > { %10442 = vmatpush1.bf16.msra.mxu0 %v10441_v58  ;;  %8792 = vmatprep.mubr.msk.f32.mxu0 %vm2237_vm6, %v13155_v31  ;;  %v10504_v58 = vpack.c.bf16 %v5253_v57, %v5252_v5  ;;  %v5787_v5 = vld [vmem:[#allocation2 + $0xb78] sm:$0xff] }
 0x3de   : > { %10119 = vmatprep.subr.bf16.mxu1 %v11127_v0  ;;  %10443 = vmatprep.subr.bf16.mxu0 %v11127_v0 }
 0x3df   : > { %10121 = vmatpush1.bf16.msra.mxu1 %v10120_v28  ;;  %v10507_v28 = vpack.c.bf16 %v5255_v60, %v5254_v59  ;;  %v5789_v59 = vld [vmem:[#allocation2 + $0xb88] sm:$0xff]  ;;  %v8721_v60 = vld [vmem:[%s14153_s5 + $0x30] sm:$0xff] }
 0x3e0   : > { %10122 = vmatprep.subr.bf16.mxu1 %v11127_v0 }
 0x3e1   : > { %10445 = vmatpush1.bf16.msra.mxu0 %v10444_v2  ;;  %v10510_v2 = vpack.c.bf16 %v5257_v63, %v5256_v61  ;;  %v5790_v61 = vld [vmem:[#allocation2 + $0xb90] sm:$0xff]  ;;  %v5791_v63 = vld [vmem:[#allocation2 + $0xb98] sm:$0xff] }
 0x3e2   : > { %10446 = vmatprep.subr.bf16.mxu0 %v11127_v0 }
 0x3e3   : > { %10124 = vmatpush1.bf16.msra.mxu1 %v10123_v6  ;;  %v10513_v6 = vpack.c.bf16 %v5259_v4, %v5258_v3  ;;  %v5792_v3 = vld [vmem:[#allocation2 + $0xba0] sm:$0xff]  ;;  %v5793_v4 = vld [vmem:[#allocation2 + $0xba8] sm:$0xff] }
 0x3e4   : > { %10125 = vmatprep.subr.bf16.mxu1 %v11127_v0 }
 0x3e5   : > { %10448 = vmatpush1.bf16.msra.mxu0 %v10447_v8  ;;  %v10516_v8 = vpack.c.bf16 %v5261_v7, %v5260_v33  ;;  %v5794_v33 = vld [vmem:[#allocation2 + $0xbb0] sm:$0xff]  ;;  %v5795_v7 = vld [vmem:[#allocation2 + $0xbb8] sm:$0xff] }
 0x3e6   : > { %10449 = vmatprep.subr.bf16.mxu0 %v11127_v0 }
 0x3e7   : > { %10127 = vmatpush1.bf16.msra.mxu1 %v10126_v11  ;;  %v10519_v11 = vpack.c.bf16 %v5263_v10, %v5262_v9  ;;  %v5796_v9 = vld [vmem:[#allocation2 + $0xbc0] sm:$0xff]  ;;  %v5797_v10 = vld [vmem:[#allocation2 + $0xbc8] sm:$0xff] }
 0x3e8   : > { %10128 = vmatprep.subr.bf16.mxu1 %v11127_v0 }
 0x3e9   : > { %10451 = vmatpush1.bf16.msra.mxu0 %v10450_v14 }
 0x3ea   : > { %10452 = vmatprep.subr.bf16.mxu0 %v11127_v0 }
 0x3eb   : > { %10130 = vmatpush1.bf16.msra.mxu1 %v10129_v17  ;;  %v5604_v17 = vld [vmem:[#allocation2 + $0xac0] sm:$0xff] }
 0x3ec   : > { %10131 = vmatprep.subr.bf16.mxu1 %v11127_v0  ;;  %v10552_v19 = vpack.c.bf16 %v5605_v18, %v5604_v17  ;;  %v10630_v17 = vpack.c.bf16 %v6137_v13, %v6136_v12  ;;  %v6138_v18 = vld [vmem:[#allocation2 + $0xc70] sm:$0xff] }
 0x3ed   : > { %10454 = vmatpush1.bf16.msra.mxu0 %v10453_v21  ;;  %v5606_v21 = vld [vmem:[#allocation2 + $0xad0] sm:$0xff] }
 0x3ee   : > { %10455 = vmatprep.subr.bf16.mxu0 %v11127_v0  ;;  %v10555_v24 = vpack.c.bf16 %v5607_v22, %v5606_v21  ;;  %v6140_v22 = vld [vmem:[#allocation2 + $0xc80] sm:$0xff] }
 0x3ef   : > { %10133 = vmatpush1.bf16.msra.mxu1 %v10132_v25  ;;  %v5608_v25 = vld [vmem:[#allocation2 + $0xae0] sm:$0xff] }
 0x3f0   : > { %10134 = vmatprep.subr.bf16.mxu1 %v11127_v0  ;;  %v10558_v27 = vpack.c.bf16 %v5609_v26, %v5608_v25  ;;  %v6142_v26 = vld [vmem:[#allocation2 + $0xc90] sm:$0xff] }
 0x3f1   : > { %10457 = vmatpush1.bf16.msra.mxu0 %v10456_v51  ;;  %v5610_v51 = vld [vmem:[#allocation2 + $0xaf0] sm:$0xff] }
 0x3f2   : > { %10458 = vmatprep.subr.bf16.mxu0 %v11127_v0  ;;  %v10561_v29 = vpack.c.bf16 %v5611_v56, %v5610_v51  ;;  %v6144_v56 = vld [vmem:[#allocation2 + $0xca0] sm:$0xff] }
 0x3f3   : > { %10136 = vmatpush1.bf16.msra.mxu1 %v10135_v30  ;;  %v5612_v30 = vld [vmem:[#allocation2 + $0xb00] sm:$0xff] }
 0x3f4   : > { %10137 = vmatprep.subr.bf16.mxu1 %v11127_v0  ;;  %v10564_v35 = vpack.c.bf16 %v5613_v32, %v5612_v30  ;;  %v6146_v32 = vld [vmem:[#allocation2 + $0xcb0] sm:$0xff] }
 0x3f5   : > { %10460 = vmatpush1.bf16.msra.mxu0 %v10459_v36  ;;  %v5614_v36 = vld [vmem:[#allocation2 + $0xb10] sm:$0xff] }
 0x3f6   : > { %10461 = vmatprep.subr.bf16.mxu0 %v11127_v0  ;;  %v10567_v38 = vpack.c.bf16 %v5615_v37, %v5614_v36  ;;  %v6148_v37 = vld [vmem:[#allocation2 + $0xcc0] sm:$0xff] }
 0x3f7   : > { %10139 = vmatpush1.bf16.msra.mxu1 %v10138_v23  ;;  %v5616_v23 = vld [vmem:[#allocation2 + $0xb20] sm:$0xff] }
 0x3f8   : > { %10140 = vmatprep.subr.bf16.mxu1 %v11127_v0  ;;  %v10570_v39 = vpack.c.bf16 %v5617_v62, %v5616_v23  ;;  %v6150_v62 = vld [vmem:[#allocation2 + $0xcd0] sm:$0xff] }
 0x3f9   : > { %10463 = vmatpush1.bf16.msra.mxu0 %v10462_v40  ;;  %v5618_v40 = vld [vmem:[#allocation2 + $0xb30] sm:$0xff] }
 0x3fa   : > { %10464 = vmatprep.subr.bf16.mxu0 %v11127_v0  ;;  %v10573_v41 = vpack.c.bf16 %v5619_v20, %v5618_v40  ;;  %v6152_v20 = vld [vmem:[#allocation2 + $0xce0] sm:$0xff] }
 0x3fb   : > { %10142 = vmatpush1.bf16.msra.mxu1 %v10141_v42  ;;  %v13300_v46 = vpop.f32.mrb[10].mxu0  ;;  %v5780_v42 = vld [vmem:[#allocation2 + $0xb40] sm:$0xff] }
 0x3fc   : > { %v3018_v47 = vpop.f32.mrb[11].mxu0 }
 0x3fd   : > { %10466 = vmatpush1.bf16.msra.mxu0 %v10465_v43  ;;  %v5781_v43 = vld [vmem:[#allocation2 + $0xb48] sm:$0xff] }
 0x3fe   : > { %2837 = vmatmul.mubr.f32.vlgmr.msra.gmra.mrb[12].mxu1 %v13157_v34  ;;  %10494 = vmatprep.subr.bf16.mxu0 %v11127_v0  ;;  %v10576_v47 = vpack.c.bf16 %v5781_v43, %v5780_v42  ;;  %v6492_v43 = vld [vmem:[#allocation2 + $0xd80] sm:$0xff] }
 0x3ff   : > { %9112 = vmatprep.mubr.msk.f32.mxu1 %vm2405_vm7, %v8721_v60  ;;  %v6500_v60 = vld [vmem:[#allocation2 + $0xdc0] sm:$0xff] }
 0x400   : > { %4973 = vmatmul.mubr.f32.vlgmr.msra.gmra.mrb[22].mxu0 %v13157_v34 }
 0x401   : > { %10496 = vmatpush1.bf16.msra.mxu0 %v10495_v48  ;;  %8804 = vmatprep.mubr.msk.f32.mxu0 %vm2237_vm6, %v13155_v31  ;;  %v5782_v48 = vld [vmem:[#allocation2 + $0xb50] sm:$0xff] }
 0x402   : > { %10497 = vmatprep.subr.bf16.mxu0 %v11127_v0  ;;  %v10579_v50 = vpack.c.bf16 %v5783_v49, %v5782_v48 }
 0x405   : > { %10499 = vmatpush1.bf16.msra.mxu0 %v10498_v52  ;;  %v5784_v52 = vld [vmem:[#allocation2 + $0xb60] sm:$0xff] }
 0x406   : > { %10500 = vmatprep.subr.bf16.mxu0 %v11127_v0  ;;  %v10582_v54 = vpack.c.bf16 %v5785_v53, %v5784_v52  ;;  %v6495_v52 = vld [vmem:[#allocation2 + $0xd98] sm:$0xff] }
 0x409   : > { %10502 = vmatpush1.bf16.msra.mxu0 %v10501_v55  ;;  %v5786_v55 = vld [vmem:[#allocation2 + $0xb70] sm:$0xff] }
 0x40a   : > { %10503 = vmatprep.subr.bf16.mxu0 %v11127_v0  ;;  %v10585_v57 = vpack.c.bf16 %v5787_v5, %v5786_v55  ;;  %v6497_v55 = vld [vmem:[#allocation2 + $0xda8] sm:$0xff] }
 0x40d   : > { %10505 = vmatpush1.bf16.msra.mxu0 %v10504_v58  ;;  %v5788_v58 = vld [vmem:[#allocation2 + $0xb80] sm:$0xff] }
 0x40e   : > { %10506 = vmatprep.subr.bf16.mxu0 %v11127_v0 }
 0x411   : > { %10508 = vmatpush1.bf16.msra.mxu0 %v10507_v28  ;;  %v10588_v28 = vpack.c.bf16 %v5789_v59, %v5788_v58  ;;  %v6499_v58 = vld [vmem:[#allocation2 + $0xdb8] sm:$0xff] }
 0x412   : > { %10509 = vmatprep.subr.bf16.mxu0 %v11127_v0 }
 0x415   : > { %10511 = vmatpush1.bf16.msra.mxu0 %v10510_v2  ;;  %v10591_v2 = vpack.c.bf16 %v5791_v63, %v5790_v61  ;;  %v6502_v63 = vld [vmem:[#allocation2 + $0xdd0] sm:$0xff] }
 0x416   : > { %10512 = vmatprep.subr.bf16.mxu0 %v11127_v0 }
 0x419   : > { %10514 = vmatpush1.bf16.msra.mxu0 %v10513_v6  ;;  %v10594_v6 = vpack.c.bf16 %v5793_v4, %v5792_v3  ;;  %v6504_v4 = vld [vmem:[#allocation2 + $0xde0] sm:$0xff] }
 0x41a   : > { %10515 = vmatprep.subr.bf16.mxu0 %v11127_v0 }
 0x41d   : > { %10517 = vmatpush1.bf16.msra.mxu0 %v10516_v8  ;;  %v10597_v8 = vpack.c.bf16 %v5795_v7, %v5794_v33  ;;  %v6506_v7 = vld [vmem:[#allocation2 + $0xdf0] sm:$0xff] }
 0x41e   : > { %10518 = vmatprep.subr.bf16.mxu0 %v11127_v0 }
 0x41f   : > { %v13315_v14 = vpop.f32.mrb[12].mxu0 }
 0x420   : > { %v3374_v15 = vpop.f32.mrb[13].mxu0 }
 0x421   : > { %10520 = vmatpush1.bf16.msra.mxu0 %v10519_v11  ;;  %v10600_v11 = vpack.c.bf16 %v5797_v10, %v5796_v9  ;;  %v6508_v10 = vld [vmem:[#allocation2 + $0xe00] sm:$0xff] }
 0x422   : > { %10548 = vmatprep.subr.bf16.mxu0 %v11127_v0 }
 0x424   : > { %5329 = vmatmul.mubr.f32.vlgmr.msra.gmra.mrb[24].mxu0 %v13157_v34 }
 0x425   : > { %10550 = vmatpush1.bf16.msra.mxu0 %v10549_v16  ;;  %8816 = vmatprep.mubr.msk.f32.mxu0 %vm2237_vm6, %v13155_v31 }
 0x426   : > { %10551 = vmatprep.subr.bf16.mxu0 %v11127_v0 }
 0x429   : > { %10553 = vmatpush1.bf16.msra.mxu0 %v10552_v19  ;;  %v6139_v19 = vld [vmem:[#allocation2 + $0xc78] sm:$0xff] }
 0x42a   : > { %10554 = vmatprep.subr.bf16.mxu0 %v11127_v0  ;;  %v10633_v21 = vpack.c.bf16 %v6139_v19, %v6138_v18  ;;  %v8722_v18 = vld [vmem:[%s14153_s5 + $0x38] sm:$0xf] }
 0x42d   : > { %10556 = vmatpush1.bf16.msra.mxu0 %v10555_v24  ;;  %v6141_v24 = vld [vmem:[#allocation2 + $0xc88] sm:$0xff] }
 0x42e   : > { %10557 = vmatprep.subr.bf16.mxu0 %v11127_v0  ;;  %v10636_v25 = vpack.c.bf16 %v6141_v24, %v6140_v22 }
 0x431   : > { %10559 = vmatpush1.bf16.msra.mxu0 %v10558_v27  ;;  %v6143_v27 = vld [vmem:[#allocation2 + $0xc98] sm:$0xff] }
 0x432   : > { %10560 = vmatprep.subr.bf16.mxu0 %v11127_v0  ;;  %v10639_v51 = vpack.c.bf16 %v6143_v27, %v6142_v26  ;;  %v3111_v26 = vld [vmem:[#allocation2 + $0x2d8] sm:$0xff]  ;;  %v8728_v27 = vld [vmem:[%s14153_s5 + $0x48] sm:$0xf] }
 0x435   : > { %10562 = vmatpush1.bf16.msra.mxu0 %v10561_v29  ;;  %v6145_v29 = vld [vmem:[#allocation2 + $0xca8] sm:$0xff] }
 0x436   : > { %10563 = vmatprep.subr.bf16.mxu0 %v11127_v0  ;;  %v10642_v30 = vpack.c.bf16 %v6145_v29, %v6144_v56  ;;  %v3112_v56 = vld [vmem:[#allocation2 + $0x2e0] sm:$0xff]  ;;  %v3113_v29 = vld [vmem:[#allocation2 + $0x2e8] sm:$0xff] }
 0x439   : > { %10565 = vmatpush1.bf16.msra.mxu0 %v10564_v35  ;;  %v6147_v35 = vld [vmem:[#allocation2 + $0xcb8] sm:$0xff] }
 0x43a   : > { %10566 = vmatprep.subr.bf16.mxu0 %v11127_v0  ;;  %v10645_v36 = vpack.c.bf16 %v6147_v35, %v6146_v32  ;;  %v3115_v32 = vld [vmem:[#allocation2 + $0x2f8] sm:$0xff] }
 0x43d   : > { %10568 = vmatpush1.bf16.msra.mxu0 %v10567_v38  ;;  %v6149_v38 = vld [vmem:[#allocation2 + $0xcc8] sm:$0xff] }
 0x43e   : > { %10569 = vmatprep.subr.bf16.mxu0 %v11127_v0  ;;  %v10648_v23 = vpack.c.bf16 %v6149_v38, %v6148_v37  ;;  %v3117_v37 = vld [vmem:[#allocation2 + $0x308] sm:$0xff] }
 0x441   : > { %10571 = vmatpush1.bf16.msra.mxu0 %v10570_v39  ;;  %v6151_v39 = vld [vmem:[#allocation2 + $0xcd8] sm:$0xff] }
 0x442   : > { %10572 = vmatprep.subr.bf16.mxu0 %v11127_v0  ;;  %v10651_v40 = vpack.c.bf16 %v6151_v39, %v6150_v62  ;;  %v3119_v62 = vld [vmem:[#allocation2 + $0x318] sm:$0xff] }
 0x443   : > { %v13329_v44 = vpop.f32.mrb[14].mxu0 }
 0x444   : > { %v3730_v45 = vpop.f32.mrb[15].mxu0 }
 0x445   : > { %10574 = vmatpush1.bf16.msra.mxu0 %v10573_v41  ;;  %v6153_v41 = vld [vmem:[#allocation2 + $0xce8] sm:$0xff] }
 0x446   : > { %10575 = vmatprep.subr.bf16.mxu0 %v11127_v0  ;;  %v10654_v42 = vpack.c.bf16 %v6153_v41, %v6152_v20  ;;  %v6493_v45 = vld [vmem:[#allocation2 + $0xd88] sm:$0xff] }
 0x447   : > { %v10684_v49 = vpack.c.bf16 %v6493_v45, %v6492_v43  ;;  %v3121_v20 = vld [vmem:[#allocation2 + $0x328] sm:$0xff]  ;;  %v3123_v43 = vld [vmem:[#allocation2 + $0x338] sm:$0xff] }
 0x448   : > { %5685 = vmatmul.mubr.f32.vlgmr.msra.gmra.mrb[26].mxu0 %v13157_v34 }
 0x449   : > { %10577 = vmatpush1.bf16.msra.mxu0 %v10576_v47  ;;  %8822 = vmatprep.mubr.msk.f32.mxu0 %vm2237_vm6, %v13155_v31 }
 0x44a   : > { %10578 = vmatprep.subr.bf16.mxu0 %v11127_v0 }
 0x44d   : > { %10580 = vmatpush1.bf16.msra.mxu0 %v10579_v50  ;;  %v6494_v50 = vld [vmem:[#allocation2 + $0xd90] sm:$0xff] }
 0x44e   : > { %10581 = vmatprep.subr.bf16.mxu0 %v11127_v0  ;;  %v10687_v53 = vpack.c.bf16 %v6495_v52, %v6494_v50  ;;  %v3126_v52 = vld [vmem:[#allocation2 + $0x350] sm:$0xff] }
 0x451   : > { %10583 = vmatpush1.bf16.msra.mxu0 %v10582_v54  ;;  %v6496_v54 = vld [vmem:[#allocation2 + $0xda0] sm:$0xff] }
 0x452   : > { %10584 = vmatprep.subr.bf16.mxu0 %v11127_v0  ;;  %v10690_v5 = vpack.c.bf16 %v6497_v55, %v6496_v54 }
 0x455   : > { %10586 = vmatpush1.bf16.msra.mxu0 %v10585_v57  ;;  %v6498_v57 = vld [vmem:[#allocation2 + $0xdb0] sm:$0xff] }
 0x456   : > { %10587 = vmatprep.subr.bf16.mxu0 %v11127_v0  ;;  %v10693_v59 = vpack.c.bf16 %v6499_v58, %v6498_v57 }
 0x459   : > { %10589 = vmatpush1.bf16.msra.mxu0 %v10588_v28  ;;  %v6501_v28 = vld [vmem:[#allocation2 + $0xdc8] sm:$0xff] }
 0x45a   : > { %10590 = vmatprep.subr.bf16.mxu0 %v11127_v0  ;;  %v10696_v61 = vpack.c.bf16 %v6501_v28, %v6500_v60  ;;  %v8733_v28 = vld [vmem:[%s14153_s5 + $0x50] sm:$0xff] }
 0x45d   : > { %10592 = vmatpush1.bf16.msra.mxu0 %v10591_v2  ;;  %v6503_v2 = vld [vmem:[#allocation2 + $0xdd8] sm:$0xff] }
 0x45e   : > { %10593 = vmatprep.subr.bf16.mxu0 %v11127_v0  ;;  %v10699_v3 = vpack.c.bf16 %v6503_v2, %v6502_v63 }
 0x461   : > { %10595 = vmatpush1.bf16.msra.mxu0 %v10594_v6  ;;  %v6505_v6 = vld [vmem:[#allocation2 + $0xde8] sm:$0xff] }
 0x462   : > { %10596 = vmatprep.subr.bf16.mxu0 %v11127_v0  ;;  %v10702_v33 = vpack.c.bf16 %v6505_v6, %v6504_v4  ;;  %v8734_v6 = vld [vmem:[%s14153_s5 + $0x58] sm:$0xf] }
 0x465   : > { %10598 = vmatpush1.bf16.msra.mxu0 %v10597_v8  ;;  %v6507_v8 = vld [vmem:[#allocation2 + $0xdf8] sm:$0xff] }
 0x466   : > { %10599 = vmatprep.subr.bf16.mxu0 %v11127_v0  ;;  %v10705_v9 = vpack.c.bf16 %v6507_v8, %v6506_v7  ;;  %v8739_v7 = vld [vmem:[%s14153_s5 + $0x60] sm:$0xff]  ;;  %v3466_v8 = vld [vmem:[#allocation2 + $0x3f0] sm:$0xff] }
 0x467   : > { %v13347_v15 = vpop.f32.mrb[16].mxu0 }
 0x468   : > { %v4086_v16 = vpop.f32.mrb[17].mxu0 }
 0x469   : > { %10601 = vmatpush1.bf16.msra.mxu0 %v10600_v11  ;;  %v6509_v11 = vld [vmem:[#allocation2 + $0xe08] sm:$0xff] }
 0x46a   : > { %10629 = vmatprep.subr.bf16.mxu0 %v11127_v0  ;;  %v10708_v12 = vpack.c.bf16 %v6509_v11, %v6508_v10  ;;  %v8740_v10 = vld [vmem:[%s14153_s5 + $0x68] sm:$0xf] }
 0x46c   : > { %5863 = vmatmul.mubr.f32.vlgmr.msra.gmra.mrb[28].mxu0 %v13157_v34 }
 0x46d   : > { %10631 = vmatpush1.bf16.msra.mxu0 %v10630_v17  ;;  %8834 = vmatprep.mubr.msk.f32.mxu0 %vm2237_vm6, %v13155_v31 }
 0x46e   : > { %10632 = vmatprep.subr.bf16.mxu0 %v11127_v0 }
 0x471   : > { %10634 = vmatpush1.bf16.msra.mxu0 %v10633_v21  ;;  %v8727_v21 = vld [vmem:[%s14153_s5 + $0x40] sm:$0xff] }
 0x472   : > { %10635 = vmatprep.subr.bf16.mxu0 %v11127_v0 }
 0x475   : > { %10637 = vmatpush1.bf16.msra.mxu0 %v10636_v25  ;;  %v3110_v25 = vld [vmem:[#allocation2 + $0x2d0] sm:$0xff] }
 0x476   : > { %10638 = vmatprep.subr.bf16.mxu0 %v11127_v0 }
 0x479   : > { %10640 = vmatpush1.bf16.msra.mxu0 %v10639_v51  ;;  %v10171_v51 = vpack.c.bf16 %v3111_v26, %v3110_v25  ;;  %v3474_v26 = vld [vmem:[#allocation2 + $0x430] sm:$0xff] }
 0x47a   : > { %10641 = vmatprep.subr.bf16.mxu0 %v11127_v0 }
 0x47d   : > { %10643 = vmatpush1.bf16.msra.mxu0 %v10642_v30  ;;  %v3114_v30 = vld [vmem:[#allocation2 + $0x2f0] sm:$0xff] }
 0x47e   : > { %10644 = vmatprep.subr.bf16.mxu0 %v11127_v0  ;;  %v10177_v35 = vpack.c.bf16 %v3115_v32, %v3114_v30  ;;  %v3478_v30 = vld [vmem:[#allocation2 + $0x450] sm:$0xff]  ;;  %v3479_v32 = vld [vmem:[#allocation2 + $0x458] sm:$0xff] }
 0x481   : > { %10646 = vmatpush1.bf16.msra.mxu0 %v10645_v36  ;;  %v3116_v36 = vld [vmem:[#allocation2 + $0x300] sm:$0xff] }
 0x482   : > { %10647 = vmatprep.subr.bf16.mxu0 %v11127_v0  ;;  %v10180_v38 = vpack.c.bf16 %v3117_v37, %v3116_v36  ;;  %v3480_v36 = vld [vmem:[#allocation2 + $0x460] sm:$0xff]  ;;  %v3481_v37 = vld [vmem:[#allocation2 + $0x468] sm:$0xff] }
 0x485   : > { %10649 = vmatpush1.bf16.msra.mxu0 %v10648_v23  ;;  %v3118_v23 = vld [vmem:[#allocation2 + $0x310] sm:$0xff] }
 0x486   : > { %10650 = vmatprep.subr.bf16.mxu0 %v11127_v0  ;;  %v10183_v39 = vpack.c.bf16 %v3119_v62, %v3118_v23  ;;  %v3482_v23 = vld [vmem:[#allocation2 + $0x470] sm:$0xff]  ;;  %v3483_v62 = vld [vmem:[#allocation2 + $0x478] sm:$0xff] }
 0x489   : > { %10652 = vmatpush1.bf16.msra.mxu0 %v10651_v40  ;;  %v3120_v40 = vld [vmem:[#allocation2 + $0x320] sm:$0xff] }
 0x48a   : > { %10653 = vmatprep.subr.bf16.mxu0 %v11127_v0  ;;  %v10186_v41 = vpack.c.bf16 %v3121_v20, %v3120_v40  ;;  %v8745_v40 = vld [vmem:[%s14153_s5 + $0x70] sm:$0xff] }
 0x48b   : > { %v13361_v47 = vpop.f32.mrb[18].mxu0 }
 0x48c   : > { %v4264_v48 = vpop.f32.mrb[19].mxu0 }
 0x48d   : > { %10655 = vmatpush1.bf16.msra.mxu0 %v10654_v42  ;;  %v3122_v42 = vld [vmem:[#allocation2 + $0x330] sm:$0xff]  ;;  %v3124_v48 = vld [vmem:[#allocation2 + $0x340] sm:$0xff] }
 0x48e   : > { %10683 = vmatprep.subr.bf16.mxu0 %v11127_v0  ;;  %v10189_v45 = vpack.c.bf16 %v3123_v43, %v3122_v42  ;;  %v8751_v43 = vld [vmem:[%s14153_s5 + $0x80] sm:$0xff] }
 0x490   : > { %6219 = vmatmul.mubr.f32.vlgmr.msra.gmra.mrb[30].mxu0 %v13157_v34 }
 0x491   : > { %10685 = vmatpush1.bf16.msra.mxu0 %v10684_v49  ;;  %8846 = vmatprep.mubr.msk.f32.mxu0 %vm2237_vm6, %v13155_v31  ;;  %v3125_v49 = vld [vmem:[#allocation2 + $0x348] sm:$0xff] }
 0x492   : > { %10686 = vmatprep.subr.bf16.mxu0 %v11127_v0  ;;  %v10192_v50 = vpack.c.bf16 %v3125_v49, %v3124_v48  ;;  %v3823_v48 = vld [vmem:[#allocation2 + $0x518] sm:$0xff]  ;;  %v8752_v49 = vld [vmem:[%s14153_s5 + $0x88] sm:$0xf] }
 0x495   : > { %10688 = vmatpush1.bf16.msra.mxu0 %v10687_v53  ;;  %v3127_v53 = vld [vmem:[#allocation2 + $0x358] sm:$0xff] }
 0x496   : > { %10689 = vmatprep.subr.bf16.mxu0 %v11127_v0 }
 0x499   : > { %10691 = vmatpush1.bf16.msra.mxu0 %v10690_v5  ;;  %v10195_v5 = vpack.c.bf16 %v3127_v53, %v3126_v52  ;;  %v3824_v52 = vld [vmem:[#allocation2 + $0x520] sm:$0xff]  ;;  %v3825_v53 = vld [vmem:[#allocation2 + $0x528] sm:$0xff] }
 0x49a   : > { %10692 = vmatprep.subr.bf16.mxu0 %v11127_v0 }
 0x49d   : > { %10694 = vmatpush1.bf16.msra.mxu0 %v10693_v59 }
 0x49e   : > { %10695 = vmatprep.subr.bf16.mxu0 %v11127_v0 }
 0x4a1   : > { %10697 = vmatpush1.bf16.msra.mxu0 %v10696_v61 }
 0x4a2   : > { %10698 = vmatprep.subr.bf16.mxu0 %v11127_v0 }
 0x4a5   : > { %10700 = vmatpush1.bf16.msra.mxu0 %v10699_v3 }
 0x4a6   : > { %10701 = vmatprep.subr.bf16.mxu0 %v11127_v0 }
 0x4a9   : > { %10703 = vmatpush1.bf16.msra.mxu0 %v10702_v33 }
 0x4aa   : > { %10704 = vmatprep.subr.bf16.mxu0 %v11127_v0 }
 0x4ad   : > { %10706 = vmatpush1.bf16.msra.mxu0 %v10705_v9  ;;  %v3467_v9 = vld [vmem:[#allocation2 + $0x3f8] sm:$0xff] }
 0x4ae   : > { %10707 = vmatprep.subr.bf16.mxu0 %v11127_v0  ;;  %v10225_v11 = vpack.c.bf16 %v3467_v9, %v3466_v8  ;;  %v3834_v9 = vld [vmem:[#allocation2 + $0x570] sm:$0xff] }
 0x4af   : > { %v13375_v13 = vpop.f32.mrb[20].mxu0 }
 0x4b0   : > { %v4620_v16 = vpop.f32.mrb[21].mxu0 }
 0x4b1   : > { %10709 = vmatpush1.bf16.msra.mxu0 %v10708_v12  ;;  %v3468_v12 = vld [vmem:[#allocation2 + $0x400] sm:$0xff]  ;;  %v3469_v16 = vld [vmem:[#allocation2 + $0x408] sm:$0xff] }
 0x4b4   : > { %6575 = vmatmul.mubr.f32.vlgmr.msra.gmra.mrb[32].mxu0 %v13157_v34 }
 0x4d1   : > { %v2838_v17 = vpop.f32.mrb[12].mxu1 }
 0x4d2   : > { %v2840_v19 = vpop.f32.mrb[13].mxu1  ;;  %9110 = vmatprep.subr.msk.mxu1 %vm2412_vm8, %v2838_v17 }
 0x4d3   : > { %9111 = vmatpush3.msk.msra.mxu1 %vm2412_vm8, %v2838_v17  ;;  %v13386_v22 = vpop.f32.mrb[22].mxu0  ;;  %v3470_v17 = vld [vmem:[#allocation2 + $0x410] sm:$0xff] }
 0x4d4   : > { %9113 = vmatmul.mubr.msk.f32.vlgmr.msra.gmra.mrb[10].mxu1 %vm2405_vm7, %v8722_v18  ;;  %9115 = vmatprep.subr.msk.mxu1 %vm2412_vm8, %v13300_v46  ;;  %v4976_v24 = vpop.f32.mrb[23].mxu0  ;;  %v3471_v18 = vld [vmem:[#allocation2 + $0x418] sm:$0xff] }
 0x4d5   : > { %9116 = vmatpush3.msk.msra.mxu1 %vm2412_vm8, %v13300_v46  ;;  %9117 = vmatprep.mubr.msk.f32.mxu1 %vm2405_vm7, %v8727_v21  ;;  %v10174_v46 = vpack.c.bf16 %v3113_v29, %v3112_v56  ;;  %v10231_v19 = vpack.c.bf16 %v3471_v18, %v3470_v17  ;;  %v3472_v21 = vld [vmem:[#allocation2 + $0x420] sm:$0xff]  ;;  %v3473_v24 = vld [vmem:[#allocation2 + $0x428] sm:$0xff]  ;;  %v3838_v17 = vld [vmem:[#allocation2 + $0x590] sm:$0xff] }
 0x4d6   : > { %10170 = vmatprep.subr.bf16.mxu1 %v11127_v0  ;;  %v10234_v25 = vpack.c.bf16 %v3473_v24, %v3472_v21  ;;  %v3476_v56 = vld [vmem:[#allocation2 + $0x440] sm:$0xff]  ;;  %v3477_v29 = vld [vmem:[#allocation2 + $0x448] sm:$0xff]  ;;  %v3839_v18 = vld [vmem:[#allocation2 + $0x598] sm:$0xff] }
 0x4d7   : > { %v8757_v21 = vld [vmem:[%s14153_s5 + $0x90] sm:$0xff] }
 0x4dc   : > { %9118 = vmatmul.mubr.msk.f32.vlgmr.msra.gmra.mrb[10].mxu1 %vm2405_vm7, %v8728_v27  ;;  %v3475_v27 = vld [vmem:[#allocation2 + $0x438] sm:$0xff] }
 0x4dd   : > { %10172 = vmatpush1.bf16.msra.mxu1 %v10171_v51  ;;  %8732 = vmatprep.mubr.msk.f32.mxu1 %vm2237_vm6, %v13155_v31  ;;  %v10237_v51 = vpack.c.bf16 %v3475_v27, %v3474_v26  ;;  %v8763_v27 = vld [vmem:[%s14153_s5 + $0xa0] sm:$0xff] }
 0x4de   : > { %10173 = vmatprep.subr.bf16.mxu1 %v11127_v0 }
 0x4e1   : > { %10175 = vmatpush1.bf16.msra.mxu1 %v10174_v46  ;;  %v10240_v46 = vpack.c.bf16 %v3477_v29, %v3476_v56  ;;  %v8769_v56 = vld [vmem:[%s14153_s5 + $0xb0] sm:$0xff]  ;;  %v4357_v29 = vld [vmem:[#allocation2 + $0x6c8] sm:$0xff] }
 0x4e2   : > { %10176 = vmatprep.subr.bf16.mxu1 %v11127_v0 }
 0x4e5   : > { %10178 = vmatpush1.bf16.msra.mxu1 %v10177_v35  ;;  %v10243_v35 = vpack.c.bf16 %v3479_v32, %v3478_v30  ;;  %v4358_v32 = vld [vmem:[#allocation2 + $0x6d0] sm:$0xff] }
 0x4e6   : > { %10179 = vmatprep.subr.bf16.mxu1 %v11127_v0 }
 0x4e9   : > { %10181 = vmatpush1.bf16.msra.mxu1 %v10180_v38  ;;  %v10246_v38 = vpack.c.bf16 %v3481_v37, %v3480_v36  ;;  %v4360_v36 = vld [vmem:[#allocation2 + $0x6e0] sm:$0xff]  ;;  %v4361_v37 = vld [vmem:[#allocation2 + $0x6e8] sm:$0xff] }
 0x4ea   : > { %10182 = vmatprep.subr.bf16.mxu1 %v11127_v0 }
 0x4ed   : > { %10184 = vmatpush1.bf16.msra.mxu1 %v10183_v39  ;;  %v10249_v39 = vpack.c.bf16 %v3483_v62, %v3482_v23  ;;  %v4362_v23 = vld [vmem:[#allocation2 + $0x6f0] sm:$0xff]  ;;  %v4363_v62 = vld [vmem:[#allocation2 + $0x6f8] sm:$0xff] }
 0x4ee   : > { %10185 = vmatprep.subr.bf16.mxu1 %v11127_v0 }
 0x4f1   : > { %10187 = vmatpush1.bf16.msra.mxu1 %v10186_v41  ;;  %v8746_v41 = vld [vmem:[%s14153_s5 + $0x78] sm:$0xf] }
 0x4f2   : > { %10188 = vmatprep.subr.bf16.mxu1 %v11127_v0 }
 0x4f5   : > { %10190 = vmatpush1.bf16.msra.mxu1 %v10189_v45  ;;  %v3822_v45 = vld [vmem:[#allocation2 + $0x510] sm:$0xff] }
 0x4f6   : > { %10191 = vmatprep.subr.bf16.mxu1 %v11127_v0 }
 0x4f7   : > { %v13408_v54 = vpop.f32.mrb[24].mxu0 }
 0x4f8   : > { %v5332_v55 = vpop.f32.mrb[25].mxu0 }
 0x4f9   : > { %10193 = vmatpush1.bf16.msra.mxu1 %v10192_v50  ;;  %v10279_v50 = vpack.c.bf16 %v3823_v48, %v3822_v45  ;;  %v3826_v55 = vld [vmem:[#allocation2 + $0x530] sm:$0xff]  ;;  %v4368_v48 = vld [vmem:[#allocation2 + $0x720] sm:$0xff] }
 0x4fa   : > { %10194 = vmatprep.subr.bf16.mxu1 %v11127_v0 }
 0x4fd   : > { %10196 = vmatpush1.bf16.msra.mxu1 %v10195_v5  ;;  %v3827_v5 = vld [vmem:[#allocation2 + $0x538] sm:$0xff] }
 0x500   : > { %3193 = vmatmul.mubr.f32.vlgmr.msra.gmra.mrb[14].mxu1 %v13157_v34 }
 0x501   : > { %9122 = vmatprep.mubr.msk.f32.mxu1 %vm2405_vm7, %v8733_v28  ;;  %v3829_v28 = vld [vmem:[#allocation2 + $0x548] sm:$0xff] }
 0x51b   : > { %v13412_v57 = vpop.f32.mrb[26].mxu0 }
 0x51c   : > { %v5688_v58 = vpop.f32.mrb[27].mxu0 }
 0x51d   : > { %v10285_v58 = vpack.c.bf16 %v3827_v5, %v3826_v55  ;;  %v4372_v55 = vld [vmem:[#allocation2 + $0x740] sm:$0xff]  ;;  %v4373_v5 = vld [vmem:[#allocation2 + $0x748] sm:$0xff] }
 0x53f   : > { %v13414_v59 = vpop.f32.mrb[28].mxu0 }
 0x540   : > { %v5866_v60 = vpop.f32.mrb[29].mxu0 }
 0x541   : > { %v3828_v60 = vld [vmem:[#allocation2 + $0x540] sm:$0xff] }
 0x563   : > { %v13420_v61 = vpop.f32.mrb[30].mxu0 }
 0x564   : > { %v6222_v63 = vpop.f32.mrb[31].mxu0 }
 0x565   : > { %v10288_v63 = vpack.c.bf16 %v3829_v28, %v3828_v60  ;;  %v8775_v60 = vld [vmem:[%s14153_s5 + $0xc0] sm:$0xff] }
 0x587   : > { %v13422_v2 = vpop.f32.mrb[32].mxu0 }
 0x588   : > { %v6578_v3 = vpop.f32.mrb[33].mxu0 }
 0x589   : > { %v3830_v3 = vld [vmem:[#allocation2 + $0x550] sm:$0xff] }
 0x5d3   : > { %v3194_v4 = vpop.f32.mrb[14].mxu1 }
 0x5d4   : > { %v3196_v33 = vpop.f32.mrb[15].mxu1  ;;  %9120 = vmatprep.subr.msk.mxu1 %vm2412_vm8, %v3194_v4 }
 0x5d5   : > { %9121 = vmatpush3.msk.msra.mxu1 %vm2412_vm8, %v3194_v4  ;;  %v3831_v4 = vld [vmem:[#allocation2 + $0x558] sm:$0xff]  ;;  %v3832_v33 = vld [vmem:[#allocation2 + $0x560] sm:$0xff] }
 0x5d6   : > { %9123 = vmatmul.mubr.msk.f32.vlgmr.msra.gmra.mrb[10].mxu1 %vm2405_vm7, %v8734_v6  ;;  %9125 = vmatprep.subr.msk.mxu1 %vm2412_vm8, %v13315_v14  ;;  %v10291_v6 = vpack.c.bf16 %v3831_v4, %v3830_v3  ;;  %v8781_v4 = vld [vmem:[%s14153_s5 + $0xd0] sm:$0xff] }
 0x5d7   : > { %9126 = vmatpush3.msk.msra.mxu1 %vm2412_vm8, %v13315_v14  ;;  %9127 = vmatprep.mubr.msk.f32.mxu1 %vm2405_vm7, %v8739_v7  ;;  %v10228_v14 = vpack.c.bf16 %v3469_v16, %v3468_v12  ;;  %v3833_v7 = vld [vmem:[#allocation2 + $0x568] sm:$0xff]  ;;  %v3836_v12 = vld [vmem:[#allocation2 + $0x580] sm:$0xff] }
 0x5d8   : > { %10224 = vmatprep.subr.bf16.mxu1 %v11127_v0  ;;  %v10294_v8 = vpack.c.bf16 %v3833_v7, %v3832_v33  ;;  %v3837_v16 = vld [vmem:[#allocation2 + $0x588] sm:$0xff]  ;;  %v8782_v7 = vld [vmem:[%s14153_s5 + $0xd8] sm:$0xf] }
 0x5d9   : > { %v4713_v33 = vld [vmem:[#allocation2 + $0x7e8] sm:$0xff] }
 0x5de   : > { %9128 = vmatmul.mubr.msk.f32.vlgmr.msra.gmra.mrb[10].mxu1 %vm2405_vm7, %v8740_v10  ;;  %v3835_v10 = vld [vmem:[#allocation2 + $0x578] sm:$0xff] }
 0x5df   : > { %10226 = vmatpush1.bf16.msra.mxu1 %v10225_v11  ;;  %8744 = vmatprep.mubr.msk.f32.mxu1 %vm2237_vm6, %v13155_v31  ;;  %v10297_v11 = vpack.c.bf16 %v3835_v10, %v3834_v9  ;;  %v4714_v9 = vld [vmem:[#allocation2 + $0x7f0] sm:$0xff]  ;;  %v4715_v10 = vld [vmem:[#allocation2 + $0x7f8] sm:$0xff] }
 0x5e0   : > { %10227 = vmatprep.subr.bf16.mxu1 %v11127_v0 }
 0x5e3   : > { %10229 = vmatpush1.bf16.msra.mxu1 %v10228_v14  ;;  %v10300_v14 = vpack.c.bf16 %v3837_v16, %v3836_v12  ;;  %v4717_v12 = vld [vmem:[#allocation2 + $0x808] sm:$0xff] }
 0x5e4   : > { %10230 = vmatprep.subr.bf16.mxu1 %v11127_v0 }
 0x5e7   : > { %10232 = vmatpush1.bf16.msra.mxu1 %v10231_v19  ;;  %v10303_v19 = vpack.c.bf16 %v3839_v18, %v3838_v17  ;;  %v4719_v17 = vld [vmem:[#allocation2 + $0x818] sm:$0xff] }
 0x5e8   : > { %10233 = vmatprep.subr.bf16.mxu1 %v11127_v0 }
 0x5eb   : > { %10235 = vmatpush1.bf16.msra.mxu1 %v10234_v25  ;;  %v8758_v25 = vld [vmem:[%s14153_s5 + $0x98] sm:$0xf] }
 0x5ec   : > { %10236 = vmatprep.subr.bf16.mxu1 %v11127_v0 }
 0x5ef   : > { %10238 = vmatpush1.bf16.msra.mxu1 %v10237_v51  ;;  %v8764_v51 = vld [vmem:[%s14153_s5 + $0xa8] sm:$0xf] }
 0x5f0   : > { %10239 = vmatprep.subr.bf16.mxu1 %v11127_v0 }
 0x5f3   : > { %10241 = vmatpush1.bf16.msra.mxu1 %v10240_v46  ;;  %v8770_v46 = vld [vmem:[%s14153_s5 + $0xb8] sm:$0xf] }
 0x5f4   : > { %10242 = vmatprep.subr.bf16.mxu1 %v11127_v0 }
 0x5f7   : > { %10244 = vmatpush1.bf16.msra.mxu1 %v10243_v35  ;;  %v4359_v35 = vld [vmem:[#allocation2 + $0x6d8] sm:$0xff] }
 0x5f8   : > { %10245 = vmatprep.subr.bf16.mxu1 %v11127_v0 }
 0x5fb   : > { %10247 = vmatpush1.bf16.msra.mxu1 %v10246_v38  ;;  %v10366_v38 = vpack.c.bf16 %v4361_v37, %v4360_v36  ;;  %v8787_v36 = vld [vmem:[%s14153_s5 + $0xe0] sm:$0xff] }
 0x5fc   : > { %10248 = vmatprep.subr.bf16.mxu1 %v11127_v0 }
 0x5ff   : > { %10250 = vmatpush1.bf16.msra.mxu1 %v10249_v39  ;;  %v10369_v39 = vpack.c.bf16 %v4363_v62, %v4362_v23  ;;  %v8793_v62 = vld [vmem:[%s14153_s5 + $0xf0] sm:$0xff] }
 0x602   : > { %3549 = vmatmul.mubr.f32.vlgmr.msra.gmra.mrb[16].mxu1 %v13157_v34 }
 0x603   : > { %9132 = vmatprep.mubr.msk.f32.mxu1 %vm2405_vm7, %v8745_v40  ;;  %v4364_v40 = vld [vmem:[#allocation2 + $0x700] sm:$0xff] }
 0x6d5   : > { %v3550_v20 = vpop.f32.mrb[16].mxu1 }
 0x6d6   : > { %v3552_v42 = vpop.f32.mrb[17].mxu1  ;;  %9130 = vmatprep.subr.msk.mxu1 %vm2412_vm8, %v3550_v20 }
 0x6d7   : > { %9131 = vmatpush3.msk.msra.mxu1 %vm2412_vm8, %v3550_v20  ;;  %v4365_v20 = vld [vmem:[#allocation2 + $0x708] sm:$0xff]  ;;  %v4366_v42 = vld [vmem:[#allocation2 + $0x710] sm:$0xff] }
 0x6d8   : > { %9133 = vmatmul.mubr.msk.f32.vlgmr.msra.gmra.mrb[10].mxu1 %vm2405_vm7, %v8746_v41  ;;  %9135 = vmatprep.subr.msk.mxu1 %vm2412_vm8, %v13329_v44  ;;  %v10372_v41 = vpack.c.bf16 %v4365_v20, %v4364_v40  ;;  %v5069_v40 = vld [vmem:[#allocation2 + $0x908] sm:$0xff]  ;;  %v8794_v20 = vld [vmem:[%s14153_s5 + $0xf8] sm:$0xf] }
 0x6d9   : > { %9136 = vmatpush3.msk.msra.mxu1 %vm2412_vm8, %v13329_v44  ;;  %9137 = vmatprep.mubr.msk.f32.mxu1 %vm2405_vm7, %v8751_v43  ;;  %v10282_v44 = vpack.c.bf16 %v3825_v53, %v3824_v52  ;;  %v4367_v43 = vld [vmem:[#allocation2 + $0x718] sm:$0xff]  ;;  %v4370_v52 = vld [vmem:[#allocation2 + $0x730] sm:$0xff] }
 0x6da   : > { %10278 = vmatprep.subr.bf16.mxu1 %v11127_v0  ;;  %v10375_v45 = vpack.c.bf16 %v4367_v43, %v4366_v42  ;;  %v4371_v53 = vld [vmem:[#allocation2 + $0x738] sm:$0xff]  ;;  %v5070_v42 = vld [vmem:[#allocation2 + $0x910] sm:$0xff] }
 0x6db   : > { %v5071_v43 = vld [vmem:[#allocation2 + $0x918] sm:$0xff] }
 0x6e0   : > { %9138 = vmatmul.mubr.msk.f32.vlgmr.msra.gmra.mrb[10].mxu1 %vm2405_vm7, %v8752_v49  ;;  %v4369_v49 = vld [vmem:[#allocation2 + $0x728] sm:$0xff] }
 0x6e1   : > { %10280 = vmatpush1.bf16.msra.mxu1 %v10279_v50  ;;  %8756 = vmatprep.mubr.msk.f32.mxu1 %vm2237_vm6, %v13155_v31  ;;  %v10378_v50 = vpack.c.bf16 %v4369_v49, %v4368_v48  ;;  %v5073_v48 = vld [vmem:[#allocation2 + $0x928] sm:$0xff] }
 0x6e2   : > { %10281 = vmatprep.subr.bf16.mxu1 %v11127_v0 }
 0x6e5   : > { %10283 = vmatpush1.bf16.msra.mxu1 %v10282_v44  ;;  %v10381_v44 = vpack.c.bf16 %v4371_v53, %v4370_v52  ;;  %v5075_v52 = vld [vmem:[#allocation2 + $0x938] sm:$0xff] }
 0x6e6   : > { %10284 = vmatprep.subr.bf16.mxu1 %v11127_v0 }
 0x6e9   : > { %10286 = vmatpush1.bf16.msra.mxu1 %v10285_v58  ;;  %v10384_v58 = vpack.c.bf16 %v4373_v5, %v4372_v55  ;;  %v5077_v55 = vld [vmem:[#allocation2 + $0x948] sm:$0xff] }
 0x6ea   : > { %10287 = vmatprep.subr.bf16.mxu1 %v11127_v0 }
 0x6ed   : > { %10289 = vmatpush1.bf16.msra.mxu1 %v10288_v63  ;;  %v8776_v63 = vld [vmem:[%s14153_s5 + $0xc8] sm:$0xf] }
 0x6ee   : > { %10290 = vmatprep.subr.bf16.mxu1 %v11127_v0 }
 0x6f1   : > { %10292 = vmatpush1.bf16.msra.mxu1 %v10291_v6  ;;  %v4712_v6 = vld [vmem:[#allocation2 + $0x7e0] sm:$0xff] }
 0x6f2   : > { %10293 = vmatprep.subr.bf16.mxu1 %v11127_v0 }
 0x6f5   : > { %10295 = vmatpush1.bf16.msra.mxu1 %v10294_v8  ;;  %v10414_v8 = vpack.c.bf16 %v4713_v33, %v4712_v6  ;;  %v5082_v6 = vld [vmem:[#allocation2 + $0x970] sm:$0xff]  ;;  %v5083_v33 = vld [vmem:[#allocation2 + $0x978] sm:$0xff] }
 0x6f6   : > { %10296 = vmatprep.subr.bf16.mxu1 %v11127_v0 }
 0x6f9   : > { %10298 = vmatpush1.bf16.msra.mxu1 %v10297_v11  ;;  %v4716_v11 = vld [vmem:[#allocation2 + $0x800] sm:$0xff] }
 0x6fa   : > { %10299 = vmatprep.subr.bf16.mxu1 %v11127_v0  ;;  %v10420_v16 = vpack.c.bf16 %v4717_v12, %v4716_v11  ;;  %v8800_v12 = vld [vmem:[%s14153_s5 + $0x108] sm:$0xf] }
 0x6fd   : > { %10301 = vmatpush1.bf16.msra.mxu1 %v10300_v14  ;;  %v4718_v14 = vld [vmem:[#allocation2 + $0x810] sm:$0xff] }
 0x6fe   : > { %10302 = vmatprep.subr.bf16.mxu1 %v11127_v0  ;;  %v10423_v18 = vpack.c.bf16 %v4719_v17, %v4718_v14  ;;  %v8805_v14 = vld [vmem:[%s14153_s5 + $0x110] sm:$0xff]  ;;  %v5424_v17 = vld [vmem:[#allocation2 + $0xa20] sm:$0xff] }
 0x701   : > { %10304 = vmatpush1.bf16.msra.mxu1 %v10303_v19  ;;  %v4720_v19 = vld [vmem:[#allocation2 + $0x820] sm:$0xff] }
 0x704   : > { %3905 = vmatmul.mubr.f32.vlgmr.msra.gmra.mrb[18].mxu1 %v13157_v34 }
 0x705   : > { %9142 = vmatprep.mubr.msk.f32.mxu1 %vm2405_vm7, %v8757_v21  ;;  %v4721_v21 = vld [vmem:[#allocation2 + $0x828] sm:$0xff] }
 0x7d7   : > { %v3906_v24 = vpop.f32.mrb[18].mxu1 }
 0x7d8   : > { %v3908_v26 = vpop.f32.mrb[19].mxu1  ;;  %9140 = vmatprep.subr.msk.mxu1 %vm2412_vm8, %v3906_v24 }
 0x7d9   : > { %9141 = vmatpush3.msk.msra.mxu1 %vm2412_vm8, %v3906_v24  ;;  %v10426_v24 = vpack.c.bf16 %v4721_v21, %v4720_v19  ;;  %v4723_v26 = vld [vmem:[#allocation2 + $0x838] sm:$0xff] }
 0x7da   : > { %9143 = vmatmul.mubr.msk.f32.vlgmr.msra.gmra.mrb[10].mxu1 %vm2405_vm7, %v8758_v25  ;;  %9145 = vmatprep.subr.msk.mxu1 %vm2412_vm8, %v13347_v15  ;;  %v4722_v25 = vld [vmem:[#allocation2 + $0x830] sm:$0xff]  ;;  %v8806_v19 = vld [vmem:[%s14153_s5 + $0x118] sm:$0xf] }
 0x7db   : > { %9146 = vmatpush3.msk.msra.mxu1 %vm2412_vm8, %v13347_v15  ;;  %9147 = vmatprep.mubr.msk.f32.mxu1 %vm2405_vm7, %v8763_v27  ;;  %v4356_v15 = vld [vmem:[#allocation2 + $0x6c0] sm:$0xff]  ;;  %v10429_v27 = vpack.c.bf16 %v4723_v26, %v4722_v25  ;;  %v5427_v25 = vld [vmem:[#allocation2 + $0xa38] sm:$0xff] }
 0x7dc   : > { %9150 = vmatprep.subr.msk.mxu1 %vm2412_vm8, %v13361_v47  ;;  %v10360_v30 = vpack.c.bf16 %v4357_v29, %v4356_v15  ;;  %v4726_v29 = vld [vmem:[#allocation2 + $0x850] sm:$0xff]  ;;  %v5428_v26 = vld [vmem:[#allocation2 + $0xa40] sm:$0xff] }
 0x7e2   : > { %9148 = vmatmul.mubr.msk.f32.vlgmr.msra.gmra.mrb[10].mxu1 %vm2405_vm7, %v8764_v51  ;;  %v4724_v51 = vld [vmem:[#allocation2 + $0x840] sm:$0xff] }
 0x7e3   : > { %9151 = vmatpush3.msk.msra.mxu1 %vm2412_vm8, %v13361_v47  ;;  %9152 = vmatprep.mubr.msk.f32.mxu1 %vm2405_vm7, %v8769_v56  ;;  %v10363_v47 = vpack.c.bf16 %v4359_v35, %v4358_v32  ;;  %v4725_v56 = vld [vmem:[#allocation2 + $0x848] sm:$0xff]  ;;  %v4728_v32 = vld [vmem:[#allocation2 + $0x860] sm:$0xff] }
 0x7e4   : > { %10359 = vmatprep.subr.bf16.mxu1 %v11127_v0  ;;  %v10432_v15 = vpack.c.bf16 %v4725_v56, %v4724_v51  ;;  %v4729_v35 = vld [vmem:[#allocation2 + $0x868] sm:$0xff]  ;;  %v5430_v56 = vld [vmem:[#allocation2 + $0xa50] sm:$0xff] }
 0x7ea   : > { %9153 = vmatmul.mubr.msk.f32.vlgmr.msra.gmra.mrb[10].mxu1 %vm2405_vm7, %v8770_v46  ;;  %v4727_v46 = vld [vmem:[#allocation2 + $0x858] sm:$0xff] }
 0x7eb   : > { %10361 = vmatpush1.bf16.msra.mxu1 %v10360_v30  ;;  %8774 = vmatprep.mubr.msk.f32.mxu1 %vm2237_vm6, %v13155_v31  ;;  %v10435_v30 = vpack.c.bf16 %v4727_v46, %v4726_v29  ;;  %v5432_v46 = vld [vmem:[#allocation2 + $0xa60] sm:$0xff] }
 0x7ec   : > { %10362 = vmatprep.subr.bf16.mxu1 %v11127_v0 }
 0x7ef   : > { %10364 = vmatpush1.bf16.msra.mxu1 %v10363_v47  ;;  %v10438_v47 = vpack.c.bf16 %v4729_v35, %v4728_v32  ;;  %v5434_v35 = vld [vmem:[#allocation2 + $0xa70] sm:$0xff] }
 0x7f0   : > { %10365 = vmatprep.subr.bf16.mxu1 %v11127_v0 }
 0x7f3   : > { %10367 = vmatpush1.bf16.msra.mxu1 %v10366_v38  ;;  %v8788_v38 = vld [vmem:[%s14153_s5 + $0xe8] sm:$0xf] }
 0x7f4   : > { %10368 = vmatprep.subr.bf16.mxu1 %v11127_v0 }
 0x7f7   : > { %10370 = vmatpush1.bf16.msra.mxu1 %v10369_v39  ;;  %v5068_v39 = vld [vmem:[#allocation2 + $0x900] sm:$0xff] }
 0x7f8   : > { %10371 = vmatprep.subr.bf16.mxu1 %v11127_v0 }
 0x7fb   : > { %10373 = vmatpush1.bf16.msra.mxu1 %v10372_v41  ;;  %v10468_v41 = vpack.c.bf16 %v5069_v40, %v5068_v39  ;;  %v5439_v39 = vld [vmem:[#allocation2 + $0xa98] sm:$0xff] }
 0x7fc   : > { %10374 = vmatprep.subr.bf16.mxu1 %v11127_v0 }
 0x7ff   : > { %10376 = vmatpush1.bf16.msra.mxu1 %v10375_v45  ;;  %v5072_v45 = vld [vmem:[#allocation2 + $0x920] sm:$0xff] }
 0x800   : > { %10377 = vmatprep.subr.bf16.mxu1 %v11127_v0  ;;  %v10474_v49 = vpack.c.bf16 %v5073_v48, %v5072_v45  ;;  %v8812_v45 = vld [vmem:[%s14153_s5 + $0x128] sm:$0xf] }
 0x803   : > { %10379 = vmatpush1.bf16.msra.mxu1 %v10378_v50  ;;  %v5074_v50 = vld [vmem:[#allocation2 + $0x930] sm:$0xff] }
 0x804   : > { %10380 = vmatprep.subr.bf16.mxu1 %v11127_v0  ;;  %v10477_v53 = vpack.c.bf16 %v5075_v52, %v5074_v50  ;;  %v8818_v50 = vld [vmem:[%s14153_s5 + $0x138] sm:$0xf]  ;;  %v8823_v52 = vld [vmem:[%s14153_s5 + $0x140] sm:$0xff] }
 0x807   : > { %10382 = vmatpush1.bf16.msra.mxu1 %v10381_v44  ;;  %v5076_v44 = vld [vmem:[#allocation2 + $0x940] sm:$0xff] }
 0x808   : > { %10383 = vmatprep.subr.bf16.mxu1 %v11127_v0  ;;  %v10480_v5 = vpack.c.bf16 %v5077_v55, %v5076_v44  ;;  %v8824_v44 = vld [vmem:[%s14153_s5 + $0x148] sm:$0xf] }
 0x80b   : > { %10385 = vmatpush1.bf16.msra.mxu1 %v10384_v58  ;;  %v5078_v58 = vld [vmem:[#allocation2 + $0x950] sm:$0xff] }
 0x80e   : > { %4439 = vmatmul.mubr.f32.vlgmr.msra.gmra.mrb[20].mxu1 %v13157_v34 }
 0x80f   : > { %9157 = vmatprep.mubr.msk.f32.mxu1 %vm2405_vm7, %v8775_v60  ;;  %v5079_v60 = vld [vmem:[#allocation2 + $0x958] sm:$0xff] }
 0x8e1   : > { %v4440_v28 = vpop.f32.mrb[20].mxu1 }
 0x8e2   : > { %v4442_v3 = vpop.f32.mrb[21].mxu1  ;;  %9155 = vmatprep.subr.msk.mxu1 %vm2412_vm8, %v4440_v28 }
 0x8e3   : > { %9156 = vmatpush3.msk.msra.mxu1 %vm2412_vm8, %v4440_v28  ;;  %v10483_v28 = vpack.c.bf16 %v5079_v60, %v5078_v58  ;;  %v5081_v3 = vld [vmem:[#allocation2 + $0x968] sm:$0xff]  ;;  %v5962_v60 = vld [vmem:[#allocation2 + $0xbf0] sm:$0xff] }
 0x8e4   : > { %9158 = vmatmul.mubr.msk.f32.vlgmr.msra.gmra.mrb[10].mxu1 %vm2405_vm7, %v8776_v63  ;;  %9160 = vmatprep.subr.msk.mxu1 %vm2412_vm8, %v13375_v13  ;;  %v5080_v63 = vld [vmem:[#allocation2 + $0x960] sm:$0xff]  ;;  %v5961_v58 = vld [vmem:[#allocation2 + $0xbe8] sm:$0xff] }
 0x8e5   : > { %9161 = vmatpush3.msk.msra.mxu1 %vm2412_vm8, %v13375_v13  ;;  %9162 = vmatprep.mubr.msk.f32.mxu1 %vm2405_vm7, %v8781_v4  ;;  %v10417_v13 = vpack.c.bf16 %v4715_v10, %v4714_v9  ;;  %v10486_v4 = vpack.c.bf16 %v5081_v3, %v5080_v63  ;;  %v5085_v9 = vld [vmem:[#allocation2 + $0x988] sm:$0xff]  ;;  %v5964_v3 = vld [vmem:[#allocation2 + $0xc00] sm:$0xff] }
 0x8e6   : > { %10413 = vmatprep.subr.bf16.mxu1 %v11127_v0 }
 0x8ec   : > { %9163 = vmatmul.mubr.msk.f32.vlgmr.msra.gmra.mrb[10].mxu1 %vm2405_vm7, %v8782_v7  ;;  %v10489_v7 = vpack.c.bf16 %v5083_v33, %v5082_v6  ;;  %v5966_v33 = vld [vmem:[#allocation2 + $0xc10] sm:$0xff] }
 0x8ed   : > { %10415 = vmatpush1.bf16.msra.mxu1 %v10414_v8  ;;  %8786 = vmatprep.mubr.msk.f32.mxu1 %vm2237_vm6, %v13155_v31  ;;  %v5084_v8 = vld [vmem:[#allocation2 + $0x980] sm:$0xff] }
 0x8ee   : > { %10416 = vmatprep.subr.bf16.mxu1 %v11127_v0  ;;  %v10492_v10 = vpack.c.bf16 %v5085_v9, %v5084_v8  ;;  %v5968_v9 = vld [vmem:[#allocation2 + $0xc20] sm:$0xff] }
 0x8f1   : > { %10418 = vmatpush1.bf16.msra.mxu1 %v10417_v13  ;;  %v8799_v13 = vld [vmem:[%s14153_s5 + $0x100] sm:$0xff] }
 0x8f2   : > { %10419 = vmatprep.subr.bf16.mxu1 %v11127_v0 }
 0x8f5   : > { %10421 = vmatpush1.bf16.msra.mxu1 %v10420_v16 }
 0x8f6   : > { %10422 = vmatprep.subr.bf16.mxu1 %v11127_v0 }
 0x8f9   : > { %10424 = vmatpush1.bf16.msra.mxu1 %v10423_v18  ;;  %v5425_v18 = vld [vmem:[#allocation2 + $0xa28] sm:$0xff] }
 0x8fa   : > { %10425 = vmatprep.subr.bf16.mxu1 %v11127_v0  ;;  %v10522_v21 = vpack.c.bf16 %v5425_v18, %v5424_v17  ;;  %v5973_v17 = vld [vmem:[#allocation2 + $0xc48] sm:$0xff] }
 0x8fd   : > { %10427 = vmatpush1.bf16.msra.mxu1 %v10426_v24  ;;  %v5426_v24 = vld [vmem:[#allocation2 + $0xa30] sm:$0xff] }
 0x8fe   : > { %10428 = vmatprep.subr.bf16.mxu1 %v11127_v0 }
 0x901   : > { %10430 = vmatpush1.bf16.msra.mxu1 %v10429_v27  ;;  %v5429_v27 = vld [vmem:[#allocation2 + $0xa48] sm:$0xff] }
 0x902   : > { %10431 = vmatprep.subr.bf16.mxu1 %v11127_v0  ;;  %v10528_v51 = vpack.c.bf16 %v5429_v27, %v5428_v26  ;;  %v8830_v26 = vld [vmem:[%s14153_s5 + $0x158] sm:$0xf] }
 0x905   : > { %10433 = vmatpush1.bf16.msra.mxu1 %v10432_v15  ;;  %v5431_v15 = vld [vmem:[#allocation2 + $0xa58] sm:$0xff] }
 0x906   : > { %10434 = vmatprep.subr.bf16.mxu1 %v11127_v0  ;;  %v10531_v29 = vpack.c.bf16 %v5431_v15, %v5430_v56  ;;  %v6314_v56 = vld [vmem:[#allocation2 + $0xcf0] sm:$0xff]  ;;  %v6315_v15 = vld [vmem:[#allocation2 + $0xcf8] sm:$0xff] }
 0x909   : > { %10436 = vmatpush1.bf16.msra.mxu1 %v10435_v30  ;;  %v5433_v30 = vld [vmem:[#allocation2 + $0xa68] sm:$0xff] }
 0x90a   : > { %10437 = vmatprep.subr.bf16.mxu1 %v11127_v0  ;;  %v10534_v32 = vpack.c.bf16 %v5433_v30, %v5432_v46  ;;  %v10657_v46 = vpack.c.bf16 %v6315_v15, %v6314_v56  ;;  %v6316_v30 = vld [vmem:[#allocation2 + $0xd00] sm:$0xff]  ;;  %v8875_v15 = vld [vmem:[%s14155_s7 + $0xc8] sm:$0xff] }
 0x90d   : > { %10439 = vmatpush1.bf16.msra.mxu1 %v10438_v47  ;;  %v5435_v47 = vld [vmem:[#allocation2 + $0xa78] sm:$0xff] }
 0x910   : > { %4795 = vmatmul.mubr.f32.vlgmr.msra.gmra.mrb[22].mxu1 %v13157_v34 }
 0x911   : > { %9167 = vmatprep.mubr.msk.f32.mxu1 %vm2405_vm7, %v8787_v36  ;;  %v10537_v36 = vpack.c.bf16 %v5435_v47, %v5434_v35  ;;  %v6318_v35 = vld [vmem:[#allocation2 + $0xd10] sm:$0xff]  ;;  %v6319_v47 = vld [vmem:[#allocation2 + $0xd18] sm:$0xff] }
 0x9e3   : > { %v4796_v37 = vpop.f32.mrb[22].mxu1 }
 0x9e4   : > { %v4798_v23 = vpop.f32.mrb[23].mxu1  ;;  %9165 = vmatprep.subr.msk.mxu1 %vm2412_vm8, %v4796_v37 }
 0x9e5   : > { %9166 = vmatpush3.msk.msra.mxu1 %vm2412_vm8, %v4796_v37  ;;  %v5436_v37 = vld [vmem:[#allocation2 + $0xa80] sm:$0xff] }
 0x9e6   : > { %9168 = vmatmul.mubr.msk.f32.vlgmr.msra.gmra.mrb[10].mxu1 %vm2405_vm7, %v8788_v38  ;;  %9170 = vmatprep.subr.msk.mxu1 %vm2412_vm8, %v13386_v22  ;;  %v5437_v38 = vld [vmem:[#allocation2 + $0xa88] sm:$0xff] }
 0x9e7   : > { %9171 = vmatpush3.msk.msra.mxu1 %vm2412_vm8, %v13386_v22  ;;  %9172 = vmatprep.mubr.msk.f32.mxu1 %vm2405_vm7, %v8793_v62  ;;  %v10471_v22 = vpack.c.bf16 %v5071_v43, %v5070_v42  ;;  %v10540_v23 = vpack.c.bf16 %v5437_v38, %v5436_v37  ;;  %v5438_v62 = vld [vmem:[#allocation2 + $0xa90] sm:$0xff]  ;;  %v8811_v43 = vld [vmem:[%s14153_s5 + $0x120] sm:$0xff]  ;;  %v6321_v38 = vld [vmem:[#allocation2 + $0xd28] sm:$0xff] }
 0x9e8   : > { %10467 = vmatprep.subr.bf16.mxu1 %v11127_v0  ;;  %v10543_v40 = vpack.c.bf16 %v5439_v39, %v5438_v62  ;;  %v6320_v37 = vld [vmem:[#allocation2 + $0xd20] sm:$0xff]  ;;  %v6322_v62 = vld [vmem:[#allocation2 + $0xd30] sm:$0xff]  ;;  %v6323_v39 = vld [vmem:[#allocation2 + $0xd38] sm:$0xff] }
 0x9ee   : > { %9173 = vmatmul.mubr.msk.f32.vlgmr.msra.gmra.mrb[10].mxu1 %vm2405_vm7, %v8794_v20  ;;  %v5440_v20 = vld [vmem:[#allocation2 + $0xaa0] sm:$0xff] }
 0x9ef   : > { %10469 = vmatpush1.bf16.msra.mxu1 %v10468_v41  ;;  %8798 = vmatprep.mubr.msk.f32.mxu1 %vm2237_vm6, %v13155_v31  ;;  %v5441_v41 = vld [vmem:[#allocation2 + $0xaa8] sm:$0xff] }
 0x9f0   : > { %10470 = vmatprep.subr.bf16.mxu1 %v11127_v0  ;;  %v10546_v42 = vpack.c.bf16 %v5441_v41, %v5440_v20  ;;  %v6325_v20 = vld [vmem:[#allocation2 + $0xd48] sm:$0xff] }
 0x9f3   : > { %10472 = vmatpush1.bf16.msra.mxu1 %v10471_v22 }
 0x9f4   : > { %10473 = vmatprep.subr.bf16.mxu1 %v11127_v0 }
 0x9f7   : > { %10475 = vmatpush1.bf16.msra.mxu1 %v10474_v49  ;;  %v8817_v49 = vld [vmem:[%s14153_s5 + $0x130] sm:$0xff] }
 0x9f8   : > { %10476 = vmatprep.subr.bf16.mxu1 %v11127_v0 }
 0x9fb   : > { %10478 = vmatpush1.bf16.msra.mxu1 %v10477_v53  ;;  %v5959_v53 = vld [vmem:[#allocation2 + $0xbd8] sm:$0xff] }
 0x9fc   : > { %10479 = vmatprep.subr.bf16.mxu1 %v11127_v0 }
 0x9ff   : > { %10481 = vmatpush1.bf16.msra.mxu1 %v10480_v5  ;;  %v5960_v5 = vld [vmem:[#allocation2 + $0xbe0] sm:$0xff] }
 0xa00   : > { %10482 = vmatprep.subr.bf16.mxu1 %v11127_v0 }
 0xa03   : > { %10484 = vmatpush1.bf16.msra.mxu1 %v10483_v28  ;;  %v5963_v28 = vld [vmem:[#allocation2 + $0xbf8] sm:$0xff] }
 0xa04   : > { %10485 = vmatprep.subr.bf16.mxu1 %v11127_v0  ;;  %v10609_v63 = vpack.c.bf16 %v5963_v28, %v5962_v60  ;;  %v8858_v28 = vld [vmem:[%s14155_s7 + $0x60] sm:$0xff] }
 0xa07   : > { %10487 = vmatpush1.bf16.msra.mxu1 %v10486_v4  ;;  %v5965_v4 = vld [vmem:[#allocation2 + $0xc08] sm:$0xff] }
 0xa08   : > { %10488 = vmatprep.subr.bf16.mxu1 %v11127_v0  ;;  %v10612_v6 = vpack.c.bf16 %v5965_v4, %v5964_v3  ;;  %v6683_v4 = vld [vmem:[%s14155_s7] sm:$0xff] }
 0xa0b   : > { %10490 = vmatpush1.bf16.msra.mxu1 %v10489_v7  ;;  %v5967_v7 = vld [vmem:[#allocation2 + $0xc18] sm:$0xff] }
 0xa0c   : > { %10491 = vmatprep.subr.bf16.mxu1 %v11127_v0  ;;  %v10615_v8 = vpack.c.bf16 %v5967_v7, %v5966_v33  ;;  %v8842_v7 = vld [vmem:[%s14153_s5 + $0x178] sm:$0xf] }
 0xa0f   : > { %10493 = vmatpush1.bf16.msra.mxu1 %v10492_v10  ;;  %v5969_v10 = vld [vmem:[#allocation2 + $0xc28] sm:$0xff] }
 0xa12   : > { %5151 = vmatmul.mubr.f32.vlgmr.msra.gmra.mrb[24].mxu1 %v13157_v34 }
 0xa13   : > { %9177 = vmatprep.mubr.msk.f32.mxu1 %vm2405_vm7, %v8799_v13  ;;  %v10618_v13 = vpack.c.bf16 %v5969_v10, %v5968_v9  ;;  %v8847_v9 = vld [vmem:[%s14153_s5 + $0x180] sm:$0xff] }
 0xae5   : > { %v5152_v11 = vpop.f32.mrb[24].mxu1 }
 0xae6   : > { %v5154_v16 = vpop.f32.mrb[25].mxu1  ;;  %9175 = vmatprep.subr.msk.mxu1 %vm2412_vm8, %v5152_v11 }
 0xae7   : > { %9176 = vmatpush3.msk.msra.mxu1 %vm2412_vm8, %v5152_v11  ;;  %v5970_v11 = vld [vmem:[#allocation2 + $0xc30] sm:$0xff] }
 0xae8   : > { %9178 = vmatmul.mubr.msk.f32.vlgmr.msra.gmra.mrb[10].mxu1 %vm2405_vm7, %v8800_v12  ;;  %9180 = vmatprep.subr.msk.mxu1 %vm2412_vm8, %v13408_v54  ;;  %v5971_v12 = vld [vmem:[#allocation2 + $0xc38] sm:$0xff] }
 0xae9   : > { %9181 = vmatpush3.msk.msra.mxu1 %vm2412_vm8, %v13408_v54  ;;  %9182 = vmatprep.mubr.msk.f32.mxu1 %vm2405_vm7, %v8805_v14  ;;  %v10525_v54 = vpack.c.bf16 %v5427_v25, %v5426_v24  ;;  %v10621_v16 = vpack.c.bf16 %v5971_v12, %v5970_v11  ;;  %v5972_v14 = vld [vmem:[#allocation2 + $0xc40] sm:$0xff]  ;;  %v8829_v25 = vld [vmem:[%s14153_s5 + $0x150] sm:$0xff]  ;;  %v6686_v11 = vld [vmem:[%s14155_s7 + $0x18] sm:$0xff] }
 0xaea   : > { %10521 = vmatprep.subr.bf16.mxu1 %v11127_v0  ;;  %v10624_v18 = vpack.c.bf16 %v5973_v17, %v5972_v14  ;;  %v8848_v12 = vld [vmem:[%s14153_s5 + $0x188] sm:$0xf] }
 0xaeb   : > { %v6688_v14 = vld [vmem:[%s14155_s7 + $0x28] sm:$0xff] }
 0xaf0   : > { %9183 = vmatmul.mubr.msk.f32.vlgmr.msra.gmra.mrb[10].mxu1 %vm2405_vm7, %v8806_v19  ;;  %v5974_v19 = vld [vmem:[#allocation2 + $0xc50] sm:$0xff] }
 0xaf1   : > { %10523 = vmatpush1.bf16.msra.mxu1 %v10522_v21  ;;  %8810 = vmatprep.mubr.msk.f32.mxu1 %vm2237_vm6, %v13155_v31  ;;  %v5975_v21 = vld [vmem:[#allocation2 + $0xc58] sm:$0xff] }
 0xaf2   : > { %10524 = vmatprep.subr.bf16.mxu1 %v11127_v0  ;;  %v10627_v24 = vpack.c.bf16 %v5975_v21, %v5974_v19  ;;  %v6690_v19 = vld [vmem:[%s14155_s7 + $0x38] sm:$0xff]  ;;  %v8860_v21 = vld [vmem:[%s14155_s7 + $0x70] sm:$0xff] }
 0xaf5   : > { %10526 = vmatpush1.bf16.msra.mxu1 %v10525_v54 }
 0xaf6   : > { %10527 = vmatprep.subr.bf16.mxu1 %v11127_v0 }
 0xaf9   : > { %10529 = vmatpush1.bf16.msra.mxu1 %v10528_v51  ;;  %v8835_v51 = vld [vmem:[%s14153_s5 + $0x160] sm:$0xff] }
 0xafa   : > { %10530 = vmatprep.subr.bf16.mxu1 %v11127_v0 }
 0xafd   : > { %10532 = vmatpush1.bf16.msra.mxu1 %v10531_v29  ;;  %v8836_v29 = vld [vmem:[%s14153_s5 + $0x168] sm:$0xf] }
 0xafe   : > { %10533 = vmatprep.subr.bf16.mxu1 %v11127_v0 }
 0xb01   : > { %10535 = vmatpush1.bf16.msra.mxu1 %v10534_v32  ;;  %v6317_v32 = vld [vmem:[#allocation2 + $0xd08] sm:$0xff] }
 0xb02   : > { %10536 = vmatprep.subr.bf16.mxu1 %v11127_v0 }
 0xb05   : > { %10538 = vmatpush1.bf16.msra.mxu1 %v10537_v36  ;;  %v10663_v36 = vpack.c.bf16 %v6319_v47, %v6318_v35  ;;  %v8867_v47 = vld [vmem:[%s14155_s7 + $0x98] sm:$0xff] }
 0xb06   : > { %10539 = vmatprep.subr.bf16.mxu1 %v11127_v0 }
 0xb09   : > { %10541 = vmatpush1.bf16.msra.mxu1 %v10540_v23  ;;  %v10666_v23 = vpack.c.bf16 %v6321_v38, %v6320_v37  ;;  %v8877_v37 = vld [vmem:[%s14155_s7 + $0xd8] sm:$0xff] }
 0xb0a   : > { %10542 = vmatprep.subr.bf16.mxu1 %v11127_v0 }
 0xb0d   : > { %10544 = vmatpush1.bf16.msra.mxu1 %v10543_v40  ;;  %v10669_v40 = vpack.c.bf16 %v6323_v39, %v6322_v62  ;;  %v8868_v62 = vld [vmem:[%s14155_s7 + $0xa0] sm:$0xff] }
 0xb0e   : > { %10545 = vmatprep.subr.bf16.mxu1 %v11127_v0 }
 0xb11   : > { %10547 = vmatpush1.bf16.msra.mxu1 %v10546_v42  ;;  %v6326_v42 = vld [vmem:[#allocation2 + $0xd50] sm:$0xff] }
 0xb14   : > { %5507 = vmatmul.mubr.f32.vlgmr.msra.gmra.mrb[26].mxu1 %v13157_v34 }
 0xb15   : > { %9187 = vmatprep.mubr.msk.f32.mxu1 %vm2405_vm7, %v8811_v43  ;;  %v6327_v43 = vld [vmem:[#allocation2 + $0xd58] sm:$0xff] }
 0xbe7   : > { %v5508_v22 = vpop.f32.mrb[26].mxu1 }
 0xbe8   : > { %v5510_v48 = vpop.f32.mrb[27].mxu1  ;;  %9185 = vmatprep.subr.msk.mxu1 %vm2412_vm8, %v5508_v22 }
 0xbe9   : > { %9186 = vmatpush3.msk.msra.mxu1 %vm2412_vm8, %v5508_v22  ;;  %v10675_v22 = vpack.c.bf16 %v6327_v43, %v6326_v42  ;;  %v6329_v48 = vld [vmem:[#allocation2 + $0xd68] sm:$0xff] }
 0xbea   : > { %9188 = vmatmul.mubr.msk.f32.vlgmr.msra.gmra.mrb[10].mxu1 %vm2405_vm7, %v8812_v45  ;;  %9190 = vmatprep.subr.msk.mxu1 %vm2412_vm8, %v13412_v57  ;;  %v6328_v45 = vld [vmem:[#allocation2 + $0xd60] sm:$0xff] }
 0xbeb   : > { %9191 = vmatpush3.msk.msra.mxu1 %vm2412_vm8, %v13412_v57  ;;  %9192 = vmatprep.mubr.msk.f32.mxu1 %vm2405_vm7, %v8817_v49  ;;  %v5958_v57 = vld [vmem:[#allocation2 + $0xbd0] sm:$0xff]  ;;  %v10678_v49 = vpack.c.bf16 %v6329_v48, %v6328_v45  ;;  %v8871_v45 = vld [vmem:[%s14155_s7 + $0xb8] sm:$0xff] }
 0xbec   : > { %9195 = vmatprep.subr.msk.mxu1 %vm2412_vm8, %v13414_v59  ;;  %v10603_v55 = vpack.c.bf16 %v5959_v53, %v5958_v57  ;;  %v8841_v53 = vld [vmem:[%s14153_s5 + $0x170] sm:$0xff] }
 0xbed   : > { %v8880_v48 = vld [vmem:[%s14155_s7 + $0xf0] sm:$0xff] }
 0xbf2   : > { %9193 = vmatmul.mubr.msk.f32.vlgmr.msra.gmra.mrb[10].mxu1 %vm2405_vm7, %v8818_v50  ;;  %v6330_v50 = vld [vmem:[#allocation2 + $0xd70] sm:$0xff] }
 0xbf3   : > { %9196 = vmatpush3.msk.msra.mxu1 %vm2412_vm8, %v13414_v59  ;;  %9197 = vmatprep.mubr.msk.f32.mxu1 %vm2405_vm7, %v8823_v52  ;;  %v10606_v59 = vpack.c.bf16 %v5961_v58, %v5960_v5  ;;  %v6331_v52 = vld [vmem:[#allocation2 + $0xd78] sm:$0xff]  ;;  %v8855_v5 = vld [vmem:[%s14155_s7 + $0x48] sm:$0xff]  ;;  %v8856_v58 = vld [vmem:[%s14155_s7 + $0x50] sm:$0xff] }
 0xbf4   : > { %10602 = vmatprep.subr.bf16.mxu1 %v11127_v0  ;;  %v10681_v57 = vpack.c.bf16 %v6331_v52, %v6330_v50 }
 0xbfa   : > { %9198 = vmatmul.mubr.msk.f32.vlgmr.msra.gmra.mrb[10].mxu1 %vm2405_vm7, %v8824_v44  ;;  %v6670_v44 = vld [vmem:[%s14154_s6 + $0x8] sm:$0xf] }
 0xbfb   : > { %10604 = vmatpush1.bf16.msra.mxu1 %v10603_v55  ;;  %8828 = vmatprep.mubr.msk.f32.mxu1 %vm2237_vm6, %v13155_v31  ;;  %v8854_v55 = vld [vmem:[%s14155_s7 + $0x40] sm:$0xff] }
 0xbfc   : > { %10605 = vmatprep.subr.bf16.mxu1 %v11127_v0  ;;  %6678 = vperm.xlu1 %10995, %v6670_v44  }
 0xbff   : > { %10607 = vmatpush1.bf16.msra.mxu1 %v10606_v59  ;;  %v8857_v59 = vld [vmem:[%s14155_s7 + $0x58] sm:$0xff] }
 0xc00   : > { %10608 = vmatprep.subr.bf16.mxu1 %v11127_v0  ;;  %v10730_v60 = vpack.c.bf16 %v8857_v59, %v8856_v58  ;;  %v7949_v59 = vld [vmem:[%s14158_s10 + $0x18] sm:$0xff] }
 0xc03   : > { %10610 = vmatpush1.bf16.msra.mxu1 %v10609_v63  ;;  %v8859_v63 = vld [vmem:[%s14155_s7 + $0x68] sm:$0xff] }
 0xc04   : > { %10611 = vmatprep.subr.bf16.mxu1 %v11127_v0  ;;  %v10734_v3 = vpack.c.bf16 %v8859_v63, %v8858_v28  ;;  %v7950_v28 = vld [vmem:[%s14158_s10 + $0x20] sm:$0xff]  ;;  %v7951_v63 = vld [vmem:[%s14158_s10 + $0x28] sm:$0xff] }
 0xc07   : > { %10613 = vmatpush1.bf16.msra.mxu1 %v10612_v6  ;;  %v6684_v6 = vld [vmem:[%s14155_s7 + $0x8] sm:$0xff] }
 0xc08   : > { %10614 = vmatprep.subr.bf16.mxu1 %v11127_v0  ;;  %v10710_v10 = vpack.c.bf16 %v6684_v6, %v6683_v4  ;;  %v7952_v4 = vld [vmem:[%s14158_s10 + $0x30] sm:$0xff]  ;;  %v7953_v6 = vld [vmem:[%s14158_s10 + $0x38] sm:$0xff] }
 0xc0b   : > { %10616 = vmatpush1.bf16.msra.mxu1 %v10615_v8 }
 0xc0c   : > { %10617 = vmatprep.subr.bf16.mxu1 %v11127_v0 }
 0xc0f   : > { %10619 = vmatpush1.bf16.msra.mxu1 %v10618_v13  ;;  %v6685_v13 = vld [vmem:[%s14155_s7 + $0x10] sm:$0xff] }
 0xc10   : > { %10620 = vmatprep.subr.bf16.mxu1 %v11127_v0 }
 0xc13   : > { %10622 = vmatpush1.bf16.msra.mxu1 %v10621_v16  ;;  %v10714_v16 = vpack.c.bf16 %v6686_v11, %v6685_v13  ;;  %v7956_v11 = vld [vmem:[%s14158_s10 + $0x50] sm:$0xff] }
 0xc14   : > { %10623 = vmatprep.subr.bf16.mxu1 %v11127_v0 }
 0xc17   : > { %10625 = vmatpush1.bf16.msra.mxu1 %v10624_v18  ;;  %v6689_v18 = vld [vmem:[%s14155_s7 + $0x30] sm:$0xff] }
 0xc18   : > { %10626 = vmatprep.subr.bf16.mxu1 %v11127_v0 }
 0xc1b   : > { %10628 = vmatpush1.bf16.msra.mxu1 %v10627_v24  ;;  %v10722_v24 = vpack.c.bf16 %v6690_v19, %v6689_v18 }
 0xc1e   : > { %6041 = vmatmul.mubr.f32.vlgmr.msra.gmra.mrb[28].mxu1 %v13157_v34 }
 0xc1f   : > { %9202 = vmatprep.mubr.msk.f32.mxu1 %vm2405_vm7, %v8829_v25  ;;  %v8861_v25 = vld [vmem:[%s14155_s7 + $0x78] sm:$0xff] }
 0xcf1   : > { %v6042_v54 = vpop.f32.mrb[28].mxu1 }
 0xcf2   : > { %v6044_v27 = vpop.f32.mrb[29].mxu1  ;;  %9200 = vmatprep.subr.msk.mxu1 %vm2412_vm8, %v6042_v54 }
 0xcf3   : > { %9201 = vmatpush3.msk.msra.mxu1 %vm2412_vm8, %v6042_v54  ;;  %v10738_v54 = vpack.c.bf16 %v8861_v25, %v8860_v21  ;;  %v8865_v27 = vld [vmem:[%s14155_s7 + $0x88] sm:$0xff] }
 0xcf4   : > { %9203 = vmatmul.mubr.msk.f32.vlgmr.msra.gmra.mrb[10].mxu1 %vm2405_vm7, %v8830_v26  ;;  %9205 = vmatprep.subr.msk.mxu1 %vm2412_vm8, %v13420_v61  ;;  %v8864_v26 = vld [vmem:[%s14155_s7 + $0x80] sm:$0xff] }
 0xcf5   : > { %9206 = vmatpush3.msk.msra.mxu1 %vm2412_vm8, %v13420_v61  ;;  %9207 = vmatprep.mubr.msk.f32.mxu1 %vm2405_vm7, %v8835_v51  ;;  %v10660_v61 = vpack.c.bf16 %v6317_v32, %v6316_v30  ;;  %v8874_v51 = vld [vmem:[%s14155_s7 + $0xc0] sm:$0xff]  ;;  %v10742_v56 = vpack.c.bf16 %v8865_v27, %v8864_v26  ;;  %v8866_v32 = vld [vmem:[%s14155_s7 + $0x90] sm:$0xff] }
 0xcf6   : > { %10656 = vmatprep.subr.bf16.mxu1 %v11127_v0  ;;  %v10746_v39 = vpack.c.bf16 %v8867_v47, %v8866_v32  ;;  %v7109_v27 = vld [vmem:[%s14156_s8 + $0x10] sm:$0xff]  ;;  %v7186_v32 = vld [vmem:[%s14156_s8 + $0x28] sm:$0xff] }
 0xcf7   : > { %v7261_v47 = vld [vmem:[%s14156_s8 + $0x30] sm:$0xff] }
 0xcfc   : > { %9208 = vmatmul.mubr.msk.f32.vlgmr.msra.gmra.mrb[10].mxu1 %vm2405_vm7, %v8836_v29  ;;  %v10758_v29 = vpack.c.bf16 %v8875_v15, %v8874_v51  ;;  %v7110_v51 = vld [vmem:[%s14156_s8 + $0x18] sm:$0xff] }
 0xcfd   : > { %10658 = vmatpush1.bf16.msra.mxu1 %v10657_v46  ;;  %8840 = vmatprep.mubr.msk.f32.mxu1 %vm2237_vm6, %v13155_v31  ;;  %v6324_v31 = vld [vmem:[#allocation2 + $0xd40] sm:$0xff]  ;;  %v6679_v46 = vpop.permute.xlu1 %6678 }
 0xcfe   : > { %10659 = vmatprep.subr.bf16.mxu1 %v11127_v0  ;;  %v10672_v41 = vpack.c.bf16 %v6325_v20, %v6324_v31  ;;  %v8869_v31 = vld [vmem:[%s14155_s7 + $0xa8] sm:$0xff]  ;;  %v8878_v20 = vld [vmem:[%s14155_s7 + $0xe0] sm:$0xff] }
 0xcff   : > { %v10750_v42 = vpack.c.bf16 %v8869_v31, %v8868_v62  ;;  %v7338_v62 = vld [vmem:[%s14156_s8 + $0x48] sm:$0xff]  ;;  %v7413_v31 = vld [vmem:[%s14156_s8 + $0x50] sm:$0xff] }
 0xd01   : > { %10661 = vmatpush1.bf16.msra.mxu1 %v10660_v61  ;;  %v6674_v61 = vpop.permute.xlu0 %6673 }
 0xd02   : > { %10662 = vmatprep.subr.bf16.mxu1 %v11127_v0 }
 0xd05   : > { %10664 = vmatpush1.bf16.msra.mxu1 %v10663_v36  ;;  %v8876_v36 = vld [vmem:[%s14155_s7 + $0xd0] sm:$0xff] }
 0xd06   : > { %10665 = vmatprep.subr.bf16.mxu1 %v11127_v0 }
 0xd09   : > { %10667 = vmatpush1.bf16.msra.mxu1 %v10666_v23 }
 0xd0a   : > { %10668 = vmatprep.subr.bf16.mxu1 %v11127_v0 }
 0xd0d   : > { %10670 = vmatpush1.bf16.msra.mxu1 %v10669_v40  ;;  %v10762_v40 = vpack.c.bf16 %v8877_v37, %v8876_v36  ;;  %v7262_v36 = vld [vmem:[%s14156_s8 + $0x38] sm:$0xff] }
 0xd0e   : > { %10671 = vmatprep.subr.bf16.mxu1 %v11127_v0  ;;  %v10784_v37 = vpack.c.bf16 %v7262_v36, %v7261_v47 }
 0xd11   : > { %10673 = vmatpush1.bf16.msra.mxu1 %v10672_v41  ;;  %v8879_v41 = vld [vmem:[%s14155_s7 + $0xe8] sm:$0xff] }
 0xd12   : > { %10674 = vmatprep.subr.bf16.mxu1 %v11127_v0  ;;  %v10766_v43 = vpack.c.bf16 %v8879_v41, %v8878_v20  ;;  %v7414_v20 = vld [vmem:[%s14156_s8 + $0x58] sm:$0xff] }
 0xd13   : > { %v10790_v41 = vpack.c.bf16 %v7414_v20, %v7413_v31 }
 0xd15   : > { %10676 = vmatpush1.bf16.msra.mxu1 %v10675_v22  ;;  %v8870_v22 = vld [vmem:[%s14155_s7 + $0xb0] sm:$0xff] }
 0xd16   : > { %10677 = vmatprep.subr.bf16.mxu1 %v11127_v0  ;;  %v10754_v50 = vpack.c.bf16 %v8871_v45, %v8870_v22  ;;  %v7490_v22 = vld [vmem:[%s14156_s8 + $0x68] sm:$0xff] }
 0xd19   : > { %10679 = vmatpush1.bf16.msra.mxu1 %v10678_v49  ;;  %v8881_v49 = vld [vmem:[%s14155_s7 + $0xf8] sm:$0xff] }
 0xd1a   : > { %10680 = vmatprep.subr.bf16.mxu1 %v11127_v0  ;;  %v10770_v52 = vpack.c.bf16 %v8881_v49, %v8880_v48  ;;  %v7565_v49 = vld [vmem:[%s14156_s8 + $0x70] sm:$0xff] }
 0xd1d   : > { %10682 = vmatpush1.bf16.msra.mxu1 %v10681_v57  ;;  %v7033_v57 = vld [vmem:[%s14156_s8] sm:$0xff] }
 0xd20   : > { %6397 = vmatmul.mubr.f32.vlgmr.msra.gmra.mrb[30].mxu1 %v13157_v34  ;;  %v10726_v34 = vpack.c.bf16 %v8855_v5, %v8854_v55  ;;  %v7946_v55 = vld [vmem:[%s14158_s10] sm:$0xff]  ;;  %v7947_v5 = vld [vmem:[%s14158_s10 + $0x8] sm:$0xff] }
 0xd21   : > { %9212 = vmatprep.mubr.msk.f32.mxu1 %vm2405_vm7, %v8841_v53  ;;  %v7034_v53 = vld [vmem:[%s14156_s8 + $0x8] sm:$0xff]  ;;  %v10811_v58 = vpack.c.bf16 %v7947_v5, %v7946_v55 }
 0xd22   : > { %10727 = vmatprep.subr.bf16.mxu0 %v10726_v34  ;;  %v10775_v44 = vpack.c.bf16 %v7034_v53, %v7033_v57  ;;  %v7641_v53 = vld [vmem:[%s14156_s8 + $0x80] sm:$0xff] }
 0xd23   : > { %10729 = vmatpush3.bf16.msra.mxu0 %v10726_v34  ;;  %v7948_v34 = vld [vmem:[%s14158_s10 + $0x10] sm:$0xff] }
 0xd24   : > { %10731 = vmatprep.subr.bf16.mxu0 %v10730_v60 }
 0xd27   : > { %10733 = vmatpush3.bf16.msra.mxu0 %v10730_v60  ;;  %v10814_v60 = vpack.c.bf16 %v7949_v59, %v7948_v34  ;;  %v7717_v34 = vld [vmem:[%s14156_s8 + $0x90] sm:$0xff] }
 0xd28   : > { %10735 = vmatprep.subr.bf16.mxu0 %v10734_v3 }
 0xd2b   : > { %10737 = vmatpush3.bf16.msra.mxu0 %v10734_v3  ;;  %v10817_v3 = vpack.c.bf16 %v7951_v63, %v7950_v28  ;;  %v7793_v28 = vld [vmem:[%s14156_s8 + $0xa0] sm:$0xff]  ;;  %v7794_v63 = vld [vmem:[%s14156_s8 + $0xa8] sm:$0xff] }
 0xd2c   : > { %10739 = vmatprep.subr.bf16.mxu0 %v10738_v54 }
 0xd2f   : > { %10741 = vmatpush3.bf16.msra.mxu0 %v10738_v54 }
 0xd30   : > { %10759 = vmatprep.subr.bf16.mxu0 %v10758_v29 }
 0xdf3   : > { %v6398_v33 = vpop.f32.mrb[30].mxu1 }
 0xdf4   : > { %v6400_v8 = vpop.f32.mrb[31].mxu1  ;;  %9210 = vmatprep.subr.msk.mxu1 %vm2412_vm8, %v6398_v33 }
 0xdf5   : > { %9211 = vmatpush3.msk.msra.mxu1 %vm2412_vm8, %v6398_v33  ;;  %v10820_v33 = vpack.c.bf16 %v7953_v6, %v7952_v4  ;;  %v7955_v8 = vld [vmem:[%s14158_s10 + $0x48] sm:$0xff]  ;;  %v7869_v6 = vld [vmem:[%s14156_s8 + $0xb0] sm:$0xff] }
 0xdf6   : > { %9213 = vmatmul.mubr.msk.f32.vlgmr.msra.gmra.mrb[10].mxu1 %vm2405_vm7, %v8842_v7  ;;  %9215 = vmatprep.subr.msk.mxu1 %vm2412_vm8, %v13422_v2  ;;  %v7954_v7 = vld [vmem:[%s14158_s10 + $0x40] sm:$0xff] }
 0xdf7   : > { %9216 = vmatpush3.msk.msra.mxu1 %vm2412_vm8, %v13422_v2  ;;  %9217 = vmatprep.mubr.msk.f32.mxu1 %vm2405_vm7, %v8847_v9  ;;  %v6687_v2 = vld [vmem:[%s14155_s7 + $0x20] sm:$0xff]  ;;  %v10823_v9 = vpack.c.bf16 %v7955_v8, %v7954_v7 }
 0xdf8   : > { %10711 = vmatprep.subr.bf16.mxu1 %v10710_v10  ;;  %v10718_v17 = vpack.c.bf16 %v6688_v14, %v6687_v2 }
 0xdfe   : > { %9218 = vmatmul.mubr.msk.f32.vlgmr.msra.gmra.mrb[10].mxu1 %vm2405_vm7, %v8848_v12  ;;  %v7957_v12 = vld [vmem:[%s14158_s10 + $0x58] sm:$0xff] }
 0xdff   : > { %10713 = vmatpush3.bf16.msra.mxu1 %v10710_v10  ;;  %v10826_v18 = vpack.c.bf16 %v7957_v12, %v7956_v11  ;;  %v7960_v12 = vld [vmem:[%s14158_s10 + $0x70] sm:$0xff] }
 0xe00   : > { %10715 = vmatprep.subr.bf16.mxu1 %v10714_v16 }
 0xe03   : > { %10717 = vmatpush3.bf16.msra.mxu1 %v10714_v16 }
 0xe04   : > { %10719 = vmatprep.subr.bf16.mxu1 %v10718_v17 }
 0xe07   : > { %10721 = vmatpush3.bf16.msra.mxu1 %v10718_v17 }
 0xe08   : > { %10723 = vmatprep.subr.bf16.mxu1 %v10722_v24 }
 0xe0b   : > { %10725 = vmatpush3.bf16.msra.mxu1 %v10722_v24 }
 0xe0c   : > { %10743 = vmatprep.subr.bf16.mxu1 %v10742_v56 }
 0xed1   : > { %v9219_v30 = vpop.f32.mrb[10].mxu1 }
 0xed2   : > { %v6658_v35 = vpop.f32.mrb[11].mxu1  ;;  %v6682_v23 = vadd.f32 %v9219_v30, %v6679_v46  ;;  %v7185_v30 = vld [vmem:[%s14156_s8 + $0x20] sm:$0xff] }
 0xed3   : > { %v6681_v38 = vadd.f32 %v6674_v61, %v6658_v35  ;;  %v10781_v61 = vpack.c.bf16 %v7186_v32, %v7185_v30 }
 0xed5   : > { %9236 = vmatprep.mubr.msk.f32.mxu1 %vm920_vm5, %v6681_v38  ;;  %9255 = vmatprep.mubr.msk.f32.mxu0 %vm920_vm5, %v6681_v38 }
 0xed6   : > { %9237 = vmatmul.mubr.msk.f32.vlgmr.msra.gmra.mrb[32].mxu1 %vm920_vm5, %v6682_v23  ;;  %9256 = vmatmul.mubr.msk.f32.vlgmr.msra.gmra.mrb[34].mxu0 %vm920_vm5, %v6682_v23 }
 0xed7   : > { %10745 = vmatpush3.bf16.msra.mxu1 %v10742_v56  ;;  %10761 = vmatpush3.bf16.msra.mxu0 %v10758_v29  ;;  %v10778_v29 = vpack.c.bf16 %v7110_v51, %v7109_v27  ;;  %v8041_v27 = vld [vmem:[%s14160_s12 + $0x20] sm:$0xff]  ;;  %v8042_v51 = vld [vmem:[%s14160_s12 + $0x28] sm:$0xff] }
 0xed8   : > { %9274 = vmatprep.mubr.msk.f32.mxu1 %vm920_vm5, %v6681_v38  ;;  %9293 = vmatprep.mubr.msk.f32.mxu0 %vm920_vm5, %v6681_v38 }
 0xed9   : > { %10747 = vmatprep.subr.bf16.mxu1 %v10746_v39  ;;  %10763 = vmatprep.subr.bf16.mxu0 %v10762_v40 }
 0xedb   : > { %10749 = vmatpush3.bf16.msra.mxu1 %v10746_v39  ;;  %10765 = vmatpush3.bf16.msra.mxu0 %v10762_v40 }
 0xedc   : > { %10751 = vmatprep.subr.bf16.mxu1 %v10750_v42  ;;  %10767 = vmatprep.subr.bf16.mxu0 %v10766_v43 }
 0xedf   : > { %10753 = vmatpush3.bf16.msra.mxu1 %v10750_v42  ;;  %10769 = vmatpush3.bf16.msra.mxu0 %v10766_v43  ;;  %v7489_v43 = vld [vmem:[%s14156_s8 + $0x60] sm:$0xff] }
 0xee0   : > { %10755 = vmatprep.subr.bf16.mxu1 %v10754_v50  ;;  %10771 = vmatprep.subr.bf16.mxu0 %v10770_v52  ;;  %v10793_v45 = vpack.c.bf16 %v7490_v22, %v7489_v43 }
 0xee3   : > { %10757 = vmatpush3.bf16.msra.mxu1 %v10754_v50  ;;  %10773 = vmatpush3.bf16.msra.mxu0 %v10770_v52  ;;  %v7566_v50 = vld [vmem:[%s14156_s8 + $0x78] sm:$0xff] }
 0xee4   : > { %10774 = vmatprep.subr.bf16.mxu1 %v11127_v0  ;;  %10810 = vmatprep.subr.bf16.mxu0 %v11127_v0  ;;  %v10796_v52 = vpack.c.bf16 %v7566_v50, %v7565_v49 }
 0xee6   : > { %9275 = vmatmul.mubr.msk.f32.vlgmr.msra.gmra.mrb[34].mxu1 %vm920_vm5, %v6682_v23  ;;  %9294 = vmatmul.mubr.msk.f32.vlgmr.msra.gmra.mrb[36].mxu0 %vm920_vm5, %v6682_v23  ;;  %v7337_v23 = vld [vmem:[%s14156_s8 + $0x40] sm:$0xff] }
 0xee7   : > { %9300 = vmatprep.mubr.msk.f32.mxu1 %vm11129_vm0, %v11128_v1  ;;  %9410 = vmatprep.mubr.msk.f32.mxu0 %vm11129_vm0, %v11128_v1  ;;  %v10787_v39 = vpack.c.bf16 %v7338_v62, %v7337_v23 }
 0xee8   : > { %10776 = vmatpush3.bf16.msra.mxu1 %v10775_v44  ;;  %10812 = vmatpush3.bf16.msra.mxu0 %v10811_v58  ;;  %v7642_v44 = vld [vmem:[%s14156_s8 + $0x88] sm:$0xff]  ;;  %v7718_v58 = vld [vmem:[%s14156_s8 + $0x98] sm:$0xff] }
 0xee9   : > { %10777 = vmatprep.subr.bf16.mxu1 %v11127_v0  ;;  %10813 = vmatprep.subr.bf16.mxu0 %v11127_v0  ;;  %v10799_v55 = vpack.c.bf16 %v7642_v44, %v7641_v53  ;;  %v10802_v59 = vpack.c.bf16 %v7718_v58, %v7717_v34 }
 0xeec   : > { %10815 = vmatpush3.bf16.msra.mxu0 %v10814_v60 }
 0xeed   : > { %10816 = vmatprep.subr.bf16.mxu0 %v11127_v0 }
 0xef0   : > { %10818 = vmatpush3.bf16.msra.mxu0 %v10817_v3  ;;  %v10805_v3 = vpack.c.bf16 %v7794_v63, %v7793_v28 }
 0xef1   : > { %10819 = vmatprep.subr.bf16.mxu0 %v11127_v0 }
 0xef4   : > { %10821 = vmatpush3.bf16.msra.mxu0 %v10820_v33  ;;  %v7870_v33 = vld [vmem:[%s14156_s8 + $0xb8] sm:$0xff] }
 0xef5   : > { %10822 = vmatprep.subr.bf16.mxu0 %v11127_v0  ;;  %v10808_v7 = vpack.c.bf16 %v7870_v33, %v7869_v6 }
 0xef8   : > { %10824 = vmatpush3.bf16.msra.mxu0 %v10823_v9 }
 0xef9   : > { %10825 = vmatprep.subr.bf16.mxu0 %v11127_v0 }
 0xefc   : > { %10827 = vmatpush3.bf16.msra.mxu0 %v10826_v18 }
 0xefd   : > { %10828 = vmatprep.subr.bf16.mxu0 %v11127_v0 }
 0xfa9   : > { %v9238_v10 = vpop.f32.mrb[32].mxu1  ;;  %v9257_v13 = vpop.f32.mrb[34].mxu0 }
 0xfaa   : > { %v6857_v16 = vmax.f32 %v9238_v10, %v9257_v13  ;;  %v6763_v2 = vpop.f32.mrb[33].mxu1  ;;  %v6847_v14 = vpop.f32.mrb[35].mxu0  ;;  %v7958_v10 = vld [vmem:[%s14158_s10 + $0x60] sm:$0xff]  ;;  %v7959_v13 = vld [vmem:[%s14158_s10 + $0x68] sm:$0xff] }
 0xfab   : > { %v6856_v17 = vmax.f32 %v6763_v2, %v6847_v14  ;;  %v10829_v11 = vpack.c.bf16 %v7959_v13, %v7958_v10  ;;  %v8037_v2 = vld [vmem:[%s14160_s12] sm:$0xff]  ;;  %v8038_v14 = vld [vmem:[%s14160_s12 + $0x8] sm:$0xff] }
 0xfad   : > { %10830 = vmatpush3.bf16.msra.mxu0 %v10829_v11 }
 0xfae   : > { %9408 = vmatprep.subr.mxu0 %v11128_v1 }
 0xfb1   : > { %9409 = vmatpush3.msra.mxu0 %v7960_v12 }
 0xfb2   : > { %10831 = vmatprep.subr.bf16.mxu0 %v11127_v0 }
 0xfb9   : > { %v9276_v19 = vpop.f32.mrb[34].mxu1  ;;  %v13900_v21 = vpop.f32.mrb[36].mxu0 }
 0xfba   : > { %v13902_v24 = vmax.f32 %v6857_v16, %v9276_v19  ;;  %v6933_v25 = vpop.f32.mrb[35].mxu1  ;;  %v7019_v54 = vpop.f32.mrb[37].mxu0  ;;  %v7032_v16 = vld [vmem:[%s14157_s9] sm:$0x1] }
 0xfbb   : > { %v6942_v26 = vmax.f32 %v6856_v17, %v6933_v25  ;;  %v8039_v25 = vld [vmem:[%s14160_s12 + $0x10] sm:$0xff] }
 0xfbc   : > { %v7029_v56 = vmax.f32 %v13902_v24, %v13900_v21  ;;  %v10832_v21 = vpack.c.bf16 %v8038_v14, %v8037_v2 }
 0xfbd   : > { %v7028_v15 = vmax.f32 %v6942_v26, %v7019_v54  ;;  %v8040_v54 = vld [vmem:[%s14160_s12 + $0x18] sm:$0xff] }
 0xfbe   : > { %v7031_v60 = vmax.f32 %v7029_v56, 0.0  ;;  %v10835_v26 = vpack.c.bf16 %v8040_v54, %v8039_v25  ;;  %v10838_v56 = vpack.c.bf16 %v8042_v51, %v8041_v27 }
 0xfbf   : > { %v7030_v46 = vmax.f32 %v7028_v15, 0.0  ;;  %v8044_v15 = vld [vmem:[%s14160_s12 + $0x38] sm:$0xf] }
 0xfc0   : > { %v7719_v4 = vrot.slane %v7031_v60, 1  ;;  %v7795_v8 = vrot.slane %v7031_v60, 2  ;;  %v7871_v9 = vrot.slane %v7031_v60, 3 }
 0xfc1   : > { %9301 = vmatmul.mubr.msk.f32.vlgmr.msra.gmra.mrb[36].mxu1 %vm2237_vm6, %v7030_v46  ;;  %v7111_v35 = vrot.slane %v7030_v46, 1  ;;  %v7187_v38 = vrot.slane %v7030_v46, 2  ;;  %v7263_v40 = vrot.slane %v7030_v46, 3  ;;  %v7339_v42 = vrot.slane %v7030_v46, 4 }
 0xfc2   : > { %10779 = vmatpush3.bf16.msra.mxu1 %v10778_v29  ;;  %9307 = vmatprep.mubr.msk.f32.mxu1 %vm11129_vm0, %v11128_v1  ;;  %v7415_v48 = vrot.slane %v7030_v46, 5  ;;  %v7491_v57 = vrot.slane %v7030_v46, 6  ;;  %v7567_v5 = vrot.slane %v7030_v46, 7 }
 0xfc3   : > { %10780 = vmatprep.subr.bf16.mxu1 %v11127_v0 }
 0xfc9   : > { %9308 = vmatmul.mubr.msk.f32.vlgmr.msra.gmra.mrb[36].mxu1 %vm2237_vm6, %v7111_v35 }
 0xfca   : > { %10782 = vmatpush3.bf16.msra.mxu1 %v10781_v61  ;;  %9314 = vmatprep.mubr.msk.f32.mxu1 %vm11129_vm0, %v11128_v1 }
 0xfcb   : > { %10783 = vmatprep.subr.bf16.mxu1 %v11127_v0 }
 0xfd1   : > { %9315 = vmatmul.mubr.msk.f32.vlgmr.msra.gmra.mrb[36].mxu1 %vm2237_vm6, %v7187_v38 }
 0xfd2   : > { %10785 = vmatpush3.bf16.msra.mxu1 %v10784_v37  ;;  %9321 = vmatprep.mubr.msk.f32.mxu1 %vm11129_vm0, %v11128_v1 }
 0xfd3   : > { %10786 = vmatprep.subr.bf16.mxu1 %v11127_v0 }
 0xfd9   : > { %9322 = vmatmul.mubr.msk.f32.vlgmr.msra.gmra.mrb[36].mxu1 %vm2237_vm6, %v7263_v40 }
 0xfda   : > { %10788 = vmatpush3.bf16.msra.mxu1 %v10787_v39  ;;  %9328 = vmatprep.mubr.msk.f32.mxu1 %vm11129_vm0, %v11128_v1 }
 0xfdb   : > { %10789 = vmatprep.subr.bf16.mxu1 %v11127_v0 }
 0xfe1   : > { %9329 = vmatmul.mubr.msk.f32.vlgmr.msra.gmra.mrb[36].mxu1 %vm2237_vm6, %v7339_v42 }
 0xfe2   : > { %10791 = vmatpush3.bf16.msra.mxu1 %v10790_v41  ;;  %9335 = vmatprep.mubr.msk.f32.mxu1 %vm11129_vm0, %v11128_v1 }
 0xfe3   : > { %10792 = vmatprep.subr.bf16.mxu1 %v11127_v0 }
 0xfe9   : > { %9336 = vmatmul.mubr.msk.f32.vlgmr.msra.gmra.mrb[36].mxu1 %vm2237_vm6, %v7415_v48 }
 0xfea   : > { %10794 = vmatpush3.bf16.msra.mxu1 %v10793_v45  ;;  %9342 = vmatprep.mubr.msk.f32.mxu1 %vm11129_vm0, %v11128_v1 }
 0xfeb   : > { %10795 = vmatprep.subr.bf16.mxu1 %v11127_v0 }
 0xff1   : > { %9343 = vmatmul.mubr.msk.f32.vlgmr.msra.gmra.mrb[36].mxu1 %vm2237_vm6, %v7491_v57 }
 0xff2   : > { %10797 = vmatpush3.bf16.msra.mxu1 %v10796_v52  ;;  %9349 = vmatprep.mubr.msk.f32.mxu1 %vm11129_vm0, %v11128_v1 }
 0xff3   : > { %10798 = vmatprep.subr.bf16.mxu1 %v11127_v0 }
 0xff9   : > { %9350 = vmatmul.mubr.msk.f32.vlgmr.msra.gmra.mrb[36].mxu1 %vm2237_vm6, %v7567_v5 }
 0xffa   : > { %10800 = vmatpush3.bf16.msra.mxu1 %v10799_v55  ;;  %9356 = vmatprep.mubr.msk.f32.mxu1 %vm11129_vm0, %v11128_v1 }
 0xffb   : > { %10801 = vmatprep.subr.bf16.mxu1 %v11127_v0 }
0x1001   : > { %9357 = vmatmul.mubr.msk.f32.vlgmr.msra.gmra.mrb[36].mxu1 %vm2237_vm6, %v7031_v60 }
0x1002   : > { %10803 = vmatpush3.bf16.msra.mxu1 %v10802_v59  ;;  %9363 = vmatprep.mubr.msk.f32.mxu1 %vm11129_vm0, %v11128_v1 }
0x1003   : > { %10804 = vmatprep.subr.bf16.mxu1 %v11127_v0 }
0x1009   : > { %9364 = vmatmul.mubr.msk.f32.vlgmr.msra.gmra.mrb[36].mxu1 %vm2237_vm6, %v7719_v4 }
0x100a   : > { %10806 = vmatpush3.bf16.msra.mxu1 %v10805_v3  ;;  %9370 = vmatprep.mubr.msk.f32.mxu1 %vm11129_vm0, %v11128_v1 }
0x100b   : > { %10807 = vmatprep.subr.bf16.mxu1 %v11127_v0 }
0x1011   : > { %9371 = vmatmul.mubr.msk.f32.vlgmr.msra.gmra.mrb[36].mxu1 %vm2237_vm6, %v7795_v8 }
0x1012   : > { %10809 = vmatpush3.bf16.msra.mxu1 %v10808_v7  ;;  %9377 = vmatprep.mubr.msk.f32.mxu1 %vm11129_vm0, %v11128_v1 }
0x1019   : > { %9378 = vmatmul.mubr.msk.f32.vlgmr.msra.gmra.mrb[36].mxu1 %vm2237_vm6, %v7871_v9 }
0x10ec   : > { %v7940_v17 = vpop.f32.mrb[36].mxu1 }
0x10ed   : > { %v10844_v18 = vadd.f32 %v7940_v17, %v7032_v16  ;;  %v9379_v19 = vpop.f32.mrb[37].mxu1 }
0x10ef   : > { %v7945_v24 = vmax.f32 %v10844_v18, 0.0 }
0x10f1   : > { %9411 = vmatmul.mubr.msk.f32.vlgmr.msra.gmra.mrb[38].mxu0 %vm7962_vm9, %v7945_v24 }
0x10f2   : > { %10833 = vmatpush3.bf16.msra.mxu0 %v10832_v21  ;;  %9429 = vmatprep.mubr.msk.f32.mxu0 %vm11129_vm0, %v11128_v1  ;;  %v8043_v1 = vld [vmem:[%s14160_s12 + $0x30] sm:$0xff] }
0x10f3   : > { %10834 = vmatprep.subr.bf16.mxu0 %v11127_v0  ;;  %v10841_v29 = vpack.c.bf16 %v8044_v15, %v8043_v1 }
0x10f6   : > { %10836 = vmatpush3.bf16.msra.mxu0 %v10835_v26 }
0x10f7   : > { %10837 = vmatprep.subr.bf16.mxu0 %v11127_v0 }
0x10fa   : > { %10839 = vmatpush3.bf16.msra.mxu0 %v10838_v56 }
0x10fb   : > { %10840 = vmatprep.subr.bf16.mxu0 %v11127_v0  ;;  %v7961_v0 = vld [vmem:[%s14159_s11] sm:$0x1] }
0x10fe   : > { %10843 = vmatpush3.bf16.msk.msra.mxu0 %vm10842_vm11, %v10841_v29 }
0x11c4   : > { %v8032_v46 = vpop.f32.mrb[38].mxu0 }
0x11c5   : > { %v8033_v30 = vadd.f32 %v8032_v46, %v7961_v0  ;;  %v9412_v32 = vpop.f32.mrb[39].mxu0 }
0x11c7   : > { %v8036_v61 = vmax.f32 %v8033_v30, 0.0  ;;  %8127 = vst.msk [vmem:[%s511_s24] sm:$0x1] %vm8126_vm12, %v8033_v30 }
0x11c9   : > { %9430 = vmatmul.mubr.msk.f32.vlgmr.msra.gmra.mrb[40].mxu0 %vm8046_vm13, %v8036_v61 }
0x11ca   : > { %11037 = shalt.err (!%p11034_p7)
}
0x11cb   : > { %s11038_s24 = scalar_lea.hbm %s14076_s18, 16  ;;  %s11042_s30 = scalar_lea.hbm %s14163_s15, 32 }
0x11cc   : > { %p11039_p8 = scmp.ne.s32.totalorder %s14076_s18, %s11038_s24  ;;  %p11043_p1 = scmp.lt.u32.totalorder %s14076_s18, %s14163_s15 }
0x11cd   : > { %p11044_p0 = scmp.lt.u32.totalorder %s11042_s30, %s11038_s24  ;;  %p11046_p6 = scmp.lt.u32.totalorder %s11038_s24, %s14076_s18 }
0x11ce   : > { %p11040_p11 = pnand %p11039_p8, %p14189_p9 }
0x11cf   : > { %p11045_p5 = por %p11044_p0, %p11043_p1 }
0x11d0   : > { %p11041_p13 = pneg %p11040_p11 }
0x11d1   : > { %p11047_p10 = por %p11046_p6, %p11045_p5 }
0x11d3   : > { %p11048_p12 = pnand %p11047_p10, %p11041_p13 }
0x11d5   : > { %11051 = shalt.err (!%p11048_p12)
}
0x11d6   : > { %10937 = dma.vmem_to_hbm [thread:$0]  (%p14189_p9), %s8159_s17, 16, %s14076_s18, %s8133_s27   ;;  %v8045_v35 = vld [vmem:[%s14161_s13] sm:$0x1]  ;;  %vm8124_vm14 = vcmask 73728  }
0x11d7   : > { %s505_s0 = scalar_lea.vmem [#allocation5], %s14064_s23  ;;  %s14190_s24 = sshll.u32 %s11235_s22, 4 }
0x11d8   : > { %s8145_s25 = sshll.u32 %s505_s0, 4  ;;  %s14105_s16 = scalar_lea.hbm %s14162_s14, %s14190_s24  ;;  %s14107_s25 = int_to_ptr.vmem [resolvable:$true] %s8145_s25 }
0x11d9   : > { %s8129_s18 = scalar_lea.sflag [#allocation4], %s14064_s23  ;;  %s11052_s17 = scalar_lea.vmem %s14107_s25, 16 }
0x11da   : > { %p11053_p2 = scmp.ne.s32.totalorder %s14107_s25, %s11052_s17  ;;  %s11133_s27 = smov [#allocation5]  }
0x11db   : > { %s11056_s29 = sshll.u32 %s11133_s27, 4  ;;  %s11057_s29 = int_to_ptr.vmem [resolvable:$false] %s11056_s29 }
0x11dc   : > { %p11054_p3 = pnand %p11053_p2, %p14189_p9  ;;  %s11058_s22 = scalar_lea.vmem %s11057_s29, 32 }
0x11dd   : > { %p11059_p7 = scmp.lt.s32.totalorder %s14107_s25, %s11057_s29  ;;  %p11060_p8 = scmp.lt.s32.totalorder %s11058_s22, %s11052_s17 }
0x11de   : > { %p11055_p4 = pneg %p11054_p3 }
0x11df   : > { %p11061_p11 = por %p11060_p8, %p11059_p7 }
0x11e1   : > { %p11062_p13 = pnand %p11061_p11, %p11055_p4 }
0x129c   : > { %v8120_v47 = vpop.f32.mrb[40].mxu0 }
0x129d   : > { %v8121_v36 = vadd.f32 %v8120_v47, %v8045_v35  ;;  %v9431_v37 = vpop.f32.mrb[41].mxu0 }
0x129f   : > { %8125 = vst.msk [vmem:[%s505_s0] sm:$0x1] %vm8124_vm14, %v8121_v36 }
0x12a0   : > { %11065 = shalt.err (!%p11062_p13)
}
0x12a1   : > { %s11066_s23 = scalar_lea.hbm %s14105_s16, 16  ;;  %s11070_s24 = scalar_lea.hbm %s14162_s14, 32 }
0x12a2   : > { %p11067_p1 = scmp.ne.s32.totalorder %s14105_s16, %s11066_s23  ;;  %p11071_p6 = scmp.lt.u32.totalorder %s14105_s16, %s14162_s14 }
0x12a3   : > { %p11072_p10 = scmp.lt.u32.totalorder %s11070_s24, %s11066_s23  ;;  %p11074_p2 = scmp.lt.u32.totalorder %s11066_s23, %s14105_s16 }
0x12a4   : > { %p11068_p0 = pnand %p11067_p1, %p14189_p9 }
0x12a5   : > { %p11073_p12 = por %p11072_p10, %p11071_p6 }
0x12a6   : > { %p11069_p5 = pneg %p11068_p0 }
0x12a7   : > { %p11075_p3 = por %p11074_p2, %p11073_p12 }
0x12a9   : > { %p11076_p4 = pnand %p11075_p3, %p11069_p5 }
0x12ab   : > { %11079 = shalt.err (!%p11076_p4)
}
0x12ac   : > { %10936 = dma.vmem_to_hbm [thread:$0]  (%p14189_p9), %s14107_s25, 16, %s14105_s16, %s8129_s18  }
0x12ad PF: > { %s14191_s17 = sld [smem:[#allocation11_spill]]  ;;  %s14192_s27 = sld [smem:[#allocation15_spill]] }
0x12ae   : > { %p10953_p7 = scmp.ge.s32.totalorder %s11122_s21, 2 }
0x12b3   : > { %s8170_s29 = sand.u32 1, %s14191_s17   ;;  %p14193_p8 = scmp.ne.s32.totalorder %s14192_s27, 0 }
0x12b4   : > { %s8171_s22 = scalar_lea.sflag [#allocation4], %s8170_s29 }
0x12b5   : > { %p10945_p11 = pnand %p10953_p7, %p14193_p8 }
0x12b7   : > { %11101 = dma.done.wait (!%p10945_p11), %s8171_s22, 16  }
0x12b8   : > { %11103 = vsyncadd (!%p10945_p11), %s8171_s22, 4294967280  ;;  %s8179_s23 = scalar_lea.sflag [#allocation7], %s8170_s29 }
0x12b9   : > { %11105 = dma.done.wait (!%p10945_p11), %s8179_s23, 16  }
0x12ba   : > { %11107 = vsyncadd (!%p10945_p11), %s8179_s23, 4294967280  ;;  %s14194_s21 = sld [smem:[#allocation13_spill]]  ;;  %s14195_s28 = sld [smem:[#allocation12_spill]] }
0x12bb   : > { %s14196_s20 = sld [smem:[#allocation14_spill]]  ;;  %s14197_s18 = smov %s11114_s19 }
0x12c0   : > { %p30_p9 = scmp.ge.s32.totalorder %s14194_s21, 4   ;;  %s14198_s19 = smov %s14195_s28 }
0x12c2   :  { %32 = sbr.rel (!%p30_p9) target bundleno = 8 (0x8), region = 187 }
0x12c9   :  { %8183 = vsyncpa [#allocation3], 1 }
0x12ca   :  { %8185 = vsyncpa [#allocation3 + $0x1], 1 }
0x12cb   :  { %8186 = vsyncpa [#allocation4], 1 }
0x12cc   :  { %8188 = vsyncpa [#allocation4 + $0x1], 1 }
0x12cd   :  { %8189 = vsyncpa [#allocation7], 1 }
0x12ce   :  { %8191 = vsyncpa [#allocation7 + $0x1], 1 }

</bundles_post_ra>
